<compile_context>
chip_gen: v7x
topology: tpu7x:2x2x1
jax: 0.10.0
libtpu: 0.0.40
codegen_flags: <defaults>
</compile_context>

<pallas_src>
import jax
import jax.numpy as jnp
from jax.experimental import pallas as pl
from jax.experimental.pallas import tpu as pltpu

IN_DIM = 3 * 32 * 32   # 3072
H1 = 1024
H2 = 512
OUT = 10


def mlp_kernel(x_ref, w1_ref, b1_ref, w2_ref, b2_ref, w3_ref, b3_ref, o_ref):
    # Layer 1: bf16 x bf16 matmul, f32 accumulate, bias + ReLU.
    x = x_ref[...].astype(jnp.bfloat16)
    h1 = jnp.dot(x, w1_ref[...], preferred_element_type=jnp.float32)
    h1 = jnp.maximum(h1 + b1_ref[...], 0.0)

    # Layer 2.
    h2 = jnp.dot(h1.astype(jnp.bfloat16), w2_ref[...],
                 preferred_element_type=jnp.float32)
    h2 = jnp.maximum(h2 + b2_ref[...], 0.0)

    # Output layer (lane-sparse OUT=10 kept as the full last dim).
    out = jnp.dot(h2.astype(jnp.bfloat16), w3_ref[...],
                  preferred_element_type=jnp.float32) + b3_ref[...]
    o_ref[...] = out.astype(o_ref.dtype)


@jax.jit
def o2u_forward(x, w1, b1, w2, b2, w3, b3):
    """x: (B, 3, 32, 32) f32.  w1/w2/w3: bf16 (in, out).  b1/b2/b3: f32 (1, out)."""
    B = x.shape[0]
    # Flatten like torch's view(-1, 3*32*32); NO dtype casts in the hot path.
    x2 = x.reshape(B, IN_DIM)

    flops = 2 * B * (IN_DIM * H1 + H1 * H2 + H2 * OUT)
    bytes_accessed = (
        B * IN_DIM * 4                                   # x (f32)
        + (IN_DIM * H1 + H1 * H2 + H2 * OUT) * 2         # weights (bf16)
        + (H1 + H2 + OUT) * 4                            # biases (f32)
        + B * OUT * 4                                    # output (f32)
    )

    out = pl.pallas_call(
        mlp_kernel,
        out_shape=jax.ShapeDtypeStruct((B, OUT), jnp.float32),
        grid=(1,),
        in_specs=[
            pl.BlockSpec((B, IN_DIM), lambda i: (0, 0)),   # x (f32, tiny)
            pl.BlockSpec((IN_DIM, H1), lambda i: (0, 0)),  # w1 (bf16, 6 MiB)
            pl.BlockSpec((1, H1), lambda i: (0, 0)),       # b1
            pl.BlockSpec((H1, H2), lambda i: (0, 0)),      # w2 (bf16, 1 MiB)
            pl.BlockSpec((1, H2), lambda i: (0, 0)),       # b2
            pl.BlockSpec((H2, OUT), lambda i: (0, 0)),     # w3 (bf16, ~10 KiB)
            pl.BlockSpec((1, OUT), lambda i: (0, 0)),      # b3
        ],
        out_specs=pl.BlockSpec((B, OUT), lambda i: (0, 0)),
        compiler_params=pltpu.CompilerParams(
            dimension_semantics=("arbitrary",),
            vmem_limit_bytes=32 * 1024 * 1024,             # fits v5e/v6e/v7x
        ),
        cost_estimate=pl.CostEstimate(
            flops=flops, transcendentals=0, bytes_accessed=bytes_accessed),
    )(x2, w1, b1, w2, b2, w3, b3)
    return out


def init_params(key):
    """Deterministic init mimicking nn.Linear's uniform(-1/sqrt(fan_in), +...).

    Weights are cast to bf16 HERE, once, outside the hot path -- they live in
    HBM as bf16 so every forward call only moves ~3.7 MiB of weight bytes.
    """
    def linear(k, fan_in, fan_out):
        k_w, k_b = jax.random.split(k)
        bound = 1.0 / jnp.sqrt(fan_in)
        w = jax.random.uniform(k_w, (fan_in, fan_out), jnp.float32, -bound, bound)
        b = jax.random.uniform(k_b, (1, fan_out), jnp.float32, -bound, bound)
        return w.astype(jnp.bfloat16), b     # weight bf16, bias f32

    k1, k2, k3 = jax.random.split(key, 3)
    w1, b1 = linear(k1, IN_DIM, H1)
    w2, b2 = linear(k2, H1, H2)
    w3, b3 = linear(k3, H2, OUT)
    return w1, b1, w2, b2, w3, b3


def reference_forward(x, w1, b1, w2, b2, w3, b3):
    """Pure-JAX reference using the same bf16-weight / f32-accumulate recipe."""
    x2 = x.reshape(x.shape[0], IN_DIM).astype(jnp.bfloat16)
    h1 = jnp.maximum(
        jnp.dot(x2, w1, preferred_element_type=jnp.float32) + b1, 0.0)
    h2 = jnp.maximum(
        jnp.dot(h1.astype(jnp.bfloat16), w2,
                preferred_element_type=jnp.float32) + b2, 0.0)
    return (jnp.dot(h2.astype(jnp.bfloat16), w3,
                    preferred_element_type=jnp.float32) + b3)


if __name__ == "__main__":
    key = jax.random.PRNGKey(0)
    k_x, k_p = jax.random.split(key)

    # Small batch; spatial dims are fixed by the module (3x32x32).
    x = jax.random.normal(k_x, (2, 3, 32, 32), jnp.float32)
    params = init_params(k_p)

    out = o2u_forward(x, *params)
    jax.block_until_ready(out)

    ref = reference_forward(x, *params)
    assert out.shape == (2, OUT), out.shape
    # Same bf16 recipe in kernel and reference; tolerance covers MXU vs XLA
    # accumulation-order differences.
    assert jnp.allclose(out, ref, atol=2e-2, rtol=2e-2), "mismatch vs reference"

    print("KERNEL_OK")
</pallas_src>

<mosaic_0001>
module attributes {stable_mosaic.version = 11 : i64} {
  func.func @mlp_kernel(%arg0: i32, %arg1: memref<2x3072xf32, #tpu.memory_space<vmem>>, %arg2: memref<3072x1024xbf16, #tpu.memory_space<vmem>>, %arg3: memref<1x1024xf32, #tpu.memory_space<vmem>>, %arg4: memref<1024x512xbf16, #tpu.memory_space<vmem>>, %arg5: memref<1x512xf32, #tpu.memory_space<vmem>>, %arg6: memref<512x10xbf16, #tpu.memory_space<vmem>>, %arg7: memref<1x10xf32, #tpu.memory_space<vmem>>, %arg8: memref<2x10xf32, #tpu.memory_space<vmem>>) attributes {dimension_semantics = [#tpu.dimension_semantics<arbitrary>], iteration_bounds = array<i64: 1>, scalar_prefetch = 0 : i64, scratch_operands = 0 : i64, tpu.core_type = #tpu.core_type<tc>, window_params = [{pipeline_mode = #tpu.pipeline_mode<synchronous>, transform_indices = @transform_0, window_bounds = array<i64: 2, 3072>}, {pipeline_mode = #tpu.pipeline_mode<synchronous>, transform_indices = @transform_1, window_bounds = array<i64: 3072, 1024>}, {pipeline_mode = #tpu.pipeline_mode<synchronous>, transform_indices = @transform_2, window_bounds = array<i64: 1, 1024>}, {pipeline_mode = #tpu.pipeline_mode<synchronous>, transform_indices = @transform_3, window_bounds = array<i64: 1024, 512>}, {pipeline_mode = #tpu.pipeline_mode<synchronous>, transform_indices = @transform_4, window_bounds = array<i64: 1, 512>}, {pipeline_mode = #tpu.pipeline_mode<synchronous>, transform_indices = @transform_5, window_bounds = array<i64: 512, 10>}, {pipeline_mode = #tpu.pipeline_mode<synchronous>, transform_indices = @transform_6, window_bounds = array<i64: 1, 10>}, {pipeline_mode = #tpu.pipeline_mode<synchronous>, transform_indices = @transform_7, window_bounds = array<i64: 2, 10>}]} {
    %c0 = arith.constant 0 : index
    %c0_0 = arith.constant 0 : index
    %0 = vector.load %arg1[%c0, %c0_0] : memref<2x3072xf32, #tpu.memory_space<vmem>>, vector<2x3072xf32>
    %1 = arith.truncf %0 : vector<2x3072xf32> to vector<2x3072xbf16>
    %c0_1 = arith.constant 0 : index
    %c0_2 = arith.constant 0 : index
    %2 = vector.load %arg2[%c0_1, %c0_2] : memref<3072x1024xbf16, #tpu.memory_space<vmem>>, vector<3072x1024xbf16>
    %cst = arith.constant dense<0.000000e+00> : vector<2x1024xf32>
    %3 = tpu.matmul %1, %2, %cst {dimension_numbers = #tpu.dot_dimension_numbers<[1], [0], [0], [1], [0, 0, 1, 1], [], []>} : vector<2x3072xbf16>, vector<3072x1024xbf16>, vector<2x1024xf32> -> vector<2x1024xf32>
    %c0_3 = arith.constant 0 : index
    %c0_4 = arith.constant 0 : index
    %4 = vector.load %arg3[%c0_3, %c0_4] : memref<1x1024xf32, #tpu.memory_space<vmem>>, vector<1x1024xf32>
    %5 = vector.broadcast %4 : vector<1x1024xf32> to vector<2x1024xf32>
    %6 = arith.addf %3, %5 : vector<2x1024xf32>
    %cst_5 = arith.constant 0.000000e+00 : f32
    %7 = vector.broadcast %cst_5 : f32 to vector<2x1024xf32>
    %8 = arith.maximumf %6, %7 : vector<2x1024xf32>
    %9 = arith.truncf %8 : vector<2x1024xf32> to vector<2x1024xbf16>
    %c0_6 = arith.constant 0 : index
    %c0_7 = arith.constant 0 : index
    %10 = vector.load %arg4[%c0_6, %c0_7] : memref<1024x512xbf16, #tpu.memory_space<vmem>>, vector<1024x512xbf16>
    %cst_8 = arith.constant dense<0.000000e+00> : vector<2x512xf32>
    %11 = tpu.matmul %9, %10, %cst_8 {dimension_numbers = #tpu.dot_dimension_numbers<[1], [0], [0], [1], [0, 0, 1, 1], [], []>} : vector<2x1024xbf16>, vector<1024x512xbf16>, vector<2x512xf32> -> vector<2x512xf32>
    %c0_9 = arith.constant 0 : index
    %c0_10 = arith.constant 0 : index
    %12 = vector.load %arg5[%c0_9, %c0_10] : memref<1x512xf32, #tpu.memory_space<vmem>>, vector<1x512xf32>
    %13 = vector.broadcast %12 : vector<1x512xf32> to vector<2x512xf32>
    %14 = arith.addf %11, %13 : vector<2x512xf32>
    %cst_11 = arith.constant 0.000000e+00 : f32
    %15 = vector.broadcast %cst_11 : f32 to vector<2x512xf32>
    %16 = arith.maximumf %14, %15 : vector<2x512xf32>
    %17 = arith.truncf %16 : vector<2x512xf32> to vector<2x512xbf16>
    %c0_12 = arith.constant 0 : index
    %c0_13 = arith.constant 0 : index
    %18 = vector.load %arg6[%c0_12, %c0_13] : memref<512x10xbf16, #tpu.memory_space<vmem>>, vector<512x10xbf16>
    %cst_14 = arith.constant dense<0.000000e+00> : vector<2x10xf32>
    %19 = tpu.matmul %17, %18, %cst_14 {dimension_numbers = #tpu.dot_dimension_numbers<[1], [0], [0], [1], [0, 0, 1, 1], [], []>} : vector<2x512xbf16>, vector<512x10xbf16>, vector<2x10xf32> -> vector<2x10xf32>
    %c0_15 = arith.constant 0 : index
    %c0_16 = arith.constant 0 : index
    %20 = vector.load %arg7[%c0_15, %c0_16] : memref<1x10xf32, #tpu.memory_space<vmem>>, vector<1x10xf32>
    %21 = vector.broadcast %20 : vector<1x10xf32> to vector<2x10xf32>
    %22 = arith.addf %19, %21 : vector<2x10xf32>
    %c0_17 = arith.constant 0 : index
    %c0_18 = arith.constant 0 : index
    %23 = vector.load %arg8[%c0_17, %c0_18] : memref<2x10xf32, #tpu.memory_space<vmem>>, vector<2x10xf32>
    tpu.vector_store %arg8[%c0_17, %c0_18], %22 {strides = array<i32>} : memref<2x10xf32, #tpu.memory_space<vmem>>, vector<2x10xf32>,
    return
  }
  func.func @transform_0(%arg0: i32) -> (i32, i32) {
    %c0_i32 = arith.constant 0 : i32
    %c0_i32_0 = arith.constant 0 : i32
    %c0_i32_1 = arith.constant 0 : i32
    return %c0_i32, %c0_i32_0 : i32, i32
  }
  func.func @transform_1(%arg0: i32) -> (i32, i32) {
    %c0_i32 = arith.constant 0 : i32
    %c0_i32_0 = arith.constant 0 : i32
    %c0_i32_1 = arith.constant 0 : i32
    return %c0_i32, %c0_i32_0 : i32, i32
  }
  func.func @transform_2(%arg0: i32) -> (i32, i32) {
    %c0_i32 = arith.constant 0 : i32
    %c0_i32_0 = arith.constant 0 : i32
    %c0_i32_1 = arith.constant 0 : i32
    return %c0_i32, %c0_i32_0 : i32, i32
  }
  func.func @transform_3(%arg0: i32) -> (i32, i32) {
    %c0_i32 = arith.constant 0 : i32
    %c0_i32_0 = arith.constant 0 : i32
    %c0_i32_1 = arith.constant 0 : i32
    return %c0_i32, %c0_i32_0 : i32, i32
  }
  func.func @transform_4(%arg0: i32) -> (i32, i32) {
    %c0_i32 = arith.constant 0 : i32
    %c0_i32_0 = arith.constant 0 : i32
    %c0_i32_1 = arith.constant 0 : i32
    return %c0_i32, %c0_i32_0 : i32, i32
  }
  func.func @transform_5(%arg0: i32) -> (i32, i32) {
    %c0_i32 = arith.constant 0 : i32
    %c0_i32_0 = arith.constant 0 : i32
    %c0_i32_1 = arith.constant 0 : i32
    return %c0_i32, %c0_i32_0 : i32, i32
  }
  func.func @transform_6(%arg0: i32) -> (i32, i32) {
    %c0_i32 = arith.constant 0 : i32
    %c0_i32_0 = arith.constant 0 : i32
    %c0_i32_1 = arith.constant 0 : i32
    return %c0_i32, %c0_i32_0 : i32, i32
  }
  func.func @transform_7(%arg0: i32) -> (i32, i32) {
    %c0_i32 = arith.constant 0 : i32
    %c0_i32_0 = arith.constant 0 : i32
    %c0_i32_1 = arith.constant 0 : i32
    return %c0_i32, %c0_i32_0 : i32, i32
  }
}

</mosaic_0001>

<bundles_post_ra>
// kernel: o2u_forward.1
= control target key start
LH: loop header
LB: loop body
LE: loop exit
PB: predicated region body
PF: predicated region fallthrough
CT: control target
= control target key end

     0   :  { %12 = vsyncpa [#allocation3], 0  ;;  %s16953_s0 = inlined_call_operand.vmem [shape: f32[2,3072], index: 0, kind: input, shape index: {}]   ;;  %s16954_s1 = inlined_call_operand.hbm [shape: bf16[3072,1024], index: 1, kind: input, shape index: {}]   ;;  %s16955_s2 = inlined_call_operand.hbm [shape: f32[1,1024], index: 2, kind: input, shape index: {}]   ;;  %s16956_s3 = inlined_call_operand.hbm [shape: bf16[1024,512], index: 3, kind: input, shape index: {}]   ;;  %s16957_s4 = inlined_call_operand.hbm [shape: f32[1,512], index: 4, kind: input, shape index: {}]   ;;  %s16958_s5 = inlined_call_operand.vmem [shape: bf16[512,10], index: 5, kind: input, shape index: {}]   ;;  %s16959_s6 = inlined_call_operand.hbm [shape: f32[1,10], index: 6, kind: input, shape index: {}]   ;;  %s16960_s7 = inlined_call_operand.hbm [shape: f32[2,10], index: 7, kind: output, shape index: {}]  }
   0x1   :  { %13 = vsyncpa [#allocation6], 0 }
   0x2   :  { %14 = vsyncpa [#allocation9], 0 }
   0x3   :  { %15 = vsyncpa [#allocation4], 0  ;;  %s16405_s24 = smov [#allocation5]   ;;  %s16406_s26 = smov [#allocation8]  }
   0x4   :  { %s36_s25 = sshll.u32 %s16405_s24, 4  ;;  %s58_s27 = sshll.u32 %s16406_s26, 4  ;;  %s37_s25 = int_to_ptr.vmem [resolvable:$true] %s36_s25  ;;  %s59_s27 = int_to_ptr.vmem [resolvable:$true] %s58_s27 }
   0x5   :  { %s16265_s30 = scalar_lea.hbm %s16955_s2, 128 }
   0x6   :  { %p16266_p0 = scmp.ne.s32.totalorder %s16955_s2, %s16265_s30  ;;  %p16269_p1 = scmp.lt.u32.totalorder %s16265_s30, %s16955_s2 }
   0x8   :  { %p16271_p2 = pnand %p16269_p1, %p16266_p0 }
   0xa   :  { %16274 = shalt.err (!%p16271_p2)
}
   0xb   :  { %s16275_s12 = scalar_lea.vmem %s37_s25, 128  ;;  %p16280_p4 = scmp.lt.s32.totalorder %s37_s25, %s37_s25 }
   0xc   :  { %p16276_p3 = scmp.ne.s32.totalorder %s37_s25, %s16275_s12  ;;  %p16281_p5 = scmp.lt.s32.totalorder %s16275_s12, %s16275_s12 }
   0xe   :  { %p16282_p6 = por %p16281_p5, %p16280_p4 }
  0x10   :  { %p16283_p7 = pnand %p16282_p6, %p16276_p3 }
  0x12   :  { %16286 = shalt.err (!%p16283_p7)
}
  0x13   :  { %39 = dma.hbm_to_vmem [thread:$0]  %s16955_s2, 128, %s37_s25, [#allocation6]  }
  0x14   :  { %s16287_s17 = scalar_lea.hbm %s16957_s4, 64 }
  0x15   :  { %p16288_p8 = scmp.ne.s32.totalorder %s16957_s4, %s16287_s17  ;;  %p16291_p9 = scmp.lt.u32.totalorder %s16287_s17, %s16957_s4 }
  0x17   :  { %p16293_p10 = pnand %p16291_p9, %p16288_p8 }
  0x19   :  { %16296 = shalt.err (!%p16293_p10)
}
  0x1a   :  { %s16297_s22 = scalar_lea.vmem %s59_s27, 64  ;;  %p16302_p12 = scmp.lt.s32.totalorder %s59_s27, %s59_s27 }
  0x1b   :  { %p16298_p11 = scmp.ne.s32.totalorder %s59_s27, %s16297_s22  ;;  %p16303_p13 = scmp.lt.s32.totalorder %s16297_s22, %s16297_s22 }
  0x1d   :  { %p16304_p0 = por %p16303_p13, %p16302_p12 }
  0x1f   :  { %p16305_p1 = pnand %p16304_p0, %p16298_p11 }
  0x21   :  { %16308 = shalt.err (!%p16305_p1)
}
  0x22   :  { %61 = dma.hbm_to_vmem [thread:$0]  %s16957_s4, 64, %s59_s27, [#allocation9]  }
  0x23   :  { %s16407_s24 = smov [#allocation2]   ;;  %s16309_s29 = scalar_lea.hbm %s16954_s1, 196608 }
  0x24   :  { %s23_s25 = sshll.u32 %s16407_s24, 4  ;;  %p16310_p2 = scmp.ne.s32.totalorder %s16954_s1, %s16309_s29  ;;  %s24_s25 = int_to_ptr.vmem [resolvable:$true] %s23_s25 }
  0x25   :  { %p16313_p3 = scmp.lt.u32.totalorder %s16309_s29, %s16954_s1 }
  0x27   :  { %p16315_p4 = pnand %p16313_p3, %p16310_p2 }
  0x29   :  { %16318 = shalt.err (!%p16315_p4)
}
  0x2a   :  { %s16319_s11 = scalar_lea.vmem %s24_s25, 196608  ;;  %p16324_p6 = scmp.lt.s32.totalorder %s24_s25, %s24_s25 }
  0x2b   :  { %p16320_p5 = scmp.ne.s32.totalorder %s24_s25, %s16319_s11  ;;  %p16325_p7 = scmp.lt.s32.totalorder %s16319_s11, %s16319_s11 }
  0x2d   :  { %p16326_p8 = por %p16325_p7, %p16324_p6 }
  0x2f   :  { %p16327_p9 = pnand %p16326_p8, %p16320_p5 }
  0x31   :  { %16330 = shalt.err (!%p16327_p9)
}
  0x32   :  { %s16408_s4 = smov 512   ;;  %s16409_s27 = smov 32  }
  0x33   :  { %29 = dma.hbm_to_vmem [thread:$0]  %s16954_s1, 196608, %s24_s25, [#allocation3], %s16408_s4, %s16408_s4, %s16409_s27  }
  0x34   :  { %s16410_s14 = smov [#allocation7]   ;;  %s16331_s18 = scalar_lea.hbm %s16956_s3, 32768 }
  0x35   :  { %s45_s15 = sshll.u32 %s16410_s14, 4  ;;  %p16332_p10 = scmp.ne.s32.totalorder %s16956_s3, %s16331_s18  ;;  %s46_s15 = int_to_ptr.vmem [resolvable:$true] %s45_s15 }
  0x36   :  { %p16335_p11 = scmp.lt.u32.totalorder %s16331_s18, %s16956_s3 }
  0x38   :  { %p16337_p12 = pnand %p16335_p11, %p16332_p10 }
  0x3a   :  { %16340 = shalt.err (!%p16337_p12)
}
  0x3b   :  { %s16341_s2 = scalar_lea.vmem %s46_s15, 32768  ;;  %p16346_p0 = scmp.lt.s32.totalorder %s46_s15, %s46_s15 }
  0x3c   :  { %p16342_p13 = scmp.ne.s32.totalorder %s46_s15, %s16341_s2  ;;  %p16347_p1 = scmp.lt.s32.totalorder %s16341_s2, %s16341_s2 }
  0x3e   :  { %p16348_p2 = por %p16347_p1, %p16346_p0 }
  0x40   :  { %p16349_p3 = pnand %p16348_p2, %p16342_p13 }
  0x42   :  { %16352 = shalt.err (!%p16349_p3)
}
  0x43   :  { %s16411_s1 = smov 256   ;;  %s16412_s23 = smov 16  }
  0x44   :  { %51 = dma.hbm_to_vmem [thread:$0]  %s16956_s3, 32768, %s46_s15, [#allocation6], %s16411_s1, %s16411_s1, %s16412_s23  }
  0x45   :  { %s16413_s26 = smov [#allocation10]   ;;  %s16353_s8 = scalar_lea.hbm %s16959_s6, 16 }
  0x46   :  { %s70_s28 = sshll.u32 %s16413_s26, 4  ;;  %p16354_p4 = scmp.ne.s32.totalorder %s16959_s6, %s16353_s8  ;;  %s71_s28 = int_to_ptr.vmem [resolvable:$true] %s70_s28 }
  0x47   :  { %p16357_p5 = scmp.lt.u32.totalorder %s16353_s8, %s16959_s6 }
  0x49   :  { %p16359_p6 = pnand %p16357_p5, %p16354_p4 }
  0x4b   :  { %16362 = shalt.err (!%p16359_p6)
}
  0x4c   :  { %s16363_s27 = scalar_lea.vmem %s71_s28, 16  ;;  %s16367_s3 = scalar_lea.vmem %s71_s28, 32 }
  0x4d   :  { %p16364_p7 = scmp.ne.s32.totalorder %s71_s28, %s16363_s27  ;;  %p16368_p8 = scmp.lt.s32.totalorder %s71_s28, %s71_s28 }
  0x4e   :  { %p16369_p9 = scmp.lt.s32.totalorder %s16367_s3, %s16363_s27 }
  0x50   :  { %p16370_p10 = por %p16369_p9, %p16368_p8 }
  0x52   :  { %p16371_p11 = pnand %p16370_p10, %p16364_p7 }
  0x54   :  { %16374 = shalt.err (!%p16371_p11)
}
  0x55   :  { %73 = dma.hbm_to_vmem [thread:$0]  %s16959_s6, 16, %s71_s28, [#allocation9]  }
  0x56   :  { %16397 = dma.done.wait [#allocation3], 196608  }
  0x57   :  { %16398 = vsyncadd [#allocation3], 4294770688 }
  0x58   :  { %16399 = dma.done.wait [#allocation6], 32896  }
  0x59   :  { %16400 = vsyncadd [#allocation6], 4294934400 }
  0x5a   :  { %16401 = dma.done.wait [#allocation9], 80  }
  0x5b   :  { %16402 = vsyncadd [#allocation9], 4294967216  ;;  %v252_v0 = vld [vmem:[#allocation2] sm:$0xff]  ;;  %v253_v2 = vld [vmem:[#allocation2 + $0x8] sm:$0xff]  ;;  %v16414_v32 = vmov 1983009808   ;;  %v106_v34 = vlaneseq }
  0x5c   :  { %v256_v1 = vld [vmem:[#allocation2 + $0x20] sm:$0xff]  ;;  %v257_v4 = vld [vmem:[#allocation2 + $0x28] sm:$0xff]  ;;  %v104_v33 = vunpack.c.l.s4 %v16414_v32  ;;  %v16524_v59 = vld [vmem:[%s16953_s0] sm:$0xff]  ;;  %vm13731_vm0 = vcmask 74752  }
  0x5d   :  { %v13751_v3 = vcombine.high %v252_v0, %v256_v1  ;;  %v13750_v5 = vcombine.low %v252_v0, %v256_v1  ;;  %v260_v6 = vld [vmem:[#allocation2 + $0x40] sm:$0xff]  ;;  %v13753_v8 = vcombine.high %v253_v2, %v257_v4  ;;  %v13752_v9 = vcombine.low %v253_v2, %v257_v4  ;;  %v261_v11 = vld [vmem:[#allocation2 + $0x48] sm:$0xff] }
  0x5e   :  { %v264_v7 = vld [vmem:[#allocation2 + $0x60] sm:$0xff]  ;;  %v265_v12 = vld [vmem:[#allocation2 + $0x68] sm:$0xff]  ;;  %v105_v43 = vunpack.c.0.s8 %v104_v33  ;;  %v16516_v44 = vshrl.u32 %v106_v34, 7 }
  0x5f   :  { %v13759_v10 = vcombine.high %v260_v6, %v264_v7  ;;  %v268_v13 = vld [vmem:[#allocation2 + $0x80] sm:$0xff]  ;;  %9510 = vmatprep.subr.bf16.mxu0 %v13751_v3  ;;  %v13761_v14 = vcombine.high %v261_v11, %v265_v12  ;;  %v269_v16 = vld [vmem:[#allocation2 + $0x88] sm:$0xff]  ;;  %10002 = vmatprep.subr.bf16.mxu1 %v13753_v8  ;;  %v13758_v18 = vcombine.low %v260_v6, %v264_v7 }
  0x60   :  { %v272_v15 = vld [vmem:[#allocation2 + $0xa0] sm:$0xff]  ;;  %v273_v17 = vld [vmem:[#allocation2 + $0xa8] sm:$0xff]  ;;  %9511 = vmatpush1.bf16.msra.mxu0 %v13750_v5  ;;  %10003 = vmatpush1.bf16.msra.mxu1 %v13752_v9  ;;  %v13760_v19 = vcombine.low %v261_v11, %v265_v12  ;;  %v16519_v53 = vsub.s32 %v105_v43, %v16516_v44 }
  0x61   :  { %9512 = vmatprep.subr.bf16.mxu0 %v13759_v10  ;;  %v13767_v20 = vcombine.high %v268_v13, %v272_v15  ;;  %10004 = vmatprep.subr.bf16.mxu1 %v13761_v14  ;;  %v13769_v21 = vcombine.high %v269_v16, %v273_v17  ;;  %v276_v22 = vld [vmem:[#allocation2 + $0xc0] sm:$0xff]  ;;  %v277_v24 = vld [vmem:[#allocation2 + $0xc8] sm:$0xff]  ;;  %v13766_v26 = vcombine.low %v268_v13, %v272_v15 }
  0x62   :  { %v280_v23 = vld [vmem:[#allocation2 + $0xe0] sm:$0xff]  ;;  %v281_v25 = vld [vmem:[#allocation2 + $0xe8] sm:$0xff]  ;;  %v13768_v27 = vcombine.low %v269_v16, %v273_v17  ;;  %v16528_v63 = vrot.slane %v16524_v59, %v16519_v53 }
  0x63   :  { %v13775_v28 = vcombine.high %v276_v22, %v280_v23  ;;  %v13777_v29 = vcombine.high %v277_v24, %v281_v25  ;;  %v284_v30 = vld [vmem:[#allocation2 + $0x100] sm:$0xff]  ;;  %v285_v35 = vld [vmem:[#allocation2 + $0x108] sm:$0xff]  ;;  %v13774_v37 = vcombine.low %v276_v22, %v280_v23  ;;  %v13776_v38 = vcombine.low %v277_v24, %v281_v25 }
  0x64   :  { %9513 = vmatpush1.bf16.msra.mxu0 %v13758_v18  ;;  %10005 = vmatpush1.bf16.msra.mxu1 %v13760_v19  ;;  %v288_v31 = vld [vmem:[#allocation2 + $0x120] sm:$0xff]  ;;  %v289_v36 = vld [vmem:[#allocation2 + $0x128] sm:$0xff]  ;;  %v117_v3 = vcombine.high %v16528_v63, %v16528_v63 }
  0x65   :  { %9514 = vmatprep.subr.bf16.mxu0 %v13767_v20  ;;  %10006 = vmatprep.subr.bf16.mxu1 %v13769_v21  ;;  %v13783_v39 = vcombine.high %v284_v30, %v288_v31  ;;  %v13785_v40 = vcombine.high %v285_v35, %v289_v36  ;;  %v292_v41 = vld [vmem:[#allocation2 + $0x140] sm:$0xff]  ;;  %v293_v45 = vld [vmem:[#allocation2 + $0x148] sm:$0xff]  ;;  %v13782_v47 = vcombine.low %v284_v30, %v288_v31 }
  0x66   :  { %v296_v42 = vld [vmem:[#allocation2 + $0x160] sm:$0xff]  ;;  %v297_v46 = vld [vmem:[#allocation2 + $0x168] sm:$0xff]  ;;  %v13784_v48 = vcombine.low %v285_v35, %v289_v36  ;;  %v16532_v9 = vpack.c.bf16 %v117_v3, %v117_v3 }
  0x67   :  { %v13791_v49 = vcombine.high %v292_v41, %v296_v42  ;;  %v13793_v50 = vcombine.high %v293_v45, %v297_v46  ;;  %v300_v51 = vld [vmem:[#allocation2 + $0x180] sm:$0xff]  ;;  %v301_v54 = vld [vmem:[#allocation2 + $0x188] sm:$0xff]  ;;  %v13790_v56 = vcombine.low %v292_v41, %v296_v42  ;;  %v13792_v57 = vcombine.low %v293_v45, %v297_v46 }
  0x68   :  { %9515 = vmatpush1.bf16.msra.mxu0 %v13766_v26  ;;  %10007 = vmatpush1.bf16.msra.mxu1 %v13768_v27  ;;  %v304_v52 = vld [vmem:[#allocation2 + $0x1a0] sm:$0xff]  ;;  %v305_v55 = vld [vmem:[#allocation2 + $0x1a8] sm:$0xff] }
  0x69   :  { %9516 = vmatprep.subr.bf16.mxu0 %v13775_v28  ;;  %10008 = vmatprep.subr.bf16.mxu1 %v13777_v29  ;;  %v13799_v58 = vcombine.high %v300_v51, %v304_v52  ;;  %v13801_v60 = vcombine.high %v301_v54, %v305_v55  ;;  %v308_v61 = vld [vmem:[#allocation2 + $0x1c0] sm:$0xff]  ;;  %v309_v0 = vld [vmem:[#allocation2 + $0x1c8] sm:$0xff]  ;;  %v13798_v2 = vcombine.low %v300_v51, %v304_v52 }
  0x6a   :  { %v312_v62 = vld [vmem:[#allocation2 + $0x1e0] sm:$0xff]  ;;  %v313_v1 = vld [vmem:[#allocation2 + $0x1e8] sm:$0xff]  ;;  %v13800_v4 = vcombine.low %v301_v54, %v305_v55  ;;  %9542 = vmatprep.mubr.bf16.mxu0 %v16532_v9  ;;  %10034 = vmatprep.mubr.bf16.mxu1 %v16532_v9 }
  0x6b   :  { %v13807_v5 = vcombine.high %v308_v61, %v312_v62  ;;  %v13809_v6 = vcombine.high %v309_v0, %v313_v1  ;;  %v316_v7 = vld [vmem:[#allocation2 + $0x200] sm:$0xff]  ;;  %v317_v10 = vld [vmem:[#allocation2 + $0x208] sm:$0xff]  ;;  %v13806_v12 = vcombine.low %v308_v61, %v312_v62  ;;  %v13808_v13 = vcombine.low %v309_v0, %v313_v1 }
  0x6c   :  { %9517 = vmatpush1.bf16.msra.mxu0 %v13774_v37  ;;  %10009 = vmatpush1.bf16.msra.mxu1 %v13776_v38  ;;  %v320_v8 = vld [vmem:[#allocation2 + $0x220] sm:$0xff]  ;;  %v321_v11 = vld [vmem:[#allocation2 + $0x228] sm:$0xff] }
  0x6d   :  { %9518 = vmatprep.subr.bf16.mxu0 %v13783_v39  ;;  %10010 = vmatprep.subr.bf16.mxu1 %v13785_v40  ;;  %v13815_v14 = vcombine.high %v316_v7, %v320_v8  ;;  %v13817_v15 = vcombine.high %v317_v10, %v321_v11  ;;  %v324_v16 = vld [vmem:[#allocation2 + $0x240] sm:$0xff]  ;;  %v325_v18 = vld [vmem:[#allocation2 + $0x248] sm:$0xff]  ;;  %v13814_v20 = vcombine.low %v316_v7, %v320_v8 }
  0x6e   :  { %v328_v17 = vld [vmem:[#allocation2 + $0x260] sm:$0xff]  ;;  %v329_v19 = vld [vmem:[#allocation2 + $0x268] sm:$0xff]  ;;  %v13816_v21 = vcombine.low %v317_v10, %v321_v11 }
  0x6f   :  { %v13823_v22 = vcombine.high %v324_v16, %v328_v17  ;;  %v13825_v23 = vcombine.high %v325_v18, %v329_v19  ;;  %v332_v24 = vld [vmem:[#allocation2 + $0x280] sm:$0xff]  ;;  %v333_v26 = vld [vmem:[#allocation2 + $0x288] sm:$0xff]  ;;  %v13822_v28 = vcombine.low %v324_v16, %v328_v17  ;;  %v13824_v29 = vcombine.low %v325_v18, %v329_v19 }
  0x70   :  { %9519 = vmatpush1.bf16.msra.mxu0 %v13782_v47  ;;  %10011 = vmatpush1.bf16.msra.mxu1 %v13784_v48  ;;  %v336_v25 = vld [vmem:[#allocation2 + $0x2a0] sm:$0xff]  ;;  %v337_v27 = vld [vmem:[#allocation2 + $0x2a8] sm:$0xff] }
  0x71   :  { %9520 = vmatprep.subr.bf16.mxu0 %v13791_v49  ;;  %10012 = vmatprep.subr.bf16.mxu1 %v13793_v50  ;;  %v13831_v30 = vcombine.high %v332_v24, %v336_v25  ;;  %v13833_v31 = vcombine.high %v333_v26, %v337_v27  ;;  %v340_v32 = vld [vmem:[#allocation2 + $0x2c0] sm:$0xff]  ;;  %v341_v34 = vld [vmem:[#allocation2 + $0x2c8] sm:$0xff]  ;;  %v13830_v36 = vcombine.low %v332_v24, %v336_v25 }
  0x72   :  { %v344_v33 = vld [vmem:[#allocation2 + $0x2e0] sm:$0xff]  ;;  %v345_v35 = vld [vmem:[#allocation2 + $0x2e8] sm:$0xff]  ;;  %v13832_v37 = vcombine.low %v333_v26, %v337_v27  ;;  %v16545_v25 = vpack.c.bf16 %v16528_v63, %v16528_v63 }
  0x73   :  { %v13839_v38 = vcombine.high %v340_v32, %v344_v33  ;;  %v13841_v39 = vcombine.high %v341_v34, %v345_v35  ;;  %v348_v40 = vld [vmem:[#allocation2 + $0x300] sm:$0xff]  ;;  %v349_v42 = vld [vmem:[#allocation2 + $0x308] sm:$0xff]  ;;  %v13838_v45 = vcombine.low %v340_v32, %v344_v33  ;;  %v13840_v46 = vcombine.low %v341_v34, %v345_v35 }
  0x74   :  { %9521 = vmatpush1.bf16.msra.mxu0 %v13790_v56  ;;  %10013 = vmatpush1.bf16.msra.mxu1 %v13792_v57  ;;  %v352_v41 = vld [vmem:[#allocation2 + $0x320] sm:$0xff]  ;;  %v353_v43 = vld [vmem:[#allocation2 + $0x328] sm:$0xff] }
  0x75   :  { %9522 = vmatprep.subr.bf16.mxu0 %v13799_v58  ;;  %10014 = vmatprep.subr.bf16.mxu1 %v13801_v60  ;;  %v13847_v47 = vcombine.high %v348_v40, %v352_v41  ;;  %v13849_v48 = vcombine.high %v349_v42, %v353_v43  ;;  %v356_v49 = vld [vmem:[#allocation2 + $0x340] sm:$0xff]  ;;  %v357_v51 = vld [vmem:[#allocation2 + $0x348] sm:$0xff]  ;;  %v13846_v54 = vcombine.low %v348_v40, %v352_v41 }
  0x76   :  { %v360_v50 = vld [vmem:[#allocation2 + $0x360] sm:$0xff]  ;;  %v361_v52 = vld [vmem:[#allocation2 + $0x368] sm:$0xff]  ;;  %v13848_v55 = vcombine.low %v349_v42, %v353_v43 }
  0x77   :  { %v13855_v56 = vcombine.high %v356_v49, %v360_v50  ;;  %v13857_v57 = vcombine.high %v357_v51, %v361_v52  ;;  %v364_v58 = vld [vmem:[#allocation2 + $0x380] sm:$0xff]  ;;  %v365_v61 = vld [vmem:[#allocation2 + $0x388] sm:$0xff]  ;;  %v13854_v0 = vcombine.low %v356_v49, %v360_v50  ;;  %v13856_v1 = vcombine.low %v357_v51, %v361_v52 }
  0x78   :  { %9523 = vmatpush1.bf16.msra.mxu0 %v13798_v2  ;;  %10015 = vmatpush1.bf16.msra.mxu1 %v13800_v4  ;;  %v368_v60 = vld [vmem:[#allocation2 + $0x3a0] sm:$0xff]  ;;  %v369_v62 = vld [vmem:[#allocation2 + $0x3a8] sm:$0xff] }
  0x79   :  { %9524 = vmatprep.subr.bf16.mxu0 %v13807_v5  ;;  %10016 = vmatprep.subr.bf16.mxu1 %v13809_v6  ;;  %v13863_v2 = vcombine.high %v364_v58, %v368_v60  ;;  %v13865_v3 = vcombine.high %v365_v61, %v369_v62  ;;  %v372_v4 = vld [vmem:[#allocation2 + $0x3c0] sm:$0xff]  ;;  %v102_v6 = vcombine.high %v16524_v59, %v16524_v59  ;;  %v373_v7 = vld [vmem:[#allocation2 + $0x3c8] sm:$0xff] }
  0x7a   :  { %v376_v5 = vld [vmem:[#allocation2 + $0x3e0] sm:$0xff]  ;;  %v377_v8 = vld [vmem:[#allocation2 + $0x3e8] sm:$0xff]  ;;  %v13862_v10 = vcombine.low %v364_v58, %v368_v60  ;;  %v13864_v11 = vcombine.low %v365_v61, %v369_v62 }
  0x7b   :  { %v16539_v16 = vrot.slane %v102_v6, %v16519_v53  ;;  %v381_v17 = vld [vmem:[#allocation2 + $0x408] sm:$0xff]  ;;  %v13870_v19 = vcombine.low %v372_v4, %v376_v5  ;;  %v13872_v59 = vcombine.low %v373_v7, %v377_v8  ;;  %v400_v32 = vld [vmem:[#allocation2 + $0x4a0] sm:$0xff] }
  0x7c   :  { %9525 = vmatpush1.bf16.msra.mxu0 %v13806_v12  ;;  %10017 = vmatpush1.bf16.msra.mxu1 %v13808_v13  ;;  %v13871_v12 = vcombine.high %v372_v4, %v376_v5  ;;  %v13873_v13 = vcombine.high %v373_v7, %v377_v8  ;;  %v385_v18 = vld [vmem:[#allocation2 + $0x428] sm:$0xff]  ;;  %v408_v40 = vld [vmem:[#allocation2 + $0x4e0] sm:$0xff] }
  0x7d   :  { %9526 = vmatprep.subr.bf16.mxu0 %v13815_v14  ;;  %10018 = vmatprep.subr.bf16.mxu1 %v13817_v15  ;;  %v380_v14 = vld [vmem:[#allocation2 + $0x400] sm:$0xff]  ;;  %v118_v24 = vcombine.high %v16539_v16, %v16539_v16  ;;  %v389_v26 = vld [vmem:[#allocation2 + $0x448] sm:$0xff] }
  0x7e   :  { %v384_v15 = vld [vmem:[#allocation2 + $0x420] sm:$0xff]  ;;  %v393_v27 = vld [vmem:[#allocation2 + $0x468] sm:$0xff] }
  0x7f   :  { %v397_v33 = vld [vmem:[#allocation2 + $0x488] sm:$0xff]  ;;  %v13889_v34 = vcombine.high %v389_v26, %v393_v27  ;;  %v416_v49 = vld [vmem:[#allocation2 + $0x520] sm:$0xff] }
  0x80   :  { %9527 = vmatpush1.bf16.msra.mxu0 %v13814_v20  ;;  %10019 = vmatpush1.bf16.msra.mxu1 %v13816_v21  ;;  %v13879_v20 = vcombine.high %v380_v14, %v384_v15  ;;  %v13881_v21 = vcombine.high %v381_v17, %v385_v18  ;;  %v401_v35 = vld [vmem:[#allocation2 + $0x4a8] sm:$0xff]  ;;  %v424_v58 = vld [vmem:[#allocation2 + $0x560] sm:$0xff] }
  0x81   :  { %9528 = vmatprep.subr.bf16.mxu0 %v13823_v22  ;;  %10020 = vmatprep.subr.bf16.mxu1 %v13825_v23  ;;  %v388_v22 = vld [vmem:[#allocation2 + $0x440] sm:$0xff]  ;;  %v405_v41 = vld [vmem:[#allocation2 + $0x4c8] sm:$0xff]  ;;  %v13897_v42 = vcombine.high %v397_v33, %v401_v35 }
  0x82   :  { %v392_v23 = vld [vmem:[#allocation2 + $0x460] sm:$0xff]  ;;  %v409_v43 = vld [vmem:[#allocation2 + $0x4e8] sm:$0xff] }
  0x83   :  { %v13886_v63 = vcombine.low %v388_v22, %v392_v23  ;;  %v413_v50 = vld [vmem:[#allocation2 + $0x508] sm:$0xff]  ;;  %v13905_v51 = vcombine.high %v405_v41, %v409_v43  ;;  %v432_v4 = vld [vmem:[#allocation2 + $0x5a0] sm:$0xff] }
  0x84   :  { %9529 = vmatpush1.bf16.msra.mxu0 %v13822_v28  ;;  %10021 = vmatpush1.bf16.msra.mxu1 %v13824_v29  ;;  %v13878_v28 = vcombine.low %v380_v14, %v384_v15  ;;  %v13880_v29 = vcombine.low %v381_v17, %v385_v18  ;;  %v417_v52 = vld [vmem:[#allocation2 + $0x528] sm:$0xff] }
  0x85   :  { %9530 = vmatprep.subr.bf16.mxu0 %v13831_v30  ;;  %10022 = vmatprep.subr.bf16.mxu1 %v13833_v31  ;;  %v13887_v30 = vcombine.high %v388_v22, %v392_v23  ;;  %v396_v31 = vld [vmem:[#allocation2 + $0x480] sm:$0xff]  ;;  %v421_v60 = vld [vmem:[#allocation2 + $0x548] sm:$0xff]  ;;  %v13913_v61 = vcombine.high %v413_v50, %v417_v52 }
  0x86   :  { %v425_v62 = vld [vmem:[#allocation2 + $0x568] sm:$0xff] }
  0x87   :  { %v429_v5 = vld [vmem:[#allocation2 + $0x588] sm:$0xff]  ;;  %v13921_v6 = vcombine.high %v421_v60, %v425_v62 }
  0x88   :  { %9531 = vmatpush1.bf16.msra.mxu0 %v13830_v36  ;;  %10023 = vmatpush1.bf16.msra.mxu1 %v13832_v37  ;;  %v16547_v36 = vpack.c.bf16 %v118_v24, %v118_v24  ;;  %v13888_v37 = vcombine.low %v389_v26, %v393_v27  ;;  %v433_v7 = vld [vmem:[#allocation2 + $0x5a8] sm:$0xff] }
  0x89   :  { %9532 = vmatprep.subr.bf16.mxu0 %v13839_v38  ;;  %10024 = vmatprep.subr.bf16.mxu1 %v13841_v39  ;;  %v13895_v38 = vcombine.high %v396_v31, %v400_v32  ;;  %v404_v39 = vld [vmem:[#allocation2 + $0x4c0] sm:$0xff]  ;;  %v437_v14 = vld [vmem:[#allocation2 + $0x5c8] sm:$0xff]  ;;  %v13929_v15 = vcombine.high %v429_v5, %v433_v7 }
  0x8a   :  { %v441_v17 = vld [vmem:[#allocation2 + $0x5e8] sm:$0xff] }
  0x8b   :  { %v445_v22 = vld [vmem:[#allocation2 + $0x608] sm:$0xff]  ;;  %v13937_v23 = vcombine.high %v437_v14, %v441_v17  ;;  %v13936_v27 = vcombine.low %v437_v14, %v441_v17  ;;  %v500_v17 = vld [vmem:[#allocation2 + $0x7c0] sm:$0xff] }
  0x8c   :  { %9533 = vmatpush1.bf16.msra.mxu0 %v13838_v45  ;;  %10025 = vmatpush1.bf16.msra.mxu1 %v13840_v46  ;;  %v13894_v45 = vcombine.low %v396_v31, %v400_v32  ;;  %v13896_v46 = vcombine.low %v397_v33, %v401_v35  ;;  %v449_v24 = vld [vmem:[#allocation2 + $0x628] sm:$0xff] }
  0x8d   :  { %9534 = vmatprep.subr.bf16.mxu0 %v13847_v47  ;;  %10026 = vmatprep.subr.bf16.mxu1 %v13849_v48  ;;  %v13903_v47 = vcombine.high %v404_v39, %v408_v40  ;;  %v412_v48 = vld [vmem:[#allocation2 + $0x500] sm:$0xff]  ;;  %v453_v31 = vld [vmem:[#allocation2 + $0x648] sm:$0xff]  ;;  %v13945_v32 = vcombine.high %v445_v22, %v449_v24  ;;  %v13944_v35 = vcombine.low %v445_v22, %v449_v24 }
  0x8e   :  { %v457_v33 = vld [vmem:[#allocation2 + $0x668] sm:$0xff] }
  0x8f   :  { %v497_v14 = vld [vmem:[#allocation2 + $0x7a8] sm:$0xff] }
  0x90   :  { %9535 = vmatpush1.bf16.msra.mxu0 %v13846_v54  ;;  %10027 = vmatpush1.bf16.msra.mxu1 %v13848_v55  ;;  %v13902_v54 = vcombine.low %v404_v39, %v408_v40  ;;  %v13904_v55 = vcombine.low %v405_v41, %v409_v43  ;;  %v461_v39 = vld [vmem:[#allocation2 + $0x688] sm:$0xff]  ;;  %v13953_v40 = vcombine.high %v453_v31, %v457_v33 }
  0x91   :  { %9536 = vmatprep.subr.bf16.mxu0 %v13855_v56  ;;  %10028 = vmatprep.subr.bf16.mxu1 %v13857_v57  ;;  %v13911_v56 = vcombine.high %v412_v48, %v416_v49  ;;  %v420_v57 = vld [vmem:[#allocation2 + $0x540] sm:$0xff]  ;;  %v465_v41 = vld [vmem:[#allocation2 + $0x6a8] sm:$0xff]  ;;  %v13952_v43 = vcombine.low %v453_v31, %v457_v33 }
  0x92   :  { %v13918_v8 = vcombine.low %v420_v57, %v424_v58 }
  0x94   :  { %9537 = vmatpush1.bf16.msra.mxu0 %v13854_v0  ;;  %10029 = vmatpush1.bf16.msra.mxu1 %v13856_v1  ;;  %v13910_v0 = vcombine.low %v412_v48, %v416_v49  ;;  %v13912_v1 = vcombine.low %v413_v50, %v417_v52  ;;  %v469_v48 = vld [vmem:[#allocation2 + $0x6c8] sm:$0xff]  ;;  %v13961_v49 = vcombine.high %v461_v39, %v465_v41 }
  0x95   :  { %9538 = vmatprep.subr.bf16.mxu0 %v13863_v2  ;;  %10030 = vmatprep.subr.bf16.mxu1 %v13865_v3  ;;  %v13919_v2 = vcombine.high %v420_v57, %v424_v58  ;;  %v428_v3 = vld [vmem:[#allocation2 + $0x580] sm:$0xff]  ;;  %v473_v50 = vld [vmem:[#allocation2 + $0x6e8] sm:$0xff]  ;;  %v13960_v52 = vcombine.low %v461_v39, %v465_v41 }
  0x96   :  { %v13926_v18 = vcombine.low %v428_v3, %v432_v4  ;;  %v477_v57 = vld [vmem:[#allocation2 + $0x708] sm:$0xff]  ;;  %v13969_v58 = vcombine.high %v469_v48, %v473_v50 }
  0x97   :  { %v517_v39 = vld [vmem:[#allocation2 + $0x848] sm:$0xff] }
  0x98   :  { %9539 = vmatpush1.bf16.msra.mxu0 %v13862_v10  ;;  %10031 = vmatpush1.bf16.msra.mxu1 %v13864_v11  ;;  %v13920_v10 = vcombine.low %v421_v60, %v425_v62  ;;  %v13927_v11 = vcombine.high %v428_v3, %v432_v4  ;;  %v481_v60 = vld [vmem:[#allocation2 + $0x728] sm:$0xff]  ;;  %v13968_v62 = vcombine.low %v469_v48, %v473_v50  ;;  %v524_v48 = vld [vmem:[#allocation2 + $0x880] sm:$0xff] }
  0x99   :  { %9540 = vmatprep.subr.bf16.mxu0 %v13871_v12  ;;  %10032 = vmatprep.subr.bf16.mxu1 %v13873_v13  ;;  %v436_v12 = vld [vmem:[#allocation2 + $0x5c0] sm:$0xff]  ;;  %v485_v3 = vld [vmem:[#allocation2 + $0x748] sm:$0xff]  ;;  %v13977_v4 = vcombine.high %v477_v57, %v481_v60 }
  0x9a   :  { %v440_v13 = vld [vmem:[#allocation2 + $0x5e0] sm:$0xff]  ;;  %v521_v41 = vld [vmem:[#allocation2 + $0x868] sm:$0xff] }
  0x9b   :  { %v13934_v26 = vcombine.low %v436_v12, %v440_v13  ;;  %v525_v50 = vld [vmem:[#allocation2 + $0x888] sm:$0xff] }
  0x9c   :  { %9541 = vmatpush1.bf16.msra.mxu0 %v13870_v19  ;;  %10033 = vmatpush1.bf16.msra.mxu1 %v13872_v59  ;;  %v13928_v19 = vcombine.low %v429_v5, %v433_v7  ;;  %v13935_v59 = vcombine.high %v436_v12, %v440_v13  ;;  %v489_v5 = vld [vmem:[#allocation2 + $0x768] sm:$0xff]  ;;  %v13976_v7 = vcombine.low %v477_v57, %v481_v60  ;;  %v532_v57 = vld [vmem:[#allocation2 + $0x8c0] sm:$0xff] }
  0x9d   :  { %9551 = vmatprep.subr.bf16.mxu0 %v13879_v20  ;;  %10043 = vmatprep.subr.bf16.mxu1 %v13881_v21  ;;  %v444_v20 = vld [vmem:[#allocation2 + $0x600] sm:$0xff]  ;;  %v493_v12 = vld [vmem:[#allocation2 + $0x788] sm:$0xff]  ;;  %v13985_v13 = vcombine.high %v485_v3, %v489_v5 }
  0x9e   :  { %v448_v21 = vld [vmem:[#allocation2 + $0x620] sm:$0xff]  ;;  %v13993_v22 = vcombine.high %v493_v12, %v497_v14  ;;  %v533_v60 = vld [vmem:[#allocation2 + $0x8c8] sm:$0xff] }
  0x9f   :  { %9543 = vmatmul.mubr.bf16.vlgmr.msra.gmra.mrb[0].mxu0 %v16545_v25  ;;  %10035 = vmatmul.mubr.bf16.vlgmr.msra.gmra.mrb[0].mxu1 %v16545_v25 }
  0xa0   :  { %9552 = vmatpush1.bf16.msra.mxu0 %v13878_v28  ;;  %10044 = vmatpush1.bf16.msra.mxu1 %v13880_v29  ;;  %v13943_v28 = vcombine.high %v444_v20, %v448_v21  ;;  %v452_v29 = vld [vmem:[#allocation2 + $0x640] sm:$0xff] }
  0xa1   :  { %9553 = vmatprep.subr.bf16.mxu0 %v13887_v30  ;;  %10045 = vmatprep.subr.bf16.mxu1 %v13889_v34  ;;  %v456_v30 = vld [vmem:[#allocation2 + $0x660] sm:$0xff]  ;;  %v13942_v34 = vcombine.low %v444_v20, %v448_v21  ;;  %v501_v20 = vld [vmem:[#allocation2 + $0x7c8] sm:$0xff] }
  0xa2   :  { %9583 = vmatprep.mubr.bf16.mxu0 %v16547_v36  ;;  %10075 = vmatprep.mubr.bf16.mxu1 %v16547_v36  ;;  %v505_v21 = vld [vmem:[#allocation2 + $0x7e8] sm:$0xff] }
  0xa3   :  { %v14001_v31 = vcombine.high %v501_v20, %v505_v21 }
  0xa4   :  { %9554 = vmatpush1.bf16.msra.mxu0 %v13886_v63  ;;  %10046 = vmatpush1.bf16.msra.mxu1 %v13888_v37  ;;  %v13951_v63 = vcombine.high %v452_v29, %v456_v30  ;;  %v460_v37 = vld [vmem:[#allocation2 + $0x680] sm:$0xff] }
  0xa5   :  { %9555 = vmatprep.subr.bf16.mxu0 %v13895_v38  ;;  %10047 = vmatprep.subr.bf16.mxu1 %v13897_v42  ;;  %v464_v38 = vld [vmem:[#allocation2 + $0x6a0] sm:$0xff]  ;;  %v13950_v42 = vcombine.low %v452_v29, %v456_v30  ;;  %v509_v30 = vld [vmem:[#allocation2 + $0x808] sm:$0xff] }
  0xa6   :  { %v512_v29 = vld [vmem:[#allocation2 + $0x820] sm:$0xff] }
  0xa8   :  { %9556 = vmatpush1.bf16.msra.mxu0 %v13894_v45  ;;  %10048 = vmatpush1.bf16.msra.mxu1 %v13896_v46  ;;  %v13959_v45 = vcombine.high %v460_v37, %v464_v38  ;;  %v468_v46 = vld [vmem:[#allocation2 + $0x6c0] sm:$0xff] }
  0xa9   :  { %9557 = vmatprep.subr.bf16.mxu0 %v13903_v47  ;;  %10049 = vmatprep.subr.bf16.mxu1 %v13905_v51  ;;  %v472_v47 = vld [vmem:[#allocation2 + $0x6e0] sm:$0xff]  ;;  %v13958_v51 = vcombine.low %v460_v37, %v464_v38 }
  0xaa   :  { %v516_v37 = vld [vmem:[#allocation2 + $0x840] sm:$0xff] }
  0xab   :  { %v520_v38 = vld [vmem:[#allocation2 + $0x860] sm:$0xff] }
  0xac   :  { %9558 = vmatpush1.bf16.msra.mxu0 %v13902_v54  ;;  %10050 = vmatpush1.bf16.msra.mxu1 %v13904_v55  ;;  %v13967_v54 = vcombine.high %v468_v46, %v472_v47  ;;  %v476_v55 = vld [vmem:[#allocation2 + $0x700] sm:$0xff] }
  0xad   :  { %9559 = vmatprep.subr.bf16.mxu0 %v13911_v56  ;;  %10051 = vmatprep.subr.bf16.mxu1 %v13913_v61  ;;  %v480_v56 = vld [vmem:[#allocation2 + $0x720] sm:$0xff]  ;;  %v13966_v61 = vcombine.low %v468_v46, %v472_v47  ;;  %v14015_v47 = vcombine.high %v516_v37, %v520_v38 }
  0xb0   :  { %9560 = vmatpush1.bf16.msra.mxu0 %v13910_v0  ;;  %10052 = vmatpush1.bf16.msra.mxu1 %v13912_v1  ;;  %v13975_v0 = vcombine.high %v476_v55, %v480_v56  ;;  %v484_v1 = vld [vmem:[#allocation2 + $0x740] sm:$0xff] }
  0xb1   :  { %9561 = vmatprep.subr.bf16.mxu0 %v13919_v2  ;;  %10053 = vmatprep.subr.bf16.mxu1 %v13921_v6  ;;  %v488_v2 = vld [vmem:[#allocation2 + $0x760] sm:$0xff]  ;;  %v13974_v6 = vcombine.low %v476_v55, %v480_v56  ;;  %v14016_v55 = vcombine.low %v517_v39, %v521_v41 }
  0xb4   :  { %9562 = vmatpush1.bf16.msra.mxu0 %v13918_v8  ;;  %10054 = vmatpush1.bf16.msra.mxu1 %v13920_v10  ;;  %v13983_v8 = vcombine.high %v484_v1, %v488_v2  ;;  %v492_v10 = vld [vmem:[#allocation2 + $0x780] sm:$0xff] }
  0xb5   :  { %9563 = vmatprep.subr.bf16.mxu0 %v13927_v11  ;;  %10055 = vmatprep.subr.bf16.mxu1 %v13929_v15  ;;  %v496_v11 = vld [vmem:[#allocation2 + $0x7a0] sm:$0xff]  ;;  %v13982_v15 = vcombine.low %v484_v1, %v488_v2 }
  0xb6   :  { %v13990_v24 = vcombine.low %v492_v10, %v496_v11 }
  0xb8   :  { %9564 = vmatpush1.bf16.msra.mxu0 %v13926_v18  ;;  %10056 = vmatpush1.bf16.msra.mxu1 %v13928_v19  ;;  %v13984_v18 = vcombine.low %v485_v3, %v489_v5  ;;  %v13991_v19 = vcombine.high %v492_v10, %v496_v11  ;;  %v540_v3 = vld [vmem:[#allocation2 + $0x900] sm:$0xff]  ;;  %v541_v5 = vld [vmem:[#allocation2 + $0x908] sm:$0xff] }
  0xb9   :  { %9565 = vmatprep.subr.bf16.mxu0 %v13935_v59  ;;  %10057 = vmatprep.subr.bf16.mxu1 %v13937_v23  ;;  %v504_v59 = vld [vmem:[#allocation2 + $0x7e0] sm:$0xff]  ;;  %v16556_v23 = vld [vmem:[%s16953_s0 + $0x8] sm:$0xff] }
  0xba   :  { %v16560_v33 = vrot.slane %v16556_v23, %v16519_v53 }
  0xbc   :  { %9566 = vmatpush1.bf16.msra.mxu0 %v13934_v26  ;;  %10058 = vmatpush1.bf16.msra.mxu1 %v13936_v27  ;;  %v13992_v26 = vcombine.low %v493_v12, %v497_v14  ;;  %v13999_v27 = vcombine.high %v500_v17, %v504_v59  ;;  %v548_v12 = vld [vmem:[#allocation2 + $0x940] sm:$0xff]  ;;  %v549_v14 = vld [vmem:[#allocation2 + $0x948] sm:$0xff] }
  0xbd   :  { %9567 = vmatprep.subr.bf16.mxu0 %v13943_v28  ;;  %10059 = vmatprep.subr.bf16.mxu1 %v13945_v32  ;;  %v508_v28 = vld [vmem:[#allocation2 + $0x800] sm:$0xff]  ;;  %v513_v32 = vld [vmem:[#allocation2 + $0x828] sm:$0xff] }
  0xbe   :  { %v14008_v46 = vcombine.low %v509_v30, %v513_v32 }
  0xc0   :  { %9568 = vmatpush1.bf16.msra.mxu0 %v13942_v34  ;;  %10060 = vmatpush1.bf16.msra.mxu1 %v13944_v35  ;;  %v13998_v34 = vcombine.low %v500_v17, %v504_v59  ;;  %v14000_v35 = vcombine.low %v501_v20, %v505_v21  ;;  %v553_v17 = vld [vmem:[#allocation2 + $0x968] sm:$0xff]  ;;  %v556_v20 = vld [vmem:[#allocation2 + $0x980] sm:$0xff] }
  0xc1   :  { %9569 = vmatprep.subr.bf16.mxu0 %v13951_v63  ;;  %10061 = vmatprep.subr.bf16.mxu1 %v13953_v40  ;;  %v14007_v63 = vcombine.high %v508_v28, %v512_v29  ;;  %v14009_v40 = vcombine.high %v509_v30, %v513_v32  ;;  %v560_v21 = vld [vmem:[#allocation2 + $0x9a0] sm:$0xff]  ;;  %v565_v32 = vld [vmem:[#allocation2 + $0x9c8] sm:$0xff] }
  0xc2   :  { %v564_v30 = vld [vmem:[#allocation2 + $0x9c0] sm:$0xff] }
  0xc4   :  { %9570 = vmatpush1.bf16.msra.mxu0 %v13950_v42  ;;  %10062 = vmatpush1.bf16.msra.mxu1 %v13952_v43  ;;  %v134_v42 = vcombine.high %v16560_v33, %v16560_v33  ;;  %v16566_v43 = vpack.c.bf16 %v16539_v16, %v16539_v16  ;;  %v14014_v16 = vcombine.low %v516_v37, %v520_v38 }
  0xc5   :  { %9571 = vmatprep.subr.bf16.mxu0 %v13959_v45  ;;  %10063 = vmatprep.subr.bf16.mxu1 %v13961_v49  ;;  %v14006_v45 = vcombine.low %v508_v28, %v512_v29  ;;  %v528_v49 = vld [vmem:[#allocation2 + $0x8a0] sm:$0xff]  ;;  %v14048_v28 = vcombine.low %v549_v14, %v553_v17  ;;  %v14055_v29 = vcombine.high %v556_v20, %v560_v21 }
  0xc6   :  { %v14023_v56 = vcombine.high %v524_v48, %v528_v49 }
  0xc8   :  { %9572 = vmatpush1.bf16.msra.mxu0 %v13958_v51  ;;  %10064 = vmatpush1.bf16.msra.mxu1 %v13960_v52  ;;  %v14017_v51 = vcombine.high %v517_v39, %v521_v41  ;;  %v529_v52 = vld [vmem:[#allocation2 + $0x8a8] sm:$0xff]  ;;  %v572_v39 = vld [vmem:[#allocation2 + $0xa00] sm:$0xff] }
  0xc9   :  { %9573 = vmatprep.subr.bf16.mxu0 %v13967_v54  ;;  %10065 = vmatprep.subr.bf16.mxu1 %v13969_v58  ;;  %v16568_v54 = vpack.c.bf16 %v134_v42, %v134_v42  ;;  %v536_v58 = vld [vmem:[#allocation2 + $0x8e0] sm:$0xff]  ;;  %v14024_v1 = vcombine.low %v525_v50, %v529_v52  ;;  %v573_v41 = vld [vmem:[#allocation2 + $0xa08] sm:$0xff] }
  0xca   :  { %v14031_v2 = vcombine.high %v532_v57, %v536_v58 }
  0xcc   :  { %9574 = vmatpush1.bf16.msra.mxu0 %v13966_v61  ;;  %10066 = vmatpush1.bf16.msra.mxu1 %v13968_v62  ;;  %v14025_v61 = vcombine.high %v525_v50, %v529_v52  ;;  %v537_v62 = vld [vmem:[#allocation2 + $0x8e8] sm:$0xff]  ;;  %v584_v50 = vld [vmem:[#allocation2 + $0xa60] sm:$0xff] }
  0xcd   :  { %9575 = vmatprep.subr.bf16.mxu0 %v13975_v0  ;;  %10067 = vmatprep.subr.bf16.mxu1 %v13977_v4  ;;  %v14022_v0 = vcombine.low %v524_v48, %v528_v49  ;;  %v544_v4 = vld [vmem:[#allocation2 + $0x920] sm:$0xff]  ;;  %v14032_v10 = vcombine.low %v533_v60, %v537_v62 }
  0xce   :  { %v14039_v11 = vcombine.high %v540_v3, %v544_v4  ;;  %v580_v49 = vld [vmem:[#allocation2 + $0xa40] sm:$0xff] }
  0xd0   :  { %9576 = vmatpush1.bf16.msra.mxu0 %v13974_v6  ;;  %10068 = vmatpush1.bf16.msra.mxu1 %v13976_v7  ;;  %v14033_v6 = vcombine.high %v533_v60, %v537_v62  ;;  %v545_v7 = vld [vmem:[#allocation2 + $0x928] sm:$0xff]  ;;  %v592_v60 = vld [vmem:[#allocation2 + $0xaa0] sm:$0xff] }
  0xd1   :  { %9577 = vmatprep.subr.bf16.mxu0 %v13983_v8  ;;  %10069 = vmatprep.subr.bf16.mxu1 %v13985_v13  ;;  %v14030_v8 = vcombine.low %v532_v57, %v536_v58  ;;  %v552_v13 = vld [vmem:[#allocation2 + $0x960] sm:$0xff]  ;;  %v14079_v57 = vcombine.high %v580_v49, %v584_v50 }
  0xd2   :  { %v14047_v59 = vcombine.high %v548_v12, %v552_v13  ;;  %v588_v58 = vld [vmem:[#allocation2 + $0xa80] sm:$0xff] }
  0xd4   :  { %9578 = vmatpush1.bf16.msra.mxu0 %v13982_v15  ;;  %10070 = vmatpush1.bf16.msra.mxu1 %v13984_v18  ;;  %v14041_v15 = vcombine.high %v541_v5, %v545_v7  ;;  %v14038_v18 = vcombine.low %v540_v3, %v544_v4  ;;  %v14087_v3 = vcombine.high %v588_v58, %v592_v60  ;;  %v596_v4 = vld [vmem:[#allocation2 + $0xac0] sm:$0xff] }
  0xd5   :  { %9579 = vmatprep.subr.bf16.mxu0 %v13991_v19  ;;  %10071 = vmatprep.subr.bf16.mxu1 %v13993_v22  ;;  %v14040_v19 = vcombine.low %v541_v5, %v545_v7  ;;  %v557_v22 = vld [vmem:[#allocation2 + $0x988] sm:$0xff]  ;;  %v600_v5 = vld [vmem:[#allocation2 + $0xae0] sm:$0xff] }
  0xd8   :  { %9580 = vmatpush1.bf16.msra.mxu0 %v13990_v24  ;;  %10072 = vmatpush1.bf16.msra.mxu1 %v13992_v26  ;;  %v14049_v24 = vcombine.high %v549_v14, %v553_v17  ;;  %v561_v26 = vld [vmem:[#allocation2 + $0x9a8] sm:$0xff]  ;;  %v608_v14 = vld [vmem:[#allocation2 + $0xb20] sm:$0xff] }
  0xd9   :  { %9581 = vmatprep.subr.bf16.mxu0 %v13999_v27  ;;  %10073 = vmatprep.subr.bf16.mxu1 %v14001_v31  ;;  %v14046_v27 = vcombine.low %v548_v12, %v552_v13  ;;  %v568_v31 = vld [vmem:[#allocation2 + $0x9e0] sm:$0xff]  ;;  %v14056_v37 = vcombine.low %v557_v22, %v561_v26  ;;  %v14095_v12 = vcombine.high %v596_v4, %v600_v5 }
  0xda   :  { %v14063_v38 = vcombine.high %v564_v30, %v568_v31  ;;  %v604_v13 = vld [vmem:[#allocation2 + $0xb00] sm:$0xff] }
  0xdc   :  { %9582 = vmatpush1.bf16.msra.mxu0 %v13998_v34  ;;  %10074 = vmatpush1.bf16.msra.mxu1 %v14000_v35  ;;  %v14057_v34 = vcombine.high %v557_v22, %v561_v26  ;;  %v569_v35 = vld [vmem:[#allocation2 + $0x9e8] sm:$0xff]  ;;  %v616_v22 = vld [vmem:[#allocation2 + $0xb60] sm:$0xff] }
  0xdd   :  { %9592 = vmatprep.subr.bf16.mxu0 %v14007_v63  ;;  %10084 = vmatprep.subr.bf16.mxu1 %v14009_v40  ;;  %v14054_v63 = vcombine.low %v556_v20, %v560_v21  ;;  %v576_v40 = vld [vmem:[#allocation2 + $0xa20] sm:$0xff]  ;;  %v14065_v42 = vcombine.high %v565_v32, %v569_v35  ;;  %v14103_v20 = vcombine.high %v604_v13, %v608_v14 }
  0xde   :  { %v14071_v48 = vcombine.high %v572_v39, %v576_v40  ;;  %v612_v21 = vld [vmem:[#allocation2 + $0xb40] sm:$0xff] }
  0xdf   :  { %9584 = vmatmul.mubr.bf16.vlgmr.msra.gmra.mrb[0].mxu0 %v16566_v43  ;;  %10076 = vmatmul.mubr.bf16.vlgmr.msra.gmra.mrb[0].mxu1 %v16566_v43 }
  0xe0   :  { %9593 = vmatpush1.bf16.msra.mxu0 %v14006_v45  ;;  %10085 = vmatpush1.bf16.msra.mxu1 %v14008_v46  ;;  %v577_v45 = vld [vmem:[#allocation2 + $0xa28] sm:$0xff]  ;;  %v14062_v46 = vcombine.low %v564_v30, %v568_v31  ;;  %v14111_v30 = vcombine.high %v612_v21, %v616_v22  ;;  %v620_v31 = vld [vmem:[#allocation2 + $0xb80] sm:$0xff] }
  0xe1   :  { %9594 = vmatprep.subr.bf16.mxu0 %v14015_v47  ;;  %10086 = vmatprep.subr.bf16.mxu1 %v14017_v51  ;;  %v14064_v47 = vcombine.low %v565_v32, %v569_v35  ;;  %v581_v51 = vld [vmem:[#allocation2 + $0xa48] sm:$0xff]  ;;  %v14073_v52 = vcombine.high %v573_v41, %v577_v45  ;;  %v624_v32 = vld [vmem:[#allocation2 + $0xba0] sm:$0xff] }
  0xe2   :  { %9624 = vmatprep.mubr.bf16.mxu0 %v16568_v54  ;;  %10116 = vmatprep.mubr.bf16.mxu1 %v16568_v54 }
  0xe4   :  { %9595 = vmatpush1.bf16.msra.mxu0 %v14014_v16  ;;  %10087 = vmatpush1.bf16.msra.mxu1 %v14016_v55  ;;  %v585_v16 = vld [vmem:[#allocation2 + $0xa68] sm:$0xff]  ;;  %v14070_v55 = vcombine.low %v572_v39, %v576_v40  ;;  %v14119_v39 = vcombine.high %v620_v31, %v624_v32  ;;  %v628_v40 = vld [vmem:[#allocation2 + $0xbc0] sm:$0xff] }
  0xe5   :  { %9596 = vmatprep.subr.bf16.mxu0 %v14023_v56  ;;  %10088 = vmatprep.subr.bf16.mxu1 %v14025_v61  ;;  %v14072_v56 = vcombine.low %v573_v41, %v577_v45  ;;  %v589_v61 = vld [vmem:[#allocation2 + $0xa88] sm:$0xff]  ;;  %v14081_v62 = vcombine.high %v581_v51, %v585_v16  ;;  %v632_v41 = vld [vmem:[#allocation2 + $0xbe0] sm:$0xff] }
  0xe8   :  { %9597 = vmatpush1.bf16.msra.mxu0 %v14022_v0  ;;  %10089 = vmatpush1.bf16.msra.mxu1 %v14024_v1  ;;  %v593_v0 = vld [vmem:[#allocation2 + $0xaa8] sm:$0xff]  ;;  %v14078_v1 = vcombine.low %v580_v49, %v584_v50  ;;  %v14127_v50 = vcombine.high %v628_v40, %v632_v41 }
  0xe9   :  { %9598 = vmatprep.subr.bf16.mxu0 %v14031_v2  ;;  %10090 = vmatprep.subr.bf16.mxu1 %v14033_v6  ;;  %v14080_v2 = vcombine.low %v581_v51, %v585_v16  ;;  %v597_v6 = vld [vmem:[#allocation2 + $0xac8] sm:$0xff]  ;;  %v14089_v7 = vcombine.high %v589_v61, %v593_v0  ;;  %v636_v51 = vld [vmem:[#allocation2 + $0xc00] sm:$0xff] }
  0xea   :  { %v637_v16 = vld [vmem:[#allocation2 + $0xc08] sm:$0xff] }
  0xec   :  { %9599 = vmatpush1.bf16.msra.mxu0 %v14030_v8  ;;  %10091 = vmatpush1.bf16.msra.mxu1 %v14032_v10  ;;  %v601_v8 = vld [vmem:[#allocation2 + $0xae8] sm:$0xff]  ;;  %v14086_v10 = vcombine.low %v588_v58, %v592_v60  ;;  %v14126_v58 = vcombine.low %v628_v40, %v632_v41 }
  0xed   :  { %9600 = vmatprep.subr.bf16.mxu0 %v14039_v11  ;;  %10092 = vmatprep.subr.bf16.mxu1 %v14041_v15  ;;  %v14088_v11 = vcombine.low %v589_v61, %v593_v0  ;;  %v605_v15 = vld [vmem:[#allocation2 + $0xb08] sm:$0xff]  ;;  %v14097_v17 = vcombine.high %v597_v6, %v601_v8  ;;  %v644_v61 = vld [vmem:[#allocation2 + $0xc40] sm:$0xff] }
  0xee   :  { %v681_v40 = vld [vmem:[#allocation2 + $0xd68] sm:$0xff] }
  0xf0   :  { %9601 = vmatpush1.bf16.msra.mxu0 %v14038_v18  ;;  %10093 = vmatpush1.bf16.msra.mxu1 %v14040_v19  ;;  %v609_v18 = vld [vmem:[#allocation2 + $0xb28] sm:$0xff]  ;;  %v14094_v19 = vcombine.low %v596_v4, %v600_v5  ;;  %v16583_v4 = vpack.c.bf16 %v16560_v33, %v16560_v33 }
  0xf1   :  { %9602 = vmatprep.subr.bf16.mxu0 %v14047_v59  ;;  %10094 = vmatprep.subr.bf16.mxu1 %v14049_v24  ;;  %v14096_v59 = vcombine.low %v597_v6, %v601_v8  ;;  %v613_v24 = vld [vmem:[#allocation2 + $0xb48] sm:$0xff]  ;;  %v14105_v26 = vcombine.high %v605_v15, %v609_v18  ;;  %v652_v8 = vld [vmem:[#allocation2 + $0xc80] sm:$0xff] }
  0xf4   :  { %9603 = vmatpush1.bf16.msra.mxu0 %v14046_v27  ;;  %10095 = vmatpush1.bf16.msra.mxu1 %v14048_v28  ;;  %v617_v27 = vld [vmem:[#allocation2 + $0xb68] sm:$0xff]  ;;  %v14102_v28 = vcombine.low %v604_v13, %v608_v14 }
  0xf5   :  { %9604 = vmatprep.subr.bf16.mxu0 %v14055_v29  ;;  %10096 = vmatprep.subr.bf16.mxu1 %v14057_v34  ;;  %v14104_v29 = vcombine.low %v605_v15, %v609_v18  ;;  %v621_v34 = vld [vmem:[#allocation2 + $0xb88] sm:$0xff]  ;;  %v14113_v35 = vcombine.high %v613_v24, %v617_v27  ;;  %v660_v18 = vld [vmem:[#allocation2 + $0xcc0] sm:$0xff] }
  0xf6   :  { %v657_v13 = vld [vmem:[#allocation2 + $0xca8] sm:$0xff] }
  0xf8   :  { %9605 = vmatpush1.bf16.msra.mxu0 %v14054_v63  ;;  %10097 = vmatpush1.bf16.msra.mxu1 %v14056_v37  ;;  %v625_v63 = vld [vmem:[#allocation2 + $0xba8] sm:$0xff]  ;;  %v14110_v37 = vcombine.low %v612_v21, %v616_v22 }
  0xf9   :  { %9606 = vmatprep.subr.bf16.mxu0 %v14063_v38  ;;  %10098 = vmatprep.subr.bf16.mxu1 %v14065_v42  ;;  %v14112_v38 = vcombine.low %v613_v24, %v617_v27  ;;  %v629_v42 = vld [vmem:[#allocation2 + $0xbc8] sm:$0xff]  ;;  %v14121_v45 = vcombine.high %v621_v34, %v625_v63  ;;  %v14120_v49 = vcombine.low %v621_v34, %v625_v63  ;;  %v668_v27 = vld [vmem:[#allocation2 + $0xd00] sm:$0xff] }
  0xfa   :  { %v665_v21 = vld [vmem:[#allocation2 + $0xce8] sm:$0xff]  ;;  %v676_v63 = vld [vmem:[#allocation2 + $0xd40] sm:$0xff] }
  0xfc   :  { %9607 = vmatpush1.bf16.msra.mxu0 %v14062_v46  ;;  %10099 = vmatpush1.bf16.msra.mxu1 %v14064_v47  ;;  %v633_v46 = vld [vmem:[#allocation2 + $0xbe8] sm:$0xff]  ;;  %v119_v47 = vcombine.high %v16556_v23, %v16556_v23 }
  0xfd   :  { %9608 = vmatprep.subr.bf16.mxu0 %v14071_v48  ;;  %10100 = vmatprep.subr.bf16.mxu1 %v14073_v52  ;;  %v14118_v48 = vcombine.low %v620_v31, %v624_v32  ;;  %v640_v52 = vld [vmem:[#allocation2 + $0xc20] sm:$0xff]  ;;  %v14128_v23 = vcombine.low %v629_v42, %v633_v46  ;;  %v673_v31 = vld [vmem:[#allocation2 + $0xd28] sm:$0xff] }
  0xfe   :  { %v14135_v60 = vcombine.high %v636_v51, %v640_v52  ;;  %v14134_v5 = vcombine.low %v636_v51, %v640_v52 }
 0x100   :  { %9609 = vmatpush1.bf16.msra.mxu0 %v14070_v55  ;;  %10101 = vmatpush1.bf16.msra.mxu1 %v14072_v56  ;;  %v14129_v55 = vcombine.high %v629_v42, %v633_v46  ;;  %v641_v56 = vld [vmem:[#allocation2 + $0xc28] sm:$0xff]  ;;  %v684_v46 = vld [vmem:[#allocation2 + $0xd80] sm:$0xff] }
 0x101   :  { %9610 = vmatprep.subr.bf16.mxu0 %v14079_v57  ;;  %10102 = vmatprep.subr.bf16.mxu1 %v14081_v62  ;;  %v16577_v57 = vrot.slane %v119_v47, %v16519_v53  ;;  %v648_v62 = vld [vmem:[#allocation2 + $0xc60] sm:$0xff]  ;;  %v14137_v0 = vcombine.high %v637_v16, %v641_v56  ;;  %v14136_v6 = vcombine.low %v637_v16, %v641_v56 }
 0x102   :  { %v14142_v33 = vcombine.low %v644_v61, %v648_v62  ;;  %v688_v47 = vld [vmem:[#allocation2 + $0xda0] sm:$0xff] }
 0x103   :  { %v14183_v16 = vcombine.high %v684_v46, %v688_v47  ;;  %v696_v56 = vld [vmem:[#allocation2 + $0xde0] sm:$0xff] }
 0x104   :  { %9611 = vmatpush1.bf16.msra.mxu0 %v14078_v1  ;;  %10103 = vmatpush1.bf16.msra.mxu1 %v14080_v2  ;;  %v645_v1 = vld [vmem:[#allocation2 + $0xc48] sm:$0xff] }
 0x105   :  { %9612 = vmatprep.subr.bf16.mxu0 %v14087_v3  ;;  %10104 = vmatprep.subr.bf16.mxu1 %v14089_v7  ;;  %v649_v2 = vld [vmem:[#allocation2 + $0xc68] sm:$0xff]  ;;  %v135_v3 = vcombine.high %v16577_v57, %v16577_v57  ;;  %v14143_v7 = vcombine.high %v644_v61, %v648_v62  ;;  %v14182_v61 = vcombine.low %v684_v46, %v688_v47 }
 0x106   :  { %v14144_v15 = vcombine.low %v645_v1, %v649_v2 }
 0x107   :  { %v16585_v14 = vpack.c.bf16 %v135_v3, %v135_v3  ;;  %v701_v3 = vld [vmem:[#allocation2 + $0xe08] sm:$0xff] }
 0x108   :  { %9613 = vmatpush1.bf16.msra.mxu0 %v14086_v10  ;;  %10105 = vmatpush1.bf16.msra.mxu1 %v14088_v11  ;;  %v656_v10 = vld [vmem:[#allocation2 + $0xca0] sm:$0xff]  ;;  %v653_v11 = vld [vmem:[#allocation2 + $0xc88] sm:$0xff] }
 0x109   :  { %9614 = vmatprep.subr.bf16.mxu0 %v14095_v12  ;;  %10106 = vmatprep.subr.bf16.mxu1 %v14097_v17  ;;  %v14145_v12 = vcombine.high %v645_v1, %v649_v2  ;;  %v14151_v17 = vcombine.high %v652_v8, %v656_v10  ;;  %v14150_v22 = vcombine.low %v652_v8, %v656_v10  ;;  %v700_v1 = vld [vmem:[#allocation2 + $0xe00] sm:$0xff] }
 0x10a   :  { %v14152_v24 = vcombine.low %v653_v11, %v657_v13  ;;  %v704_v2 = vld [vmem:[#allocation2 + $0xe20] sm:$0xff] }
 0x10b   :  { %v14199_v10 = vcombine.high %v700_v1, %v704_v2 }
 0x10c   :  { %9615 = vmatpush1.bf16.msra.mxu0 %v14094_v19  ;;  %10107 = vmatpush1.bf16.msra.mxu1 %v14096_v59  ;;  %v664_v19 = vld [vmem:[#allocation2 + $0xce0] sm:$0xff]  ;;  %v661_v59 = vld [vmem:[#allocation2 + $0xcc8] sm:$0xff] }
 0x10d   :  { %9616 = vmatprep.subr.bf16.mxu0 %v14103_v20  ;;  %10108 = vmatprep.subr.bf16.mxu1 %v14105_v26  ;;  %v14153_v20 = vcombine.high %v653_v11, %v657_v13  ;;  %v14159_v26 = vcombine.high %v660_v18, %v664_v19  ;;  %v14158_v32 = vcombine.low %v660_v18, %v664_v19  ;;  %v708_v11 = vld [vmem:[#allocation2 + $0xe40] sm:$0xff]  ;;  %v709_v13 = vld [vmem:[#allocation2 + $0xe48] sm:$0xff] }
 0x10e   :  { %v14160_v34 = vcombine.low %v661_v59, %v665_v21 }
 0x110   :  { %9617 = vmatpush1.bf16.msra.mxu0 %v14102_v28  ;;  %10109 = vmatpush1.bf16.msra.mxu1 %v14104_v29  ;;  %v672_v28 = vld [vmem:[#allocation2 + $0xd20] sm:$0xff]  ;;  %v669_v29 = vld [vmem:[#allocation2 + $0xd08] sm:$0xff] }
 0x111   :  { %9618 = vmatprep.subr.bf16.mxu0 %v14111_v30  ;;  %10110 = vmatprep.subr.bf16.mxu1 %v14113_v35  ;;  %v14161_v30 = vcombine.high %v661_v59, %v665_v21  ;;  %v14167_v35 = vcombine.high %v668_v27, %v672_v28  ;;  %v14166_v41 = vcombine.low %v668_v27, %v672_v28  ;;  %v720_v21 = vld [vmem:[#allocation2 + $0xea0] sm:$0xff] }
 0x112   :  { %v14168_v42 = vcombine.low %v669_v29, %v673_v31 }
 0x114   :  { %9619 = vmatpush1.bf16.msra.mxu0 %v14110_v37  ;;  %10111 = vmatpush1.bf16.msra.mxu1 %v14112_v38  ;;  %v680_v37 = vld [vmem:[#allocation2 + $0xd60] sm:$0xff]  ;;  %v677_v38 = vld [vmem:[#allocation2 + $0xd48] sm:$0xff] }
 0x115   :  { %9620 = vmatprep.subr.bf16.mxu0 %v14119_v39  ;;  %10112 = vmatprep.subr.bf16.mxu1 %v14121_v45  ;;  %v14169_v39 = vcombine.high %v669_v29, %v673_v31  ;;  %v14175_v45 = vcombine.high %v676_v63, %v680_v37  ;;  %v14174_v51 = vcombine.low %v676_v63, %v680_v37  ;;  %v728_v31 = vld [vmem:[#allocation2 + $0xee0] sm:$0xff] }
 0x116   :  { %v14176_v52 = vcombine.low %v677_v38, %v681_v40 }
 0x118   :  { %9621 = vmatpush1.bf16.msra.mxu0 %v14118_v48  ;;  %10113 = vmatpush1.bf16.msra.mxu1 %v14120_v49  ;;  %v685_v48 = vld [vmem:[#allocation2 + $0xd88] sm:$0xff]  ;;  %v14177_v49 = vcombine.high %v677_v38, %v681_v40  ;;  %v736_v40 = vld [vmem:[#allocation2 + $0xf20] sm:$0xff] }
 0x119   :  { %9622 = vmatprep.subr.bf16.mxu0 %v14127_v50  ;;  %10114 = vmatprep.subr.bf16.mxu1 %v14129_v55  ;;  %v689_v50 = vld [vmem:[#allocation2 + $0xda8] sm:$0xff]  ;;  %v692_v55 = vld [vmem:[#allocation2 + $0xdc0] sm:$0xff] }
 0x11a   :  { %v14184_v62 = vcombine.low %v685_v48, %v689_v50 }
 0x11c   :  { %9623 = vmatpush1.bf16.msra.mxu0 %v14126_v58  ;;  %10115 = vmatpush1.bf16.msra.mxu1 %v14128_v23  ;;  %v693_v58 = vld [vmem:[#allocation2 + $0xdc8] sm:$0xff]  ;;  %v14185_v23 = vcombine.high %v685_v48, %v689_v50  ;;  %v744_v50 = vld [vmem:[#allocation2 + $0xf60] sm:$0xff] }
 0x11d   :  { %9633 = vmatprep.subr.bf16.mxu0 %v14135_v60  ;;  %10125 = vmatprep.subr.bf16.mxu1 %v14137_v0  ;;  %v697_v60 = vld [vmem:[#allocation2 + $0xde8] sm:$0xff]  ;;  %v14191_v0 = vcombine.high %v692_v55, %v696_v56 }
 0x11e   :  { %v14192_v8 = vcombine.low %v693_v58, %v697_v60 }
 0x11f   :  { %9625 = vmatmul.mubr.bf16.vlgmr.msra.gmra.mrb[0].mxu0 %v16583_v4  ;;  %10117 = vmatmul.mubr.bf16.vlgmr.msra.gmra.mrb[0].mxu1 %v16583_v4 }
 0x120   :  { %9634 = vmatpush1.bf16.msra.mxu0 %v14134_v5  ;;  %10126 = vmatpush1.bf16.msra.mxu1 %v14136_v6  ;;  %v14193_v5 = vcombine.high %v693_v58, %v697_v60  ;;  %v705_v6 = vld [vmem:[#allocation2 + $0xe28] sm:$0xff]  ;;  %v752_v60 = vld [vmem:[#allocation2 + $0xfa0] sm:$0xff] }
 0x121   :  { %9635 = vmatprep.subr.bf16.mxu0 %v14143_v7  ;;  %10127 = vmatprep.subr.bf16.mxu1 %v14145_v12  ;;  %v14190_v7 = vcombine.low %v692_v55, %v696_v56  ;;  %v712_v12 = vld [vmem:[#allocation2 + $0xe60] sm:$0xff]  ;;  %v14200_v18 = vcombine.low %v701_v3, %v705_v6 }
 0x122   :  { %9665 = vmatprep.mubr.bf16.mxu0 %v16585_v14  ;;  %10157 = vmatprep.mubr.bf16.mxu1 %v16585_v14  ;;  %v14207_v19 = vcombine.high %v708_v11, %v712_v12 }
 0x124   :  { %9636 = vmatpush1.bf16.msra.mxu0 %v14142_v33  ;;  %10128 = vmatpush1.bf16.msra.mxu1 %v14144_v15  ;;  %v14201_v33 = vcombine.high %v701_v3, %v705_v6  ;;  %v713_v15 = vld [vmem:[#allocation2 + $0xe68] sm:$0xff]  ;;  %v760_v6 = vld [vmem:[#allocation2 + $0xfe0] sm:$0xff] }
 0x125   :  { %9637 = vmatprep.subr.bf16.mxu0 %v14151_v17  ;;  %10129 = vmatprep.subr.bf16.mxu1 %v14153_v20  ;;  %v14198_v17 = vcombine.low %v700_v1, %v704_v2  ;;  %v14209_v59 = vcombine.high %v709_v13, %v713_v15  ;;  %v716_v20 = vld [vmem:[#allocation2 + $0xe80] sm:$0xff]  ;;  %v14208_v27 = vcombine.low %v709_v13, %v713_v15 }
 0x126   :  { %v14215_v28 = vcombine.high %v716_v20, %v720_v21  ;;  %v764_v15 = vld [vmem:[#allocation2 + $0x1000] sm:$0xff] }
 0x128   :  { %9638 = vmatpush1.bf16.msra.mxu0 %v14150_v22  ;;  %10130 = vmatpush1.bf16.msra.mxu1 %v14152_v24  ;;  %v717_v22 = vld [vmem:[#allocation2 + $0xe88] sm:$0xff] }
 0x129   :  { %9639 = vmatprep.subr.bf16.mxu0 %v14159_v26  ;;  %10131 = vmatprep.subr.bf16.mxu1 %v14161_v30  ;;  %v721_v24 = vld [vmem:[#allocation2 + $0xea8] sm:$0xff]  ;;  %v14206_v26 = vcombine.low %v708_v11, %v712_v12  ;;  %v724_v30 = vld [vmem:[#allocation2 + $0xec0] sm:$0xff] }
 0x12a   :  { %v14217_v29 = vcombine.high %v717_v22, %v721_v24  ;;  %v14216_v63 = vcombine.low %v717_v22, %v721_v24  ;;  %v14223_v37 = vcombine.high %v724_v30, %v728_v31 }
 0x12c   :  { %9640 = vmatpush1.bf16.msra.mxu0 %v14158_v32  ;;  %10132 = vmatpush1.bf16.msra.mxu1 %v14160_v34  ;;  %v725_v32 = vld [vmem:[#allocation2 + $0xec8] sm:$0xff] }
 0x12d   :  { %9641 = vmatprep.subr.bf16.mxu0 %v14167_v35  ;;  %10133 = vmatprep.subr.bf16.mxu1 %v14169_v39  ;;  %v729_v34 = vld [vmem:[#allocation2 + $0xee8] sm:$0xff]  ;;  %v14214_v35 = vcombine.low %v716_v20, %v720_v21  ;;  %v732_v39 = vld [vmem:[#allocation2 + $0xf00] sm:$0xff] }
 0x12e   :  { %v14225_v38 = vcombine.high %v725_v32, %v729_v34  ;;  %v14224_v46 = vcombine.low %v725_v32, %v729_v34  ;;  %v14231_v47 = vcombine.high %v732_v39, %v736_v40 }
 0x130   :  { %9642 = vmatpush1.bf16.msra.mxu0 %v14166_v41  ;;  %10134 = vmatpush1.bf16.msra.mxu1 %v14168_v42  ;;  %v733_v41 = vld [vmem:[#allocation2 + $0xf08] sm:$0xff] }
 0x131   :  { %9643 = vmatprep.subr.bf16.mxu0 %v14175_v45  ;;  %10135 = vmatprep.subr.bf16.mxu1 %v14177_v49  ;;  %v737_v42 = vld [vmem:[#allocation2 + $0xf28] sm:$0xff]  ;;  %v14222_v45 = vcombine.low %v724_v30, %v728_v31  ;;  %v740_v49 = vld [vmem:[#allocation2 + $0xf40] sm:$0xff] }
 0x132   :  { %v14233_v48 = vcombine.high %v733_v41, %v737_v42  ;;  %v14232_v55 = vcombine.low %v733_v41, %v737_v42  ;;  %v14239_v56 = vcombine.high %v740_v49, %v744_v50  ;;  %v773_v30 = vld [vmem:[#allocation2 + $0x1048] sm:$0xff] }
 0x133   :  { %v777_v31 = vld [vmem:[#allocation2 + $0x1068] sm:$0xff] }
 0x134   :  { %9644 = vmatpush1.bf16.msra.mxu0 %v14174_v51  ;;  %10136 = vmatpush1.bf16.msra.mxu1 %v14176_v52  ;;  %v741_v51 = vld [vmem:[#allocation2 + $0xf48] sm:$0xff]  ;;  %v14272_v42 = vcombine.low %v773_v30, %v777_v31 }
 0x135   :  { %9645 = vmatprep.subr.bf16.mxu0 %v14183_v16  ;;  %10137 = vmatprep.subr.bf16.mxu1 %v14185_v23  ;;  %v745_v52 = vld [vmem:[#allocation2 + $0xf68] sm:$0xff]  ;;  %v14230_v16 = vcombine.low %v732_v39, %v736_v40  ;;  %v748_v23 = vld [vmem:[#allocation2 + $0xf80] sm:$0xff] }
 0x136   :  { %v14241_v58 = vcombine.high %v741_v51, %v745_v52  ;;  %v14240_v1 = vcombine.low %v741_v51, %v745_v52  ;;  %v14247_v2 = vcombine.high %v748_v23, %v752_v60  ;;  %v14246_v11 = vcombine.low %v748_v23, %v752_v60  ;;  %v781_v40 = vld [vmem:[#allocation2 + $0x1088] sm:$0xff] }
 0x137   :  { %v785_v41 = vld [vmem:[#allocation2 + $0x10a8] sm:$0xff] }
 0x138   :  { %9646 = vmatpush1.bf16.msra.mxu0 %v14182_v61  ;;  %10138 = vmatpush1.bf16.msra.mxu1 %v14184_v62  ;;  %v749_v61 = vld [vmem:[#allocation2 + $0xf88] sm:$0xff]  ;;  %v14280_v52 = vcombine.low %v781_v40, %v785_v41 }
 0x139   :  { %9647 = vmatprep.subr.bf16.mxu0 %v14191_v0  ;;  %10139 = vmatprep.subr.bf16.mxu1 %v14193_v5  ;;  %v753_v62 = vld [vmem:[#allocation2 + $0xfa8] sm:$0xff]  ;;  %v14238_v0 = vcombine.low %v740_v49, %v744_v50  ;;  %v756_v5 = vld [vmem:[#allocation2 + $0xfc0] sm:$0xff] }
 0x13a   :  { %v14249_v3 = vcombine.high %v749_v61, %v753_v62  ;;  %v14248_v12 = vcombine.low %v749_v61, %v753_v62  ;;  %v14255_v13 = vcombine.high %v756_v5, %v760_v6  ;;  %v14254_v20 = vcombine.low %v756_v5, %v760_v6  ;;  %v789_v49 = vld [vmem:[#allocation2 + $0x10c8] sm:$0xff] }
 0x13b   :  { %v793_v50 = vld [vmem:[#allocation2 + $0x10e8] sm:$0xff] }
 0x13c   :  { %9648 = vmatpush1.bf16.msra.mxu0 %v14190_v7  ;;  %10140 = vmatpush1.bf16.msra.mxu1 %v14192_v8  ;;  %v757_v7 = vld [vmem:[#allocation2 + $0xfc8] sm:$0xff]  ;;  %v14288_v62 = vcombine.low %v789_v49, %v793_v50 }
 0x13d   :  { %9649 = vmatprep.subr.bf16.mxu0 %v14199_v10  ;;  %10141 = vmatprep.subr.bf16.mxu1 %v14201_v33  ;;  %v761_v8 = vld [vmem:[#allocation2 + $0xfe8] sm:$0xff]  ;;  %v16594_v10 = vld [vmem:[%s16953_s0 + $0x10] sm:$0xff] }
 0x13e   :  { %v14257_v33 = vcombine.high %v757_v7, %v761_v8  ;;  %v14256_v21 = vcombine.low %v757_v7, %v761_v8  ;;  %v797_v23 = vld [vmem:[#allocation2 + $0x1108] sm:$0xff] }
 0x13f   :  { %v801_v60 = vld [vmem:[#allocation2 + $0x1128] sm:$0xff] }
 0x140   :  { %9650 = vmatpush1.bf16.msra.mxu0 %v14198_v17  ;;  %10142 = vmatpush1.bf16.msra.mxu1 %v14200_v18  ;;  %v768_v17 = vld [vmem:[#allocation2 + $0x1020] sm:$0xff]  ;;  %v16598_v18 = vrot.slane %v16594_v10, %v16519_v53  ;;  %v805_v5 = vld [vmem:[#allocation2 + $0x1148] sm:$0xff]  ;;  %v14296_v8 = vcombine.low %v797_v23, %v801_v60 }
 0x141   :  { %9651 = vmatprep.subr.bf16.mxu0 %v14207_v19  ;;  %10143 = vmatprep.subr.bf16.mxu1 %v14209_v59  ;;  %v765_v19 = vld [vmem:[#allocation2 + $0x1008] sm:$0xff]  ;;  %v14263_v22 = vcombine.high %v764_v15, %v768_v17  ;;  %v14262_v32 = vcombine.low %v764_v15, %v768_v17 }
 0x142   :  { %v769_v59 = vld [vmem:[#allocation2 + $0x1028] sm:$0xff] }
 0x143   :  { %v14265_v24 = vcombine.high %v765_v19, %v769_v59  ;;  %v14264_v34 = vcombine.low %v765_v19, %v769_v59  ;;  %v809_v6 = vld [vmem:[#allocation2 + $0x1168] sm:$0xff] }
 0x144   :  { %9652 = vmatpush1.bf16.msra.mxu0 %v14206_v26  ;;  %10144 = vmatpush1.bf16.msra.mxu1 %v14208_v27  ;;  %v772_v26 = vld [vmem:[#allocation2 + $0x1040] sm:$0xff]  ;;  %v813_v15 = vld [vmem:[#allocation2 + $0x1188] sm:$0xff]  ;;  %v14304_v59 = vcombine.low %v805_v5, %v809_v6 }
 0x145   :  { %9653 = vmatprep.subr.bf16.mxu0 %v14215_v28  ;;  %10145 = vmatprep.subr.bf16.mxu1 %v14217_v29  ;;  %v776_v27 = vld [vmem:[#allocation2 + $0x1060] sm:$0xff]  ;;  %v151_v28 = vcombine.high %v16598_v18, %v16598_v18  ;;  %v16604_v29 = vpack.c.bf16 %v16577_v57, %v16577_v57  ;;  %v817_v17 = vld [vmem:[#allocation2 + $0x11a8] sm:$0xff] }
 0x146   :  { %v14270_v57 = vcombine.low %v772_v26, %v776_v27 }
 0x147   :  { %v16606_v39 = vpack.c.bf16 %v151_v28, %v151_v28 }
 0x148   :  { %9654 = vmatpush1.bf16.msra.mxu0 %v14214_v35  ;;  %10146 = vmatpush1.bf16.msra.mxu1 %v14216_v63  ;;  %v14271_v35 = vcombine.high %v772_v26, %v776_v27  ;;  %v14273_v63 = vcombine.high %v773_v30, %v777_v31  ;;  %v821_v26 = vld [vmem:[#allocation2 + $0x11c8] sm:$0xff]  ;;  %v14312_v30 = vcombine.low %v813_v15, %v817_v17 }
 0x149   :  { %9655 = vmatprep.subr.bf16.mxu0 %v14223_v37  ;;  %10147 = vmatprep.subr.bf16.mxu1 %v14225_v38  ;;  %v780_v37 = vld [vmem:[#allocation2 + $0x1080] sm:$0xff]  ;;  %v825_v27 = vld [vmem:[#allocation2 + $0x11e8] sm:$0xff] }
 0x14a   :  { %v784_v38 = vld [vmem:[#allocation2 + $0x10a0] sm:$0xff] }
 0x14b   :  { %v14278_v51 = vcombine.low %v780_v37, %v784_v38 }
 0x14c   :  { %9656 = vmatpush1.bf16.msra.mxu0 %v14222_v45  ;;  %10148 = vmatpush1.bf16.msra.mxu1 %v14224_v46  ;;  %v14279_v45 = vcombine.high %v780_v37, %v784_v38  ;;  %v14281_v46 = vcombine.high %v781_v40, %v785_v41  ;;  %v833_v37 = vld [vmem:[#allocation2 + $0x1228] sm:$0xff]  ;;  %v14320_v40 = vcombine.low %v821_v26, %v825_v27 }
 0x14d   :  { %9657 = vmatprep.subr.bf16.mxu0 %v14231_v47  ;;  %10149 = vmatprep.subr.bf16.mxu1 %v14233_v48  ;;  %v788_v47 = vld [vmem:[#allocation2 + $0x10c0] sm:$0xff] }
 0x14e   :  { %v792_v48 = vld [vmem:[#allocation2 + $0x10e0] sm:$0xff] }
 0x14f   :  { %v14286_v61 = vcombine.low %v788_v47, %v792_v48 }
 0x150   :  { %9658 = vmatpush1.bf16.msra.mxu0 %v14230_v16  ;;  %10150 = vmatpush1.bf16.msra.mxu1 %v14232_v55  ;;  %v14287_v16 = vcombine.high %v788_v47, %v792_v48  ;;  %v14289_v55 = vcombine.high %v789_v49, %v793_v50  ;;  %v841_v47 = vld [vmem:[#allocation2 + $0x1268] sm:$0xff] }
 0x151   :  { %9659 = vmatprep.subr.bf16.mxu0 %v14239_v56  ;;  %10151 = vmatprep.subr.bf16.mxu1 %v14241_v58  ;;  %v796_v56 = vld [vmem:[#allocation2 + $0x1100] sm:$0xff] }
 0x152   :  { %v800_v58 = vld [vmem:[#allocation2 + $0x1120] sm:$0xff] }
 0x153   :  { %v14294_v7 = vcombine.low %v796_v56, %v800_v58 }
 0x154   :  { %9660 = vmatpush1.bf16.msra.mxu0 %v14238_v0  ;;  %10152 = vmatpush1.bf16.msra.mxu1 %v14240_v1  ;;  %v14295_v0 = vcombine.high %v796_v56, %v800_v58  ;;  %v14297_v1 = vcombine.high %v797_v23, %v801_v60  ;;  %v849_v56 = vld [vmem:[#allocation2 + $0x12a8] sm:$0xff] }
 0x155   :  { %9661 = vmatprep.subr.bf16.mxu0 %v14247_v2  ;;  %10153 = vmatprep.subr.bf16.mxu1 %v14249_v3  ;;  %v804_v2 = vld [vmem:[#allocation2 + $0x1140] sm:$0xff] }
 0x156   :  { %v808_v3 = vld [vmem:[#allocation2 + $0x1160] sm:$0xff] }
 0x157   :  { %v14302_v19 = vcombine.low %v804_v2, %v808_v3 }
 0x158   :  { %9662 = vmatpush1.bf16.msra.mxu0 %v14246_v11  ;;  %10154 = vmatpush1.bf16.msra.mxu1 %v14248_v12  ;;  %v14303_v11 = vcombine.high %v804_v2, %v808_v3  ;;  %v14305_v12 = vcombine.high %v805_v5, %v809_v6  ;;  %v857_v2 = vld [vmem:[#allocation2 + $0x12e8] sm:$0xff] }
 0x159   :  { %9663 = vmatprep.subr.bf16.mxu0 %v14255_v13  ;;  %10155 = vmatprep.subr.bf16.mxu1 %v14257_v33  ;;  %v812_v13 = vld [vmem:[#allocation2 + $0x1180] sm:$0xff] }
 0x15a   :  { %v816_v33 = vld [vmem:[#allocation2 + $0x11a0] sm:$0xff] }
 0x15b   :  { %v14310_v28 = vcombine.low %v812_v13, %v816_v33 }
 0x15c   :  { %9664 = vmatpush1.bf16.msra.mxu0 %v14254_v20  ;;  %10156 = vmatpush1.bf16.msra.mxu1 %v14256_v21  ;;  %v14311_v20 = vcombine.high %v812_v13, %v816_v33  ;;  %v14313_v21 = vcombine.high %v813_v15, %v817_v17  ;;  %v865_v13 = vld [vmem:[#allocation2 + $0x1328] sm:$0xff] }
 0x15d   :  { %9674 = vmatprep.subr.bf16.mxu0 %v14263_v22  ;;  %10166 = vmatprep.subr.bf16.mxu1 %v14265_v24  ;;  %v820_v22 = vld [vmem:[#allocation2 + $0x11c0] sm:$0xff] }
 0x15e   :  { %v824_v24 = vld [vmem:[#allocation2 + $0x11e0] sm:$0xff] }
 0x15f   :  { %9666 = vmatmul.mubr.bf16.vlgmr.msra.gmra.mrb[0].mxu0 %v16604_v29  ;;  %10158 = vmatmul.mubr.bf16.vlgmr.msra.gmra.mrb[0].mxu1 %v16604_v29  ;;  %v14319_v31 = vcombine.high %v820_v22, %v824_v24  ;;  %v14318_v38 = vcombine.low %v820_v22, %v824_v24  ;;  %v873_v22 = vld [vmem:[#allocation2 + $0x1368] sm:$0xff] }
 0x160   :  { %9675 = vmatpush1.bf16.msra.mxu0 %v14262_v32  ;;  %10167 = vmatpush1.bf16.msra.mxu1 %v14264_v34  ;;  %v14321_v32 = vcombine.high %v821_v26, %v825_v27  ;;  %v828_v34 = vld [vmem:[#allocation2 + $0x1200] sm:$0xff] }
 0x161   :  { %9676 = vmatprep.subr.bf16.mxu0 %v14271_v35  ;;  %10168 = vmatprep.subr.bf16.mxu1 %v14273_v63  ;;  %v832_v35 = vld [vmem:[#allocation2 + $0x1220] sm:$0xff]  ;;  %v829_v63 = vld [vmem:[#allocation2 + $0x1208] sm:$0xff] }
 0x162   :  { %9706 = vmatprep.mubr.bf16.mxu0 %v16606_v39  ;;  %10198 = vmatprep.mubr.bf16.mxu1 %v16606_v39  ;;  %v14327_v41 = vcombine.high %v828_v34, %v832_v35  ;;  %v14326_v48 = vcombine.low %v828_v34, %v832_v35  ;;  %v14328_v49 = vcombine.low %v829_v63, %v833_v37  ;;  %v881_v34 = vld [vmem:[#allocation2 + $0x13a8] sm:$0xff] }
 0x164   :  { %9677 = vmatpush1.bf16.msra.mxu0 %v14270_v57  ;;  %10169 = vmatpush1.bf16.msra.mxu1 %v14272_v42  ;;  %v14329_v57 = vcombine.high %v829_v63, %v833_v37  ;;  %v836_v42 = vld [vmem:[#allocation2 + $0x1240] sm:$0xff] }
 0x165   :  { %9678 = vmatprep.subr.bf16.mxu0 %v14279_v45  ;;  %10170 = vmatprep.subr.bf16.mxu1 %v14281_v46  ;;  %v840_v45 = vld [vmem:[#allocation2 + $0x1260] sm:$0xff]  ;;  %v837_v46 = vld [vmem:[#allocation2 + $0x1248] sm:$0xff] }
 0x166   :  { %v14335_v50 = vcombine.high %v836_v42, %v840_v45  ;;  %v14334_v58 = vcombine.low %v836_v42, %v840_v45  ;;  %v14336_v23 = vcombine.low %v837_v46, %v841_v47  ;;  %v885_v42 = vld [vmem:[#allocation2 + $0x13c8] sm:$0xff] }
 0x167   :  { %v889_v45 = vld [vmem:[#allocation2 + $0x13e8] sm:$0xff] }
 0x168   :  { %9679 = vmatpush1.bf16.msra.mxu0 %v14278_v51  ;;  %10171 = vmatpush1.bf16.msra.mxu1 %v14280_v52  ;;  %v14337_v51 = vcombine.high %v837_v46, %v841_v47  ;;  %v844_v52 = vld [vmem:[#allocation2 + $0x1280] sm:$0xff] }
 0x169   :  { %9680 = vmatprep.subr.bf16.mxu0 %v14287_v16  ;;  %10172 = vmatprep.subr.bf16.mxu1 %v14289_v55  ;;  %v848_v16 = vld [vmem:[#allocation2 + $0x12a0] sm:$0xff]  ;;  %v845_v55 = vld [vmem:[#allocation2 + $0x1288] sm:$0xff] }
 0x16a   :  { %v14343_v60 = vcombine.high %v844_v52, %v848_v16  ;;  %v14342_v3 = vcombine.low %v844_v52, %v848_v16  ;;  %v14344_v5 = vcombine.low %v845_v55, %v849_v56  ;;  %v893_v16 = vld [vmem:[#allocation2 + $0x1408] sm:$0xff] }
 0x16c   :  { %9681 = vmatpush1.bf16.msra.mxu0 %v14286_v61  ;;  %10173 = vmatpush1.bf16.msra.mxu1 %v14288_v62  ;;  %v14345_v61 = vcombine.high %v845_v55, %v849_v56  ;;  %v852_v62 = vld [vmem:[#allocation2 + $0x12c0] sm:$0xff]  ;;  %v897_v55 = vld [vmem:[#allocation2 + $0x1428] sm:$0xff] }
 0x16d   :  { %9682 = vmatprep.subr.bf16.mxu0 %v14295_v0  ;;  %10174 = vmatprep.subr.bf16.mxu1 %v14297_v1  ;;  %v856_v0 = vld [vmem:[#allocation2 + $0x12e0] sm:$0xff]  ;;  %v853_v1 = vld [vmem:[#allocation2 + $0x12c8] sm:$0xff] }
 0x16e   :  { %v14351_v6 = vcombine.high %v852_v62, %v856_v0  ;;  %v14350_v33 = vcombine.low %v852_v62, %v856_v0  ;;  %v14352_v15 = vcombine.low %v853_v1, %v857_v2  ;;  %v16621_v0 = vpack.c.bf16 %v16598_v18, %v16598_v18 }
 0x170   :  { %9683 = vmatpush1.bf16.msra.mxu0 %v14294_v7  ;;  %10175 = vmatpush1.bf16.msra.mxu1 %v14296_v8  ;;  %v14353_v7 = vcombine.high %v853_v1, %v857_v2  ;;  %v860_v8 = vld [vmem:[#allocation2 + $0x1300] sm:$0xff]  ;;  %v901_v1 = vld [vmem:[#allocation2 + $0x1448] sm:$0xff] }
 0x171   :  { %9684 = vmatprep.subr.bf16.mxu0 %v14303_v11  ;;  %10176 = vmatprep.subr.bf16.mxu1 %v14305_v12  ;;  %v864_v11 = vld [vmem:[#allocation2 + $0x1320] sm:$0xff]  ;;  %v861_v12 = vld [vmem:[#allocation2 + $0x1308] sm:$0xff] }
 0x172   :  { %v14359_v17 = vcombine.high %v860_v8, %v864_v11  ;;  %v14358_v24 = vcombine.low %v860_v8, %v864_v11  ;;  %v14360_v26 = vcombine.low %v861_v12, %v865_v13  ;;  %v905_v2 = vld [vmem:[#allocation2 + $0x1468] sm:$0xff]  ;;  %v908_v8 = vld [vmem:[#allocation2 + $0x1480] sm:$0xff] }
 0x173   :  { %v912_v11 = vld [vmem:[#allocation2 + $0x14a0] sm:$0xff] }
 0x174   :  { %9685 = vmatpush1.bf16.msra.mxu0 %v14302_v19  ;;  %10177 = vmatpush1.bf16.msra.mxu1 %v14304_v59  ;;  %v14361_v19 = vcombine.high %v861_v12, %v865_v13  ;;  %v868_v59 = vld [vmem:[#allocation2 + $0x1340] sm:$0xff]  ;;  %v909_v13 = vld [vmem:[#allocation2 + $0x1488] sm:$0xff] }
 0x175   :  { %9686 = vmatprep.subr.bf16.mxu0 %v14311_v20  ;;  %10178 = vmatprep.subr.bf16.mxu1 %v14313_v21  ;;  %v872_v20 = vld [vmem:[#allocation2 + $0x1360] sm:$0xff]  ;;  %v869_v21 = vld [vmem:[#allocation2 + $0x1348] sm:$0xff] }
 0x176   :  { %v14367_v27 = vcombine.high %v868_v59, %v872_v20  ;;  %v14366_v35 = vcombine.low %v868_v59, %v872_v20  ;;  %v14368_v63 = vcombine.low %v869_v21, %v873_v22  ;;  %v916_v59 = vld [vmem:[#allocation2 + $0x14c0] sm:$0xff] }
 0x177   :  { %v920_v20 = vld [vmem:[#allocation2 + $0x14e0] sm:$0xff] }
 0x178   :  { %9687 = vmatpush1.bf16.msra.mxu0 %v14310_v28  ;;  %10179 = vmatpush1.bf16.msra.mxu1 %v14312_v30  ;;  %v14369_v28 = vcombine.high %v869_v21, %v873_v22  ;;  %v876_v30 = vld [vmem:[#allocation2 + $0x1380] sm:$0xff]  ;;  %v917_v21 = vld [vmem:[#allocation2 + $0x14c8] sm:$0xff] }
 0x179   :  { %9688 = vmatprep.subr.bf16.mxu0 %v14319_v31  ;;  %10180 = vmatprep.subr.bf16.mxu1 %v14321_v32  ;;  %v880_v31 = vld [vmem:[#allocation2 + $0x13a0] sm:$0xff]  ;;  %v877_v32 = vld [vmem:[#allocation2 + $0x1388] sm:$0xff] }
 0x17a   :  { %v14375_v37 = vcombine.high %v876_v30, %v880_v31  ;;  %v14374_v46 = vcombine.low %v876_v30, %v880_v31  ;;  %v14376_v47 = vcombine.low %v877_v32, %v881_v34  ;;  %v921_v22 = vld [vmem:[#allocation2 + $0x14e8] sm:$0xff]  ;;  %v924_v30 = vld [vmem:[#allocation2 + $0x1500] sm:$0xff] }
 0x17b   :  { %v928_v31 = vld [vmem:[#allocation2 + $0x1520] sm:$0xff] }
 0x17c   :  { %9689 = vmatpush1.bf16.msra.mxu0 %v14318_v38  ;;  %10181 = vmatpush1.bf16.msra.mxu1 %v14320_v40  ;;  %v14377_v38 = vcombine.high %v877_v32, %v881_v34  ;;  %v884_v40 = vld [vmem:[#allocation2 + $0x13c0] sm:$0xff]  ;;  %v925_v32 = vld [vmem:[#allocation2 + $0x1508] sm:$0xff] }
 0x17d   :  { %9690 = vmatprep.subr.bf16.mxu0 %v14327_v41  ;;  %10182 = vmatprep.subr.bf16.mxu1 %v14329_v57  ;;  %v888_v41 = vld [vmem:[#allocation2 + $0x13e0] sm:$0xff]  ;;  %v136_v57 = vcombine.high %v16594_v10, %v16594_v10  ;;  %v14384_v10 = vcombine.low %v885_v42, %v889_v45  ;;  %v929_v34 = vld [vmem:[#allocation2 + $0x1528] sm:$0xff] }
 0x17e   :  { %v14382_v56 = vcombine.low %v884_v40, %v888_v41 }
 0x17f   :  { %v16615_v52 = vrot.slane %v136_v57, %v16519_v53  ;;  %v933_v57 = vld [vmem:[#allocation2 + $0x1548] sm:$0xff] }
 0x180   :  { %9691 = vmatpush1.bf16.msra.mxu0 %v14326_v48  ;;  %10183 = vmatpush1.bf16.msra.mxu1 %v14328_v49  ;;  %v14383_v48 = vcombine.high %v884_v40, %v888_v41  ;;  %v14385_v49 = vcombine.high %v885_v42, %v889_v45  ;;  %v932_v40 = vld [vmem:[#allocation2 + $0x1540] sm:$0xff]  ;;  %v937_v42 = vld [vmem:[#allocation2 + $0x1568] sm:$0xff]  ;;  %v14422_v45 = vcombine.low %v924_v30, %v928_v31 }
 0x181   :  { %9692 = vmatprep.subr.bf16.mxu0 %v14335_v50  ;;  %10184 = vmatprep.subr.bf16.mxu1 %v14337_v51  ;;  %v892_v50 = vld [vmem:[#allocation2 + $0x1400] sm:$0xff]  ;;  %v152_v62 = vcombine.high %v16615_v52, %v16615_v52 }
 0x182   :  { %v896_v51 = vld [vmem:[#allocation2 + $0x1420] sm:$0xff] }
 0x183   :  { %v16623_v12 = vpack.c.bf16 %v152_v62, %v152_v62  ;;  %v936_v41 = vld [vmem:[#allocation2 + $0x1560] sm:$0xff]  ;;  %v953_v62 = vld [vmem:[#allocation2 + $0x15e8] sm:$0xff] }
 0x184   :  { %9693 = vmatpush1.bf16.msra.mxu0 %v14334_v58  ;;  %10185 = vmatpush1.bf16.msra.mxu1 %v14336_v23  ;;  %v14391_v58 = vcombine.high %v892_v50, %v896_v51  ;;  %v14393_v23 = vcombine.high %v893_v16, %v897_v55 }
 0x185   :  { %9694 = vmatprep.subr.bf16.mxu0 %v14343_v60  ;;  %10186 = vmatprep.subr.bf16.mxu1 %v14345_v61  ;;  %v900_v60 = vld [vmem:[#allocation2 + $0x1440] sm:$0xff] }
 0x186   :  { %v904_v61 = vld [vmem:[#allocation2 + $0x1460] sm:$0xff] }
 0x187   :  { %v14398_v18 = vcombine.low %v900_v60, %v904_v61 }
 0x188   :  { %9695 = vmatpush1.bf16.msra.mxu0 %v14342_v3  ;;  %10187 = vmatpush1.bf16.msra.mxu1 %v14344_v5  ;;  %v14390_v3 = vcombine.low %v892_v50, %v896_v51  ;;  %v14392_v5 = vcombine.low %v893_v16, %v897_v55  ;;  %v944_v50 = vld [vmem:[#allocation2 + $0x15a0] sm:$0xff]  ;;  %v941_v51 = vld [vmem:[#allocation2 + $0x1588] sm:$0xff]  ;;  %v14430_v55 = vcombine.low %v932_v40, %v936_v41 }
 0x189   :  { %9696 = vmatprep.subr.bf16.mxu0 %v14351_v6  ;;  %10188 = vmatprep.subr.bf16.mxu1 %v14353_v7  ;;  %v14399_v6 = vcombine.high %v900_v60, %v904_v61  ;;  %v14401_v7 = vcombine.high %v901_v1, %v905_v2  ;;  %v945_v16 = vld [vmem:[#allocation2 + $0x15a8] sm:$0xff]  ;;  %v952_v60 = vld [vmem:[#allocation2 + $0x15e0] sm:$0xff] }
 0x18a   :  { %v949_v61 = vld [vmem:[#allocation2 + $0x15c8] sm:$0xff] }
 0x18c   :  { %9697 = vmatpush1.bf16.msra.mxu0 %v14350_v33  ;;  %10189 = vmatpush1.bf16.msra.mxu1 %v14352_v15  ;;  %v913_v33 = vld [vmem:[#allocation2 + $0x14a8] sm:$0xff]  ;;  %v14400_v15 = vcombine.low %v901_v1, %v905_v2  ;;  %v14440_v2 = vcombine.low %v941_v51, %v945_v16 }
 0x18d   :  { %9698 = vmatprep.subr.bf16.mxu0 %v14359_v17  ;;  %10190 = vmatprep.subr.bf16.mxu1 %v14361_v19  ;;  %v14407_v17 = vcombine.high %v908_v8, %v912_v11  ;;  %v14409_v19 = vcombine.high %v909_v13, %v913_v33 }
 0x190   :  { %9699 = vmatpush1.bf16.msra.mxu0 %v14358_v24  ;;  %10191 = vmatpush1.bf16.msra.mxu1 %v14360_v26  ;;  %v14406_v24 = vcombine.low %v908_v8, %v912_v11  ;;  %v14408_v26 = vcombine.low %v909_v13, %v913_v33  ;;  %v957_v8 = vld [vmem:[#allocation2 + $0x1608] sm:$0xff]  ;;  %v14448_v33 = vcombine.low %v949_v61, %v953_v62 }
 0x191   :  { %9700 = vmatprep.subr.bf16.mxu0 %v14367_v27  ;;  %10192 = vmatprep.subr.bf16.mxu1 %v14369_v28  ;;  %v14415_v27 = vcombine.high %v916_v59, %v920_v20  ;;  %v14417_v28 = vcombine.high %v917_v21, %v921_v22  ;;  %v961_v11 = vld [vmem:[#allocation2 + $0x1628] sm:$0xff] }
 0x194   :  { %9701 = vmatpush1.bf16.msra.mxu0 %v14366_v35  ;;  %10193 = vmatpush1.bf16.msra.mxu1 %v14368_v63  ;;  %v14414_v35 = vcombine.low %v916_v59, %v920_v20  ;;  %v14416_v63 = vcombine.low %v917_v21, %v921_v22  ;;  %v965_v59 = vld [vmem:[#allocation2 + $0x1648] sm:$0xff]  ;;  %v14456_v22 = vcombine.low %v957_v8, %v961_v11 }
 0x195   :  { %9702 = vmatprep.subr.bf16.mxu0 %v14375_v37  ;;  %10194 = vmatprep.subr.bf16.mxu1 %v14377_v38  ;;  %v14423_v37 = vcombine.high %v924_v30, %v928_v31  ;;  %v14425_v38 = vcombine.high %v925_v32, %v929_v34  ;;  %v969_v20 = vld [vmem:[#allocation2 + $0x1668] sm:$0xff] }
 0x196   :  { %v973_v30 = vld [vmem:[#allocation2 + $0x1688] sm:$0xff] }
 0x197   :  { %v977_v31 = vld [vmem:[#allocation2 + $0x16a8] sm:$0xff] }
 0x198   :  { %9703 = vmatpush1.bf16.msra.mxu0 %v14374_v46  ;;  %10195 = vmatpush1.bf16.msra.mxu1 %v14376_v47  ;;  %v14424_v46 = vcombine.low %v925_v32, %v929_v34  ;;  %v14431_v47 = vcombine.high %v932_v40, %v936_v41  ;;  %v14464_v34 = vcombine.low %v965_v59, %v969_v20  ;;  %v981_v40 = vld [vmem:[#allocation2 + $0x16c8] sm:$0xff] }
 0x199   :  { %9704 = vmatprep.subr.bf16.mxu0 %v14383_v48  ;;  %10196 = vmatprep.subr.bf16.mxu1 %v14385_v49  ;;  %v14433_v48 = vcombine.high %v933_v57, %v937_v42  ;;  %v940_v49 = vld [vmem:[#allocation2 + $0x1580] sm:$0xff]  ;;  %v985_v41 = vld [vmem:[#allocation2 + $0x16e8] sm:$0xff] }
 0x19a   :  { %v14438_v1 = vcombine.low %v940_v49, %v944_v50 }
 0x19c   :  { %9705 = vmatpush1.bf16.msra.mxu0 %v14382_v56  ;;  %10197 = vmatpush1.bf16.msra.mxu1 %v14384_v10  ;;  %v14432_v56 = vcombine.low %v933_v57, %v937_v42  ;;  %v14439_v10 = vcombine.high %v940_v49, %v944_v50  ;;  %v14472_v42 = vcombine.low %v973_v30, %v977_v31  ;;  %v989_v49 = vld [vmem:[#allocation2 + $0x1708] sm:$0xff] }
 0x19d   :  { %9715 = vmatprep.subr.bf16.mxu0 %v14391_v58  ;;  %10207 = vmatprep.subr.bf16.mxu1 %v14393_v23  ;;  %v14441_v58 = vcombine.high %v941_v51, %v945_v16  ;;  %v948_v23 = vld [vmem:[#allocation2 + $0x15c0] sm:$0xff]  ;;  %v993_v50 = vld [vmem:[#allocation2 + $0x1728] sm:$0xff]  ;;  %v14480_v16 = vcombine.low %v981_v40, %v985_v41 }
 0x19e   :  { %v14446_v13 = vcombine.low %v948_v23, %v952_v60 }
 0x19f   :  { %9707 = vmatmul.mubr.bf16.vlgmr.msra.gmra.mrb[0].mxu0 %v16621_v0  ;;  %10199 = vmatmul.mubr.bf16.vlgmr.msra.gmra.mrb[0].mxu1 %v16621_v0 }
 0x1a0   :  { %9716 = vmatpush1.bf16.msra.mxu0 %v14390_v3  ;;  %10208 = vmatpush1.bf16.msra.mxu1 %v14392_v5  ;;  %v14447_v3 = vcombine.high %v948_v23, %v952_v60  ;;  %v14449_v5 = vcombine.high %v949_v61, %v953_v62  ;;  %v997_v23 = vld [vmem:[#allocation2 + $0x1748] sm:$0xff]  ;;  %v14488_v62 = vcombine.low %v989_v49, %v993_v50 }
 0x1a1   :  { %9717 = vmatprep.subr.bf16.mxu0 %v14399_v6  ;;  %10209 = vmatprep.subr.bf16.mxu1 %v14401_v7  ;;  %v956_v6 = vld [vmem:[#allocation2 + $0x1600] sm:$0xff]  ;;  %v1001_v60 = vld [vmem:[#allocation2 + $0x1768] sm:$0xff] }
 0x1a2   :  { %9747 = vmatprep.mubr.bf16.mxu0 %v16623_v12  ;;  %10239 = vmatprep.mubr.bf16.mxu1 %v16623_v12  ;;  %v960_v7 = vld [vmem:[#allocation2 + $0x1620] sm:$0xff] }
 0x1a3   :  { %v14454_v21 = vcombine.low %v956_v6, %v960_v7 }
 0x1a4   :  { %9718 = vmatpush1.bf16.msra.mxu0 %v14398_v18  ;;  %10210 = vmatpush1.bf16.msra.mxu1 %v14400_v15  ;;  %v14455_v18 = vcombine.high %v956_v6, %v960_v7  ;;  %v14457_v15 = vcombine.high %v957_v8, %v961_v11  ;;  %v1005_v6 = vld [vmem:[#allocation2 + $0x1788] sm:$0xff]  ;;  %v14496_v11 = vcombine.low %v997_v23, %v1001_v60 }
 0x1a5   :  { %9719 = vmatprep.subr.bf16.mxu0 %v14407_v17  ;;  %10211 = vmatprep.subr.bf16.mxu1 %v14409_v19  ;;  %v964_v17 = vld [vmem:[#allocation2 + $0x1640] sm:$0xff]  ;;  %v1009_v7 = vld [vmem:[#allocation2 + $0x17a8] sm:$0xff] }
 0x1a6   :  { %v968_v19 = vld [vmem:[#allocation2 + $0x1660] sm:$0xff] }
 0x1a7   :  { %v14462_v32 = vcombine.low %v964_v17, %v968_v19 }
 0x1a8   :  { %9720 = vmatpush1.bf16.msra.mxu0 %v14406_v24  ;;  %10212 = vmatpush1.bf16.msra.mxu1 %v14408_v26  ;;  %v14463_v24 = vcombine.high %v964_v17, %v968_v19  ;;  %v14465_v26 = vcombine.high %v965_v59, %v969_v20  ;;  %v1013_v17 = vld [vmem:[#allocation2 + $0x17c8] sm:$0xff] }
 0x1a9   :  { %9721 = vmatprep.subr.bf16.mxu0 %v14415_v27  ;;  %10213 = vmatprep.subr.bf16.mxu1 %v14417_v28  ;;  %v972_v27 = vld [vmem:[#allocation2 + $0x1680] sm:$0xff]  ;;  %v1017_v19 = vld [vmem:[#allocation2 + $0x17e8] sm:$0xff] }
 0x1aa   :  { %v976_v28 = vld [vmem:[#allocation2 + $0x16a0] sm:$0xff]  ;;  %v16632_v59 = vld [vmem:[%s16953_s0 + $0x18] sm:$0xff] }
 0x1ab   :  { %v14470_v57 = vcombine.low %v972_v27, %v976_v28 }
 0x1ac   :  { %9722 = vmatpush1.bf16.msra.mxu0 %v14414_v35  ;;  %10214 = vmatpush1.bf16.msra.mxu1 %v14416_v63  ;;  %v14471_v35 = vcombine.high %v972_v27, %v976_v28  ;;  %v14473_v63 = vcombine.high %v973_v30, %v977_v31  ;;  %v1024_v27 = vld [vmem:[#allocation2 + $0x1820] sm:$0xff]  ;;  %v16636_v28 = vrot.slane %v16632_v59, %v16519_v53  ;;  %v1021_v30 = vld [vmem:[#allocation2 + $0x1808] sm:$0xff] }
 0x1ad   :  { %9723 = vmatprep.subr.bf16.mxu0 %v14423_v37  ;;  %10215 = vmatprep.subr.bf16.mxu1 %v14425_v38  ;;  %v980_v37 = vld [vmem:[#allocation2 + $0x16c0] sm:$0xff]  ;;  %v1025_v31 = vld [vmem:[#allocation2 + $0x1828] sm:$0xff] }
 0x1ae   :  { %v984_v38 = vld [vmem:[#allocation2 + $0x16e0] sm:$0xff] }
 0x1af   :  { %v14478_v51 = vcombine.low %v980_v37, %v984_v38 }
 0x1b0   :  { %9724 = vmatpush1.bf16.msra.mxu0 %v14422_v45  ;;  %10216 = vmatpush1.bf16.msra.mxu1 %v14424_v46  ;;  %v14479_v45 = vcombine.high %v980_v37, %v984_v38  ;;  %v14481_v46 = vcombine.high %v981_v40, %v985_v41  ;;  %v1028_v37 = vld [vmem:[#allocation2 + $0x1840] sm:$0xff]  ;;  %v168_v40 = vcombine.high %v16636_v28, %v16636_v28 }
 0x1b1   :  { %9725 = vmatprep.subr.bf16.mxu0 %v14431_v47  ;;  %10217 = vmatprep.subr.bf16.mxu1 %v14433_v48  ;;  %v988_v47 = vld [vmem:[#allocation2 + $0x1700] sm:$0xff]  ;;  %v16642_v41 = vpack.c.bf16 %v16615_v52, %v16615_v52 }
 0x1b2   :  { %v992_v48 = vld [vmem:[#allocation2 + $0x1720] sm:$0xff] }
 0x1b3   :  { %v14486_v61 = vcombine.low %v988_v47, %v992_v48  ;;  %v1032_v38 = vld [vmem:[#allocation2 + $0x1860] sm:$0xff] }
 0x1b4   :  { %9726 = vmatpush1.bf16.msra.mxu0 %v14430_v55  ;;  %10218 = vmatpush1.bf16.msra.mxu1 %v14432_v56  ;;  %v14487_v55 = vcombine.high %v988_v47, %v992_v48  ;;  %v14489_v56 = vcombine.high %v989_v49, %v993_v50  ;;  %v14527_v47 = vcombine.high %v1028_v37, %v1032_v38  ;;  %v1036_v49 = vld [vmem:[#allocation2 + $0x1880] sm:$0xff] }
 0x1b5   :  { %9727 = vmatprep.subr.bf16.mxu0 %v14439_v10  ;;  %10219 = vmatprep.subr.bf16.mxu1 %v14441_v58  ;;  %v996_v10 = vld [vmem:[#allocation2 + $0x1740] sm:$0xff]  ;;  %v14526_v52 = vcombine.low %v1028_v37, %v1032_v38 }
 0x1b6   :  { %v1000_v58 = vld [vmem:[#allocation2 + $0x1760] sm:$0xff] }
 0x1b7   :  { %v14494_v8 = vcombine.low %v996_v10, %v1000_v58  ;;  %v1040_v50 = vld [vmem:[#allocation2 + $0x18a0] sm:$0xff] }
 0x1b8   :  { %9728 = vmatpush1.bf16.msra.mxu0 %v14438_v1  ;;  %10220 = vmatpush1.bf16.msra.mxu1 %v14440_v2  ;;  %v14495_v1 = vcombine.high %v996_v10, %v1000_v58  ;;  %v14497_v2 = vcombine.high %v997_v23, %v1001_v60  ;;  %v14535_v10 = vcombine.high %v1036_v49, %v1040_v50  ;;  %v1044_v23 = vld [vmem:[#allocation2 + $0x18c0] sm:$0xff] }
 0x1b9   :  { %9729 = vmatprep.subr.bf16.mxu0 %v14447_v3  ;;  %10221 = vmatprep.subr.bf16.mxu1 %v14449_v5  ;;  %v1004_v3 = vld [vmem:[#allocation2 + $0x1780] sm:$0xff] }
 0x1ba   :  { %v1008_v5 = vld [vmem:[#allocation2 + $0x17a0] sm:$0xff] }
 0x1bb   :  { %v14502_v20 = vcombine.low %v1004_v3, %v1008_v5  ;;  %v1048_v60 = vld [vmem:[#allocation2 + $0x18e0] sm:$0xff] }
 0x1bc   :  { %9730 = vmatpush1.bf16.msra.mxu0 %v14446_v13  ;;  %10222 = vmatpush1.bf16.msra.mxu1 %v14448_v33  ;;  %v14503_v13 = vcombine.high %v1004_v3, %v1008_v5  ;;  %v14505_v33 = vcombine.high %v1005_v6, %v1009_v7  ;;  %v14543_v3 = vcombine.high %v1044_v23, %v1048_v60 }
 0x1bd   :  { %9731 = vmatprep.subr.bf16.mxu0 %v14455_v18  ;;  %10223 = vmatprep.subr.bf16.mxu1 %v14457_v15  ;;  %v1012_v18 = vld [vmem:[#allocation2 + $0x17c0] sm:$0xff] }
 0x1be   :  { %v1016_v15 = vld [vmem:[#allocation2 + $0x17e0] sm:$0xff] }
 0x1c0   :  { %9732 = vmatpush1.bf16.msra.mxu0 %v14454_v21  ;;  %10224 = vmatpush1.bf16.msra.mxu1 %v14456_v22  ;;  %v14504_v21 = vcombine.low %v1005_v6, %v1009_v7  ;;  %v14511_v22 = vcombine.high %v1012_v18, %v1016_v15  ;;  %v1052_v6 = vld [vmem:[#allocation2 + $0x1900] sm:$0xff] }
 0x1c1   :  { %9733 = vmatprep.subr.bf16.mxu0 %v14463_v24  ;;  %10225 = vmatprep.subr.bf16.mxu1 %v14465_v26  ;;  %v14513_v24 = vcombine.high %v1013_v17, %v1017_v19  ;;  %v1020_v26 = vld [vmem:[#allocation2 + $0x1800] sm:$0xff] }
 0x1c2   :  { %v1056_v7 = vld [vmem:[#allocation2 + $0x1920] sm:$0xff] }
 0x1c4   :  { %9734 = vmatpush1.bf16.msra.mxu0 %v14462_v32  ;;  %10226 = vmatpush1.bf16.msra.mxu1 %v14464_v34  ;;  %v14510_v32 = vcombine.low %v1012_v18, %v1016_v15  ;;  %v14512_v34 = vcombine.low %v1013_v17, %v1017_v19  ;;  %v14551_v18 = vcombine.high %v1052_v6, %v1056_v7  ;;  %v1060_v17 = vld [vmem:[#allocation2 + $0x1940] sm:$0xff] }
 0x1c5   :  { %9735 = vmatprep.subr.bf16.mxu0 %v14471_v35  ;;  %10227 = vmatprep.subr.bf16.mxu1 %v14473_v63  ;;  %v14519_v35 = vcombine.high %v1020_v26, %v1024_v27  ;;  %v14521_v63 = vcombine.high %v1021_v30, %v1025_v31  ;;  %v1064_v19 = vld [vmem:[#allocation2 + $0x1960] sm:$0xff] }
 0x1c8   :  { %9736 = vmatpush1.bf16.msra.mxu0 %v14470_v57  ;;  %10228 = vmatpush1.bf16.msra.mxu1 %v14472_v42  ;;  %v1029_v57 = vld [vmem:[#allocation2 + $0x1848] sm:$0xff] }
 0x1c9   :  { %9737 = vmatprep.subr.bf16.mxu0 %v14479_v45  ;;  %10229 = vmatprep.subr.bf16.mxu1 %v14481_v46  ;;  %v1033_v42 = vld [vmem:[#allocation2 + $0x1868] sm:$0xff]  ;;  %v14518_v45 = vcombine.low %v1020_v26, %v1024_v27  ;;  %v14520_v46 = vcombine.low %v1021_v30, %v1025_v31  ;;  %v14559_v26 = vcombine.high %v1060_v17, %v1064_v19  ;;  %v1068_v30 = vld [vmem:[#allocation2 + $0x1980] sm:$0xff] }
 0x1ca   :  { %v14529_v48 = vcombine.high %v1029_v57, %v1033_v42  ;;  %v1072_v31 = vld [vmem:[#allocation2 + $0x19a0] sm:$0xff] }
 0x1cb   :  { %v14567_v37 = vcombine.high %v1068_v30, %v1072_v31 }
 0x1cc   :  { %9738 = vmatpush1.bf16.msra.mxu0 %v14478_v51  ;;  %10230 = vmatpush1.bf16.msra.mxu1 %v14480_v16  ;;  %v16644_v51 = vpack.c.bf16 %v168_v40, %v168_v40  ;;  %v1037_v16 = vld [vmem:[#allocation2 + $0x1888] sm:$0xff]  ;;  %v1076_v40 = vld [vmem:[#allocation2 + $0x19c0] sm:$0xff] }
 0x1cd   :  { %9739 = vmatprep.subr.bf16.mxu0 %v14487_v55  ;;  %10231 = vmatprep.subr.bf16.mxu1 %v14489_v56  ;;  %v1041_v55 = vld [vmem:[#allocation2 + $0x18a8] sm:$0xff]  ;;  %v14528_v56 = vcombine.low %v1029_v57, %v1033_v42  ;;  %v1080_v57 = vld [vmem:[#allocation2 + $0x19e0] sm:$0xff] }
 0x1ce   :  { %v14537_v58 = vcombine.high %v1037_v16, %v1041_v55  ;;  %v1077_v42 = vld [vmem:[#allocation2 + $0x19c8] sm:$0xff] }
 0x1d0   :  { %9740 = vmatpush1.bf16.msra.mxu0 %v14486_v61  ;;  %10232 = vmatpush1.bf16.msra.mxu1 %v14488_v62  ;;  %v1045_v61 = vld [vmem:[#allocation2 + $0x18c8] sm:$0xff] }
 0x1d1   :  { %9741 = vmatprep.subr.bf16.mxu0 %v14495_v1  ;;  %10233 = vmatprep.subr.bf16.mxu1 %v14497_v2  ;;  %v1049_v62 = vld [vmem:[#allocation2 + $0x18e8] sm:$0xff]  ;;  %v14534_v1 = vcombine.low %v1036_v49, %v1040_v50  ;;  %v14536_v2 = vcombine.low %v1037_v16, %v1041_v55  ;;  %v1084_v50 = vld [vmem:[#allocation2 + $0x1a00] sm:$0xff] }
 0x1d2   :  { %v14545_v5 = vcombine.high %v1045_v61, %v1049_v62  ;;  %v1088_v16 = vld [vmem:[#allocation2 + $0x1a20] sm:$0xff]  ;;  %v1085_v55 = vld [vmem:[#allocation2 + $0x1a08] sm:$0xff] }
 0x1d4   :  { %9742 = vmatpush1.bf16.msra.mxu0 %v14494_v8  ;;  %10234 = vmatpush1.bf16.msra.mxu1 %v14496_v11  ;;  %v1053_v8 = vld [vmem:[#allocation2 + $0x1908] sm:$0xff] }
 0x1d5   :  { %9743 = vmatprep.subr.bf16.mxu0 %v14503_v13  ;;  %10235 = vmatprep.subr.bf16.mxu1 %v14505_v33  ;;  %v1057_v11 = vld [vmem:[#allocation2 + $0x1928] sm:$0xff]  ;;  %v14542_v13 = vcombine.low %v1044_v23, %v1048_v60  ;;  %v14544_v33 = vcombine.low %v1045_v61, %v1049_v62  ;;  %v1092_v60 = vld [vmem:[#allocation2 + $0x1a40] sm:$0xff] }
 0x1d6   :  { %v14553_v15 = vcombine.high %v1053_v8, %v1057_v11  ;;  %v1096_v61 = vld [vmem:[#allocation2 + $0x1a60] sm:$0xff]  ;;  %v1093_v62 = vld [vmem:[#allocation2 + $0x1a48] sm:$0xff] }
 0x1d8   :  { %9744 = vmatpush1.bf16.msra.mxu0 %v14502_v20  ;;  %10236 = vmatpush1.bf16.msra.mxu1 %v14504_v21  ;;  %v1061_v20 = vld [vmem:[#allocation2 + $0x1948] sm:$0xff] }
 0x1d9   :  { %9745 = vmatprep.subr.bf16.mxu0 %v14511_v22  ;;  %10237 = vmatprep.subr.bf16.mxu1 %v14513_v24  ;;  %v1065_v21 = vld [vmem:[#allocation2 + $0x1968] sm:$0xff]  ;;  %v14550_v22 = vcombine.low %v1052_v6, %v1056_v7  ;;  %v14552_v24 = vcombine.low %v1053_v8, %v1057_v11  ;;  %v1100_v7 = vld [vmem:[#allocation2 + $0x1a80] sm:$0xff] }
 0x1da   :  { %v14561_v27 = vcombine.high %v1061_v20, %v1065_v21  ;;  %v1104_v8 = vld [vmem:[#allocation2 + $0x1aa0] sm:$0xff]  ;;  %v1101_v11 = vld [vmem:[#allocation2 + $0x1a88] sm:$0xff] }
 0x1dc   :  { %9746 = vmatpush1.bf16.msra.mxu0 %v14510_v32  ;;  %10238 = vmatpush1.bf16.msra.mxu1 %v14512_v34  ;;  %v1069_v32 = vld [vmem:[#allocation2 + $0x1988] sm:$0xff] }
 0x1dd   :  { %9756 = vmatprep.subr.bf16.mxu0 %v14519_v35  ;;  %10248 = vmatprep.subr.bf16.mxu1 %v14521_v63  ;;  %v1073_v34 = vld [vmem:[#allocation2 + $0x19a8] sm:$0xff]  ;;  %v14558_v35 = vcombine.low %v1060_v17, %v1064_v19  ;;  %v14560_v63 = vcombine.low %v1061_v20, %v1065_v21  ;;  %v1108_v19 = vld [vmem:[#allocation2 + $0x1ac0] sm:$0xff] }
 0x1de   :  { %v14569_v38 = vcombine.high %v1069_v32, %v1073_v34  ;;  %v1112_v20 = vld [vmem:[#allocation2 + $0x1ae0] sm:$0xff]  ;;  %v1109_v21 = vld [vmem:[#allocation2 + $0x1ac8] sm:$0xff] }
 0x1df   :  { %9748 = vmatmul.mubr.bf16.vlgmr.msra.gmra.mrb[0].mxu0 %v16642_v41  ;;  %10240 = vmatmul.mubr.bf16.vlgmr.msra.gmra.mrb[0].mxu1 %v16642_v41 }
 0x1e0   :  { %9757 = vmatpush1.bf16.msra.mxu0 %v14518_v45  ;;  %10249 = vmatpush1.bf16.msra.mxu1 %v14520_v46  ;;  %v1081_v45 = vld [vmem:[#allocation2 + $0x19e8] sm:$0xff]  ;;  %v14566_v46 = vcombine.low %v1068_v30, %v1072_v31  ;;  %v1116_v31 = vld [vmem:[#allocation2 + $0x1b00] sm:$0xff] }
 0x1e1   :  { %9758 = vmatprep.subr.bf16.mxu0 %v14527_v47  ;;  %10250 = vmatprep.subr.bf16.mxu1 %v14529_v48  ;;  %v14568_v47 = vcombine.low %v1069_v32, %v1073_v34  ;;  %v14575_v48 = vcombine.high %v1076_v40, %v1080_v57  ;;  %v14577_v49 = vcombine.high %v1077_v42, %v1081_v45  ;;  %v1120_v32 = vld [vmem:[#allocation2 + $0x1b20] sm:$0xff]  ;;  %v1117_v34 = vld [vmem:[#allocation2 + $0x1b08] sm:$0xff] }
 0x1e2   :  { %9788 = vmatprep.mubr.bf16.mxu0 %v16644_v51  ;;  %10280 = vmatprep.mubr.bf16.mxu1 %v16644_v51 }
 0x1e4   :  { %9759 = vmatpush1.bf16.msra.mxu0 %v14526_v52  ;;  %10251 = vmatpush1.bf16.msra.mxu1 %v14528_v56  ;;  %v1089_v52 = vld [vmem:[#allocation2 + $0x1a28] sm:$0xff]  ;;  %v14574_v56 = vcombine.low %v1076_v40, %v1080_v57  ;;  %v1124_v57 = vld [vmem:[#allocation2 + $0x1b40] sm:$0xff] }
 0x1e5   :  { %9760 = vmatprep.subr.bf16.mxu0 %v14535_v10  ;;  %10252 = vmatprep.subr.bf16.mxu1 %v14537_v58  ;;  %v14576_v10 = vcombine.low %v1077_v42, %v1081_v45  ;;  %v14583_v58 = vcombine.high %v1084_v50, %v1088_v16  ;;  %v14585_v23 = vcombine.high %v1085_v55, %v1089_v52  ;;  %v1128_v42 = vld [vmem:[#allocation2 + $0x1b60] sm:$0xff]  ;;  %v1125_v45 = vld [vmem:[#allocation2 + $0x1b48] sm:$0xff] }
 0x1e8   :  { %9761 = vmatpush1.bf16.msra.mxu0 %v14534_v1  ;;  %10253 = vmatpush1.bf16.msra.mxu1 %v14536_v2  ;;  %v1097_v1 = vld [vmem:[#allocation2 + $0x1a68] sm:$0xff]  ;;  %v14582_v2 = vcombine.low %v1084_v50, %v1088_v16  ;;  %v1132_v16 = vld [vmem:[#allocation2 + $0x1b80] sm:$0xff] }
 0x1e9   :  { %9762 = vmatprep.subr.bf16.mxu0 %v14543_v3  ;;  %10254 = vmatprep.subr.bf16.mxu1 %v14545_v5  ;;  %v14584_v3 = vcombine.low %v1085_v55, %v1089_v52  ;;  %v14591_v5 = vcombine.high %v1092_v60, %v1096_v61  ;;  %v14593_v6 = vcombine.high %v1093_v62, %v1097_v1  ;;  %v1136_v55 = vld [vmem:[#allocation2 + $0x1ba0] sm:$0xff]  ;;  %v1133_v52 = vld [vmem:[#allocation2 + $0x1b88] sm:$0xff] }
 0x1ec   :  { %9763 = vmatpush1.bf16.msra.mxu0 %v14542_v13  ;;  %10255 = vmatpush1.bf16.msra.mxu1 %v14544_v33  ;;  %v1105_v13 = vld [vmem:[#allocation2 + $0x1aa8] sm:$0xff]  ;;  %v14590_v33 = vcombine.low %v1092_v60, %v1096_v61  ;;  %v1140_v61 = vld [vmem:[#allocation2 + $0x1bc0] sm:$0xff] }
 0x1ed   :  { %9764 = vmatprep.subr.bf16.mxu0 %v14551_v18  ;;  %10256 = vmatprep.subr.bf16.mxu1 %v14553_v15  ;;  %v14592_v18 = vcombine.low %v1093_v62, %v1097_v1  ;;  %v14599_v15 = vcombine.high %v1100_v7, %v1104_v8  ;;  %v14601_v17 = vcombine.high %v1101_v11, %v1105_v13  ;;  %v1144_v62 = vld [vmem:[#allocation2 + $0x1be0] sm:$0xff] }
 0x1ee   :  { %v153_v1 = vcombine.high %v16632_v59, %v16632_v59 }
 0x1f0   :  { %9765 = vmatpush1.bf16.msra.mxu0 %v14550_v22  ;;  %10257 = vmatpush1.bf16.msra.mxu1 %v14552_v24  ;;  %v1113_v22 = vld [vmem:[#allocation2 + $0x1ae8] sm:$0xff]  ;;  %v14598_v24 = vcombine.low %v1100_v7, %v1104_v8  ;;  %v14639_v7 = vcombine.high %v1140_v61, %v1144_v62 }
 0x1f1   :  { %9766 = vmatprep.subr.bf16.mxu0 %v14559_v26  ;;  %10258 = vmatprep.subr.bf16.mxu1 %v14561_v27  ;;  %v14600_v26 = vcombine.low %v1101_v11, %v1105_v13  ;;  %v14607_v27 = vcombine.high %v1108_v19, %v1112_v20  ;;  %v14609_v30 = vcombine.high %v1109_v21, %v1113_v22  ;;  %v1148_v11 = vld [vmem:[#allocation2 + $0x1c00] sm:$0xff] }
 0x1f2   :  { %v1152_v13 = vld [vmem:[#allocation2 + $0x1c20] sm:$0xff] }
 0x1f4   :  { %9767 = vmatpush1.bf16.msra.mxu0 %v14558_v35  ;;  %10259 = vmatpush1.bf16.msra.mxu1 %v14560_v63  ;;  %v1121_v35 = vld [vmem:[#allocation2 + $0x1b28] sm:$0xff]  ;;  %v14606_v63 = vcombine.low %v1108_v19, %v1112_v20  ;;  %v14647_v19 = vcombine.high %v1148_v11, %v1152_v13 }
 0x1f5   :  { %9768 = vmatprep.subr.bf16.mxu0 %v14567_v37  ;;  %10260 = vmatprep.subr.bf16.mxu1 %v14569_v38  ;;  %v14608_v37 = vcombine.low %v1109_v21, %v1113_v22  ;;  %v14615_v38 = vcombine.high %v1116_v31, %v1120_v32  ;;  %v14617_v40 = vcombine.high %v1117_v34, %v1121_v35  ;;  %v1156_v21 = vld [vmem:[#allocation2 + $0x1c40] sm:$0xff] }
 0x1f6   :  { %v1160_v22 = vld [vmem:[#allocation2 + $0x1c60] sm:$0xff] }
 0x1f8   :  { %9769 = vmatpush1.bf16.msra.mxu0 %v14566_v46  ;;  %10261 = vmatpush1.bf16.msra.mxu1 %v14568_v47  ;;  %v1129_v46 = vld [vmem:[#allocation2 + $0x1b68] sm:$0xff]  ;;  %v14614_v47 = vcombine.low %v1116_v31, %v1120_v32  ;;  %v14646_v31 = vcombine.low %v1148_v11, %v1152_v13 }
 0x1f9   :  { %9770 = vmatprep.subr.bf16.mxu0 %v14575_v48  ;;  %10262 = vmatprep.subr.bf16.mxu1 %v14577_v49  ;;  %v14616_v48 = vcombine.low %v1117_v34, %v1121_v35  ;;  %v14623_v49 = vcombine.high %v1124_v57, %v1128_v42  ;;  %v14625_v50 = vcombine.high %v1125_v45, %v1129_v46 }
 0x1fa   :  { %v14655_v34 = vcombine.high %v1156_v21, %v1160_v22 }
 0x1fc   :  { %9771 = vmatpush1.bf16.msra.mxu0 %v14574_v56  ;;  %10263 = vmatpush1.bf16.msra.mxu1 %v14576_v10  ;;  %v1137_v56 = vld [vmem:[#allocation2 + $0x1ba8] sm:$0xff]  ;;  %v14622_v10 = vcombine.low %v1124_v57, %v1128_v42 }
 0x1fd   :  { %9772 = vmatprep.subr.bf16.mxu0 %v14583_v58  ;;  %10264 = vmatprep.subr.bf16.mxu1 %v14585_v23  ;;  %v14624_v58 = vcombine.low %v1125_v45, %v1129_v46  ;;  %v14631_v23 = vcombine.high %v1132_v16, %v1136_v55  ;;  %v14633_v60 = vcombine.high %v1133_v52, %v1137_v56  ;;  %v1169_v57 = vld [vmem:[#allocation2 + $0x1ca8] sm:$0xff] }
 0x200   :  { %9773 = vmatpush1.bf16.msra.mxu0 %v14582_v2  ;;  %10265 = vmatpush1.bf16.msra.mxu1 %v14584_v3  ;;  %v1141_v2 = vld [vmem:[#allocation2 + $0x1bc8] sm:$0xff] }
 0x201   :  { %9774 = vmatprep.subr.bf16.mxu0 %v14591_v5  ;;  %10266 = vmatprep.subr.bf16.mxu1 %v14593_v6  ;;  %v1145_v3 = vld [vmem:[#allocation2 + $0x1be8] sm:$0xff]  ;;  %v14630_v5 = vcombine.low %v1132_v16, %v1136_v55  ;;  %v14632_v6 = vcombine.low %v1133_v52, %v1137_v56 }
 0x202   :  { %v14641_v8 = vcombine.high %v1141_v2, %v1145_v3  ;;  %v14640_v59 = vcombine.low %v1141_v2, %v1145_v3  ;;  %v1188_v3 = vld [vmem:[#allocation2 + $0x1d40] sm:$0xff] }
 0x204   :  { %9775 = vmatpush1.bf16.msra.mxu0 %v14590_v33  ;;  %10267 = vmatpush1.bf16.msra.mxu1 %v14592_v18  ;;  %v16653_v33 = vrot.slane %v153_v1, %v16519_v53  ;;  %v1149_v18 = vld [vmem:[#allocation2 + $0x1c08] sm:$0xff] }
 0x205   :  { %9776 = vmatprep.subr.bf16.mxu0 %v14599_v15  ;;  %10268 = vmatprep.subr.bf16.mxu1 %v14601_v17  ;;  %v1153_v15 = vld [vmem:[#allocation2 + $0x1c28] sm:$0xff]  ;;  %v14638_v17 = vcombine.low %v1140_v61, %v1144_v62 }
 0x206   :  { %v14649_v20 = vcombine.high %v1149_v18, %v1153_v15  ;;  %v14648_v32 = vcombine.low %v1149_v18, %v1153_v15  ;;  %v1196_v15 = vld [vmem:[#allocation2 + $0x1d80] sm:$0xff] }
 0x208   :  { %9777 = vmatpush1.bf16.msra.mxu0 %v14598_v24  ;;  %10269 = vmatpush1.bf16.msra.mxu1 %v14600_v26  ;;  %v169_v24 = vcombine.high %v16653_v33, %v16653_v33  ;;  %v16659_v26 = vpack.c.bf16 %v16636_v28, %v16636_v28  ;;  %v14654_v28 = vcombine.low %v1156_v21, %v1160_v22 }
 0x209   :  { %9778 = vmatprep.subr.bf16.mxu0 %v14607_v27  ;;  %10270 = vmatprep.subr.bf16.mxu1 %v14609_v30  ;;  %v1157_v27 = vld [vmem:[#allocation2 + $0x1c48] sm:$0xff] }
 0x20a   :  { %v1161_v30 = vld [vmem:[#allocation2 + $0x1c68] sm:$0xff] }
 0x20b   :  { %v14657_v35 = vcombine.high %v1157_v27, %v1161_v30  ;;  %v14656_v42 = vcombine.low %v1157_v27, %v1161_v30  ;;  %v1204_v27 = vld [vmem:[#allocation2 + $0x1dc0] sm:$0xff] }
 0x20c   :  { %9779 = vmatpush1.bf16.msra.mxu0 %v14606_v63  ;;  %10271 = vmatpush1.bf16.msra.mxu1 %v14608_v37  ;;  %v1164_v63 = vld [vmem:[#allocation2 + $0x1c80] sm:$0xff] }
 0x20d   :  { %9780 = vmatprep.subr.bf16.mxu0 %v14615_v38  ;;  %10272 = vmatprep.subr.bf16.mxu1 %v14617_v40  ;;  %v1168_v37 = vld [vmem:[#allocation2 + $0x1ca0] sm:$0xff]  ;;  %v16661_v38 = vpack.c.bf16 %v169_v24, %v169_v24  ;;  %v1165_v40 = vld [vmem:[#allocation2 + $0x1c88] sm:$0xff] }
 0x20e   :  { %v14663_v45 = vcombine.high %v1164_v63, %v1168_v37  ;;  %v14665_v46 = vcombine.high %v1165_v40, %v1169_v57  ;;  %v14662_v16 = vcombine.low %v1164_v63, %v1168_v37  ;;  %v14664_v55 = vcombine.low %v1165_v40, %v1169_v57  ;;  %v1208_v30 = vld [vmem:[#allocation2 + $0x1de0] sm:$0xff] }
 0x20f   :  { %v14703_v63 = vcombine.high %v1204_v27, %v1208_v30  ;;  %v1212_v40 = vld [vmem:[#allocation2 + $0x1e00] sm:$0xff] }
 0x210   :  { %9781 = vmatpush1.bf16.msra.mxu0 %v14614_v47  ;;  %10273 = vmatpush1.bf16.msra.mxu1 %v14616_v48  ;;  %v1172_v47 = vld [vmem:[#allocation2 + $0x1cc0] sm:$0xff] }
 0x211   :  { %9782 = vmatprep.subr.bf16.mxu0 %v14623_v49  ;;  %10274 = vmatprep.subr.bf16.mxu1 %v14625_v50  ;;  %v1176_v48 = vld [vmem:[#allocation2 + $0x1ce0] sm:$0xff]  ;;  %v1173_v49 = vld [vmem:[#allocation2 + $0x1cc8] sm:$0xff] }
 0x212   :  { %v1177_v50 = vld [vmem:[#allocation2 + $0x1ce8] sm:$0xff]  ;;  %v14671_v52 = vcombine.high %v1172_v47, %v1176_v48  ;;  %v14670_v61 = vcombine.low %v1172_v47, %v1176_v48  ;;  %v1216_v57 = vld [vmem:[#allocation2 + $0x1e20] sm:$0xff] }
 0x213   :  { %v14673_v56 = vcombine.high %v1173_v49, %v1177_v50  ;;  %v14672_v62 = vcombine.low %v1173_v49, %v1177_v50  ;;  %v14711_v47 = vcombine.high %v1212_v40, %v1216_v57  ;;  %v1220_v49 = vld [vmem:[#allocation2 + $0x1e40] sm:$0xff] }
 0x214   :  { %9783 = vmatpush1.bf16.msra.mxu0 %v14622_v10  ;;  %10275 = vmatpush1.bf16.msra.mxu1 %v14624_v58  ;;  %v1180_v10 = vld [vmem:[#allocation2 + $0x1d00] sm:$0xff] }
 0x215   :  { %9784 = vmatprep.subr.bf16.mxu0 %v14631_v23  ;;  %10276 = vmatprep.subr.bf16.mxu1 %v14633_v60  ;;  %v1184_v58 = vld [vmem:[#allocation2 + $0x1d20] sm:$0xff]  ;;  %v1181_v23 = vld [vmem:[#allocation2 + $0x1d08] sm:$0xff] }
 0x216   :  { %v1185_v60 = vld [vmem:[#allocation2 + $0x1d28] sm:$0xff]  ;;  %v14679_v1 = vcombine.high %v1180_v10, %v1184_v58  ;;  %v1224_v50 = vld [vmem:[#allocation2 + $0x1e60] sm:$0xff] }
 0x217   :  { %v14681_v2 = vcombine.high %v1181_v23, %v1185_v60  ;;  %v14680_v11 = vcombine.low %v1181_v23, %v1185_v60  ;;  %v1228_v23 = vld [vmem:[#allocation2 + $0x1e80] sm:$0xff] }
 0x218   :  { %9785 = vmatpush1.bf16.msra.mxu0 %v14630_v5  ;;  %10277 = vmatpush1.bf16.msra.mxu1 %v14632_v6  ;;  %v1192_v5 = vld [vmem:[#allocation2 + $0x1d60] sm:$0xff]  ;;  %v1189_v6 = vld [vmem:[#allocation2 + $0x1d48] sm:$0xff] }
 0x219   :  { %9786 = vmatprep.subr.bf16.mxu0 %v14639_v7  ;;  %10278 = vmatprep.subr.bf16.mxu1 %v14641_v8  ;;  %v1193_v7 = vld [vmem:[#allocation2 + $0x1d68] sm:$0xff]  ;;  %v14678_v8 = vcombine.low %v1180_v10, %v1184_v58  ;;  %v14687_v13 = vcombine.high %v1188_v3, %v1192_v5  ;;  %v14719_v10 = vcombine.high %v1220_v49, %v1224_v50  ;;  %v1232_v60 = vld [vmem:[#allocation2 + $0x1ea0] sm:$0xff] }
 0x21a   :  { %v14689_v18 = vcombine.high %v1189_v6, %v1193_v7  ;;  %v14688_v21 = vcombine.low %v1189_v6, %v1193_v7  ;;  %v1236_v6 = vld [vmem:[#allocation2 + $0x1ec0] sm:$0xff] }
 0x21b   :  { %v1240_v7 = vld [vmem:[#allocation2 + $0x1ee0] sm:$0xff] }
 0x21c   :  { %9787 = vmatpush1.bf16.msra.mxu0 %v14638_v17  ;;  %10279 = vmatpush1.bf16.msra.mxu1 %v14640_v59  ;;  %v1200_v17 = vld [vmem:[#allocation2 + $0x1da0] sm:$0xff]  ;;  %v1197_v59 = vld [vmem:[#allocation2 + $0x1d88] sm:$0xff] }
 0x21d   :  { %9797 = vmatprep.subr.bf16.mxu0 %v14647_v19  ;;  %10289 = vmatprep.subr.bf16.mxu1 %v14649_v20  ;;  %v1201_v19 = vld [vmem:[#allocation2 + $0x1da8] sm:$0xff]  ;;  %v14686_v20 = vcombine.low %v1188_v3, %v1192_v5  ;;  %v14695_v22 = vcombine.high %v1196_v15, %v1200_v17  ;;  %v14727_v3 = vcombine.high %v1228_v23, %v1232_v60 }
 0x21e   :  { %v14697_v24 = vcombine.high %v1197_v59, %v1201_v19 }
 0x21f   :  { %9789 = vmatmul.mubr.bf16.vlgmr.msra.gmra.mrb[0].mxu0 %v16659_v26  ;;  %10281 = vmatmul.mubr.bf16.vlgmr.msra.gmra.mrb[0].mxu1 %v16659_v26 }
 0x220   :  { %9798 = vmatpush1.bf16.msra.mxu0 %v14646_v31  ;;  %10290 = vmatpush1.bf16.msra.mxu1 %v14648_v32  ;;  %v1205_v31 = vld [vmem:[#allocation2 + $0x1dc8] sm:$0xff] }
 0x221   :  { %9799 = vmatprep.subr.bf16.mxu0 %v14655_v34  ;;  %10291 = vmatprep.subr.bf16.mxu1 %v14657_v35  ;;  %v1209_v32 = vld [vmem:[#allocation2 + $0x1de8] sm:$0xff]  ;;  %v14694_v34 = vcombine.low %v1196_v15, %v1200_v17  ;;  %v14696_v35 = vcombine.low %v1197_v59, %v1201_v19  ;;  %v14735_v15 = vcombine.high %v1236_v6, %v1240_v7  ;;  %v1244_v59 = vld [vmem:[#allocation2 + $0x1f00] sm:$0xff] }
 0x222   :  { %9829 = vmatprep.mubr.bf16.mxu0 %v16661_v38  ;;  %10321 = vmatprep.mubr.bf16.mxu1 %v16661_v38  ;;  %v14705_v37 = vcombine.high %v1205_v31, %v1209_v32  ;;  %v1248_v19 = vld [vmem:[#allocation2 + $0x1f20] sm:$0xff] }
 0x224   :  { %9800 = vmatpush1.bf16.msra.mxu0 %v14654_v28  ;;  %10292 = vmatpush1.bf16.msra.mxu1 %v14656_v42  ;;  %v1213_v28 = vld [vmem:[#allocation2 + $0x1e08] sm:$0xff] }
 0x225   :  { %9801 = vmatprep.subr.bf16.mxu0 %v14663_v45  ;;  %10293 = vmatprep.subr.bf16.mxu1 %v14665_v46  ;;  %v1217_v42 = vld [vmem:[#allocation2 + $0x1e28] sm:$0xff]  ;;  %v14702_v45 = vcombine.low %v1204_v27, %v1208_v30  ;;  %v14704_v46 = vcombine.low %v1205_v31, %v1209_v32  ;;  %v14743_v27 = vcombine.high %v1244_v59, %v1248_v19  ;;  %v1252_v31 = vld [vmem:[#allocation2 + $0x1f40] sm:$0xff] }
 0x226   :  { %v14713_v48 = vcombine.high %v1213_v28, %v1217_v42  ;;  %v1256_v32 = vld [vmem:[#allocation2 + $0x1f60] sm:$0xff] }
 0x228   :  { %9802 = vmatpush1.bf16.msra.mxu0 %v14662_v16  ;;  %10294 = vmatpush1.bf16.msra.mxu1 %v14664_v55  ;;  %v1221_v16 = vld [vmem:[#allocation2 + $0x1e48] sm:$0xff] }
 0x229   :  { %9803 = vmatprep.subr.bf16.mxu0 %v14671_v52  ;;  %10295 = vmatprep.subr.bf16.mxu1 %v14673_v56  ;;  %v1225_v55 = vld [vmem:[#allocation2 + $0x1e68] sm:$0xff]  ;;  %v14710_v52 = vcombine.low %v1212_v40, %v1216_v57  ;;  %v14712_v56 = vcombine.low %v1213_v28, %v1217_v42  ;;  %v14751_v40 = vcombine.high %v1252_v31, %v1256_v32  ;;  %v1260_v28 = vld [vmem:[#allocation2 + $0x1f80] sm:$0xff] }
 0x22a   :  { %v14721_v58 = vcombine.high %v1221_v16, %v1225_v55  ;;  %v1264_v42 = vld [vmem:[#allocation2 + $0x1fa0] sm:$0xff] }
 0x22c   :  { %9804 = vmatpush1.bf16.msra.mxu0 %v14670_v61  ;;  %10296 = vmatpush1.bf16.msra.mxu1 %v14672_v62  ;;  %v1229_v61 = vld [vmem:[#allocation2 + $0x1e88] sm:$0xff] }
 0x22d   :  { %9805 = vmatprep.subr.bf16.mxu0 %v14679_v1  ;;  %10297 = vmatprep.subr.bf16.mxu1 %v14681_v2  ;;  %v1233_v62 = vld [vmem:[#allocation2 + $0x1ea8] sm:$0xff]  ;;  %v14718_v1 = vcombine.low %v1220_v49, %v1224_v50  ;;  %v14720_v2 = vcombine.low %v1221_v16, %v1225_v55  ;;  %v14759_v49 = vcombine.high %v1260_v28, %v1264_v42  ;;  %v1268_v16 = vld [vmem:[#allocation2 + $0x1fc0] sm:$0xff] }
 0x22e   :  { %v14729_v5 = vcombine.high %v1229_v61, %v1233_v62  ;;  %v1272_v55 = vld [vmem:[#allocation2 + $0x1fe0] sm:$0xff] }
 0x230   :  { %9806 = vmatpush1.bf16.msra.mxu0 %v14678_v8  ;;  %10298 = vmatpush1.bf16.msra.mxu1 %v14680_v11  ;;  %v1237_v8 = vld [vmem:[#allocation2 + $0x1ec8] sm:$0xff] }
 0x231   :  { %9807 = vmatprep.subr.bf16.mxu0 %v14687_v13  ;;  %10299 = vmatprep.subr.bf16.mxu1 %v14689_v18  ;;  %v1241_v11 = vld [vmem:[#allocation2 + $0x1ee8] sm:$0xff]  ;;  %v14726_v13 = vcombine.low %v1228_v23, %v1232_v60  ;;  %v14728_v18 = vcombine.low %v1229_v61, %v1233_v62  ;;  %v14767_v60 = vcombine.high %v1268_v16, %v1272_v55  ;;  %v1276_v62 = vld [vmem:[#allocation2 + $0x2000] sm:$0xff] }
 0x232   :  { %v14737_v17 = vcombine.high %v1237_v8, %v1241_v11 }
 0x234   :  { %9808 = vmatpush1.bf16.msra.mxu0 %v14686_v20  ;;  %10300 = vmatpush1.bf16.msra.mxu1 %v14688_v21  ;;  %v1245_v20 = vld [vmem:[#allocation2 + $0x1f08] sm:$0xff] }
 0x235   :  { %9809 = vmatprep.subr.bf16.mxu0 %v14695_v22  ;;  %10301 = vmatprep.subr.bf16.mxu1 %v14697_v24  ;;  %v1249_v21 = vld [vmem:[#allocation2 + $0x1f28] sm:$0xff]  ;;  %v14734_v22 = vcombine.low %v1236_v6, %v1240_v7  ;;  %v14736_v24 = vcombine.low %v1237_v8, %v1241_v11  ;;  %v14766_v6 = vcombine.low %v1268_v16, %v1272_v55 }
 0x236   :  { %v14745_v30 = vcombine.high %v1245_v20, %v1249_v21  ;;  %v1309_v16 = vld [vmem:[#allocation2 + $0x2108] sm:$0xff] }
 0x237   :  { %v1313_v55 = vld [vmem:[#allocation2 + $0x2128] sm:$0xff] }
 0x238   :  { %9810 = vmatpush1.bf16.msra.mxu0 %v14694_v34  ;;  %10302 = vmatpush1.bf16.msra.mxu1 %v14696_v35  ;;  %v1253_v34 = vld [vmem:[#allocation2 + $0x1f48] sm:$0xff] }
 0x239   :  { %9811 = vmatprep.subr.bf16.mxu0 %v14703_v63  ;;  %10303 = vmatprep.subr.bf16.mxu1 %v14705_v37  ;;  %v1257_v35 = vld [vmem:[#allocation2 + $0x1f68] sm:$0xff]  ;;  %v14742_v63 = vcombine.low %v1244_v59, %v1248_v19  ;;  %v14744_v37 = vcombine.low %v1245_v20, %v1249_v21 }
 0x23a   :  { %v14753_v57 = vcombine.high %v1253_v34, %v1257_v35  ;;  %v1285_v59 = vld [vmem:[#allocation2 + $0x2048] sm:$0xff] }
 0x23b   :  { %v1289_v19 = vld [vmem:[#allocation2 + $0x2068] sm:$0xff] }
 0x23c   :  { %9812 = vmatpush1.bf16.msra.mxu0 %v14702_v45  ;;  %10304 = vmatpush1.bf16.msra.mxu1 %v14704_v46  ;;  %v1261_v45 = vld [vmem:[#allocation2 + $0x1f88] sm:$0xff] }
 0x23d   :  { %9813 = vmatprep.subr.bf16.mxu0 %v14711_v47  ;;  %10305 = vmatprep.subr.bf16.mxu1 %v14713_v48  ;;  %v1265_v46 = vld [vmem:[#allocation2 + $0x1fa8] sm:$0xff]  ;;  %v14750_v47 = vcombine.low %v1252_v31, %v1256_v32  ;;  %v14752_v48 = vcombine.low %v1253_v34, %v1257_v35  ;;  %v14784_v35 = vcombine.low %v1285_v59, %v1289_v19 }
 0x23e   :  { %v14761_v50 = vcombine.high %v1261_v45, %v1265_v46  ;;  %v14760_v23 = vcombine.low %v1261_v45, %v1265_v46  ;;  %v1293_v32 = vld [vmem:[#allocation2 + $0x2088] sm:$0xff] }
 0x23f   :  { %v1297_v34 = vld [vmem:[#allocation2 + $0x20a8] sm:$0xff] }
 0x240   :  { %9814 = vmatpush1.bf16.msra.mxu0 %v14710_v52  ;;  %10306 = vmatpush1.bf16.msra.mxu1 %v14712_v56  ;;  %v1269_v52 = vld [vmem:[#allocation2 + $0x1fc8] sm:$0xff]  ;;  %v14792_v46 = vcombine.low %v1293_v32, %v1297_v34 }
 0x241   :  { %9815 = vmatprep.subr.bf16.mxu0 %v14719_v10  ;;  %10307 = vmatprep.subr.bf16.mxu1 %v14721_v58  ;;  %v1273_v56 = vld [vmem:[#allocation2 + $0x1fe8] sm:$0xff]  ;;  %v16670_v10 = vld [vmem:[%s16953_s0 + $0x20] sm:$0xff]  ;;  %v14758_v58 = vcombine.low %v1260_v28, %v1264_v42 }
 0x242   :  { %v14769_v61 = vcombine.high %v1269_v52, %v1273_v56  ;;  %v14768_v7 = vcombine.low %v1269_v52, %v1273_v56  ;;  %v1301_v28 = vld [vmem:[#allocation2 + $0x20c8] sm:$0xff] }
 0x243   :  { %v1305_v42 = vld [vmem:[#allocation2 + $0x20e8] sm:$0xff] }
 0x244   :  { %9816 = vmatpush1.bf16.msra.mxu0 %v14718_v1  ;;  %10308 = vmatpush1.bf16.msra.mxu1 %v14720_v2  ;;  %v1280_v1 = vld [vmem:[#allocation2 + $0x2020] sm:$0xff]  ;;  %v16674_v2 = vrot.slane %v16670_v10, %v16519_v53  ;;  %v14800_v56 = vcombine.low %v1301_v28, %v1305_v42 }
 0x245   :  { %9817 = vmatprep.subr.bf16.mxu0 %v14727_v3  ;;  %10309 = vmatprep.subr.bf16.mxu1 %v14729_v5  ;;  %v1277_v3 = vld [vmem:[#allocation2 + $0x2008] sm:$0xff]  ;;  %v14775_v8 = vcombine.high %v1276_v62, %v1280_v1  ;;  %v14774_v20 = vcombine.low %v1276_v62, %v1280_v1 }
 0x246   :  { %v1281_v5 = vld [vmem:[#allocation2 + $0x2028] sm:$0xff] }
 0x247   :  { %v14777_v11 = vcombine.high %v1277_v3, %v1281_v5  ;;  %v14776_v21 = vcombine.low %v1277_v3, %v1281_v5  ;;  %v1317_v62 = vld [vmem:[#allocation2 + $0x2148] sm:$0xff]  ;;  %v14808_v5 = vcombine.low %v1309_v16, %v1313_v55 }
 0x248   :  { %9818 = vmatpush1.bf16.msra.mxu0 %v14726_v13  ;;  %10310 = vmatpush1.bf16.msra.mxu1 %v14728_v18  ;;  %v1284_v13 = vld [vmem:[#allocation2 + $0x2040] sm:$0xff]  ;;  %v1321_v1 = vld [vmem:[#allocation2 + $0x2168] sm:$0xff] }
 0x249   :  { %9819 = vmatprep.subr.bf16.mxu0 %v14735_v15  ;;  %10311 = vmatprep.subr.bf16.mxu1 %v14737_v17  ;;  %v1288_v18 = vld [vmem:[#allocation2 + $0x2060] sm:$0xff]  ;;  %v185_v15 = vcombine.high %v16674_v2, %v16674_v2  ;;  %v16680_v17 = vpack.c.bf16 %v16653_v33, %v16653_v33 }
 0x24a   :  { %v14782_v33 = vcombine.low %v1284_v13, %v1288_v18 }
 0x24b   :  { %v16682_v31 = vpack.c.bf16 %v185_v15, %v185_v15 }
 0x24c   :  { %9820 = vmatpush1.bf16.msra.mxu0 %v14734_v22  ;;  %10312 = vmatpush1.bf16.msra.mxu1 %v14736_v24  ;;  %v14783_v22 = vcombine.high %v1284_v13, %v1288_v18  ;;  %v14785_v24 = vcombine.high %v1285_v59, %v1289_v19  ;;  %v1325_v13 = vld [vmem:[#allocation2 + $0x2188] sm:$0xff]  ;;  %v14816_v59 = vcombine.low %v1317_v62, %v1321_v1 }
 0x24d   :  { %9821 = vmatprep.subr.bf16.mxu0 %v14743_v27  ;;  %10313 = vmatprep.subr.bf16.mxu1 %v14745_v30  ;;  %v1292_v27 = vld [vmem:[#allocation2 + $0x2080] sm:$0xff]  ;;  %v1329_v18 = vld [vmem:[#allocation2 + $0x21a8] sm:$0xff] }
 0x24e   :  { %v1296_v30 = vld [vmem:[#allocation2 + $0x20a0] sm:$0xff] }
 0x24f   :  { %v14790_v45 = vcombine.low %v1292_v27, %v1296_v30 }
 0x250   :  { %9822 = vmatpush1.bf16.msra.mxu0 %v14742_v63  ;;  %10314 = vmatpush1.bf16.msra.mxu1 %v14744_v37  ;;  %v14791_v63 = vcombine.high %v1292_v27, %v1296_v30  ;;  %v14793_v37 = vcombine.high %v1293_v32, %v1297_v34  ;;  %v1337_v27 = vld [vmem:[#allocation2 + $0x21e8] sm:$0xff]  ;;  %v14824_v32 = vcombine.low %v1325_v13, %v1329_v18 }
 0x251   :  { %9823 = vmatprep.subr.bf16.mxu0 %v14751_v40  ;;  %10315 = vmatprep.subr.bf16.mxu1 %v14753_v57  ;;  %v1300_v40 = vld [vmem:[#allocation2 + $0x20c0] sm:$0xff] }
 0x252   :  { %v1304_v57 = vld [vmem:[#allocation2 + $0x20e0] sm:$0xff] }
 0x253   :  { %v14798_v52 = vcombine.low %v1300_v40, %v1304_v57 }
 0x254   :  { %9824 = vmatpush1.bf16.msra.mxu0 %v14750_v47  ;;  %10316 = vmatpush1.bf16.msra.mxu1 %v14752_v48  ;;  %v14799_v47 = vcombine.high %v1300_v40, %v1304_v57  ;;  %v14801_v48 = vcombine.high %v1301_v28, %v1305_v42  ;;  %v1345_v40 = vld [vmem:[#allocation2 + $0x2228] sm:$0xff] }
 0x255   :  { %9825 = vmatprep.subr.bf16.mxu0 %v14759_v49  ;;  %10317 = vmatprep.subr.bf16.mxu1 %v14761_v50  ;;  %v1308_v49 = vld [vmem:[#allocation2 + $0x2100] sm:$0xff] }
 0x256   :  { %v1312_v50 = vld [vmem:[#allocation2 + $0x2120] sm:$0xff] }
 0x257   :  { %v14806_v3 = vcombine.low %v1308_v49, %v1312_v50 }
 0x258   :  { %9826 = vmatpush1.bf16.msra.mxu0 %v14758_v58  ;;  %10318 = vmatpush1.bf16.msra.mxu1 %v14760_v23  ;;  %v14807_v58 = vcombine.high %v1308_v49, %v1312_v50  ;;  %v14809_v23 = vcombine.high %v1309_v16, %v1313_v55  ;;  %v1353_v49 = vld [vmem:[#allocation2 + $0x2268] sm:$0xff] }
 0x259   :  { %9827 = vmatprep.subr.bf16.mxu0 %v14767_v60  ;;  %10319 = vmatprep.subr.bf16.mxu1 %v14769_v61  ;;  %v1316_v60 = vld [vmem:[#allocation2 + $0x2140] sm:$0xff] }
 0x25a   :  { %v1320_v61 = vld [vmem:[#allocation2 + $0x2160] sm:$0xff] }
 0x25b   :  { %v14814_v15 = vcombine.low %v1316_v60, %v1320_v61 }
 0x25c   :  { %9828 = vmatpush1.bf16.msra.mxu0 %v14766_v6  ;;  %10320 = vmatpush1.bf16.msra.mxu1 %v14768_v7  ;;  %v14815_v6 = vcombine.high %v1316_v60, %v1320_v61  ;;  %v14817_v7 = vcombine.high %v1317_v62, %v1321_v1  ;;  %v1361_v60 = vld [vmem:[#allocation2 + $0x22a8] sm:$0xff] }
 0x25d   :  { %9838 = vmatprep.subr.bf16.mxu0 %v14775_v8  ;;  %10330 = vmatprep.subr.bf16.mxu1 %v14777_v11  ;;  %v1324_v8 = vld [vmem:[#allocation2 + $0x2180] sm:$0xff] }
 0x25e   :  { %v1328_v11 = vld [vmem:[#allocation2 + $0x21a0] sm:$0xff] }
 0x25f   :  { %9830 = vmatmul.mubr.bf16.vlgmr.msra.gmra.mrb[0].mxu0 %v16680_v17  ;;  %10322 = vmatmul.mubr.bf16.vlgmr.msra.gmra.mrb[0].mxu1 %v16680_v17  ;;  %v14823_v19 = vcombine.high %v1324_v8, %v1328_v11  ;;  %v14822_v30 = vcombine.low %v1324_v8, %v1328_v11  ;;  %v1369_v8 = vld [vmem:[#allocation2 + $0x22e8] sm:$0xff] }
 0x260   :  { %9839 = vmatpush1.bf16.msra.mxu0 %v14774_v20  ;;  %10331 = vmatpush1.bf16.msra.mxu1 %v14776_v21  ;;  %v14825_v20 = vcombine.high %v1325_v13, %v1329_v18  ;;  %v1332_v21 = vld [vmem:[#allocation2 + $0x21c0] sm:$0xff] }
 0x261   :  { %9840 = vmatprep.subr.bf16.mxu0 %v14783_v22  ;;  %10332 = vmatprep.subr.bf16.mxu1 %v14785_v24  ;;  %v1336_v22 = vld [vmem:[#allocation2 + $0x21e0] sm:$0xff]  ;;  %v1333_v24 = vld [vmem:[#allocation2 + $0x21c8] sm:$0xff] }
 0x262   :  { %9870 = vmatprep.mubr.bf16.mxu0 %v16682_v31  ;;  %10362 = vmatprep.mubr.bf16.mxu1 %v16682_v31  ;;  %v14831_v34 = vcombine.high %v1332_v21, %v1336_v22  ;;  %v14830_v57 = vcombine.low %v1332_v21, %v1336_v22  ;;  %v14832_v28 = vcombine.low %v1333_v24, %v1337_v27  ;;  %v1377_v21 = vld [vmem:[#allocation2 + $0x2328] sm:$0xff] }
 0x264   :  { %9841 = vmatpush1.bf16.msra.mxu0 %v14782_v33  ;;  %10333 = vmatpush1.bf16.msra.mxu1 %v14784_v35  ;;  %v14833_v33 = vcombine.high %v1333_v24, %v1337_v27  ;;  %v1340_v35 = vld [vmem:[#allocation2 + $0x2200] sm:$0xff] }
 0x265   :  { %9842 = vmatprep.subr.bf16.mxu0 %v14791_v63  ;;  %10334 = vmatprep.subr.bf16.mxu1 %v14793_v37  ;;  %v1344_v63 = vld [vmem:[#allocation2 + $0x2220] sm:$0xff]  ;;  %v1341_v37 = vld [vmem:[#allocation2 + $0x2208] sm:$0xff] }
 0x266   :  { %v14839_v42 = vcombine.high %v1340_v35, %v1344_v63  ;;  %v14838_v50 = vcombine.low %v1340_v35, %v1344_v63  ;;  %v14840_v16 = vcombine.low %v1341_v37, %v1345_v40  ;;  %v1385_v35 = vld [vmem:[#allocation2 + $0x2368] sm:$0xff] }
 0x268   :  { %9843 = vmatpush1.bf16.msra.mxu0 %v14790_v45  ;;  %10335 = vmatpush1.bf16.msra.mxu1 %v14792_v46  ;;  %v14841_v45 = vcombine.high %v1341_v37, %v1345_v40  ;;  %v1348_v46 = vld [vmem:[#allocation2 + $0x2240] sm:$0xff] }
 0x269   :  { %9844 = vmatprep.subr.bf16.mxu0 %v14799_v47  ;;  %10336 = vmatprep.subr.bf16.mxu1 %v14801_v48  ;;  %v1352_v47 = vld [vmem:[#allocation2 + $0x2260] sm:$0xff]  ;;  %v1349_v48 = vld [vmem:[#allocation2 + $0x2248] sm:$0xff] }
 0x26a   :  { %v14847_v55 = vcombine.high %v1348_v46, %v1352_v47  ;;  %v14846_v61 = vcombine.low %v1348_v46, %v1352_v47  ;;  %v14848_v62 = vcombine.low %v1349_v48, %v1353_v49  ;;  %v1393_v46 = vld [vmem:[#allocation2 + $0x23a8] sm:$0xff] }
 0x26c   :  { %9845 = vmatpush1.bf16.msra.mxu0 %v14798_v52  ;;  %10337 = vmatpush1.bf16.msra.mxu1 %v14800_v56  ;;  %v14849_v52 = vcombine.high %v1349_v48, %v1353_v49  ;;  %v1356_v56 = vld [vmem:[#allocation2 + $0x2280] sm:$0xff] }
 0x26d   :  { %9846 = vmatprep.subr.bf16.mxu0 %v14807_v58  ;;  %10338 = vmatprep.subr.bf16.mxu1 %v14809_v23  ;;  %v1360_v58 = vld [vmem:[#allocation2 + $0x22a0] sm:$0xff]  ;;  %v1357_v23 = vld [vmem:[#allocation2 + $0x2288] sm:$0xff] }
 0x26e   :  { %v14855_v1 = vcombine.high %v1356_v56, %v1360_v58  ;;  %v14854_v11 = vcombine.low %v1356_v56, %v1360_v58  ;;  %v14856_v13 = vcombine.low %v1357_v23, %v1361_v60  ;;  %v1397_v56 = vld [vmem:[#allocation2 + $0x23c8] sm:$0xff] }
 0x26f   :  { %v1401_v58 = vld [vmem:[#allocation2 + $0x23e8] sm:$0xff] }
 0x270   :  { %9847 = vmatpush1.bf16.msra.mxu0 %v14806_v3  ;;  %10339 = vmatpush1.bf16.msra.mxu1 %v14808_v5  ;;  %v14857_v3 = vcombine.high %v1357_v23, %v1361_v60  ;;  %v1364_v5 = vld [vmem:[#allocation2 + $0x22c0] sm:$0xff] }
 0x271   :  { %9848 = vmatprep.subr.bf16.mxu0 %v14815_v6  ;;  %10340 = vmatprep.subr.bf16.mxu1 %v14817_v7  ;;  %v1368_v6 = vld [vmem:[#allocation2 + $0x22e0] sm:$0xff]  ;;  %v1365_v7 = vld [vmem:[#allocation2 + $0x22c8] sm:$0xff] }
 0x272   :  { %v14863_v18 = vcombine.high %v1364_v5, %v1368_v6  ;;  %v14862_v22 = vcombine.low %v1364_v5, %v1368_v6  ;;  %v14864_v24 = vcombine.low %v1365_v7, %v1369_v8  ;;  %v1405_v6 = vld [vmem:[#allocation2 + $0x2408] sm:$0xff] }
 0x274   :  { %9849 = vmatpush1.bf16.msra.mxu0 %v14814_v15  ;;  %10341 = vmatpush1.bf16.msra.mxu1 %v14816_v59  ;;  %v14865_v15 = vcombine.high %v1365_v7, %v1369_v8  ;;  %v1372_v59 = vld [vmem:[#allocation2 + $0x2300] sm:$0xff]  ;;  %v1409_v7 = vld [vmem:[#allocation2 + $0x2428] sm:$0xff] }
 0x275   :  { %9850 = vmatprep.subr.bf16.mxu0 %v14823_v19  ;;  %10342 = vmatprep.subr.bf16.mxu1 %v14825_v20  ;;  %v1376_v19 = vld [vmem:[#allocation2 + $0x2320] sm:$0xff]  ;;  %v1373_v20 = vld [vmem:[#allocation2 + $0x2308] sm:$0xff] }
 0x276   :  { %v14871_v27 = vcombine.high %v1372_v59, %v1376_v19  ;;  %v14870_v63 = vcombine.low %v1372_v59, %v1376_v19  ;;  %v14872_v37 = vcombine.low %v1373_v20, %v1377_v21  ;;  %v16697_v19 = vpack.c.bf16 %v16674_v2, %v16674_v2 }
 0x278   :  { %9851 = vmatpush1.bf16.msra.mxu0 %v14822_v30  ;;  %10343 = vmatpush1.bf16.msra.mxu1 %v14824_v32  ;;  %v14873_v30 = vcombine.high %v1373_v20, %v1377_v21  ;;  %v1380_v32 = vld [vmem:[#allocation2 + $0x2340] sm:$0xff]  ;;  %v1413_v20 = vld [vmem:[#allocation2 + $0x2448] sm:$0xff] }
 0x279   :  { %9852 = vmatprep.subr.bf16.mxu0 %v14831_v34  ;;  %10344 = vmatprep.subr.bf16.mxu1 %v14833_v33  ;;  %v1384_v34 = vld [vmem:[#allocation2 + $0x2360] sm:$0xff]  ;;  %v1381_v33 = vld [vmem:[#allocation2 + $0x2348] sm:$0xff] }
 0x27a   :  { %v14879_v40 = vcombine.high %v1380_v32, %v1384_v34  ;;  %v14878_v47 = vcombine.low %v1380_v32, %v1384_v34  ;;  %v14880_v48 = vcombine.low %v1381_v33, %v1385_v35  ;;  %v1417_v21 = vld [vmem:[#allocation2 + $0x2468] sm:$0xff]  ;;  %v1420_v32 = vld [vmem:[#allocation2 + $0x2480] sm:$0xff] }
 0x27b   :  { %v1424_v34 = vld [vmem:[#allocation2 + $0x24a0] sm:$0xff] }
 0x27c   :  { %9853 = vmatpush1.bf16.msra.mxu0 %v14830_v57  ;;  %10345 = vmatpush1.bf16.msra.mxu1 %v14832_v28  ;;  %v14881_v57 = vcombine.high %v1381_v33, %v1385_v35  ;;  %v1388_v28 = vld [vmem:[#allocation2 + $0x2380] sm:$0xff]  ;;  %v1421_v35 = vld [vmem:[#allocation2 + $0x2488] sm:$0xff] }
 0x27d   :  { %9854 = vmatprep.subr.bf16.mxu0 %v14839_v42  ;;  %10346 = vmatprep.subr.bf16.mxu1 %v14841_v45  ;;  %v1392_v42 = vld [vmem:[#allocation2 + $0x23a0] sm:$0xff]  ;;  %v1389_v45 = vld [vmem:[#allocation2 + $0x2388] sm:$0xff] }
 0x27e   :  { %v14887_v49 = vcombine.high %v1388_v28, %v1392_v42  ;;  %v14886_v23 = vcombine.low %v1388_v28, %v1392_v42  ;;  %v14888_v60 = vcombine.low %v1389_v45, %v1393_v46  ;;  %v1428_v28 = vld [vmem:[#allocation2 + $0x24c0] sm:$0xff] }
 0x27f   :  { %v1432_v42 = vld [vmem:[#allocation2 + $0x24e0] sm:$0xff] }
 0x280   :  { %9855 = vmatpush1.bf16.msra.mxu0 %v14838_v50  ;;  %10347 = vmatpush1.bf16.msra.mxu1 %v14840_v16  ;;  %v14889_v50 = vcombine.high %v1389_v45, %v1393_v46  ;;  %v1396_v16 = vld [vmem:[#allocation2 + $0x23c0] sm:$0xff]  ;;  %v1429_v45 = vld [vmem:[#allocation2 + $0x24c8] sm:$0xff] }
 0x281   :  { %9856 = vmatprep.subr.bf16.mxu0 %v14847_v55  ;;  %10348 = vmatprep.subr.bf16.mxu1 %v14849_v52  ;;  %v1400_v55 = vld [vmem:[#allocation2 + $0x23e0] sm:$0xff]  ;;  %v170_v52 = vcombine.high %v16670_v10, %v16670_v10  ;;  %v14896_v10 = vcombine.low %v1397_v56, %v1401_v58  ;;  %v1433_v46 = vld [vmem:[#allocation2 + $0x24e8] sm:$0xff] }
 0x282   :  { %v14894_v8 = vcombine.low %v1396_v16, %v1400_v55 }
 0x283   :  { %v16691_v5 = vrot.slane %v170_v52, %v16519_v53  ;;  %v1437_v52 = vld [vmem:[#allocation2 + $0x2508] sm:$0xff] }
 0x284   :  { %9857 = vmatpush1.bf16.msra.mxu0 %v14846_v61  ;;  %10349 = vmatpush1.bf16.msra.mxu1 %v14848_v62  ;;  %v14895_v61 = vcombine.high %v1396_v16, %v1400_v55  ;;  %v14897_v62 = vcombine.high %v1397_v56, %v1401_v58  ;;  %v1436_v16 = vld [vmem:[#allocation2 + $0x2500] sm:$0xff]  ;;  %v1441_v56 = vld [vmem:[#allocation2 + $0x2528] sm:$0xff]  ;;  %v14926_v58 = vcombine.low %v1428_v28, %v1432_v42 }
 0x285   :  { %9858 = vmatprep.subr.bf16.mxu0 %v14855_v1  ;;  %10350 = vmatprep.subr.bf16.mxu1 %v14857_v3  ;;  %v1404_v1 = vld [vmem:[#allocation2 + $0x2400] sm:$0xff]  ;;  %v186_v59 = vcombine.high %v16691_v5, %v16691_v5 }
 0x286   :  { %v1408_v3 = vld [vmem:[#allocation2 + $0x2420] sm:$0xff] }
 0x287   :  { %v16699_v33 = vpack.c.bf16 %v186_v59, %v186_v59  ;;  %v1440_v55 = vld [vmem:[#allocation2 + $0x2520] sm:$0xff]  ;;  %v1457_v59 = vld [vmem:[#allocation2 + $0x25a8] sm:$0xff] }
 0x288   :  { %9859 = vmatpush1.bf16.msra.mxu0 %v14854_v11  ;;  %10351 = vmatpush1.bf16.msra.mxu1 %v14856_v13  ;;  %v14903_v11 = vcombine.high %v1404_v1, %v1408_v3  ;;  %v14905_v13 = vcombine.high %v1405_v6, %v1409_v7 }
 0x289   :  { %9860 = vmatprep.subr.bf16.mxu0 %v14863_v18  ;;  %10352 = vmatprep.subr.bf16.mxu1 %v14865_v15  ;;  %v1412_v18 = vld [vmem:[#allocation2 + $0x2440] sm:$0xff] }
 0x28a   :  { %v1416_v15 = vld [vmem:[#allocation2 + $0x2460] sm:$0xff] }
 0x28b   :  { %v14910_v2 = vcombine.low %v1412_v18, %v1416_v15 }
 0x28c   :  { %9861 = vmatpush1.bf16.msra.mxu0 %v14862_v22  ;;  %10353 = vmatpush1.bf16.msra.mxu1 %v14864_v24  ;;  %v14902_v22 = vcombine.low %v1404_v1, %v1408_v3  ;;  %v14904_v24 = vcombine.low %v1405_v6, %v1409_v7  ;;  %v1448_v1 = vld [vmem:[#allocation2 + $0x2560] sm:$0xff]  ;;  %v1445_v3 = vld [vmem:[#allocation2 + $0x2548] sm:$0xff]  ;;  %v14934_v7 = vcombine.low %v1436_v16, %v1440_v55 }
 0x28d   :  { %9862 = vmatprep.subr.bf16.mxu0 %v14871_v27  ;;  %10354 = vmatprep.subr.bf16.mxu1 %v14873_v30  ;;  %v14911_v27 = vcombine.high %v1412_v18, %v1416_v15  ;;  %v14913_v30 = vcombine.high %v1413_v20, %v1417_v21  ;;  %v1449_v6 = vld [vmem:[#allocation2 + $0x2568] sm:$0xff]  ;;  %v1456_v18 = vld [vmem:[#allocation2 + $0x25a0] sm:$0xff] }
 0x28e   :  { %v1453_v15 = vld [vmem:[#allocation2 + $0x2588] sm:$0xff] }
 0x290   :  { %9863 = vmatpush1.bf16.msra.mxu0 %v14870_v63  ;;  %10355 = vmatpush1.bf16.msra.mxu1 %v14872_v37  ;;  %v1425_v63 = vld [vmem:[#allocation2 + $0x24a8] sm:$0xff]  ;;  %v14912_v37 = vcombine.low %v1413_v20, %v1417_v21  ;;  %v14944_v21 = vcombine.low %v1445_v3, %v1449_v6 }
 0x291   :  { %9864 = vmatprep.subr.bf16.mxu0 %v14879_v40  ;;  %10356 = vmatprep.subr.bf16.mxu1 %v14881_v57  ;;  %v14919_v40 = vcombine.high %v1420_v32, %v1424_v34  ;;  %v14921_v57 = vcombine.high %v1421_v35, %v1425_v63 }
 0x294   :  { %9865 = vmatpush1.bf16.msra.mxu0 %v14878_v47  ;;  %10357 = vmatpush1.bf16.msra.mxu1 %v14880_v48  ;;  %v14918_v47 = vcombine.low %v1420_v32, %v1424_v34  ;;  %v14920_v48 = vcombine.low %v1421_v35, %v1425_v63  ;;  %v1461_v32 = vld [vmem:[#allocation2 + $0x25c8] sm:$0xff]  ;;  %v14952_v63 = vcombine.low %v1453_v15, %v1457_v59 }
 0x295   :  { %9866 = vmatprep.subr.bf16.mxu0 %v14887_v49  ;;  %10358 = vmatprep.subr.bf16.mxu1 %v14889_v50  ;;  %v14927_v49 = vcombine.high %v1428_v28, %v1432_v42  ;;  %v14929_v50 = vcombine.high %v1429_v45, %v1433_v46  ;;  %v1465_v34 = vld [vmem:[#allocation2 + $0x25e8] sm:$0xff] }
 0x296   :  { %v1469_v28 = vld [vmem:[#allocation2 + $0x2608] sm:$0xff] }
 0x297   :  { %v1473_v42 = vld [vmem:[#allocation2 + $0x2628] sm:$0xff] }
 0x298   :  { %9867 = vmatpush1.bf16.msra.mxu0 %v14886_v23  ;;  %10359 = vmatpush1.bf16.msra.mxu1 %v14888_v60  ;;  %v14928_v23 = vcombine.low %v1429_v45, %v1433_v46  ;;  %v14935_v60 = vcombine.high %v1436_v16, %v1440_v55  ;;  %v14960_v46 = vcombine.low %v1461_v32, %v1465_v34  ;;  %v1477_v16 = vld [vmem:[#allocation2 + $0x2648] sm:$0xff] }
 0x299   :  { %9868 = vmatprep.subr.bf16.mxu0 %v14895_v61  ;;  %10360 = vmatprep.subr.bf16.mxu1 %v14897_v62  ;;  %v14937_v61 = vcombine.high %v1437_v52, %v1441_v56  ;;  %v1444_v62 = vld [vmem:[#allocation2 + $0x2540] sm:$0xff]  ;;  %v1481_v55 = vld [vmem:[#allocation2 + $0x2668] sm:$0xff] }
 0x29a   :  { %v14942_v20 = vcombine.low %v1444_v62, %v1448_v1 }
 0x29c   :  { %9869 = vmatpush1.bf16.msra.mxu0 %v14894_v8  ;;  %10361 = vmatpush1.bf16.msra.mxu1 %v14896_v10  ;;  %v14936_v8 = vcombine.low %v1437_v52, %v1441_v56  ;;  %v14943_v10 = vcombine.high %v1444_v62, %v1448_v1  ;;  %v14968_v56 = vcombine.low %v1469_v28, %v1473_v42  ;;  %v1485_v62 = vld [vmem:[#allocation2 + $0x2688] sm:$0xff] }
 0x29d   :  { %9879 = vmatprep.subr.bf16.mxu0 %v14903_v11  ;;  %10371 = vmatprep.subr.bf16.mxu1 %v14905_v13  ;;  %v14945_v11 = vcombine.high %v1445_v3, %v1449_v6  ;;  %v1452_v13 = vld [vmem:[#allocation2 + $0x2580] sm:$0xff]  ;;  %v1489_v1 = vld [vmem:[#allocation2 + $0x26a8] sm:$0xff]  ;;  %v14976_v6 = vcombine.low %v1477_v16, %v1481_v55 }
 0x29e   :  { %v14950_v35 = vcombine.low %v1452_v13, %v1456_v18 }
 0x29f   :  { %9871 = vmatmul.mubr.bf16.vlgmr.msra.gmra.mrb[0].mxu0 %v16697_v19  ;;  %10363 = vmatmul.mubr.bf16.vlgmr.msra.gmra.mrb[0].mxu1 %v16697_v19 }
 0x2a0   :  { %9880 = vmatpush1.bf16.msra.mxu0 %v14902_v22  ;;  %10372 = vmatpush1.bf16.msra.mxu1 %v14904_v24  ;;  %v14951_v22 = vcombine.high %v1452_v13, %v1456_v18  ;;  %v14953_v24 = vcombine.high %v1453_v15, %v1457_v59  ;;  %v1493_v13 = vld [vmem:[#allocation2 + $0x26c8] sm:$0xff]  ;;  %v14984_v59 = vcombine.low %v1485_v62, %v1489_v1 }
 0x2a1   :  { %9881 = vmatprep.subr.bf16.mxu0 %v14911_v27  ;;  %10373 = vmatprep.subr.bf16.mxu1 %v14913_v30  ;;  %v1460_v27 = vld [vmem:[#allocation2 + $0x25c0] sm:$0xff]  ;;  %v1497_v18 = vld [vmem:[#allocation2 + $0x26e8] sm:$0xff] }
 0x2a2   :  { %9911 = vmatprep.mubr.bf16.mxu0 %v16699_v33  ;;  %10403 = vmatprep.mubr.bf16.mxu1 %v16699_v33  ;;  %v1464_v30 = vld [vmem:[#allocation2 + $0x25e0] sm:$0xff] }
 0x2a3   :  { %v14958_v45 = vcombine.low %v1460_v27, %v1464_v30 }
 0x2a4   :  { %9882 = vmatpush1.bf16.msra.mxu0 %v14910_v2  ;;  %10374 = vmatpush1.bf16.msra.mxu1 %v14912_v37  ;;  %v14959_v2 = vcombine.high %v1460_v27, %v1464_v30  ;;  %v14961_v37 = vcombine.high %v1461_v32, %v1465_v34  ;;  %v1501_v27 = vld [vmem:[#allocation2 + $0x2708] sm:$0xff]  ;;  %v14992_v34 = vcombine.low %v1493_v13, %v1497_v18 }
 0x2a5   :  { %9883 = vmatprep.subr.bf16.mxu0 %v14919_v40  ;;  %10375 = vmatprep.subr.bf16.mxu1 %v14921_v57  ;;  %v1468_v40 = vld [vmem:[#allocation2 + $0x2600] sm:$0xff]  ;;  %v1505_v30 = vld [vmem:[#allocation2 + $0x2728] sm:$0xff] }
 0x2a6   :  { %v1472_v57 = vld [vmem:[#allocation2 + $0x2620] sm:$0xff] }
 0x2a7   :  { %v14966_v52 = vcombine.low %v1468_v40, %v1472_v57 }
 0x2a8   :  { %9884 = vmatpush1.bf16.msra.mxu0 %v14918_v47  ;;  %10376 = vmatpush1.bf16.msra.mxu1 %v14920_v48  ;;  %v14967_v47 = vcombine.high %v1468_v40, %v1472_v57  ;;  %v14969_v48 = vcombine.high %v1469_v28, %v1473_v42  ;;  %v1509_v40 = vld [vmem:[#allocation2 + $0x2748] sm:$0xff]  ;;  %v15000_v42 = vcombine.low %v1501_v27, %v1505_v30 }
 0x2a9   :  { %9885 = vmatprep.subr.bf16.mxu0 %v14927_v49  ;;  %10377 = vmatprep.subr.bf16.mxu1 %v14929_v50  ;;  %v1476_v49 = vld [vmem:[#allocation2 + $0x2640] sm:$0xff]  ;;  %v1513_v57 = vld [vmem:[#allocation2 + $0x2768] sm:$0xff] }
 0x2aa   :  { %v1480_v50 = vld [vmem:[#allocation2 + $0x2660] sm:$0xff] }
 0x2ab   :  { %v14974_v3 = vcombine.low %v1476_v49, %v1480_v50 }
 0x2ac   :  { %9886 = vmatpush1.bf16.msra.mxu0 %v14926_v58  ;;  %10378 = vmatpush1.bf16.msra.mxu1 %v14928_v23  ;;  %v14975_v58 = vcombine.high %v1476_v49, %v1480_v50  ;;  %v14977_v23 = vcombine.high %v1477_v16, %v1481_v55  ;;  %v1517_v49 = vld [vmem:[#allocation2 + $0x2788] sm:$0xff]  ;;  %v15008_v55 = vcombine.low %v1509_v40, %v1513_v57 }
 0x2ad   :  { %9887 = vmatprep.subr.bf16.mxu0 %v14935_v60  ;;  %10379 = vmatprep.subr.bf16.mxu1 %v14937_v61  ;;  %v1484_v60 = vld [vmem:[#allocation2 + $0x2680] sm:$0xff]  ;;  %v1521_v50 = vld [vmem:[#allocation2 + $0x27a8] sm:$0xff] }
 0x2ae   :  { %v1488_v61 = vld [vmem:[#allocation2 + $0x26a0] sm:$0xff] }
 0x2af   :  { %v14982_v15 = vcombine.low %v1484_v60, %v1488_v61 }
 0x2b0   :  { %9888 = vmatpush1.bf16.msra.mxu0 %v14934_v7  ;;  %10380 = vmatpush1.bf16.msra.mxu1 %v14936_v8  ;;  %v14983_v7 = vcombine.high %v1484_v60, %v1488_v61  ;;  %v14985_v8 = vcombine.high %v1485_v62, %v1489_v1  ;;  %v1525_v60 = vld [vmem:[#allocation2 + $0x27c8] sm:$0xff]  ;;  %v16708_v62 = vld [vmem:[%s16953_s0 + $0x28] sm:$0xff] }
 0x2b1   :  { %9889 = vmatprep.subr.bf16.mxu0 %v14943_v10  ;;  %10381 = vmatprep.subr.bf16.mxu1 %v14945_v11  ;;  %v1492_v10 = vld [vmem:[#allocation2 + $0x26c0] sm:$0xff]  ;;  %v1529_v61 = vld [vmem:[#allocation2 + $0x27e8] sm:$0xff] }
 0x2b2   :  { %v1496_v11 = vld [vmem:[#allocation2 + $0x26e0] sm:$0xff] }
 0x2b3   :  { %v14990_v32 = vcombine.low %v1492_v10, %v1496_v11 }
 0x2b4   :  { %9890 = vmatpush1.bf16.msra.mxu0 %v14942_v20  ;;  %10382 = vmatpush1.bf16.msra.mxu1 %v14944_v21  ;;  %v14991_v20 = vcombine.high %v1492_v10, %v1496_v11  ;;  %v14993_v21 = vcombine.high %v1493_v13, %v1497_v18  ;;  %v1536_v10 = vld [vmem:[#allocation2 + $0x2820] sm:$0xff]  ;;  %v16712_v11 = vrot.slane %v16708_v62, %v16519_v53  ;;  %v1533_v13 = vld [vmem:[#allocation2 + $0x2808] sm:$0xff] }
 0x2b5   :  { %9891 = vmatprep.subr.bf16.mxu0 %v14951_v22  ;;  %10383 = vmatprep.subr.bf16.mxu1 %v14953_v24  ;;  %v1500_v22 = vld [vmem:[#allocation2 + $0x2700] sm:$0xff]  ;;  %v1537_v18 = vld [vmem:[#allocation2 + $0x2828] sm:$0xff] }
 0x2b6   :  { %v1504_v24 = vld [vmem:[#allocation2 + $0x2720] sm:$0xff] }
 0x2b7   :  { %v14998_v28 = vcombine.low %v1500_v22, %v1504_v24 }
 0x2b8   :  { %9892 = vmatpush1.bf16.msra.mxu0 %v14950_v35  ;;  %10384 = vmatpush1.bf16.msra.mxu1 %v14952_v63  ;;  %v14999_v35 = vcombine.high %v1500_v22, %v1504_v24  ;;  %v15001_v63 = vcombine.high %v1501_v27, %v1505_v30  ;;  %v1540_v22 = vld [vmem:[#allocation2 + $0x2840] sm:$0xff]  ;;  %v202_v27 = vcombine.high %v16712_v11, %v16712_v11 }
 0x2b9   :  { %9893 = vmatprep.subr.bf16.mxu0 %v14959_v2  ;;  %10385 = vmatprep.subr.bf16.mxu1 %v14961_v37  ;;  %v1508_v2 = vld [vmem:[#allocation2 + $0x2740] sm:$0xff]  ;;  %v16718_v30 = vpack.c.bf16 %v16691_v5, %v16691_v5 }
 0x2ba   :  { %v1512_v37 = vld [vmem:[#allocation2 + $0x2760] sm:$0xff] }
 0x2bb   :  { %v15006_v16 = vcombine.low %v1508_v2, %v1512_v37  ;;  %v1544_v24 = vld [vmem:[#allocation2 + $0x2860] sm:$0xff] }
 0x2bc   :  { %9894 = vmatpush1.bf16.msra.mxu0 %v14958_v45  ;;  %10386 = vmatpush1.bf16.msra.mxu1 %v14960_v46  ;;  %v15007_v45 = vcombine.high %v1508_v2, %v1512_v37  ;;  %v15009_v46 = vcombine.high %v1509_v40, %v1513_v57  ;;  %v15039_v2 = vcombine.high %v1540_v22, %v1544_v24  ;;  %v1548_v40 = vld [vmem:[#allocation2 + $0x2880] sm:$0xff] }
 0x2bd   :  { %9895 = vmatprep.subr.bf16.mxu0 %v14967_v47  ;;  %10387 = vmatprep.subr.bf16.mxu1 %v14969_v48  ;;  %v1516_v47 = vld [vmem:[#allocation2 + $0x2780] sm:$0xff]  ;;  %v15038_v5 = vcombine.low %v1540_v22, %v1544_v24 }
 0x2be   :  { %v1520_v48 = vld [vmem:[#allocation2 + $0x27a0] sm:$0xff] }
 0x2bf   :  { %v15014_v1 = vcombine.low %v1516_v47, %v1520_v48  ;;  %v1552_v57 = vld [vmem:[#allocation2 + $0x28a0] sm:$0xff] }
 0x2c0   :  { %9896 = vmatpush1.bf16.msra.mxu0 %v14966_v52  ;;  %10388 = vmatpush1.bf16.msra.mxu1 %v14968_v56  ;;  %v15015_v52 = vcombine.high %v1516_v47, %v1520_v48  ;;  %v15017_v56 = vcombine.high %v1517_v49, %v1521_v50  ;;  %v15047_v47 = vcombine.high %v1548_v40, %v1552_v57 }
 0x2c1   :  { %9897 = vmatprep.subr.bf16.mxu0 %v14975_v58  ;;  %10389 = vmatprep.subr.bf16.mxu1 %v14977_v23  ;;  %v1524_v58 = vld [vmem:[#allocation2 + $0x27c0] sm:$0xff] }
 0x2c2   :  { %v1528_v23 = vld [vmem:[#allocation2 + $0x27e0] sm:$0xff] }
 0x2c4   :  { %9898 = vmatpush1.bf16.msra.mxu0 %v14974_v3  ;;  %10390 = vmatpush1.bf16.msra.mxu1 %v14976_v6  ;;  %v15016_v3 = vcombine.low %v1517_v49, %v1521_v50  ;;  %v15023_v6 = vcombine.high %v1524_v58, %v1528_v23  ;;  %v1556_v49 = vld [vmem:[#allocation2 + $0x28c0] sm:$0xff] }
 0x2c5   :  { %9899 = vmatprep.subr.bf16.mxu0 %v14983_v7  ;;  %10391 = vmatprep.subr.bf16.mxu1 %v14985_v8  ;;  %v15025_v7 = vcombine.high %v1525_v60, %v1529_v61  ;;  %v1532_v8 = vld [vmem:[#allocation2 + $0x2800] sm:$0xff] }
 0x2c6   :  { %v1560_v50 = vld [vmem:[#allocation2 + $0x28e0] sm:$0xff] }
 0x2c8   :  { %9900 = vmatpush1.bf16.msra.mxu0 %v14982_v15  ;;  %10392 = vmatpush1.bf16.msra.mxu1 %v14984_v59  ;;  %v15022_v15 = vcombine.low %v1524_v58, %v1528_v23  ;;  %v15024_v59 = vcombine.low %v1525_v60, %v1529_v61  ;;  %v15055_v58 = vcombine.high %v1556_v49, %v1560_v50  ;;  %v1564_v60 = vld [vmem:[#allocation2 + $0x2900] sm:$0xff] }
 0x2c9   :  { %9901 = vmatprep.subr.bf16.mxu0 %v14991_v20  ;;  %10393 = vmatprep.subr.bf16.mxu1 %v14993_v21  ;;  %v15031_v20 = vcombine.high %v1532_v8, %v1536_v10  ;;  %v15033_v21 = vcombine.high %v1533_v13, %v1537_v18  ;;  %v1568_v61 = vld [vmem:[#allocation2 + $0x2920] sm:$0xff] }
 0x2cc   :  { %9902 = vmatpush1.bf16.msra.mxu0 %v14990_v32  ;;  %10394 = vmatpush1.bf16.msra.mxu1 %v14992_v34  ;;  %v1541_v32 = vld [vmem:[#allocation2 + $0x2848] sm:$0xff] }
 0x2cd   :  { %9903 = vmatprep.subr.bf16.mxu0 %v14999_v35  ;;  %10395 = vmatprep.subr.bf16.mxu1 %v15001_v63  ;;  %v1545_v34 = vld [vmem:[#allocation2 + $0x2868] sm:$0xff]  ;;  %v15030_v35 = vcombine.low %v1532_v8, %v1536_v10  ;;  %v15032_v63 = vcombine.low %v1533_v13, %v1537_v18  ;;  %v15063_v8 = vcombine.high %v1564_v60, %v1568_v61  ;;  %v1572_v13 = vld [vmem:[#allocation2 + $0x2940] sm:$0xff] }
 0x2ce   :  { %v15041_v37 = vcombine.high %v1541_v32, %v1545_v34  ;;  %v1576_v18 = vld [vmem:[#allocation2 + $0x2960] sm:$0xff] }
 0x2cf   :  { %v15071_v22 = vcombine.high %v1572_v13, %v1576_v18 }
 0x2d0   :  { %9904 = vmatpush1.bf16.msra.mxu0 %v14998_v28  ;;  %10396 = vmatpush1.bf16.msra.mxu1 %v15000_v42  ;;  %v16720_v28 = vpack.c.bf16 %v202_v27, %v202_v27  ;;  %v1549_v42 = vld [vmem:[#allocation2 + $0x2888] sm:$0xff]  ;;  %v1580_v27 = vld [vmem:[#allocation2 + $0x2980] sm:$0xff] }
 0x2d1   :  { %9905 = vmatprep.subr.bf16.mxu0 %v15007_v45  ;;  %10397 = vmatprep.subr.bf16.mxu1 %v15009_v46  ;;  %v1553_v45 = vld [vmem:[#allocation2 + $0x28a8] sm:$0xff]  ;;  %v15040_v46 = vcombine.low %v1541_v32, %v1545_v34  ;;  %v1584_v32 = vld [vmem:[#allocation2 + $0x29a0] sm:$0xff] }
 0x2d2   :  { %v15049_v48 = vcombine.high %v1549_v42, %v1553_v45  ;;  %v1581_v34 = vld [vmem:[#allocation2 + $0x2988] sm:$0xff] }
 0x2d4   :  { %9906 = vmatpush1.bf16.msra.mxu0 %v15006_v16  ;;  %10398 = vmatpush1.bf16.msra.mxu1 %v15008_v55  ;;  %v1557_v16 = vld [vmem:[#allocation2 + $0x28c8] sm:$0xff] }
 0x2d5   :  { %9907 = vmatprep.subr.bf16.mxu0 %v15015_v52  ;;  %10399 = vmatprep.subr.bf16.mxu1 %v15017_v56  ;;  %v1561_v55 = vld [vmem:[#allocation2 + $0x28e8] sm:$0xff]  ;;  %v15046_v52 = vcombine.low %v1548_v40, %v1552_v57  ;;  %v15048_v56 = vcombine.low %v1549_v42, %v1553_v45  ;;  %v1588_v57 = vld [vmem:[#allocation2 + $0x29c0] sm:$0xff] }
 0x2d6   :  { %v15057_v23 = vcombine.high %v1557_v16, %v1561_v55  ;;  %v1592_v42 = vld [vmem:[#allocation2 + $0x29e0] sm:$0xff]  ;;  %v1589_v45 = vld [vmem:[#allocation2 + $0x29c8] sm:$0xff] }
 0x2d8   :  { %9908 = vmatpush1.bf16.msra.mxu0 %v15014_v1  ;;  %10400 = vmatpush1.bf16.msra.mxu1 %v15016_v3  ;;  %v1565_v1 = vld [vmem:[#allocation2 + $0x2908] sm:$0xff] }
 0x2d9   :  { %9909 = vmatprep.subr.bf16.mxu0 %v15023_v6  ;;  %10401 = vmatprep.subr.bf16.mxu1 %v15025_v7  ;;  %v1569_v3 = vld [vmem:[#allocation2 + $0x2928] sm:$0xff]  ;;  %v15054_v6 = vcombine.low %v1556_v49, %v1560_v50  ;;  %v15056_v7 = vcombine.low %v1557_v16, %v1561_v55  ;;  %v1596_v50 = vld [vmem:[#allocation2 + $0x2a00] sm:$0xff] }
 0x2da   :  { %v15065_v10 = vcombine.high %v1565_v1, %v1569_v3  ;;  %v1600_v16 = vld [vmem:[#allocation2 + $0x2a20] sm:$0xff]  ;;  %v1597_v55 = vld [vmem:[#allocation2 + $0x2a08] sm:$0xff] }
 0x2dc   :  { %9910 = vmatpush1.bf16.msra.mxu0 %v15022_v15  ;;  %10402 = vmatpush1.bf16.msra.mxu1 %v15024_v59  ;;  %v1573_v15 = vld [vmem:[#allocation2 + $0x2948] sm:$0xff] }
 0x2dd   :  { %9920 = vmatprep.subr.bf16.mxu0 %v15031_v20  ;;  %10412 = vmatprep.subr.bf16.mxu1 %v15033_v21  ;;  %v1577_v59 = vld [vmem:[#allocation2 + $0x2968] sm:$0xff]  ;;  %v15062_v20 = vcombine.low %v1564_v60, %v1568_v61  ;;  %v15064_v21 = vcombine.low %v1565_v1, %v1569_v3  ;;  %v1604_v61 = vld [vmem:[#allocation2 + $0x2a40] sm:$0xff] }
 0x2de   :  { %v15073_v24 = vcombine.high %v1573_v15, %v1577_v59  ;;  %v1608_v1 = vld [vmem:[#allocation2 + $0x2a60] sm:$0xff]  ;;  %v1605_v3 = vld [vmem:[#allocation2 + $0x2a48] sm:$0xff] }
 0x2df   :  { %9912 = vmatmul.mubr.bf16.vlgmr.msra.gmra.mrb[0].mxu0 %v16718_v30  ;;  %10404 = vmatmul.mubr.bf16.vlgmr.msra.gmra.mrb[0].mxu1 %v16718_v30 }
 0x2e0   :  { %9921 = vmatpush1.bf16.msra.mxu0 %v15030_v35  ;;  %10413 = vmatpush1.bf16.msra.mxu1 %v15032_v63  ;;  %v1585_v35 = vld [vmem:[#allocation2 + $0x29a8] sm:$0xff]  ;;  %v15070_v63 = vcombine.low %v1572_v13, %v1576_v18  ;;  %v1612_v18 = vld [vmem:[#allocation2 + $0x2a80] sm:$0xff] }
 0x2e1   :  { %9922 = vmatprep.subr.bf16.mxu0 %v15039_v2  ;;  %10414 = vmatprep.subr.bf16.mxu1 %v15041_v37  ;;  %v15072_v2 = vcombine.low %v1573_v15, %v1577_v59  ;;  %v15079_v37 = vcombine.high %v1580_v27, %v1584_v32  ;;  %v15081_v40 = vcombine.high %v1581_v34, %v1585_v35  ;;  %v1616_v15 = vld [vmem:[#allocation2 + $0x2aa0] sm:$0xff]  ;;  %v1613_v59 = vld [vmem:[#allocation2 + $0x2a88] sm:$0xff] }
 0x2e2   :  { %9952 = vmatprep.mubr.bf16.mxu0 %v16720_v28  ;;  %10444 = vmatprep.mubr.bf16.mxu1 %v16720_v28 }
 0x2e4   :  { %9923 = vmatpush1.bf16.msra.mxu0 %v15038_v5  ;;  %10415 = vmatpush1.bf16.msra.mxu1 %v15040_v46  ;;  %v1593_v5 = vld [vmem:[#allocation2 + $0x29e8] sm:$0xff]  ;;  %v15078_v46 = vcombine.low %v1580_v27, %v1584_v32  ;;  %v1620_v32 = vld [vmem:[#allocation2 + $0x2ac0] sm:$0xff] }
 0x2e5   :  { %9924 = vmatprep.subr.bf16.mxu0 %v15047_v47  ;;  %10416 = vmatprep.subr.bf16.mxu1 %v15049_v48  ;;  %v15080_v47 = vcombine.low %v1581_v34, %v1585_v35  ;;  %v15087_v48 = vcombine.high %v1588_v57, %v1592_v42  ;;  %v15089_v49 = vcombine.high %v1589_v45, %v1593_v5  ;;  %v1624_v34 = vld [vmem:[#allocation2 + $0x2ae0] sm:$0xff]  ;;  %v1621_v35 = vld [vmem:[#allocation2 + $0x2ac8] sm:$0xff] }
 0x2e8   :  { %9925 = vmatpush1.bf16.msra.mxu0 %v15046_v52  ;;  %10417 = vmatpush1.bf16.msra.mxu1 %v15048_v56  ;;  %v1601_v52 = vld [vmem:[#allocation2 + $0x2a28] sm:$0xff]  ;;  %v15086_v56 = vcombine.low %v1588_v57, %v1592_v42  ;;  %v1628_v42 = vld [vmem:[#allocation2 + $0x2b00] sm:$0xff] }
 0x2e9   :  { %9926 = vmatprep.subr.bf16.mxu0 %v15055_v58  ;;  %10418 = vmatprep.subr.bf16.mxu1 %v15057_v23  ;;  %v15088_v58 = vcombine.low %v1589_v45, %v1593_v5  ;;  %v15095_v23 = vcombine.high %v1596_v50, %v1600_v16  ;;  %v15097_v60 = vcombine.high %v1597_v55, %v1601_v52  ;;  %v1632_v45 = vld [vmem:[#allocation2 + $0x2b20] sm:$0xff]  ;;  %v1629_v5 = vld [vmem:[#allocation2 + $0x2b08] sm:$0xff] }
 0x2ec   :  { %9927 = vmatpush1.bf16.msra.mxu0 %v15054_v6  ;;  %10419 = vmatpush1.bf16.msra.mxu1 %v15056_v7  ;;  %v1609_v6 = vld [vmem:[#allocation2 + $0x2a68] sm:$0xff]  ;;  %v15094_v7 = vcombine.low %v1596_v50, %v1600_v16  ;;  %v1636_v16 = vld [vmem:[#allocation2 + $0x2b40] sm:$0xff] }
 0x2ed   :  { %9928 = vmatprep.subr.bf16.mxu0 %v15063_v8  ;;  %10420 = vmatprep.subr.bf16.mxu1 %v15065_v10  ;;  %v15096_v8 = vcombine.low %v1597_v55, %v1601_v52  ;;  %v15103_v10 = vcombine.high %v1604_v61, %v1608_v1  ;;  %v15105_v13 = vcombine.high %v1605_v3, %v1609_v6  ;;  %v1640_v55 = vld [vmem:[#allocation2 + $0x2b60] sm:$0xff]  ;;  %v1637_v52 = vld [vmem:[#allocation2 + $0x2b48] sm:$0xff] }
 0x2f0   :  { %9929 = vmatpush1.bf16.msra.mxu0 %v15062_v20  ;;  %10421 = vmatpush1.bf16.msra.mxu1 %v15064_v21  ;;  %v1617_v20 = vld [vmem:[#allocation2 + $0x2aa8] sm:$0xff]  ;;  %v15102_v21 = vcombine.low %v1604_v61, %v1608_v1  ;;  %v1644_v1 = vld [vmem:[#allocation2 + $0x2b80] sm:$0xff] }
 0x2f1   :  { %9930 = vmatprep.subr.bf16.mxu0 %v15071_v22  ;;  %10422 = vmatprep.subr.bf16.mxu1 %v15073_v24  ;;  %v15104_v22 = vcombine.low %v1605_v3, %v1609_v6  ;;  %v15111_v24 = vcombine.high %v1612_v18, %v1616_v15  ;;  %v15113_v27 = vcombine.high %v1613_v59, %v1617_v20  ;;  %v1648_v3 = vld [vmem:[#allocation2 + $0x2ba0] sm:$0xff]  ;;  %v1645_v6 = vld [vmem:[#allocation2 + $0x2b88] sm:$0xff] }
 0x2f4   :  { %9931 = vmatpush1.bf16.msra.mxu0 %v15070_v63  ;;  %10423 = vmatpush1.bf16.msra.mxu1 %v15072_v2  ;;  %v1625_v63 = vld [vmem:[#allocation2 + $0x2ae8] sm:$0xff]  ;;  %v15110_v2 = vcombine.low %v1612_v18, %v1616_v15  ;;  %v1652_v15 = vld [vmem:[#allocation2 + $0x2bc0] sm:$0xff] }
 0x2f5   :  { %9932 = vmatprep.subr.bf16.mxu0 %v15079_v37  ;;  %10424 = vmatprep.subr.bf16.mxu1 %v15081_v40  ;;  %v15112_v37 = vcombine.low %v1613_v59, %v1617_v20  ;;  %v15119_v40 = vcombine.high %v1620_v32, %v1624_v34  ;;  %v15121_v57 = vcombine.high %v1621_v35, %v1625_v63  ;;  %v1656_v59 = vld [vmem:[#allocation2 + $0x2be0] sm:$0xff] }
 0x2f6   :  { %v187_v20 = vcombine.high %v16708_v62, %v16708_v62 }
 0x2f8   :  { %9933 = vmatpush1.bf16.msra.mxu0 %v15078_v46  ;;  %10425 = vmatpush1.bf16.msra.mxu1 %v15080_v47  ;;  %v1633_v46 = vld [vmem:[#allocation2 + $0x2b28] sm:$0xff]  ;;  %v15118_v47 = vcombine.low %v1620_v32, %v1624_v34  ;;  %v15151_v32 = vcombine.high %v1652_v15, %v1656_v59 }
 0x2f9   :  { %9934 = vmatprep.subr.bf16.mxu0 %v15087_v48  ;;  %10426 = vmatprep.subr.bf16.mxu1 %v15089_v49  ;;  %v15120_v48 = vcombine.low %v1621_v35, %v1625_v63  ;;  %v15127_v49 = vcombine.high %v1628_v42, %v1632_v45  ;;  %v15129_v50 = vcombine.high %v1629_v5, %v1633_v46  ;;  %v1660_v35 = vld [vmem:[#allocation2 + $0x2c00] sm:$0xff] }
 0x2fa   :  { %v1664_v63 = vld [vmem:[#allocation2 + $0x2c20] sm:$0xff] }
 0x2fc   :  { %9935 = vmatpush1.bf16.msra.mxu0 %v15086_v56  ;;  %10427 = vmatpush1.bf16.msra.mxu1 %v15088_v58  ;;  %v1641_v56 = vld [vmem:[#allocation2 + $0x2b68] sm:$0xff]  ;;  %v15126_v58 = vcombine.low %v1628_v42, %v1632_v45  ;;  %v15159_v42 = vcombine.high %v1660_v35, %v1664_v63 }
 0x2fd   :  { %9936 = vmatprep.subr.bf16.mxu0 %v15095_v23  ;;  %10428 = vmatprep.subr.bf16.mxu1 %v15097_v60  ;;  %v15128_v23 = vcombine.low %v1629_v5, %v1633_v46  ;;  %v15135_v60 = vcombine.high %v1636_v16, %v1640_v55  ;;  %v15137_v61 = vcombine.high %v1637_v52, %v1641_v56  ;;  %v1668_v5 = vld [vmem:[#allocation2 + $0x2c40] sm:$0xff] }
 0x2fe   :  { %v1672_v46 = vld [vmem:[#allocation2 + $0x2c60] sm:$0xff] }
 0x300   :  { %9937 = vmatpush1.bf16.msra.mxu0 %v15094_v7  ;;  %10429 = vmatpush1.bf16.msra.mxu1 %v15096_v8  ;;  %v1649_v7 = vld [vmem:[#allocation2 + $0x2ba8] sm:$0xff]  ;;  %v15134_v8 = vcombine.low %v1636_v16, %v1640_v55  ;;  %v15167_v55 = vcombine.high %v1668_v5, %v1672_v46 }
 0x301   :  { %9938 = vmatprep.subr.bf16.mxu0 %v15103_v10  ;;  %10430 = vmatprep.subr.bf16.mxu1 %v15105_v13  ;;  %v15136_v10 = vcombine.low %v1637_v52, %v1641_v56  ;;  %v15143_v13 = vcombine.high %v1644_v1, %v1648_v3  ;;  %v15145_v18 = vcombine.high %v1645_v6, %v1649_v7  ;;  %v1676_v56 = vld [vmem:[#allocation2 + $0x2c80] sm:$0xff] }
 0x304   :  { %9939 = vmatpush1.bf16.msra.mxu0 %v15102_v21  ;;  %10431 = vmatpush1.bf16.msra.mxu1 %v15104_v22  ;;  %v1653_v21 = vld [vmem:[#allocation2 + $0x2bc8] sm:$0xff] }
 0x305   :  { %9940 = vmatprep.subr.bf16.mxu0 %v15111_v24  ;;  %10432 = vmatprep.subr.bf16.mxu1 %v15113_v27  ;;  %v1657_v22 = vld [vmem:[#allocation2 + $0x2be8] sm:$0xff]  ;;  %v15142_v24 = vcombine.low %v1644_v1, %v1648_v3  ;;  %v15144_v27 = vcombine.low %v1645_v6, %v1649_v7  ;;  %v1684_v7 = vld [vmem:[#allocation2 + $0x2cc0] sm:$0xff] }
 0x306   :  { %v15153_v34 = vcombine.high %v1653_v21, %v1657_v22  ;;  %v15152_v62 = vcombine.low %v1653_v21, %v1657_v22  ;;  %v1692_v21 = vld [vmem:[#allocation2 + $0x2d00] sm:$0xff] }
 0x307   :  { %v1696_v22 = vld [vmem:[#allocation2 + $0x2d20] sm:$0xff] }
 0x308   :  { %9941 = vmatpush1.bf16.msra.mxu0 %v15110_v2  ;;  %10433 = vmatpush1.bf16.msra.mxu1 %v15112_v37  ;;  %v16729_v2 = vrot.slane %v187_v20, %v16519_v53  ;;  %v1661_v37 = vld [vmem:[#allocation2 + $0x2c08] sm:$0xff] }
 0x309   :  { %9942 = vmatprep.subr.bf16.mxu0 %v15119_v40  ;;  %10434 = vmatprep.subr.bf16.mxu1 %v15121_v57  ;;  %v1665_v40 = vld [vmem:[#allocation2 + $0x2c28] sm:$0xff]  ;;  %v15150_v57 = vcombine.low %v1652_v15, %v1656_v59 }
 0x30a   :  { %v15161_v45 = vcombine.high %v1661_v37, %v1665_v40  ;;  %v1669_v53 = vld [vmem:[#allocation2 + $0x2c48] sm:$0xff]  ;;  %v15160_v16 = vcombine.low %v1661_v37, %v1665_v40  ;;  %v1700_v37 = vld [vmem:[#allocation2 + $0x2d40] sm:$0xff] }
 0x30b   :  { %v1704_v40 = vld [vmem:[#allocation2 + $0x2d60] sm:$0xff] }
 0x30c   :  { %9943 = vmatpush1.bf16.msra.mxu0 %v15118_v47  ;;  %10435 = vmatpush1.bf16.msra.mxu1 %v15120_v48  ;;  %v203_v47 = vcombine.high %v16729_v2, %v16729_v2  ;;  %v16735_v48 = vpack.c.bf16 %v16712_v11, %v16712_v11  ;;  %v15166_v11 = vcombine.low %v1668_v5, %v1672_v46 }
 0x30d   :  { %9944 = vmatprep.subr.bf16.mxu0 %v15127_v49  ;;  %10436 = vmatprep.subr.bf16.mxu1 %v15129_v50  ;;  %v1673_v49 = vld [vmem:[#allocation2 + $0x2c68] sm:$0xff]  ;;  %v15158_v50 = vcombine.low %v1660_v35, %v1664_v63  ;;  %v15191_v35 = vcombine.high %v1692_v21, %v1696_v22  ;;  %v15199_v5 = vcombine.high %v1700_v37, %v1704_v40 }
 0x30e   :  { %v15169_v52 = vcombine.high %v1669_v53, %v1673_v49  ;;  %v15168_v1 = vcombine.low %v1669_v53, %v1673_v49  ;;  %v1712_v53 = vld [vmem:[#allocation2 + $0x2da0] sm:$0xff]  ;;  %v1709_v49 = vld [vmem:[#allocation2 + $0x2d88] sm:$0xff] }
 0x310   :  { %9945 = vmatpush1.bf16.msra.mxu0 %v15126_v58  ;;  %10437 = vmatpush1.bf16.msra.mxu1 %v15128_v23  ;;  %v1680_v58 = vld [vmem:[#allocation2 + $0x2ca0] sm:$0xff]  ;;  %v16737_v23 = vpack.c.bf16 %v203_v47, %v203_v47 }
 0x311   :  { %9946 = vmatprep.subr.bf16.mxu0 %v15135_v60  ;;  %10438 = vmatprep.subr.bf16.mxu1 %v15137_v61  ;;  %v1677_v60 = vld [vmem:[#allocation2 + $0x2c88] sm:$0xff]  ;;  %v15175_v3 = vcombine.high %v1676_v56, %v1680_v58  ;;  %v1708_v47 = vld [vmem:[#allocation2 + $0x2d80] sm:$0xff] }
 0x312   :  { %v1681_v61 = vld [vmem:[#allocation2 + $0x2ca8] sm:$0xff] }
 0x313   :  { %v15177_v6 = vcombine.high %v1677_v60, %v1681_v61  ;;  %v15176_v15 = vcombine.low %v1677_v60, %v1681_v61  ;;  %v1720_v60 = vld [vmem:[#allocation2 + $0x2de0] sm:$0xff]  ;;  %v1717_v61 = vld [vmem:[#allocation2 + $0x2dc8] sm:$0xff] }
 0x314   :  { %9947 = vmatpush1.bf16.msra.mxu0 %v15134_v8  ;;  %10439 = vmatpush1.bf16.msra.mxu1 %v15136_v10  ;;  %v1688_v8 = vld [vmem:[#allocation2 + $0x2ce0] sm:$0xff]  ;;  %v1685_v10 = vld [vmem:[#allocation2 + $0x2cc8] sm:$0xff] }
 0x315   :  { %9948 = vmatprep.subr.bf16.mxu0 %v15143_v13  ;;  %10440 = vmatprep.subr.bf16.mxu1 %v15145_v18  ;;  %v1689_v13 = vld [vmem:[#allocation2 + $0x2ce8] sm:$0xff]  ;;  %v15174_v18 = vcombine.low %v1676_v56, %v1680_v58  ;;  %v15183_v59 = vcombine.high %v1684_v7, %v1688_v8  ;;  %v1716_v58 = vld [vmem:[#allocation2 + $0x2dc0] sm:$0xff] }
 0x316   :  { %v15185_v20 = vcombine.high %v1685_v10, %v1689_v13 }
 0x318   :  { %9949 = vmatpush1.bf16.msra.mxu0 %v15142_v24  ;;  %10441 = vmatpush1.bf16.msra.mxu1 %v15144_v27  ;;  %v1693_v24 = vld [vmem:[#allocation2 + $0x2d08] sm:$0xff] }
 0x319   :  { %9950 = vmatprep.subr.bf16.mxu0 %v15151_v32  ;;  %10442 = vmatprep.subr.bf16.mxu1 %v15153_v34  ;;  %v1697_v27 = vld [vmem:[#allocation2 + $0x2d28] sm:$0xff]  ;;  %v15182_v32 = vcombine.low %v1684_v7, %v1688_v8  ;;  %v15184_v34 = vcombine.low %v1685_v10, %v1689_v13  ;;  %v1724_v8 = vld [vmem:[#allocation2 + $0x2e00] sm:$0xff] }
 0x31a   :  { %v15193_v63 = vcombine.high %v1693_v24, %v1697_v27  ;;  %v1728_v10 = vld [vmem:[#allocation2 + $0x2e20] sm:$0xff]  ;;  %v1725_v13 = vld [vmem:[#allocation2 + $0x2e08] sm:$0xff] }
 0x31c   :  { %9951 = vmatpush1.bf16.msra.mxu0 %v15150_v57  ;;  %10443 = vmatpush1.bf16.msra.mxu1 %v15152_v62  ;;  %v1701_v57 = vld [vmem:[#allocation2 + $0x2d48] sm:$0xff] }
 0x31d   :  { %9961 = vmatprep.subr.bf16.mxu0 %v15159_v42  ;;  %10453 = vmatprep.subr.bf16.mxu1 %v15161_v45  ;;  %v1705_v62 = vld [vmem:[#allocation2 + $0x2d68] sm:$0xff]  ;;  %v15190_v42 = vcombine.low %v1692_v21, %v1696_v22  ;;  %v15192_v45 = vcombine.low %v1693_v24, %v1697_v27  ;;  %v1732_v22 = vld [vmem:[#allocation2 + $0x2e40] sm:$0xff] }
 0x31e   :  { %v15201_v46 = vcombine.high %v1701_v57, %v1705_v62  ;;  %v1736_v24 = vld [vmem:[#allocation2 + $0x2e60] sm:$0xff]  ;;  %v1733_v27 = vld [vmem:[#allocation2 + $0x2e48] sm:$0xff] }
 0x31f   :  { %9953 = vmatmul.mubr.bf16.vlgmr.msra.gmra.mrb[0].mxu0 %v16735_v48  ;;  %10445 = vmatmul.mubr.bf16.vlgmr.msra.gmra.mrb[0].mxu1 %v16735_v48 }
 0x320   :  { %9962 = vmatpush1.bf16.msra.mxu0 %v15158_v50  ;;  %10454 = vmatpush1.bf16.msra.mxu1 %v15160_v16  ;;  %v1713_v50 = vld [vmem:[#allocation2 + $0x2da8] sm:$0xff]  ;;  %v15198_v16 = vcombine.low %v1700_v37, %v1704_v40  ;;  %v1740_v40 = vld [vmem:[#allocation2 + $0x2e80] sm:$0xff] }
 0x321   :  { %9963 = vmatprep.subr.bf16.mxu0 %v15167_v55  ;;  %10455 = vmatprep.subr.bf16.mxu1 %v15169_v52  ;;  %v15200_v55 = vcombine.low %v1701_v57, %v1705_v62  ;;  %v15207_v52 = vcombine.high %v1708_v47, %v1712_v53  ;;  %v15209_v56 = vcombine.high %v1709_v49, %v1713_v50  ;;  %v1744_v57 = vld [vmem:[#allocation2 + $0x2ea0] sm:$0xff]  ;;  %v1741_v62 = vld [vmem:[#allocation2 + $0x2e88] sm:$0xff] }
 0x322   :  { %9993 = vmatprep.mubr.bf16.mxu0 %v16737_v23  ;;  %10485 = vmatprep.mubr.bf16.mxu1 %v16737_v23 }
 0x324   :  { %9964 = vmatpush1.bf16.msra.mxu0 %v15166_v11  ;;  %10456 = vmatpush1.bf16.msra.mxu1 %v15168_v1  ;;  %v1721_v11 = vld [vmem:[#allocation2 + $0x2de8] sm:$0xff]  ;;  %v15206_v1 = vcombine.low %v1708_v47, %v1712_v53  ;;  %v1748_v53 = vld [vmem:[#allocation2 + $0x2ec0] sm:$0xff] }
 0x325   :  { %9965 = vmatprep.subr.bf16.mxu0 %v15175_v3  ;;  %10457 = vmatprep.subr.bf16.mxu1 %v15177_v6  ;;  %v15208_v3 = vcombine.low %v1709_v49, %v1713_v50  ;;  %v15215_v6 = vcombine.high %v1716_v58, %v1720_v60  ;;  %v15217_v7 = vcombine.high %v1717_v61, %v1721_v11  ;;  %v1752_v49 = vld [vmem:[#allocation2 + $0x2ee0] sm:$0xff]  ;;  %v1749_v50 = vld [vmem:[#allocation2 + $0x2ec8] sm:$0xff] }
 0x328   :  { %9966 = vmatpush1.bf16.msra.mxu0 %v15174_v18  ;;  %10458 = vmatpush1.bf16.msra.mxu1 %v15176_v15  ;;  %v1729_v18 = vld [vmem:[#allocation2 + $0x2e28] sm:$0xff]  ;;  %v15214_v15 = vcombine.low %v1716_v58, %v1720_v60  ;;  %v1756_v60 = vld [vmem:[#allocation2 + $0x2f00] sm:$0xff] }
 0x329   :  { %9967 = vmatprep.subr.bf16.mxu0 %v15183_v59  ;;  %10459 = vmatprep.subr.bf16.mxu1 %v15185_v20  ;;  %v15216_v59 = vcombine.low %v1717_v61, %v1721_v11  ;;  %v15223_v20 = vcombine.high %v1724_v8, %v1728_v10  ;;  %v15225_v21 = vcombine.high %v1725_v13, %v1729_v18  ;;  %v1760_v61 = vld [vmem:[#allocation2 + $0x2f20] sm:$0xff]  ;;  %v1757_v11 = vld [vmem:[#allocation2 + $0x2f08] sm:$0xff] }
 0x32c   :  { %9968 = vmatpush1.bf16.msra.mxu0 %v15182_v32  ;;  %10460 = vmatpush1.bf16.msra.mxu1 %v15184_v34  ;;  %v1737_v32 = vld [vmem:[#allocation2 + $0x2e68] sm:$0xff]  ;;  %v15222_v34 = vcombine.low %v1724_v8, %v1728_v10  ;;  %v1764_v10 = vld [vmem:[#allocation2 + $0x2f40] sm:$0xff] }
 0x32d   :  { %9969 = vmatprep.subr.bf16.mxu0 %v15191_v35  ;;  %10461 = vmatprep.subr.bf16.mxu1 %v15193_v63  ;;  %v15224_v35 = vcombine.low %v1725_v13, %v1729_v18  ;;  %v15231_v63 = vcombine.high %v1732_v22, %v1736_v24  ;;  %v15233_v37 = vcombine.high %v1733_v27, %v1737_v32  ;;  %v1768_v13 = vld [vmem:[#allocation2 + $0x2f60] sm:$0xff]  ;;  %v1765_v18 = vld [vmem:[#allocation2 + $0x2f48] sm:$0xff] }
 0x330   :  { %9970 = vmatpush1.bf16.msra.mxu0 %v15190_v42  ;;  %10462 = vmatpush1.bf16.msra.mxu1 %v15192_v45  ;;  %v1745_v42 = vld [vmem:[#allocation2 + $0x2ea8] sm:$0xff]  ;;  %v15230_v45 = vcombine.low %v1732_v22, %v1736_v24  ;;  %v1772_v24 = vld [vmem:[#allocation2 + $0x2f80] sm:$0xff] }
 0x331   :  { %9971 = vmatprep.subr.bf16.mxu0 %v15199_v5  ;;  %10463 = vmatprep.subr.bf16.mxu1 %v15201_v46  ;;  %v15232_v5 = vcombine.low %v1733_v27, %v1737_v32  ;;  %v15239_v46 = vcombine.high %v1740_v40, %v1744_v57  ;;  %v15241_v47 = vcombine.high %v1741_v62, %v1745_v42  ;;  %v1776_v27 = vld [vmem:[#allocation2 + $0x2fa0] sm:$0xff]  ;;  %v1773_v32 = vld [vmem:[#allocation2 + $0x2f88] sm:$0xff] }
 0x334   :  { %9972 = vmatpush1.bf16.msra.mxu0 %v15198_v16  ;;  %10464 = vmatpush1.bf16.msra.mxu1 %v15200_v55  ;;  %v1753_v16 = vld [vmem:[#allocation2 + $0x2ee8] sm:$0xff]  ;;  %v15238_v55 = vcombine.low %v1740_v40, %v1744_v57  ;;  %v1780_v57 = vld [vmem:[#allocation2 + $0x2fc0] sm:$0xff] }
 0x335   :  { %9973 = vmatprep.subr.bf16.mxu0 %v15207_v52  ;;  %10465 = vmatprep.subr.bf16.mxu1 %v15209_v56  ;;  %v15240_v52 = vcombine.low %v1741_v62, %v1745_v42  ;;  %v15247_v56 = vcombine.high %v1748_v53, %v1752_v49  ;;  %v15249_v58 = vcombine.high %v1749_v50, %v1753_v16  ;;  %v1784_v62 = vld [vmem:[#allocation2 + $0x2fe0] sm:$0xff]  ;;  %v1781_v42 = vld [vmem:[#allocation2 + $0x2fc8] sm:$0xff] }
 0x338   :  { %9974 = vmatpush1.bf16.msra.mxu0 %v15206_v1  ;;  %10466 = vmatpush1.bf16.msra.mxu1 %v15208_v3  ;;  %v1761_v1 = vld [vmem:[#allocation2 + $0x2f28] sm:$0xff]  ;;  %v15246_v3 = vcombine.low %v1748_v53, %v1752_v49  ;;  %v254_v49 = vld [vmem:[#allocation2 + $0x10] sm:$0xff] }
 0x339   :  { %9975 = vmatprep.subr.bf16.mxu0 %v15215_v6  ;;  %10467 = vmatprep.subr.bf16.mxu1 %v15217_v7  ;;  %v15248_v6 = vcombine.low %v1749_v50, %v1753_v16  ;;  %v15255_v7 = vcombine.high %v1756_v60, %v1760_v61  ;;  %v15257_v8 = vcombine.high %v1757_v11, %v1761_v1  ;;  %v258_v50 = vld [vmem:[#allocation2 + $0x30] sm:$0xff]  ;;  %v255_v16 = vld [vmem:[#allocation2 + $0x18] sm:$0xff] }
 0x33c   :  { %9976 = vmatpush1.bf16.msra.mxu0 %v15214_v15  ;;  %10468 = vmatpush1.bf16.msra.mxu1 %v15216_v59  ;;  %v1769_v15 = vld [vmem:[#allocation2 + $0x2f68] sm:$0xff]  ;;  %v15254_v59 = vcombine.low %v1756_v60, %v1760_v61  ;;  %v262_v61 = vld [vmem:[#allocation2 + $0x50] sm:$0xff] }
 0x33d   :  { %9977 = vmatprep.subr.bf16.mxu0 %v15223_v20  ;;  %10469 = vmatprep.subr.bf16.mxu1 %v15225_v21  ;;  %v15256_v20 = vcombine.low %v1757_v11, %v1761_v1  ;;  %v15263_v21 = vcombine.high %v1764_v10, %v1768_v13  ;;  %v15265_v22 = vcombine.high %v1765_v18, %v1769_v15  ;;  %v266_v11 = vld [vmem:[#allocation2 + $0x70] sm:$0xff] }
 0x33e   :  { %v16745_v1 = vpack.c.bf16 %v16729_v2, %v16729_v2  ;;  %v13762_v2 = vcombine.low %v262_v61, %v266_v11 }
 0x340   :  { %9978 = vmatpush1.bf16.msra.mxu0 %v15222_v34  ;;  %10470 = vmatpush1.bf16.msra.mxu1 %v15224_v35  ;;  %v1777_v34 = vld [vmem:[#allocation2 + $0x2fa8] sm:$0xff]  ;;  %v15262_v35 = vcombine.low %v1764_v10, %v1768_v13  ;;  %v13763_v10 = vcombine.high %v262_v61, %v266_v11  ;;  %v302_v61 = vld [vmem:[#allocation2 + $0x190] sm:$0xff] }
 0x341   :  { %9979 = vmatprep.subr.bf16.mxu0 %v15231_v63  ;;  %10471 = vmatprep.subr.bf16.mxu1 %v15233_v37  ;;  %v15264_v63 = vcombine.low %v1765_v18, %v1769_v15  ;;  %v15271_v37 = vcombine.high %v1772_v24, %v1776_v27  ;;  %v15273_v40 = vcombine.high %v1773_v32, %v1777_v34  ;;  %v270_v18 = vld [vmem:[#allocation2 + $0x90] sm:$0xff] }
 0x342   :  { %v274_v15 = vld [vmem:[#allocation2 + $0xb0] sm:$0xff] }
 0x343   :  { %v306_v11 = vld [vmem:[#allocation2 + $0x1b0] sm:$0xff] }
 0x344   :  { %9980 = vmatpush1.bf16.msra.mxu0 %v15230_v45  ;;  %10472 = vmatpush1.bf16.msra.mxu1 %v15232_v5  ;;  %v1785_v45 = vld [vmem:[#allocation2 + $0x2fe8] sm:$0xff]  ;;  %v15270_v5 = vcombine.low %v1772_v24, %v1776_v27  ;;  %v278_v27 = vld [vmem:[#allocation2 + $0xd0] sm:$0xff] }
 0x345   :  { %9981 = vmatprep.subr.bf16.mxu0 %v15239_v46  ;;  %10473 = vmatprep.subr.bf16.mxu1 %v15241_v47  ;;  %v15272_v46 = vcombine.low %v1773_v32, %v1777_v34  ;;  %v15279_v47 = vcombine.high %v1780_v57, %v1784_v62  ;;  %v15281_v53 = vcombine.high %v1781_v42, %v1785_v45  ;;  %v282_v32 = vld [vmem:[#allocation2 + $0xf0] sm:$0xff]  ;;  %v279_v34 = vld [vmem:[#allocation2 + $0xd8] sm:$0xff] }
 0x348   :  { %9982 = vmatpush1.bf16.msra.mxu0 %v15238_v55  ;;  %10474 = vmatpush1.bf16.msra.mxu1 %v15240_v52  ;;  %v259_v55 = vld [vmem:[#allocation2 + $0x38] sm:$0xff]  ;;  %v15278_v52 = vcombine.low %v1780_v57, %v1784_v62  ;;  %v286_v62 = vld [vmem:[#allocation2 + $0x110] sm:$0xff] }
 0x349   :  { %9983 = vmatprep.subr.bf16.mxu0 %v15247_v56  ;;  %10475 = vmatprep.subr.bf16.mxu1 %v15249_v58  ;;  %v15280_v56 = vcombine.low %v1781_v42, %v1785_v45  ;;  %v13755_v58 = vcombine.high %v254_v49, %v258_v50  ;;  %v13757_v60 = vcombine.high %v255_v16, %v259_v55  ;;  %v290_v42 = vld [vmem:[#allocation2 + $0x130] sm:$0xff]  ;;  %v287_v45 = vld [vmem:[#allocation2 + $0x118] sm:$0xff] }
 0x34c   :  { %9984 = vmatpush1.bf16.msra.mxu0 %v15246_v3  ;;  %10476 = vmatpush1.bf16.msra.mxu1 %v15248_v6  ;;  %v263_v3 = vld [vmem:[#allocation2 + $0x58] sm:$0xff] }
 0x34d   :  { %9985 = vmatprep.subr.bf16.mxu0 %v15255_v7  ;;  %10477 = vmatprep.subr.bf16.mxu1 %v15257_v8  ;;  %v267_v6 = vld [vmem:[#allocation2 + $0x78] sm:$0xff]  ;;  %v13754_v7 = vcombine.low %v254_v49, %v258_v50  ;;  %v13756_v8 = vcombine.low %v255_v16, %v259_v55  ;;  %v294_v49 = vld [vmem:[#allocation2 + $0x150] sm:$0xff] }
 0x34e   :  { %v13765_v13 = vcombine.high %v263_v3, %v267_v6  ;;  %v298_v50 = vld [vmem:[#allocation2 + $0x170] sm:$0xff]  ;;  %v295_v16 = vld [vmem:[#allocation2 + $0x158] sm:$0xff] }
 0x34f   :  { %v299_v55 = vld [vmem:[#allocation2 + $0x178] sm:$0xff] }
 0x350   :  { %9986 = vmatpush1.bf16.msra.mxu0 %v15254_v59  ;;  %10478 = vmatpush1.bf16.msra.mxu1 %v15256_v20  ;;  %v271_v59 = vld [vmem:[#allocation2 + $0x98] sm:$0xff] }
 0x351   :  { %9987 = vmatprep.subr.bf16.mxu0 %v15263_v21  ;;  %10479 = vmatprep.subr.bf16.mxu1 %v15265_v22  ;;  %v275_v20 = vld [vmem:[#allocation2 + $0xb8] sm:$0xff]  ;;  %v13764_v21 = vcombine.low %v263_v3, %v267_v6  ;;  %v13771_v22 = vcombine.high %v270_v18, %v274_v15 }
 0x352   :  { %v13773_v24 = vcombine.high %v271_v59, %v275_v20  ;;  %v303_v3 = vld [vmem:[#allocation2 + $0x198] sm:$0xff] }
 0x353   :  { %v307_v6 = vld [vmem:[#allocation2 + $0x1b8] sm:$0xff] }
 0x354   :  { %9988 = vmatpush1.bf16.msra.mxu0 %v15262_v35  ;;  %10480 = vmatpush1.bf16.msra.mxu1 %v15264_v63  ;;  %v283_v35 = vld [vmem:[#allocation2 + $0xf8] sm:$0xff]  ;;  %v13770_v63 = vcombine.low %v270_v18, %v274_v15  ;;  %v310_v18 = vld [vmem:[#allocation2 + $0x1d0] sm:$0xff] }
 0x355   :  { %9989 = vmatprep.subr.bf16.mxu0 %v15271_v37  ;;  %10481 = vmatprep.subr.bf16.mxu1 %v15273_v40  ;;  %v13772_v37 = vcombine.low %v271_v59, %v275_v20  ;;  %v13779_v40 = vcombine.high %v278_v27, %v282_v32  ;;  %v13781_v57 = vcombine.high %v279_v34, %v283_v35  ;;  %v314_v15 = vld [vmem:[#allocation2 + $0x1f0] sm:$0xff]  ;;  %v311_v59 = vld [vmem:[#allocation2 + $0x1d8] sm:$0xff] }
 0x356   :  { %v315_v20 = vld [vmem:[#allocation2 + $0x1f8] sm:$0xff] }
 0x358   :  { %9990 = vmatpush1.bf16.msra.mxu0 %v15270_v5  ;;  %10482 = vmatpush1.bf16.msra.mxu1 %v15272_v46  ;;  %v291_v5 = vld [vmem:[#allocation2 + $0x138] sm:$0xff]  ;;  %v13778_v46 = vcombine.low %v278_v27, %v282_v32  ;;  %v318_v27 = vld [vmem:[#allocation2 + $0x210] sm:$0xff] }
 0x359   :  { %9991 = vmatprep.subr.bf16.mxu0 %v15279_v47  ;;  %10483 = vmatprep.subr.bf16.mxu1 %v15281_v53  ;;  %v13780_v47 = vcombine.low %v279_v34, %v283_v35  ;;  %v13787_v53 = vcombine.high %v286_v62, %v290_v42  ;;  %v322_v32 = vld [vmem:[#allocation2 + $0x230] sm:$0xff]  ;;  %v319_v34 = vld [vmem:[#allocation2 + $0x218] sm:$0xff] }
 0x35a   :  { %v323_v35 = vld [vmem:[#allocation2 + $0x238] sm:$0xff] }
 0x35c   :  { %9992 = vmatpush1.bf16.msra.mxu0 %v15278_v52  ;;  %10484 = vmatpush1.bf16.msra.mxu1 %v15280_v56  ;;  %v13786_v52 = vcombine.low %v286_v62, %v290_v42  ;;  %v13788_v56 = vcombine.low %v287_v45, %v291_v5  ;;  %v326_v62 = vld [vmem:[#allocation2 + $0x250] sm:$0xff] }
 0x35d   :  { %10494 = vmatprep.subr.bf16.mxu0 %v13755_v58  ;;  %10986 = vmatprep.subr.bf16.mxu1 %v13757_v60  ;;  %v13795_v58 = vcombine.high %v294_v49, %v298_v50  ;;  %v13797_v60 = vcombine.high %v295_v16, %v299_v55  ;;  %v330_v42 = vld [vmem:[#allocation2 + $0x270] sm:$0xff] }
 0x35f   :  { %9994 = vmatmul.mubr.bf16.vlgmr.msra.gmra.mrb[0].mxu0 %v16745_v1  ;;  %10486 = vmatmul.mubr.bf16.vlgmr.msra.gmra.mrb[0].mxu1 %v16745_v1 }
 0x360   :  { %10495 = vmatpush1.bf16.msra.mxu0 %v13754_v7  ;;  %10987 = vmatpush1.bf16.msra.mxu1 %v13756_v8  ;;  %v13794_v7 = vcombine.low %v294_v49, %v298_v50  ;;  %v13796_v8 = vcombine.low %v295_v16, %v299_v55  ;;  %v334_v49 = vld [vmem:[#allocation2 + $0x290] sm:$0xff]  ;;  %v335_v16 = vld [vmem:[#allocation2 + $0x298] sm:$0xff] }
 0x361   :  { %10496 = vmatprep.subr.bf16.mxu0 %v13763_v10  ;;  %10988 = vmatprep.subr.bf16.mxu1 %v13765_v13  ;;  %v13803_v10 = vcombine.high %v302_v61, %v306_v11  ;;  %v13805_v13 = vcombine.high %v303_v3, %v307_v6  ;;  %v338_v50 = vld [vmem:[#allocation2 + $0x2b0] sm:$0xff]  ;;  %v339_v55 = vld [vmem:[#allocation2 + $0x2b8] sm:$0xff] }
 0x362   :  { %10526 = vmatprep.mubr.bf16.mxu0 %v16532_v9  ;;  %11018 = vmatprep.mubr.bf16.mxu1 %v16532_v9  ;;  %v13789_v9 = vcombine.high %v287_v45, %v291_v5  ;;  %v327_v45 = vld [vmem:[#allocation2 + $0x258] sm:$0xff] }
 0x363   :  { %v331_v5 = vld [vmem:[#allocation2 + $0x278] sm:$0xff] }
 0x364   :  { %10497 = vmatpush1.bf16.msra.mxu0 %v13762_v2  ;;  %10989 = vmatpush1.bf16.msra.mxu1 %v13764_v21  ;;  %v13802_v2 = vcombine.low %v302_v61, %v306_v11  ;;  %v13804_v21 = vcombine.low %v303_v3, %v307_v6  ;;  %v342_v61 = vld [vmem:[#allocation2 + $0x2d0] sm:$0xff]  ;;  %v343_v3 = vld [vmem:[#allocation2 + $0x2d8] sm:$0xff] }
 0x365   :  { %10498 = vmatprep.subr.bf16.mxu0 %v13771_v22  ;;  %10990 = vmatprep.subr.bf16.mxu1 %v13773_v24  ;;  %v13811_v22 = vcombine.high %v310_v18, %v314_v15  ;;  %v13813_v24 = vcombine.high %v311_v59, %v315_v20  ;;  %v346_v11 = vld [vmem:[#allocation2 + $0x2f0] sm:$0xff]  ;;  %v347_v6 = vld [vmem:[#allocation2 + $0x2f8] sm:$0xff] }
 0x368   :  { %10499 = vmatpush1.bf16.msra.mxu0 %v13770_v63  ;;  %10991 = vmatpush1.bf16.msra.mxu1 %v13772_v37  ;;  %v13810_v63 = vcombine.low %v310_v18, %v314_v15  ;;  %v13812_v37 = vcombine.low %v311_v59, %v315_v20  ;;  %v350_v18 = vld [vmem:[#allocation2 + $0x310] sm:$0xff]  ;;  %v351_v59 = vld [vmem:[#allocation2 + $0x318] sm:$0xff] }
 0x369   :  { %10500 = vmatprep.subr.bf16.mxu0 %v13779_v40  ;;  %10992 = vmatprep.subr.bf16.mxu1 %v13781_v57  ;;  %v13819_v40 = vcombine.high %v318_v27, %v322_v32  ;;  %v13821_v57 = vcombine.high %v319_v34, %v323_v35  ;;  %v354_v15 = vld [vmem:[#allocation2 + $0x330] sm:$0xff]  ;;  %v355_v20 = vld [vmem:[#allocation2 + $0x338] sm:$0xff] }
 0x36c   :  { %10501 = vmatpush1.bf16.msra.mxu0 %v13778_v46  ;;  %10993 = vmatpush1.bf16.msra.mxu1 %v13780_v47  ;;  %v13818_v46 = vcombine.low %v318_v27, %v322_v32  ;;  %v13820_v47 = vcombine.low %v319_v34, %v323_v35  ;;  %v358_v27 = vld [vmem:[#allocation2 + $0x350] sm:$0xff]  ;;  %v359_v34 = vld [vmem:[#allocation2 + $0x358] sm:$0xff] }
 0x36d   :  { %10502 = vmatprep.subr.bf16.mxu0 %v13787_v53  ;;  %10994 = vmatprep.subr.bf16.mxu1 %v13789_v9  ;;  %v13827_v53 = vcombine.high %v326_v62, %v330_v42  ;;  %v13829_v9 = vcombine.high %v327_v45, %v331_v5  ;;  %v362_v32 = vld [vmem:[#allocation2 + $0x370] sm:$0xff]  ;;  %v363_v35 = vld [vmem:[#allocation2 + $0x378] sm:$0xff] }
 0x370   :  { %10503 = vmatpush1.bf16.msra.mxu0 %v13786_v52  ;;  %10995 = vmatpush1.bf16.msra.mxu1 %v13788_v56  ;;  %v13826_v52 = vcombine.low %v326_v62, %v330_v42  ;;  %v13828_v56 = vcombine.low %v327_v45, %v331_v5  ;;  %v366_v62 = vld [vmem:[#allocation2 + $0x390] sm:$0xff]  ;;  %v367_v45 = vld [vmem:[#allocation2 + $0x398] sm:$0xff] }
 0x371   :  { %10504 = vmatprep.subr.bf16.mxu0 %v13795_v58  ;;  %10996 = vmatprep.subr.bf16.mxu1 %v13797_v60  ;;  %v13835_v58 = vcombine.high %v334_v49, %v338_v50  ;;  %v13837_v60 = vcombine.high %v335_v16, %v339_v55  ;;  %v370_v42 = vld [vmem:[#allocation2 + $0x3b0] sm:$0xff]  ;;  %v371_v5 = vld [vmem:[#allocation2 + $0x3b8] sm:$0xff] }
 0x374   :  { %10505 = vmatpush1.bf16.msra.mxu0 %v13794_v7  ;;  %10997 = vmatpush1.bf16.msra.mxu1 %v13796_v8  ;;  %v13834_v7 = vcombine.low %v334_v49, %v338_v50  ;;  %v13836_v8 = vcombine.low %v335_v16, %v339_v55  ;;  %v374_v49 = vld [vmem:[#allocation2 + $0x3d0] sm:$0xff]  ;;  %v375_v16 = vld [vmem:[#allocation2 + $0x3d8] sm:$0xff] }
 0x375   :  { %10506 = vmatprep.subr.bf16.mxu0 %v13803_v10  ;;  %10998 = vmatprep.subr.bf16.mxu1 %v13805_v13  ;;  %v13843_v10 = vcombine.high %v342_v61, %v346_v11  ;;  %v13845_v13 = vcombine.high %v343_v3, %v347_v6  ;;  %v378_v50 = vld [vmem:[#allocation2 + $0x3f0] sm:$0xff]  ;;  %v379_v55 = vld [vmem:[#allocation2 + $0x3f8] sm:$0xff] }
 0x378   :  { %10507 = vmatpush1.bf16.msra.mxu0 %v13802_v2  ;;  %10999 = vmatpush1.bf16.msra.mxu1 %v13804_v21  ;;  %v13842_v2 = vcombine.low %v342_v61, %v346_v11  ;;  %v13844_v21 = vcombine.low %v343_v3, %v347_v6  ;;  %v382_v61 = vld [vmem:[#allocation2 + $0x410] sm:$0xff]  ;;  %v383_v3 = vld [vmem:[#allocation2 + $0x418] sm:$0xff] }
 0x379   :  { %10508 = vmatprep.subr.bf16.mxu0 %v13811_v22  ;;  %11000 = vmatprep.subr.bf16.mxu1 %v13813_v24  ;;  %v13851_v22 = vcombine.high %v350_v18, %v354_v15  ;;  %v13853_v24 = vcombine.high %v351_v59, %v355_v20  ;;  %v386_v11 = vld [vmem:[#allocation2 + $0x430] sm:$0xff]  ;;  %v387_v6 = vld [vmem:[#allocation2 + $0x438] sm:$0xff] }
 0x37c   :  { %10509 = vmatpush1.bf16.msra.mxu0 %v13810_v63  ;;  %11001 = vmatpush1.bf16.msra.mxu1 %v13812_v37  ;;  %v13850_v63 = vcombine.low %v350_v18, %v354_v15  ;;  %v13852_v37 = vcombine.low %v351_v59, %v355_v20  ;;  %v390_v18 = vld [vmem:[#allocation2 + $0x450] sm:$0xff]  ;;  %v391_v59 = vld [vmem:[#allocation2 + $0x458] sm:$0xff] }
 0x37d   :  { %10510 = vmatprep.subr.bf16.mxu0 %v13819_v40  ;;  %11002 = vmatprep.subr.bf16.mxu1 %v13821_v57  ;;  %v13859_v40 = vcombine.high %v358_v27, %v362_v32  ;;  %v13861_v57 = vcombine.high %v359_v34, %v363_v35  ;;  %v394_v15 = vld [vmem:[#allocation2 + $0x470] sm:$0xff]  ;;  %v395_v20 = vld [vmem:[#allocation2 + $0x478] sm:$0xff] }
 0x380   :  { %10511 = vmatpush1.bf16.msra.mxu0 %v13818_v46  ;;  %11003 = vmatpush1.bf16.msra.mxu1 %v13820_v47  ;;  %v13858_v46 = vcombine.low %v358_v27, %v362_v32  ;;  %v13860_v47 = vcombine.low %v359_v34, %v363_v35  ;;  %v398_v27 = vld [vmem:[#allocation2 + $0x490] sm:$0xff]  ;;  %v399_v34 = vld [vmem:[#allocation2 + $0x498] sm:$0xff] }
 0x381   :  { %10512 = vmatprep.subr.bf16.mxu0 %v13827_v53  ;;  %11004 = vmatprep.subr.bf16.mxu1 %v13829_v9  ;;  %v13867_v53 = vcombine.high %v366_v62, %v370_v42  ;;  %v13869_v9 = vcombine.high %v367_v45, %v371_v5  ;;  %v402_v32 = vld [vmem:[#allocation2 + $0x4b0] sm:$0xff]  ;;  %v403_v35 = vld [vmem:[#allocation2 + $0x4b8] sm:$0xff] }
 0x384   :  { %10513 = vmatpush1.bf16.msra.mxu0 %v13826_v52  ;;  %11005 = vmatpush1.bf16.msra.mxu1 %v13828_v56  ;;  %v13866_v52 = vcombine.low %v366_v62, %v370_v42  ;;  %v13868_v56 = vcombine.low %v367_v45, %v371_v5  ;;  %v406_v62 = vld [vmem:[#allocation2 + $0x4d0] sm:$0xff]  ;;  %v407_v45 = vld [vmem:[#allocation2 + $0x4d8] sm:$0xff] }
 0x385   :  { %10514 = vmatprep.subr.bf16.mxu0 %v13835_v58  ;;  %11006 = vmatprep.subr.bf16.mxu1 %v13837_v60  ;;  %v13875_v58 = vcombine.high %v374_v49, %v378_v50  ;;  %v13877_v60 = vcombine.high %v375_v16, %v379_v55  ;;  %v410_v42 = vld [vmem:[#allocation2 + $0x4f0] sm:$0xff]  ;;  %v411_v5 = vld [vmem:[#allocation2 + $0x4f8] sm:$0xff] }
 0x388   :  { %10515 = vmatpush1.bf16.msra.mxu0 %v13834_v7  ;;  %11007 = vmatpush1.bf16.msra.mxu1 %v13836_v8  ;;  %v13874_v7 = vcombine.low %v374_v49, %v378_v50  ;;  %v13876_v8 = vcombine.low %v375_v16, %v379_v55  ;;  %v418_v49 = vld [vmem:[#allocation2 + $0x530] sm:$0xff]  ;;  %v415_v50 = vld [vmem:[#allocation2 + $0x518] sm:$0xff]  ;;  %v13906_v55 = vcombine.low %v406_v62, %v410_v42 }
 0x389   :  { %10516 = vmatprep.subr.bf16.mxu0 %v13843_v10  ;;  %11008 = vmatprep.subr.bf16.mxu1 %v13845_v13  ;;  %v13883_v10 = vcombine.high %v382_v61, %v386_v11  ;;  %v13885_v13 = vcombine.high %v383_v3, %v387_v6  ;;  %v419_v16 = vld [vmem:[#allocation2 + $0x538] sm:$0xff] }
 0x38c   :  { %10517 = vmatpush1.bf16.msra.mxu0 %v13842_v2  ;;  %11009 = vmatpush1.bf16.msra.mxu1 %v13844_v21  ;;  %v13882_v2 = vcombine.low %v382_v61, %v386_v11  ;;  %v13884_v21 = vcombine.low %v383_v3, %v387_v6  ;;  %v423_v61 = vld [vmem:[#allocation2 + $0x558] sm:$0xff]  ;;  %v13916_v6 = vcombine.low %v415_v50, %v419_v16 }
 0x38d   :  { %10518 = vmatprep.subr.bf16.mxu0 %v13851_v22  ;;  %11010 = vmatprep.subr.bf16.mxu1 %v13853_v24  ;;  %v13891_v22 = vcombine.high %v390_v18, %v394_v15  ;;  %v13893_v24 = vcombine.high %v391_v59, %v395_v20  ;;  %v427_v11 = vld [vmem:[#allocation2 + $0x578] sm:$0xff] }
 0x390   :  { %10519 = vmatpush1.bf16.msra.mxu0 %v13850_v63  ;;  %11011 = vmatpush1.bf16.msra.mxu1 %v13852_v37  ;;  %v13890_v63 = vcombine.low %v390_v18, %v394_v15  ;;  %v13892_v37 = vcombine.low %v391_v59, %v395_v20  ;;  %v431_v18 = vld [vmem:[#allocation2 + $0x598] sm:$0xff]  ;;  %v13924_v20 = vcombine.low %v423_v61, %v427_v11 }
 0x391   :  { %10520 = vmatprep.subr.bf16.mxu0 %v13859_v40  ;;  %11012 = vmatprep.subr.bf16.mxu1 %v13861_v57  ;;  %v13899_v40 = vcombine.high %v398_v27, %v402_v32  ;;  %v13901_v57 = vcombine.high %v399_v34, %v403_v35  ;;  %v435_v15 = vld [vmem:[#allocation2 + $0x5b8] sm:$0xff] }
 0x394   :  { %10521 = vmatpush1.bf16.msra.mxu0 %v13858_v46  ;;  %11013 = vmatpush1.bf16.msra.mxu1 %v13860_v47  ;;  %v13898_v46 = vcombine.low %v398_v27, %v402_v32  ;;  %v13907_v47 = vcombine.high %v406_v62, %v410_v42  ;;  %v439_v27 = vld [vmem:[#allocation2 + $0x5d8] sm:$0xff] }
 0x395   :  { %10522 = vmatprep.subr.bf16.mxu0 %v13867_v53  ;;  %11014 = vmatprep.subr.bf16.mxu1 %v13869_v9  ;;  %v13909_v53 = vcombine.high %v407_v45, %v411_v5  ;;  %v414_v9 = vld [vmem:[#allocation2 + $0x510] sm:$0xff]  ;;  %v443_v32 = vld [vmem:[#allocation2 + $0x5f8] sm:$0xff] }
 0x396   :  { %v13914_v3 = vcombine.low %v414_v9, %v418_v49  ;;  %v447_v62 = vld [vmem:[#allocation2 + $0x618] sm:$0xff] }
 0x397   :  { %v451_v42 = vld [vmem:[#allocation2 + $0x638] sm:$0xff] }
 0x398   :  { %10523 = vmatpush1.bf16.msra.mxu0 %v13866_v52  ;;  %11015 = vmatpush1.bf16.msra.mxu1 %v13868_v56  ;;  %v13908_v52 = vcombine.low %v407_v45, %v411_v5  ;;  %v13915_v56 = vcombine.high %v414_v9, %v418_v49  ;;  %v13940_v5 = vcombine.low %v439_v27, %v443_v32  ;;  %v455_v9 = vld [vmem:[#allocation2 + $0x658] sm:$0xff] }
 0x399   :  { %10524 = vmatprep.subr.bf16.mxu0 %v13875_v58  ;;  %11016 = vmatprep.subr.bf16.mxu1 %v13877_v60  ;;  %v422_v58 = vld [vmem:[#allocation2 + $0x550] sm:$0xff]  ;;  %v459_v49 = vld [vmem:[#allocation2 + $0x678] sm:$0xff] }
 0x39a   :  { %v426_v60 = vld [vmem:[#allocation2 + $0x570] sm:$0xff] }
 0x39b   :  { %v13922_v59 = vcombine.low %v422_v58, %v426_v60 }
 0x39c   :  { %10525 = vmatpush1.bf16.msra.mxu0 %v13874_v7  ;;  %11017 = vmatpush1.bf16.msra.mxu1 %v13876_v8  ;;  %v13923_v7 = vcombine.high %v422_v58, %v426_v60  ;;  %v13925_v8 = vcombine.high %v423_v61, %v427_v11  ;;  %v463_v58 = vld [vmem:[#allocation2 + $0x698] sm:$0xff]  ;;  %v13956_v11 = vcombine.low %v455_v9, %v459_v49 }
 0x39d   :  { %10535 = vmatprep.subr.bf16.mxu0 %v13883_v10  ;;  %11027 = vmatprep.subr.bf16.mxu1 %v13885_v13  ;;  %v430_v10 = vld [vmem:[#allocation2 + $0x590] sm:$0xff]  ;;  %v467_v60 = vld [vmem:[#allocation2 + $0x6b8] sm:$0xff] }
 0x39e   :  { %v434_v13 = vld [vmem:[#allocation2 + $0x5b0] sm:$0xff] }
 0x39f   :  { %10527 = vmatmul.mubr.bf16.vlgmr.msra.gmra.mrb[4].mxu0 %v16545_v25  ;;  %11019 = vmatmul.mubr.bf16.vlgmr.msra.gmra.mrb[4].mxu1 %v16545_v25  ;;  %v13900_v25 = vcombine.low %v399_v34, %v403_v35  ;;  %v13930_v34 = vcombine.low %v430_v10, %v434_v13  ;;  %v13932_v35 = vcombine.low %v431_v18, %v435_v15 }
 0x3a0   :  { %10536 = vmatpush1.bf16.msra.mxu0 %v13882_v2  ;;  %11028 = vmatpush1.bf16.msra.mxu1 %v13884_v21  ;;  %v13931_v2 = vcombine.high %v430_v10, %v434_v13  ;;  %v13933_v21 = vcombine.high %v431_v18, %v435_v15  ;;  %v471_v10 = vld [vmem:[#allocation2 + $0x6d8] sm:$0xff]  ;;  %v13964_v15 = vcombine.low %v463_v58, %v467_v60 }
 0x3a1   :  { %10537 = vmatprep.subr.bf16.mxu0 %v13891_v22  ;;  %11029 = vmatprep.subr.bf16.mxu1 %v13893_v24  ;;  %v438_v22 = vld [vmem:[#allocation2 + $0x5d0] sm:$0xff]  ;;  %v475_v13 = vld [vmem:[#allocation2 + $0x6f8] sm:$0xff] }
 0x3a2   :  { %10567 = vmatprep.mubr.bf16.mxu0 %v16547_v36  ;;  %11059 = vmatprep.mubr.bf16.mxu1 %v16547_v36  ;;  %v13917_v36 = vcombine.high %v415_v50, %v419_v16  ;;  %v442_v24 = vld [vmem:[#allocation2 + $0x5f0] sm:$0xff]  ;;  %v13948_v16 = vcombine.low %v447_v62, %v451_v42 }
 0x3a3   :  { %v13938_v45 = vcombine.low %v438_v22, %v442_v24 }
 0x3a4   :  { %10538 = vmatpush1.bf16.msra.mxu0 %v13890_v63  ;;  %11030 = vmatpush1.bf16.msra.mxu1 %v13892_v37  ;;  %v13939_v63 = vcombine.high %v438_v22, %v442_v24  ;;  %v13941_v37 = vcombine.high %v439_v27, %v443_v32  ;;  %v479_v22 = vld [vmem:[#allocation2 + $0x718] sm:$0xff]  ;;  %v13972_v32 = vcombine.low %v471_v10, %v475_v13 }
 0x3a5   :  { %10539 = vmatprep.subr.bf16.mxu0 %v13899_v40  ;;  %11031 = vmatprep.subr.bf16.mxu1 %v13901_v57  ;;  %v446_v40 = vld [vmem:[#allocation2 + $0x610] sm:$0xff]  ;;  %v483_v24 = vld [vmem:[#allocation2 + $0x738] sm:$0xff] }
 0x3a6   :  { %v450_v57 = vld [vmem:[#allocation2 + $0x630] sm:$0xff] }
 0x3a7   :  { %v13946_v50 = vcombine.low %v446_v40, %v450_v57 }
 0x3a8   :  { %10540 = vmatpush1.bf16.msra.mxu0 %v13898_v46  ;;  %11032 = vmatpush1.bf16.msra.mxu1 %v13900_v25  ;;  %v13947_v46 = vcombine.high %v446_v40, %v450_v57  ;;  %v13949_v25 = vcombine.high %v447_v62, %v451_v42  ;;  %v487_v40 = vld [vmem:[#allocation2 + $0x758] sm:$0xff]  ;;  %v13980_v42 = vcombine.low %v479_v22, %v483_v24 }
 0x3a9   :  { %10541 = vmatprep.subr.bf16.mxu0 %v13907_v47  ;;  %11033 = vmatprep.subr.bf16.mxu1 %v13909_v53  ;;  %v454_v47 = vld [vmem:[#allocation2 + $0x650] sm:$0xff]  ;;  %v491_v57 = vld [vmem:[#allocation2 + $0x778] sm:$0xff] }
 0x3aa   :  { %v458_v53 = vld [vmem:[#allocation2 + $0x670] sm:$0xff] }
 0x3ab   :  { %v13954_v61 = vcombine.low %v454_v47, %v458_v53 }
 0x3ac   :  { %10542 = vmatpush1.bf16.msra.mxu0 %v13906_v55  ;;  %11034 = vmatpush1.bf16.msra.mxu1 %v13908_v52  ;;  %v13955_v55 = vcombine.high %v454_v47, %v458_v53  ;;  %v13957_v52 = vcombine.high %v455_v9, %v459_v49  ;;  %v495_v47 = vld [vmem:[#allocation2 + $0x798] sm:$0xff]  ;;  %v13988_v49 = vcombine.low %v487_v40, %v491_v57 }
 0x3ad   :  { %10543 = vmatprep.subr.bf16.mxu0 %v13915_v56  ;;  %11035 = vmatprep.subr.bf16.mxu1 %v13917_v36  ;;  %v462_v56 = vld [vmem:[#allocation2 + $0x690] sm:$0xff]  ;;  %v499_v53 = vld [vmem:[#allocation2 + $0x7b8] sm:$0xff] }
 0x3ae   :  { %v466_v36 = vld [vmem:[#allocation2 + $0x6b0] sm:$0xff] }
 0x3af   :  { %v13962_v18 = vcombine.low %v462_v56, %v466_v36 }
 0x3b0   :  { %10544 = vmatpush1.bf16.msra.mxu0 %v13914_v3  ;;  %11036 = vmatpush1.bf16.msra.mxu1 %v13916_v6  ;;  %v13963_v3 = vcombine.high %v462_v56, %v466_v36  ;;  %v13965_v6 = vcombine.high %v463_v58, %v467_v60  ;;  %v503_v56 = vld [vmem:[#allocation2 + $0x7d8] sm:$0xff]  ;;  %v13996_v60 = vcombine.low %v495_v47, %v499_v53 }
 0x3b1   :  { %10545 = vmatprep.subr.bf16.mxu0 %v13923_v7  ;;  %11037 = vmatprep.subr.bf16.mxu1 %v13925_v8  ;;  %v470_v7 = vld [vmem:[#allocation2 + $0x6d0] sm:$0xff]  ;;  %v507_v36 = vld [vmem:[#allocation2 + $0x7f8] sm:$0xff] }
 0x3b2   :  { %v474_v8 = vld [vmem:[#allocation2 + $0x6f0] sm:$0xff] }
 0x3b3   :  { %v13970_v27 = vcombine.low %v470_v7, %v474_v8 }
 0x3b4   :  { %10546 = vmatpush1.bf16.msra.mxu0 %v13922_v59  ;;  %11038 = vmatpush1.bf16.msra.mxu1 %v13924_v20  ;;  %v13971_v59 = vcombine.high %v470_v7, %v474_v8  ;;  %v13973_v20 = vcombine.high %v471_v10, %v475_v13  ;;  %v511_v7 = vld [vmem:[#allocation2 + $0x818] sm:$0xff]  ;;  %v14004_v13 = vcombine.low %v503_v56, %v507_v36 }
 0x3b5   :  { %10547 = vmatprep.subr.bf16.mxu0 %v13931_v2  ;;  %11039 = vmatprep.subr.bf16.mxu1 %v13933_v21  ;;  %v478_v2 = vld [vmem:[#allocation2 + $0x710] sm:$0xff]  ;;  %v515_v8 = vld [vmem:[#allocation2 + $0x838] sm:$0xff] }
 0x3b6   :  { %v482_v21 = vld [vmem:[#allocation2 + $0x730] sm:$0xff] }
 0x3b7   :  { %v13978_v62 = vcombine.low %v478_v2, %v482_v21 }
 0x3b8   :  { %10548 = vmatpush1.bf16.msra.mxu0 %v13930_v34  ;;  %11040 = vmatpush1.bf16.msra.mxu1 %v13932_v35  ;;  %v13979_v34 = vcombine.high %v478_v2, %v482_v21  ;;  %v13981_v35 = vcombine.high %v479_v22, %v483_v24  ;;  %v519_v2 = vld [vmem:[#allocation2 + $0x858] sm:$0xff]  ;;  %v14012_v24 = vcombine.low %v511_v7, %v515_v8 }
 0x3b9   :  { %10549 = vmatprep.subr.bf16.mxu0 %v13939_v63  ;;  %11041 = vmatprep.subr.bf16.mxu1 %v13941_v37  ;;  %v486_v63 = vld [vmem:[#allocation2 + $0x750] sm:$0xff]  ;;  %v523_v21 = vld [vmem:[#allocation2 + $0x878] sm:$0xff] }
 0x3ba   :  { %v490_v37 = vld [vmem:[#allocation2 + $0x770] sm:$0xff] }
 0x3bb   :  { %v13986_v9 = vcombine.low %v486_v63, %v490_v37 }
 0x3bc   :  { %10550 = vmatpush1.bf16.msra.mxu0 %v13938_v45  ;;  %11042 = vmatpush1.bf16.msra.mxu1 %v13940_v5  ;;  %v13987_v45 = vcombine.high %v486_v63, %v490_v37  ;;  %v13989_v5 = vcombine.high %v487_v40, %v491_v57  ;;  %v527_v63 = vld [vmem:[#allocation2 + $0x898] sm:$0xff]  ;;  %v14020_v57 = vcombine.low %v519_v2, %v523_v21 }
 0x3bd   :  { %10551 = vmatprep.subr.bf16.mxu0 %v13947_v46  ;;  %11043 = vmatprep.subr.bf16.mxu1 %v13949_v25  ;;  %v494_v46 = vld [vmem:[#allocation2 + $0x790] sm:$0xff]  ;;  %v531_v37 = vld [vmem:[#allocation2 + $0x8b8] sm:$0xff] }
 0x3be   :  { %v498_v25 = vld [vmem:[#allocation2 + $0x7b0] sm:$0xff] }
 0x3bf   :  { %v13994_v58 = vcombine.low %v494_v46, %v498_v25 }
 0x3c0   :  { %10552 = vmatpush1.bf16.msra.mxu0 %v13946_v50  ;;  %11044 = vmatpush1.bf16.msra.mxu1 %v13948_v16  ;;  %v13995_v50 = vcombine.high %v494_v46, %v498_v25  ;;  %v13997_v16 = vcombine.high %v495_v47, %v499_v53  ;;  %v535_v46 = vld [vmem:[#allocation2 + $0x8d8] sm:$0xff] }
 0x3c1   :  { %10553 = vmatprep.subr.bf16.mxu0 %v13955_v55  ;;  %11045 = vmatprep.subr.bf16.mxu1 %v13957_v52  ;;  %v502_v55 = vld [vmem:[#allocation2 + $0x7d0] sm:$0xff]  ;;  %v539_v25 = vld [vmem:[#allocation2 + $0x8f8] sm:$0xff] }
 0x3c2   :  { %v506_v52 = vld [vmem:[#allocation2 + $0x7f0] sm:$0xff] }
 0x3c3   :  { %v14002_v10 = vcombine.low %v502_v55, %v506_v52 }
 0x3c4   :  { %10554 = vmatpush1.bf16.msra.mxu0 %v13954_v61  ;;  %11046 = vmatpush1.bf16.msra.mxu1 %v13956_v11  ;;  %v14003_v61 = vcombine.high %v502_v55, %v506_v52  ;;  %v14005_v11 = vcombine.high %v503_v56, %v507_v36  ;;  %v547_v55 = vld [vmem:[#allocation2 + $0x938] sm:$0xff]  ;;  %v14036_v56 = vcombine.low %v535_v46, %v539_v25 }
 0x3c5   :  { %10555 = vmatprep.subr.bf16.mxu0 %v13963_v3  ;;  %11047 = vmatprep.subr.bf16.mxu1 %v13965_v6  ;;  %v510_v3 = vld [vmem:[#allocation2 + $0x810] sm:$0xff] }
 0x3c6   :  { %v514_v6 = vld [vmem:[#allocation2 + $0x830] sm:$0xff] }
 0x3c7   :  { %v14010_v22 = vcombine.low %v510_v3, %v514_v6 }
 0x3c8   :  { %10556 = vmatpush1.bf16.msra.mxu0 %v13962_v18  ;;  %11048 = vmatpush1.bf16.msra.mxu1 %v13964_v15  ;;  %v14011_v18 = vcombine.high %v510_v3, %v514_v6  ;;  %v14013_v15 = vcombine.high %v511_v7, %v515_v8 }
 0x3c9   :  { %10557 = vmatprep.subr.bf16.mxu0 %v13971_v59  ;;  %11049 = vmatprep.subr.bf16.mxu1 %v13973_v20  ;;  %v518_v59 = vld [vmem:[#allocation2 + $0x850] sm:$0xff] }
 0x3ca   :  { %v522_v20 = vld [vmem:[#allocation2 + $0x870] sm:$0xff] }
 0x3cb   :  { %v14018_v40 = vcombine.low %v518_v59, %v522_v20 }
 0x3cc   :  { %10558 = vmatpush1.bf16.msra.mxu0 %v13970_v27  ;;  %11050 = vmatpush1.bf16.msra.mxu1 %v13972_v32  ;;  %v14019_v27 = vcombine.high %v518_v59, %v522_v20  ;;  %v14021_v32 = vcombine.high %v519_v2, %v523_v21 }
 0x3cd   :  { %10559 = vmatprep.subr.bf16.mxu0 %v13979_v34  ;;  %11051 = vmatprep.subr.bf16.mxu1 %v13981_v35  ;;  %v526_v34 = vld [vmem:[#allocation2 + $0x890] sm:$0xff] }
 0x3ce   :  { %v530_v35 = vld [vmem:[#allocation2 + $0x8b0] sm:$0xff] }
 0x3cf   :  { %v14026_v47 = vcombine.low %v526_v34, %v530_v35 }
 0x3d0   :  { %10560 = vmatpush1.bf16.msra.mxu0 %v13978_v62  ;;  %11052 = vmatpush1.bf16.msra.mxu1 %v13980_v42  ;;  %v14027_v62 = vcombine.high %v526_v34, %v530_v35  ;;  %v14029_v42 = vcombine.high %v527_v63, %v531_v37 }
 0x3d1   :  { %10561 = vmatprep.subr.bf16.mxu0 %v13987_v45  ;;  %11053 = vmatprep.subr.bf16.mxu1 %v13989_v5  ;;  %v534_v45 = vld [vmem:[#allocation2 + $0x8d0] sm:$0xff] }
 0x3d2   :  { %v538_v5 = vld [vmem:[#allocation2 + $0x8f0] sm:$0xff] }
 0x3d3   :  { %v14035_v53 = vcombine.high %v534_v45, %v538_v5  ;;  %v14034_v52 = vcombine.low %v534_v45, %v538_v5 }
 0x3d4   :  { %10562 = vmatpush1.bf16.msra.mxu0 %v13986_v9  ;;  %11054 = vmatpush1.bf16.msra.mxu1 %v13988_v49  ;;  %v14037_v9 = vcombine.high %v535_v46, %v539_v25  ;;  %v542_v49 = vld [vmem:[#allocation2 + $0x910] sm:$0xff] }
 0x3d5   :  { %10563 = vmatprep.subr.bf16.mxu0 %v13995_v50  ;;  %11055 = vmatprep.subr.bf16.mxu1 %v13997_v16  ;;  %v546_v50 = vld [vmem:[#allocation2 + $0x930] sm:$0xff]  ;;  %v543_v16 = vld [vmem:[#allocation2 + $0x918] sm:$0xff] }
 0x3d6   :  { %v14043_v36 = vcombine.high %v542_v49, %v546_v50  ;;  %v14042_v3 = vcombine.low %v542_v49, %v546_v50  ;;  %v14044_v6 = vcombine.low %v543_v16, %v547_v55 }
 0x3d8   :  { %10564 = vmatpush1.bf16.msra.mxu0 %v13994_v58  ;;  %11056 = vmatpush1.bf16.msra.mxu1 %v13996_v60  ;;  %v550_v58 = vld [vmem:[#allocation2 + $0x950] sm:$0xff] }
 0x3d9   :  { %10565 = vmatprep.subr.bf16.mxu0 %v14003_v61  ;;  %11057 = vmatprep.subr.bf16.mxu1 %v14005_v11  ;;  %v554_v60 = vld [vmem:[#allocation2 + $0x970] sm:$0xff]  ;;  %v551_v61 = vld [vmem:[#allocation2 + $0x958] sm:$0xff] }
 0x3da   :  { %v555_v11 = vld [vmem:[#allocation2 + $0x978] sm:$0xff]  ;;  %v14051_v7 = vcombine.high %v550_v58, %v554_v60  ;;  %v14050_v59 = vcombine.low %v550_v58, %v554_v60 }
 0x3db   :  { %v14053_v8 = vcombine.high %v551_v61, %v555_v11  ;;  %v14052_v20 = vcombine.low %v551_v61, %v555_v11 }
 0x3dc   :  { %10566 = vmatpush1.bf16.msra.mxu0 %v14002_v10  ;;  %11058 = vmatpush1.bf16.msra.mxu1 %v14004_v13  ;;  %v558_v10 = vld [vmem:[#allocation2 + $0x990] sm:$0xff] }
 0x3dd   :  { %10576 = vmatprep.subr.bf16.mxu0 %v14011_v18  ;;  %11068 = vmatprep.subr.bf16.mxu1 %v14013_v15  ;;  %v562_v13 = vld [vmem:[#allocation2 + $0x9b0] sm:$0xff]  ;;  %v559_v18 = vld [vmem:[#allocation2 + $0x998] sm:$0xff] }
 0x3de   :  { %v563_v15 = vld [vmem:[#allocation2 + $0x9b8] sm:$0xff]  ;;  %v14059_v2 = vcombine.high %v558_v10, %v562_v13  ;;  %v14058_v34 = vcombine.low %v558_v10, %v562_v13 }
 0x3df   :  { %10568 = vmatmul.mubr.bf16.vlgmr.msra.gmra.mrb[4].mxu0 %v16566_v43  ;;  %11060 = vmatmul.mubr.bf16.vlgmr.msra.gmra.mrb[4].mxu1 %v16566_v43  ;;  %v14028_v43 = vcombine.low %v527_v63, %v531_v37  ;;  %v14061_v21 = vcombine.high %v559_v18, %v563_v15  ;;  %v14060_v35 = vcombine.low %v559_v18, %v563_v15 }
 0x3e0   :  { %10577 = vmatpush1.bf16.msra.mxu0 %v14010_v22  ;;  %11069 = vmatpush1.bf16.msra.mxu1 %v14012_v24  ;;  %v566_v22 = vld [vmem:[#allocation2 + $0x9d0] sm:$0xff] }
 0x3e1   :  { %10578 = vmatprep.subr.bf16.mxu0 %v14019_v27  ;;  %11070 = vmatprep.subr.bf16.mxu1 %v14021_v32  ;;  %v570_v24 = vld [vmem:[#allocation2 + $0x9f0] sm:$0xff]  ;;  %v567_v27 = vld [vmem:[#allocation2 + $0x9d8] sm:$0xff] }
 0x3e2   :  { %10608 = vmatprep.mubr.bf16.mxu0 %v16568_v54  ;;  %11100 = vmatprep.mubr.bf16.mxu1 %v16568_v54  ;;  %v14045_v54 = vcombine.high %v543_v16, %v547_v55  ;;  %v571_v32 = vld [vmem:[#allocation2 + $0x9f8] sm:$0xff]  ;;  %v14067_v63 = vcombine.high %v566_v22, %v570_v24  ;;  %v14066_v45 = vcombine.low %v566_v22, %v570_v24 }
 0x3e3   :  { %v14069_v37 = vcombine.high %v567_v27, %v571_v32  ;;  %v14068_v5 = vcombine.low %v567_v27, %v571_v32 }
 0x3e4   :  { %10579 = vmatpush1.bf16.msra.mxu0 %v14018_v40  ;;  %11071 = vmatpush1.bf16.msra.mxu1 %v14020_v57  ;;  %v574_v40 = vld [vmem:[#allocation2 + $0xa10] sm:$0xff] }
 0x3e5   :  { %10580 = vmatprep.subr.bf16.mxu0 %v14027_v62  ;;  %11072 = vmatprep.subr.bf16.mxu1 %v14029_v42  ;;  %v578_v57 = vld [vmem:[#allocation2 + $0xa30] sm:$0xff]  ;;  %v575_v62 = vld [vmem:[#allocation2 + $0xa18] sm:$0xff] }
 0x3e6   :  { %v579_v42 = vld [vmem:[#allocation2 + $0xa38] sm:$0xff]  ;;  %v14075_v46 = vcombine.high %v574_v40, %v578_v57  ;;  %v14074_v49 = vcombine.low %v574_v40, %v578_v57 }
 0x3e7   :  { %v14077_v25 = vcombine.high %v575_v62, %v579_v42  ;;  %v14076_v50 = vcombine.low %v575_v62, %v579_v42 }
 0x3e8   :  { %10581 = vmatpush1.bf16.msra.mxu0 %v14026_v47  ;;  %11073 = vmatpush1.bf16.msra.mxu1 %v14028_v43  ;;  %v582_v47 = vld [vmem:[#allocation2 + $0xa50] sm:$0xff] }
 0x3e9   :  { %10582 = vmatprep.subr.bf16.mxu0 %v14035_v53  ;;  %11074 = vmatprep.subr.bf16.mxu1 %v14037_v9  ;;  %v586_v43 = vld [vmem:[#allocation2 + $0xa70] sm:$0xff]  ;;  %v583_v53 = vld [vmem:[#allocation2 + $0xa58] sm:$0xff] }
 0x3ea   :  { %v587_v9 = vld [vmem:[#allocation2 + $0xa78] sm:$0xff]  ;;  %v14083_v16 = vcombine.high %v582_v47, %v586_v43  ;;  %v14082_v58 = vcombine.low %v582_v47, %v586_v43 }
 0x3eb   :  { %v14085_v55 = vcombine.high %v583_v53, %v587_v9  ;;  %v14084_v60 = vcombine.low %v583_v53, %v587_v9 }
 0x3ec   :  { %10583 = vmatpush1.bf16.msra.mxu0 %v14034_v52  ;;  %11075 = vmatpush1.bf16.msra.mxu1 %v14036_v56  ;;  %v590_v52 = vld [vmem:[#allocation2 + $0xa90] sm:$0xff] }
 0x3ed   :  { %10584 = vmatprep.subr.bf16.mxu0 %v14043_v36  ;;  %11076 = vmatprep.subr.bf16.mxu1 %v14045_v54  ;;  %v594_v56 = vld [vmem:[#allocation2 + $0xab0] sm:$0xff]  ;;  %v591_v36 = vld [vmem:[#allocation2 + $0xa98] sm:$0xff] }
 0x3ee   :  { %v595_v54 = vld [vmem:[#allocation2 + $0xab8] sm:$0xff]  ;;  %v14091_v61 = vcombine.high %v590_v52, %v594_v56  ;;  %v14090_v10 = vcombine.low %v590_v52, %v594_v56 }
 0x3ef   :  { %v14093_v11 = vcombine.high %v591_v36, %v595_v54  ;;  %v14092_v13 = vcombine.low %v591_v36, %v595_v54 }
 0x3f0   :  { %10585 = vmatpush1.bf16.msra.mxu0 %v14042_v3  ;;  %11077 = vmatpush1.bf16.msra.mxu1 %v14044_v6  ;;  %v598_v3 = vld [vmem:[#allocation2 + $0xad0] sm:$0xff] }
 0x3f1   :  { %10586 = vmatprep.subr.bf16.mxu0 %v14051_v7  ;;  %11078 = vmatprep.subr.bf16.mxu1 %v14053_v8  ;;  %v602_v6 = vld [vmem:[#allocation2 + $0xaf0] sm:$0xff]  ;;  %v599_v7 = vld [vmem:[#allocation2 + $0xad8] sm:$0xff] }
 0x3f2   :  { %v603_v8 = vld [vmem:[#allocation2 + $0xaf8] sm:$0xff]  ;;  %v14099_v18 = vcombine.high %v598_v3, %v602_v6  ;;  %v14098_v22 = vcombine.low %v598_v3, %v602_v6 }
 0x3f3   :  { %v14101_v15 = vcombine.high %v599_v7, %v603_v8  ;;  %v14100_v24 = vcombine.low %v599_v7, %v603_v8 }
 0x3f4   :  { %10587 = vmatpush1.bf16.msra.mxu0 %v14050_v59  ;;  %11079 = vmatpush1.bf16.msra.mxu1 %v14052_v20  ;;  %v606_v59 = vld [vmem:[#allocation2 + $0xb10] sm:$0xff] }
 0x3f5   :  { %10588 = vmatprep.subr.bf16.mxu0 %v14059_v2  ;;  %11080 = vmatprep.subr.bf16.mxu1 %v14061_v21  ;;  %v610_v20 = vld [vmem:[#allocation2 + $0xb30] sm:$0xff]  ;;  %v607_v2 = vld [vmem:[#allocation2 + $0xb18] sm:$0xff] }
 0x3f6   :  { %v611_v21 = vld [vmem:[#allocation2 + $0xb38] sm:$0xff]  ;;  %v14107_v27 = vcombine.high %v606_v59, %v610_v20  ;;  %v14106_v40 = vcombine.low %v606_v59, %v610_v20 }
 0x3f7   :  { %v14109_v32 = vcombine.high %v607_v2, %v611_v21  ;;  %v14108_v57 = vcombine.low %v607_v2, %v611_v21 }
 0x3f8   :  { %10589 = vmatpush1.bf16.msra.mxu0 %v14058_v34  ;;  %11081 = vmatpush1.bf16.msra.mxu1 %v14060_v35  ;;  %v614_v34 = vld [vmem:[#allocation2 + $0xb50] sm:$0xff] }
 0x3f9   :  { %10590 = vmatprep.subr.bf16.mxu0 %v14067_v63  ;;  %11082 = vmatprep.subr.bf16.mxu1 %v14069_v37  ;;  %v618_v35 = vld [vmem:[#allocation2 + $0xb70] sm:$0xff]  ;;  %v615_v63 = vld [vmem:[#allocation2 + $0xb58] sm:$0xff] }
 0x3fa   :  { %v619_v37 = vld [vmem:[#allocation2 + $0xb78] sm:$0xff]  ;;  %v14115_v62 = vcombine.high %v614_v34, %v618_v35  ;;  %v14114_v47 = vcombine.low %v614_v34, %v618_v35 }
 0x3fb   :  { %v14117_v42 = vcombine.high %v615_v63, %v619_v37  ;;  %v14116_v43 = vcombine.low %v615_v63, %v619_v37 }
 0x3fc   :  { %10591 = vmatpush1.bf16.msra.mxu0 %v14066_v45  ;;  %11083 = vmatpush1.bf16.msra.mxu1 %v14068_v5  ;;  %v622_v45 = vld [vmem:[#allocation2 + $0xb90] sm:$0xff] }
 0x3fd   :  { %10592 = vmatprep.subr.bf16.mxu0 %v14075_v46  ;;  %11084 = vmatprep.subr.bf16.mxu1 %v14077_v25  ;;  %v626_v5 = vld [vmem:[#allocation2 + $0xbb0] sm:$0xff]  ;;  %v623_v46 = vld [vmem:[#allocation2 + $0xb98] sm:$0xff] }
 0x3fe   :  { %v627_v25 = vld [vmem:[#allocation2 + $0xbb8] sm:$0xff]  ;;  %v14123_v53 = vcombine.high %v622_v45, %v626_v5  ;;  %v14122_v52 = vcombine.low %v622_v45, %v626_v5 }
 0x3ff   :  { %v14125_v9 = vcombine.high %v623_v46, %v627_v25  ;;  %v14124_v56 = vcombine.low %v623_v46, %v627_v25  ;;  %v670_v25 = vld [vmem:[#allocation2 + $0xd10] sm:$0xff] }
 0x400   :  { %10593 = vmatpush1.bf16.msra.mxu0 %v14074_v49  ;;  %11085 = vmatpush1.bf16.msra.mxu1 %v14076_v50  ;;  %v630_v49 = vld [vmem:[#allocation2 + $0xbd0] sm:$0xff] }
 0x401   :  { %10594 = vmatprep.subr.bf16.mxu0 %v14083_v16  ;;  %11086 = vmatprep.subr.bf16.mxu1 %v14085_v55  ;;  %v634_v50 = vld [vmem:[#allocation2 + $0xbf0] sm:$0xff]  ;;  %v631_v16 = vld [vmem:[#allocation2 + $0xbd8] sm:$0xff] }
 0x402   :  { %v635_v55 = vld [vmem:[#allocation2 + $0xbf8] sm:$0xff]  ;;  %v14131_v36 = vcombine.high %v630_v49, %v634_v50  ;;  %v14130_v3 = vcombine.low %v630_v49, %v634_v50 }
 0x403   :  { %v14133_v54 = vcombine.high %v631_v16, %v635_v55  ;;  %v14132_v6 = vcombine.low %v631_v16, %v635_v55  ;;  %v678_v16 = vld [vmem:[#allocation2 + $0xd50] sm:$0xff] }
 0x404   :  { %10595 = vmatpush1.bf16.msra.mxu0 %v14082_v58  ;;  %11087 = vmatpush1.bf16.msra.mxu1 %v14084_v60  ;;  %v638_v58 = vld [vmem:[#allocation2 + $0xc10] sm:$0xff] }
 0x405   :  { %10596 = vmatprep.subr.bf16.mxu0 %v14091_v61  ;;  %11088 = vmatprep.subr.bf16.mxu1 %v14093_v11  ;;  %v642_v60 = vld [vmem:[#allocation2 + $0xc30] sm:$0xff]  ;;  %v639_v61 = vld [vmem:[#allocation2 + $0xc18] sm:$0xff] }
 0x406   :  { %v643_v11 = vld [vmem:[#allocation2 + $0xc38] sm:$0xff]  ;;  %v14139_v7 = vcombine.high %v638_v58, %v642_v60  ;;  %v14138_v59 = vcombine.low %v638_v58, %v642_v60  ;;  %v682_v55 = vld [vmem:[#allocation2 + $0xd70] sm:$0xff] }
 0x407   :  { %v14141_v8 = vcombine.high %v639_v61, %v643_v11  ;;  %v14140_v20 = vcombine.low %v639_v61, %v643_v11  ;;  %v14179_v58 = vcombine.high %v678_v16, %v682_v55  ;;  %v686_v61 = vld [vmem:[#allocation2 + $0xd90] sm:$0xff] }
 0x408   :  { %10597 = vmatpush1.bf16.msra.mxu0 %v14090_v10  ;;  %11089 = vmatpush1.bf16.msra.mxu1 %v14092_v13  ;;  %v646_v10 = vld [vmem:[#allocation2 + $0xc50] sm:$0xff] }
 0x409   :  { %10598 = vmatprep.subr.bf16.mxu0 %v14099_v18  ;;  %11090 = vmatprep.subr.bf16.mxu1 %v14101_v15  ;;  %v650_v13 = vld [vmem:[#allocation2 + $0xc70] sm:$0xff]  ;;  %v647_v18 = vld [vmem:[#allocation2 + $0xc58] sm:$0xff] }
 0x40a   :  { %v651_v15 = vld [vmem:[#allocation2 + $0xc78] sm:$0xff]  ;;  %v14147_v2 = vcombine.high %v646_v10, %v650_v13  ;;  %v14146_v34 = vcombine.low %v646_v10, %v650_v13  ;;  %v690_v11 = vld [vmem:[#allocation2 + $0xdb0] sm:$0xff] }
 0x40b   :  { %v14149_v21 = vcombine.high %v647_v18, %v651_v15  ;;  %v14148_v35 = vcombine.low %v647_v18, %v651_v15  ;;  %v14187_v10 = vcombine.high %v686_v61, %v690_v11  ;;  %v694_v15 = vld [vmem:[#allocation2 + $0xdd0] sm:$0xff] }
 0x40c   :  { %10599 = vmatpush1.bf16.msra.mxu0 %v14098_v22  ;;  %11091 = vmatpush1.bf16.msra.mxu1 %v14100_v24  ;;  %v654_v22 = vld [vmem:[#allocation2 + $0xc90] sm:$0xff] }
 0x40d   :  { %10600 = vmatprep.subr.bf16.mxu0 %v14107_v27  ;;  %11092 = vmatprep.subr.bf16.mxu1 %v14109_v32  ;;  %v658_v24 = vld [vmem:[#allocation2 + $0xcb0] sm:$0xff]  ;;  %v655_v27 = vld [vmem:[#allocation2 + $0xc98] sm:$0xff] }
 0x40e   :  { %v659_v32 = vld [vmem:[#allocation2 + $0xcb8] sm:$0xff]  ;;  %v14155_v63 = vcombine.high %v654_v22, %v658_v24  ;;  %v14154_v45 = vcombine.low %v654_v22, %v658_v24 }
 0x40f   :  { %v14157_v37 = vcombine.high %v655_v27, %v659_v32  ;;  %v699_v22 = vld [vmem:[#allocation2 + $0xdf8] sm:$0xff] }
 0x410   :  { %10601 = vmatpush1.bf16.msra.mxu0 %v14106_v40  ;;  %11093 = vmatpush1.bf16.msra.mxu1 %v14108_v57  ;;  %v662_v40 = vld [vmem:[#allocation2 + $0xcd0] sm:$0xff] }
 0x411   :  { %10602 = vmatprep.subr.bf16.mxu0 %v14115_v62  ;;  %11094 = vmatprep.subr.bf16.mxu1 %v14117_v42  ;;  %v666_v57 = vld [vmem:[#allocation2 + $0xcf0] sm:$0xff]  ;;  %v663_v62 = vld [vmem:[#allocation2 + $0xcd8] sm:$0xff] }
 0x412   :  { %v667_v42 = vld [vmem:[#allocation2 + $0xcf8] sm:$0xff]  ;;  %v14163_v5 = vcombine.high %v662_v40, %v666_v57 }
 0x413   :  { %v14165_v46 = vcombine.high %v663_v62, %v667_v42  ;;  %v14164_v49 = vcombine.low %v663_v62, %v667_v42  ;;  %v702_v62 = vld [vmem:[#allocation2 + $0xe10] sm:$0xff] }
 0x414   :  { %10603 = vmatpush1.bf16.msra.mxu0 %v14114_v47  ;;  %11095 = vmatpush1.bf16.msra.mxu1 %v14116_v43  ;;  %v674_v47 = vld [vmem:[#allocation2 + $0xd30] sm:$0xff]  ;;  %v671_v43 = vld [vmem:[#allocation2 + $0xd18] sm:$0xff] }
 0x415   :  { %10604 = vmatprep.subr.bf16.mxu0 %v14123_v53  ;;  %11096 = vmatprep.subr.bf16.mxu1 %v14125_v9  ;;  %v675_v53 = vld [vmem:[#allocation2 + $0xd38] sm:$0xff]  ;;  %v14162_v9 = vcombine.low %v662_v40, %v666_v57  ;;  %v14171_v50 = vcombine.high %v670_v25, %v674_v47  ;;  %v706_v42 = vld [vmem:[#allocation2 + $0xe30] sm:$0xff] }
 0x418   :  { %10605 = vmatpush1.bf16.msra.mxu0 %v14122_v52  ;;  %11097 = vmatpush1.bf16.msra.mxu1 %v14124_v56  ;;  %v679_v52 = vld [vmem:[#allocation2 + $0xd58] sm:$0xff] }
 0x419   :  { %10606 = vmatprep.subr.bf16.mxu0 %v14131_v36  ;;  %11098 = vmatprep.subr.bf16.mxu1 %v14133_v54  ;;  %v683_v56 = vld [vmem:[#allocation2 + $0xd78] sm:$0xff]  ;;  %v14170_v36 = vcombine.low %v670_v25, %v674_v47  ;;  %v14172_v54 = vcombine.low %v671_v43, %v675_v53  ;;  %v14203_v25 = vcombine.high %v702_v62, %v706_v42 }
 0x41a   :  { %v14181_v60 = vcombine.high %v679_v52, %v683_v56 }
 0x41c   :  { %10607 = vmatpush1.bf16.msra.mxu0 %v14130_v3  ;;  %11099 = vmatpush1.bf16.msra.mxu1 %v14132_v6  ;;  %v687_v3 = vld [vmem:[#allocation2 + $0xd98] sm:$0xff] }
 0x41d   :  { %10617 = vmatprep.subr.bf16.mxu0 %v14139_v7  ;;  %11109 = vmatprep.subr.bf16.mxu1 %v14141_v8  ;;  %v691_v6 = vld [vmem:[#allocation2 + $0xdb8] sm:$0xff]  ;;  %v14178_v7 = vcombine.low %v678_v16, %v682_v55  ;;  %v14180_v8 = vcombine.low %v679_v52, %v683_v56  ;;  %v718_v52 = vld [vmem:[#allocation2 + $0xe90] sm:$0xff] }
 0x41e   :  { %v14189_v18 = vcombine.high %v687_v3, %v691_v6  ;;  %v722_v56 = vld [vmem:[#allocation2 + $0xeb0] sm:$0xff] }
 0x41f   :  { %10609 = vmatmul.mubr.bf16.vlgmr.msra.gmra.mrb[4].mxu0 %v16583_v4  ;;  %11101 = vmatmul.mubr.bf16.vlgmr.msra.gmra.mrb[4].mxu1 %v16583_v4  ;;  %v14156_v4 = vcombine.low %v655_v27, %v659_v32  ;;  %v14186_v32 = vcombine.low %v686_v61, %v690_v11  ;;  %v14219_v61 = vcombine.high %v718_v52, %v722_v56 }
 0x420   :  { %10618 = vmatpush1.bf16.msra.mxu0 %v14138_v59  ;;  %11110 = vmatpush1.bf16.msra.mxu1 %v14140_v20  ;;  %v698_v59 = vld [vmem:[#allocation2 + $0xdf0] sm:$0xff] }
 0x421   :  { %10619 = vmatprep.subr.bf16.mxu0 %v14147_v2  ;;  %11111 = vmatprep.subr.bf16.mxu1 %v14149_v21  ;;  %v695_v21 = vld [vmem:[#allocation2 + $0xdd8] sm:$0xff] }
 0x422   :  { %10649 = vmatprep.mubr.bf16.mxu0 %v16585_v14  ;;  %11141 = vmatprep.mubr.bf16.mxu1 %v16585_v14  ;;  %v14173_v14 = vcombine.high %v671_v43, %v675_v53  ;;  %v14197_v57 = vcombine.high %v695_v21, %v699_v22  ;;  %v710_v43 = vld [vmem:[#allocation2 + $0xe50] sm:$0xff] }
 0x423   :  { %v714_v53 = vld [vmem:[#allocation2 + $0xe70] sm:$0xff] }
 0x424   :  { %10620 = vmatpush1.bf16.msra.mxu0 %v14146_v34  ;;  %11112 = vmatpush1.bf16.msra.mxu1 %v14148_v35  ;;  %v14211_v16 = vcombine.high %v710_v43, %v714_v53 }
 0x425   :  { %10621 = vmatprep.subr.bf16.mxu0 %v14155_v63  ;;  %11113 = vmatprep.subr.bf16.mxu1 %v14157_v37  ;;  %v14188_v63 = vcombine.low %v687_v3, %v691_v6  ;;  %v14195_v37 = vcombine.high %v694_v15, %v698_v59  ;;  %v726_v3 = vld [vmem:[#allocation2 + $0xed0] sm:$0xff] }
 0x426   :  { %v730_v6 = vld [vmem:[#allocation2 + $0xef0] sm:$0xff] }
 0x428   :  { %10622 = vmatpush1.bf16.msra.mxu0 %v14154_v45  ;;  %11114 = vmatpush1.bf16.msra.mxu1 %v14156_v4  ;;  %v703_v45 = vld [vmem:[#allocation2 + $0xe18] sm:$0xff] }
 0x429   :  { %10623 = vmatprep.subr.bf16.mxu0 %v14163_v5  ;;  %11115 = vmatprep.subr.bf16.mxu1 %v14165_v46  ;;  %v707_v4 = vld [vmem:[#allocation2 + $0xe38] sm:$0xff]  ;;  %v14194_v5 = vcombine.low %v694_v15, %v698_v59  ;;  %v14196_v46 = vcombine.low %v695_v21, %v699_v22  ;;  %v14227_v15 = vcombine.high %v726_v3, %v730_v6  ;;  %v734_v21 = vld [vmem:[#allocation2 + $0xf10] sm:$0xff] }
 0x42a   :  { %v14205_v47 = vcombine.high %v703_v45, %v707_v4  ;;  %v738_v22 = vld [vmem:[#allocation2 + $0xf30] sm:$0xff] }
 0x42c   :  { %10624 = vmatpush1.bf16.msra.mxu0 %v14162_v9  ;;  %11116 = vmatpush1.bf16.msra.mxu1 %v14164_v49  ;;  %v711_v9 = vld [vmem:[#allocation2 + $0xe58] sm:$0xff] }
 0x42d   :  { %10625 = vmatprep.subr.bf16.mxu0 %v14171_v50  ;;  %11117 = vmatprep.subr.bf16.mxu1 %v14173_v14  ;;  %v715_v49 = vld [vmem:[#allocation2 + $0xe78] sm:$0xff]  ;;  %v14202_v50 = vcombine.low %v702_v62, %v706_v42  ;;  %v14204_v14 = vcombine.low %v703_v45, %v707_v4  ;;  %v14234_v45 = vcombine.low %v734_v21, %v738_v22 }
 0x42e   :  { %v14213_v55 = vcombine.high %v711_v9, %v715_v49  ;;  %v743_v62 = vld [vmem:[#allocation2 + $0xf58] sm:$0xff] }
 0x42f   :  { %v747_v42 = vld [vmem:[#allocation2 + $0xf78] sm:$0xff] }
 0x430   :  { %10626 = vmatpush1.bf16.msra.mxu0 %v14170_v36  ;;  %11118 = vmatpush1.bf16.msra.mxu1 %v14172_v54  ;;  %v719_v36 = vld [vmem:[#allocation2 + $0xe98] sm:$0xff] }
 0x431   :  { %10627 = vmatprep.subr.bf16.mxu0 %v14179_v58  ;;  %11119 = vmatprep.subr.bf16.mxu1 %v14181_v60  ;;  %v723_v54 = vld [vmem:[#allocation2 + $0xeb8] sm:$0xff]  ;;  %v14210_v58 = vcombine.low %v710_v43, %v714_v53  ;;  %v14212_v60 = vcombine.low %v711_v9, %v715_v49  ;;  %v14244_v49 = vcombine.low %v743_v62, %v747_v42 }
 0x432   :  { %v16763_v13 = vpop.f32.mrb[0].mxu0  ;;  %v16765_v20 = vpop.f32.mrb[0].mxu1  ;;  %v14221_v11 = vcombine.high %v719_v36, %v723_v54  ;;  %v751_v43 = vld [vmem:[#allocation2 + $0xf98] sm:$0xff] }
 0x433   :  { %v16767_v2 = vpop.f32.mrb[1].mxu0  ;;  %v16769_v24 = vpop.f32.mrb[1].mxu1  ;;  %v755_v53 = vld [vmem:[#allocation2 + $0xfb8] sm:$0xff] }
 0x434   :  { %v9999_v27 = vpop.f32.mrb[2].mxu0  ;;  %10628 = vmatpush1.bf16.msra.mxu0 %v14178_v7  ;;  %v10491_v34 = vpop.f32.mrb[2].mxu1  ;;  %11120 = vmatpush1.bf16.msra.mxu1 %v14180_v8  ;;  %v727_v7 = vld [vmem:[#allocation2 + $0xed8] sm:$0xff] }
 0x435   :  { %v10000_v35 = vpop.f32.mrb[3].mxu0  ;;  %10629 = vmatprep.subr.bf16.mxu0 %v14187_v10  ;;  %v10492_v40 = vpop.f32.mrb[3].mxu1  ;;  %11121 = vmatprep.subr.bf16.mxu1 %v14189_v18  ;;  %v731_v8 = vld [vmem:[#allocation2 + $0xef8] sm:$0xff]  ;;  %v14218_v10 = vcombine.low %v718_v52, %v722_v56  ;;  %v14220_v18 = vcombine.low %v719_v36, %v723_v54  ;;  %v14226_v34 = vcombine.low %v726_v3, %v730_v6 }
 0x436   :  { %v14229_v59 = vcombine.high %v727_v7, %v731_v8  ;;  %v735_v27 = vld [vmem:[#allocation2 + $0xf18] sm:$0xff]  ;;  %v14228_v35 = vcombine.low %v727_v7, %v731_v8  ;;  %v742_v40 = vld [vmem:[#allocation2 + $0xf50] sm:$0xff]  ;;  %v14252_v54 = vcombine.low %v751_v43, %v755_v53 }
 0x437   :  { %v759_v52 = vld [vmem:[#allocation2 + $0xfd8] sm:$0xff] }
 0x438   :  { %10630 = vmatpush1.bf16.msra.mxu0 %v14186_v32  ;;  %11122 = vmatpush1.bf16.msra.mxu1 %v14188_v63  ;;  %v739_v32 = vld [vmem:[#allocation2 + $0xf38] sm:$0xff]  ;;  %v14235_v63 = vcombine.high %v734_v21, %v738_v22 }
 0x439   :  { %10631 = vmatprep.subr.bf16.mxu0 %v14195_v37  ;;  %11123 = vmatprep.subr.bf16.mxu1 %v14197_v57  ;;  %v14237_v37 = vcombine.high %v735_v27, %v739_v32  ;;  %v746_v57 = vld [vmem:[#allocation2 + $0xf70] sm:$0xff]  ;;  %v14236_v4 = vcombine.low %v735_v27, %v739_v32  ;;  %v763_v56 = vld [vmem:[#allocation2 + $0xff8] sm:$0xff] }
 0x43a   :  { %v14242_v9 = vcombine.low %v742_v40, %v746_v57  ;;  %v767_v3 = vld [vmem:[#allocation2 + $0x1018] sm:$0xff]  ;;  %v14260_v8 = vcombine.low %v759_v52, %v763_v56 }
 0x43b   :  { %v771_v6 = vld [vmem:[#allocation2 + $0x1038] sm:$0xff] }
 0x43c   :  { %10632 = vmatpush1.bf16.msra.mxu0 %v14194_v5  ;;  %11124 = vmatpush1.bf16.msra.mxu1 %v14196_v46  ;;  %v14243_v5 = vcombine.high %v742_v40, %v746_v57  ;;  %v14245_v46 = vcombine.high %v743_v62, %v747_v42  ;;  %v775_v21 = vld [vmem:[#allocation2 + $0x1058] sm:$0xff]  ;;  %v14268_v32 = vcombine.low %v767_v3, %v771_v6 }
 0x43d   :  { %10633 = vmatprep.subr.bf16.mxu0 %v14203_v25  ;;  %11125 = vmatprep.subr.bf16.mxu1 %v14205_v47  ;;  %v750_v25 = vld [vmem:[#allocation2 + $0xf90] sm:$0xff]  ;;  %v779_v22 = vld [vmem:[#allocation2 + $0x1078] sm:$0xff] }
 0x43e   :  { %v754_v47 = vld [vmem:[#allocation2 + $0xfb0] sm:$0xff]  ;;  %v783_v40 = vld [vmem:[#allocation2 + $0x1098] sm:$0xff]  ;;  %v14276_v42 = vcombine.low %v775_v21, %v779_v22 }
 0x43f   :  { %v14250_v36 = vcombine.low %v750_v25, %v754_v47  ;;  %v787_v57 = vld [vmem:[#allocation2 + $0x10b8] sm:$0xff] }
 0x440   :  { %10634 = vmatpush1.bf16.msra.mxu0 %v14202_v50  ;;  %11126 = vmatpush1.bf16.msra.mxu1 %v14204_v14  ;;  %v14251_v50 = vcombine.high %v750_v25, %v754_v47  ;;  %v14253_v14 = vcombine.high %v751_v43, %v755_v53  ;;  %v791_v25 = vld [vmem:[#allocation2 + $0x10d8] sm:$0xff] }
 0x441   :  { %10635 = vmatprep.subr.bf16.mxu0 %v14211_v16  ;;  %11127 = vmatprep.subr.bf16.mxu1 %v14213_v55  ;;  %v758_v16 = vld [vmem:[#allocation2 + $0xfd0] sm:$0xff]  ;;  %v795_v47 = vld [vmem:[#allocation2 + $0x10f8] sm:$0xff] }
 0x442   :  { %v762_v55 = vld [vmem:[#allocation2 + $0xff0] sm:$0xff] }
 0x443   :  { %v14258_v7 = vcombine.low %v758_v16, %v762_v55 }
 0x444   :  { %10636 = vmatpush1.bf16.msra.mxu0 %v14210_v58  ;;  %11128 = vmatpush1.bf16.msra.mxu1 %v14212_v60  ;;  %v14259_v58 = vcombine.high %v758_v16, %v762_v55  ;;  %v14261_v60 = vcombine.high %v759_v52, %v763_v56  ;;  %v803_v16 = vld [vmem:[#allocation2 + $0x1138] sm:$0xff]  ;;  %v14292_v52 = vcombine.low %v791_v25, %v795_v47 }
 0x445   :  { %10637 = vmatprep.subr.bf16.mxu0 %v14219_v61  ;;  %11129 = vmatprep.subr.bf16.mxu1 %v14221_v11  ;;  %v766_v61 = vld [vmem:[#allocation2 + $0x1010] sm:$0xff] }
 0x446   :  { %v770_v11 = vld [vmem:[#allocation2 + $0x1030] sm:$0xff] }
 0x447   :  { %v14266_v27 = vcombine.low %v766_v61, %v770_v11 }
 0x448   :  { %10638 = vmatpush1.bf16.msra.mxu0 %v14218_v10  ;;  %11130 = vmatpush1.bf16.msra.mxu1 %v14220_v18  ;;  %v14267_v10 = vcombine.high %v766_v61, %v770_v11  ;;  %v14269_v18 = vcombine.high %v767_v3, %v771_v6 }
 0x449   :  { %10639 = vmatprep.subr.bf16.mxu0 %v14227_v15  ;;  %11131 = vmatprep.subr.bf16.mxu1 %v14229_v59  ;;  %v774_v15 = vld [vmem:[#allocation2 + $0x1050] sm:$0xff] }
 0x44a   :  { %v778_v59 = vld [vmem:[#allocation2 + $0x1070] sm:$0xff] }
 0x44b   :  { %v14274_v62 = vcombine.low %v774_v15, %v778_v59 }
 0x44c   :  { %10640 = vmatpush1.bf16.msra.mxu0 %v14226_v34  ;;  %11132 = vmatpush1.bf16.msra.mxu1 %v14228_v35  ;;  %v14275_v34 = vcombine.high %v774_v15, %v778_v59  ;;  %v14277_v35 = vcombine.high %v775_v21, %v779_v22 }
 0x44d   :  { %10641 = vmatprep.subr.bf16.mxu0 %v14235_v63  ;;  %11133 = vmatprep.subr.bf16.mxu1 %v14237_v37  ;;  %v782_v63 = vld [vmem:[#allocation2 + $0x1090] sm:$0xff] }
 0x44e   :  { %v786_v37 = vld [vmem:[#allocation2 + $0x10b0] sm:$0xff] }
 0x44f   :  { %v14282_v43 = vcombine.low %v782_v63, %v786_v37 }
 0x450   :  { %10642 = vmatpush1.bf16.msra.mxu0 %v14234_v45  ;;  %11134 = vmatpush1.bf16.msra.mxu1 %v14236_v4  ;;  %v14283_v45 = vcombine.high %v782_v63, %v786_v37  ;;  %v14285_v4 = vcombine.high %v783_v40, %v787_v57 }
 0x451   :  { %10643 = vmatprep.subr.bf16.mxu0 %v14243_v5  ;;  %11135 = vmatprep.subr.bf16.mxu1 %v14245_v46  ;;  %v790_v5 = vld [vmem:[#allocation2 + $0x10d0] sm:$0xff] }
 0x452   :  { %v794_v46 = vld [vmem:[#allocation2 + $0x10f0] sm:$0xff] }
 0x453   :  { %v14291_v53 = vcombine.high %v790_v5, %v794_v46  ;;  %v14290_v55 = vcombine.low %v790_v5, %v794_v46 }
 0x454   :  { %10644 = vmatpush1.bf16.msra.mxu0 %v14242_v9  ;;  %11136 = vmatpush1.bf16.msra.mxu1 %v14244_v49  ;;  %v14293_v9 = vcombine.high %v791_v25, %v795_v47  ;;  %v798_v49 = vld [vmem:[#allocation2 + $0x1110] sm:$0xff] }
 0x455   :  { %10645 = vmatprep.subr.bf16.mxu0 %v14251_v50  ;;  %11137 = vmatprep.subr.bf16.mxu1 %v14253_v14  ;;  %v802_v50 = vld [vmem:[#allocation2 + $0x1130] sm:$0xff]  ;;  %v799_v14 = vld [vmem:[#allocation2 + $0x1118] sm:$0xff] }
 0x456   :  { %v14299_v56 = vcombine.high %v798_v49, %v802_v50  ;;  %v14298_v61 = vcombine.low %v798_v49, %v802_v50  ;;  %v14300_v11 = vcombine.low %v799_v14, %v803_v16 }
 0x458   :  { %10646 = vmatpush1.bf16.msra.mxu0 %v14250_v36  ;;  %11138 = vmatpush1.bf16.msra.mxu1 %v14252_v54  ;;  %v806_v36 = vld [vmem:[#allocation2 + $0x1150] sm:$0xff] }
 0x459   :  { %10647 = vmatprep.subr.bf16.mxu0 %v14259_v58  ;;  %11139 = vmatprep.subr.bf16.mxu1 %v14261_v60  ;;  %v810_v54 = vld [vmem:[#allocation2 + $0x1170] sm:$0xff]  ;;  %v807_v58 = vld [vmem:[#allocation2 + $0x1158] sm:$0xff] }
 0x45a   :  { %v811_v60 = vld [vmem:[#allocation2 + $0x1178] sm:$0xff]  ;;  %v14307_v3 = vcombine.high %v806_v36, %v810_v54  ;;  %v14306_v15 = vcombine.low %v806_v36, %v810_v54 }
 0x45b   :  { %v14309_v6 = vcombine.high %v807_v58, %v811_v60  ;;  %v14308_v59 = vcombine.low %v807_v58, %v811_v60 }
 0x45c   :  { %10648 = vmatpush1.bf16.msra.mxu0 %v14258_v7  ;;  %11140 = vmatpush1.bf16.msra.mxu1 %v14260_v8  ;;  %v814_v7 = vld [vmem:[#allocation2 + $0x1190] sm:$0xff] }
 0x45d   :  { %10658 = vmatprep.subr.bf16.mxu0 %v14267_v10  ;;  %11150 = vmatprep.subr.bf16.mxu1 %v14269_v18  ;;  %v818_v8 = vld [vmem:[#allocation2 + $0x11b0] sm:$0xff]  ;;  %v815_v10 = vld [vmem:[#allocation2 + $0x1198] sm:$0xff] }
 0x45e   :  { %v819_v18 = vld [vmem:[#allocation2 + $0x11b8] sm:$0xff]  ;;  %v14315_v21 = vcombine.high %v814_v7, %v818_v8  ;;  %v14314_v63 = vcombine.low %v814_v7, %v818_v8 }
 0x45f   :  { %10650 = vmatmul.mubr.bf16.vlgmr.msra.gmra.mrb[4].mxu0 %v16604_v29  ;;  %11142 = vmatmul.mubr.bf16.vlgmr.msra.gmra.mrb[4].mxu1 %v16604_v29  ;;  %v14284_v29 = vcombine.low %v783_v40, %v787_v57  ;;  %v14317_v22 = vcombine.high %v815_v10, %v819_v18  ;;  %v14316_v37 = vcombine.low %v815_v10, %v819_v18 }
 0x460   :  { %10659 = vmatpush1.bf16.msra.mxu0 %v14266_v27  ;;  %11151 = vmatpush1.bf16.msra.mxu1 %v14268_v32  ;;  %v822_v27 = vld [vmem:[#allocation2 + $0x11d0] sm:$0xff] }
 0x461   :  { %10660 = vmatprep.subr.bf16.mxu0 %v14275_v34  ;;  %11152 = vmatprep.subr.bf16.mxu1 %v14277_v35  ;;  %v826_v32 = vld [vmem:[#allocation2 + $0x11f0] sm:$0xff]  ;;  %v823_v34 = vld [vmem:[#allocation2 + $0x11d8] sm:$0xff] }
 0x462   :  { %10690 = vmatprep.mubr.bf16.mxu0 %v16606_v39  ;;  %11182 = vmatprep.mubr.bf16.mxu1 %v16606_v39  ;;  %v14301_v39 = vcombine.high %v799_v14, %v803_v16  ;;  %v827_v35 = vld [vmem:[#allocation2 + $0x11f8] sm:$0xff]  ;;  %v14323_v40 = vcombine.high %v822_v27, %v826_v32  ;;  %v14322_v5 = vcombine.low %v822_v27, %v826_v32 }
 0x463   :  { %v14325_v57 = vcombine.high %v823_v34, %v827_v35  ;;  %v14324_v46 = vcombine.low %v823_v34, %v827_v35 }
 0x464   :  { %10661 = vmatpush1.bf16.msra.mxu0 %v14274_v62  ;;  %11153 = vmatpush1.bf16.msra.mxu1 %v14276_v42  ;;  %v830_v62 = vld [vmem:[#allocation2 + $0x1210] sm:$0xff] }
 0x465   :  { %10662 = vmatprep.subr.bf16.mxu0 %v14283_v45  ;;  %11154 = vmatprep.subr.bf16.mxu1 %v14285_v4  ;;  %v834_v42 = vld [vmem:[#allocation2 + $0x1230] sm:$0xff]  ;;  %v831_v45 = vld [vmem:[#allocation2 + $0x1218] sm:$0xff] }
 0x466   :  { %v835_v4 = vld [vmem:[#allocation2 + $0x1238] sm:$0xff]  ;;  %v14331_v25 = vcombine.high %v830_v62, %v834_v42  ;;  %v14330_v49 = vcombine.low %v830_v62, %v834_v42 }
 0x467   :  { %v14333_v47 = vcombine.high %v831_v45, %v835_v4  ;;  %v14332_v50 = vcombine.low %v831_v45, %v835_v4 }
 0x468   :  { %10663 = vmatpush1.bf16.msra.mxu0 %v14282_v43  ;;  %11155 = vmatpush1.bf16.msra.mxu1 %v14284_v29  ;;  %v838_v43 = vld [vmem:[#allocation2 + $0x1250] sm:$0xff] }
 0x469   :  { %10664 = vmatprep.subr.bf16.mxu0 %v14291_v53  ;;  %11156 = vmatprep.subr.bf16.mxu1 %v14293_v9  ;;  %v842_v29 = vld [vmem:[#allocation2 + $0x1270] sm:$0xff]  ;;  %v839_v53 = vld [vmem:[#allocation2 + $0x1258] sm:$0xff] }
 0x46a   :  { %v843_v9 = vld [vmem:[#allocation2 + $0x1278] sm:$0xff]  ;;  %v14339_v14 = vcombine.high %v838_v43, %v842_v29  ;;  %v14338_v36 = vcombine.low %v838_v43, %v842_v29 }
 0x46b   :  { %v14341_v16 = vcombine.high %v839_v53, %v843_v9  ;;  %v14340_v54 = vcombine.low %v839_v53, %v843_v9 }
 0x46c   :  { %10665 = vmatpush1.bf16.msra.mxu0 %v14290_v55  ;;  %11157 = vmatpush1.bf16.msra.mxu1 %v14292_v52  ;;  %v846_v55 = vld [vmem:[#allocation2 + $0x1290] sm:$0xff] }
 0x46d   :  { %10666 = vmatprep.subr.bf16.mxu0 %v14299_v56  ;;  %11158 = vmatprep.subr.bf16.mxu1 %v14301_v39  ;;  %v850_v52 = vld [vmem:[#allocation2 + $0x12b0] sm:$0xff]  ;;  %v847_v56 = vld [vmem:[#allocation2 + $0x1298] sm:$0xff] }
 0x46e   :  { %v851_v39 = vld [vmem:[#allocation2 + $0x12b8] sm:$0xff]  ;;  %v14347_v58 = vcombine.high %v846_v55, %v850_v52  ;;  %v14346_v7 = vcombine.low %v846_v55, %v850_v52 }
 0x46f   :  { %v14349_v60 = vcombine.high %v847_v56, %v851_v39  ;;  %v14348_v8 = vcombine.low %v847_v56, %v851_v39 }
 0x470   :  { %10667 = vmatpush1.bf16.msra.mxu0 %v14298_v61  ;;  %11159 = vmatpush1.bf16.msra.mxu1 %v14300_v11  ;;  %v854_v61 = vld [vmem:[#allocation2 + $0x12d0] sm:$0xff] }
 0x471   :  { %10668 = vmatprep.subr.bf16.mxu0 %v14307_v3  ;;  %11160 = vmatprep.subr.bf16.mxu1 %v14309_v6  ;;  %v858_v11 = vld [vmem:[#allocation2 + $0x12f0] sm:$0xff]  ;;  %v855_v3 = vld [vmem:[#allocation2 + $0x12d8] sm:$0xff] }
 0x472   :  { %v859_v6 = vld [vmem:[#allocation2 + $0x12f8] sm:$0xff]  ;;  %v14355_v10 = vcombine.high %v854_v61, %v858_v11  ;;  %v14354_v27 = vcombine.low %v854_v61, %v858_v11 }
 0x473   :  { %v14357_v18 = vcombine.high %v855_v3, %v859_v6  ;;  %v14356_v32 = vcombine.low %v855_v3, %v859_v6 }
 0x474   :  { %10669 = vmatpush1.bf16.msra.mxu0 %v14306_v15  ;;  %11161 = vmatpush1.bf16.msra.mxu1 %v14308_v59  ;;  %v862_v15 = vld [vmem:[#allocation2 + $0x1310] sm:$0xff] }
 0x475   :  { %10670 = vmatprep.subr.bf16.mxu0 %v14315_v21  ;;  %11162 = vmatprep.subr.bf16.mxu1 %v14317_v22  ;;  %v866_v59 = vld [vmem:[#allocation2 + $0x1330] sm:$0xff]  ;;  %v863_v21 = vld [vmem:[#allocation2 + $0x1318] sm:$0xff] }
 0x476   :  { %v867_v22 = vld [vmem:[#allocation2 + $0x1338] sm:$0xff]  ;;  %v14363_v34 = vcombine.high %v862_v15, %v866_v59  ;;  %v14362_v62 = vcombine.low %v862_v15, %v866_v59 }
 0x477   :  { %v14365_v35 = vcombine.high %v863_v21, %v867_v22  ;;  %v14364_v42 = vcombine.low %v863_v21, %v867_v22 }
 0x478   :  { %10671 = vmatpush1.bf16.msra.mxu0 %v14314_v63  ;;  %11163 = vmatpush1.bf16.msra.mxu1 %v14316_v37  ;;  %v870_v63 = vld [vmem:[#allocation2 + $0x1350] sm:$0xff] }
 0x479   :  { %10672 = vmatprep.subr.bf16.mxu0 %v14323_v40  ;;  %11164 = vmatprep.subr.bf16.mxu1 %v14325_v57  ;;  %v874_v37 = vld [vmem:[#allocation2 + $0x1370] sm:$0xff]  ;;  %v871_v40 = vld [vmem:[#allocation2 + $0x1358] sm:$0xff] }
 0x47a   :  { %v875_v57 = vld [vmem:[#allocation2 + $0x1378] sm:$0xff]  ;;  %v14371_v45 = vcombine.high %v870_v63, %v874_v37  ;;  %v14370_v43 = vcombine.low %v870_v63, %v874_v37 }
 0x47b   :  { %v14373_v4 = vcombine.high %v871_v40, %v875_v57  ;;  %v14372_v29 = vcombine.low %v871_v40, %v875_v57 }
 0x47c   :  { %10673 = vmatpush1.bf16.msra.mxu0 %v14322_v5  ;;  %11165 = vmatpush1.bf16.msra.mxu1 %v14324_v46  ;;  %v878_v5 = vld [vmem:[#allocation2 + $0x1390] sm:$0xff] }
 0x47d   :  { %10674 = vmatprep.subr.bf16.mxu0 %v14331_v25  ;;  %11166 = vmatprep.subr.bf16.mxu1 %v14333_v47  ;;  %v882_v46 = vld [vmem:[#allocation2 + $0x13b0] sm:$0xff]  ;;  %v879_v25 = vld [vmem:[#allocation2 + $0x1398] sm:$0xff] }
 0x47e   :  { %v883_v47 = vld [vmem:[#allocation2 + $0x13b8] sm:$0xff]  ;;  %v14379_v53 = vcombine.high %v878_v5, %v882_v46  ;;  %v14378_v55 = vcombine.low %v878_v5, %v882_v46 }
 0x47f   :  { %v14381_v9 = vcombine.high %v879_v25, %v883_v47  ;;  %v14380_v52 = vcombine.low %v879_v25, %v883_v47  ;;  %v926_v47 = vld [vmem:[#allocation2 + $0x1510] sm:$0xff] }
 0x480   :  { %10675 = vmatpush1.bf16.msra.mxu0 %v14330_v49  ;;  %11167 = vmatpush1.bf16.msra.mxu1 %v14332_v50  ;;  %v886_v49 = vld [vmem:[#allocation2 + $0x13d0] sm:$0xff] }
 0x481   :  { %10676 = vmatprep.subr.bf16.mxu0 %v14339_v14  ;;  %11168 = vmatprep.subr.bf16.mxu1 %v14341_v16  ;;  %v890_v50 = vld [vmem:[#allocation2 + $0x13f0] sm:$0xff]  ;;  %v887_v14 = vld [vmem:[#allocation2 + $0x13d8] sm:$0xff] }
 0x482   :  { %v891_v16 = vld [vmem:[#allocation2 + $0x13f8] sm:$0xff]  ;;  %v14387_v56 = vcombine.high %v886_v49, %v890_v50  ;;  %v14386_v61 = vcombine.low %v886_v49, %v890_v50 }
 0x483   :  { %v14389_v39 = vcombine.high %v887_v14, %v891_v16  ;;  %v14388_v11 = vcombine.low %v887_v14, %v891_v16  ;;  %v934_v14 = vld [vmem:[#allocation2 + $0x1550] sm:$0xff] }
 0x484   :  { %10677 = vmatpush1.bf16.msra.mxu0 %v14338_v36  ;;  %11169 = vmatpush1.bf16.msra.mxu1 %v14340_v54  ;;  %v894_v36 = vld [vmem:[#allocation2 + $0x1410] sm:$0xff] }
 0x485   :  { %10678 = vmatprep.subr.bf16.mxu0 %v14347_v58  ;;  %11170 = vmatprep.subr.bf16.mxu1 %v14349_v60  ;;  %v898_v54 = vld [vmem:[#allocation2 + $0x1430] sm:$0xff]  ;;  %v895_v58 = vld [vmem:[#allocation2 + $0x1418] sm:$0xff] }
 0x486   :  { %v899_v60 = vld [vmem:[#allocation2 + $0x1438] sm:$0xff]  ;;  %v14395_v3 = vcombine.high %v894_v36, %v898_v54  ;;  %v14394_v15 = vcombine.low %v894_v36, %v898_v54  ;;  %v938_v16 = vld [vmem:[#allocation2 + $0x1570] sm:$0xff] }
 0x487   :  { %v14397_v6 = vcombine.high %v895_v58, %v899_v60  ;;  %v14396_v59 = vcombine.low %v895_v58, %v899_v60  ;;  %v14435_v36 = vcombine.high %v934_v14, %v938_v16  ;;  %v942_v58 = vld [vmem:[#allocation2 + $0x1590] sm:$0xff] }
 0x488   :  { %10679 = vmatpush1.bf16.msra.mxu0 %v14346_v7  ;;  %11171 = vmatpush1.bf16.msra.mxu1 %v14348_v8  ;;  %v902_v7 = vld [vmem:[#allocation2 + $0x1450] sm:$0xff] }
 0x489   :  { %10680 = vmatprep.subr.bf16.mxu0 %v14355_v10  ;;  %11172 = vmatprep.subr.bf16.mxu1 %v14357_v18  ;;  %v906_v8 = vld [vmem:[#allocation2 + $0x1470] sm:$0xff]  ;;  %v903_v10 = vld [vmem:[#allocation2 + $0x1458] sm:$0xff] }
 0x48a   :  { %v907_v18 = vld [vmem:[#allocation2 + $0x1478] sm:$0xff]  ;;  %v14403_v21 = vcombine.high %v902_v7, %v906_v8  ;;  %v14402_v63 = vcombine.low %v902_v7, %v906_v8  ;;  %v946_v60 = vld [vmem:[#allocation2 + $0x15b0] sm:$0xff] }
 0x48b   :  { %v14405_v22 = vcombine.high %v903_v10, %v907_v18  ;;  %v14404_v37 = vcombine.low %v903_v10, %v907_v18  ;;  %v14443_v7 = vcombine.high %v942_v58, %v946_v60  ;;  %v950_v10 = vld [vmem:[#allocation2 + $0x15d0] sm:$0xff] }
 0x48c   :  { %10681 = vmatpush1.bf16.msra.mxu0 %v14354_v27  ;;  %11173 = vmatpush1.bf16.msra.mxu1 %v14356_v32  ;;  %v910_v27 = vld [vmem:[#allocation2 + $0x1490] sm:$0xff] }
 0x48d   :  { %10682 = vmatprep.subr.bf16.mxu0 %v14363_v34  ;;  %11174 = vmatprep.subr.bf16.mxu1 %v14365_v35  ;;  %v914_v32 = vld [vmem:[#allocation2 + $0x14b0] sm:$0xff]  ;;  %v911_v34 = vld [vmem:[#allocation2 + $0x1498] sm:$0xff] }
 0x48e   :  { %v915_v35 = vld [vmem:[#allocation2 + $0x14b8] sm:$0xff]  ;;  %v14411_v40 = vcombine.high %v910_v27, %v914_v32  ;;  %v14410_v5 = vcombine.low %v910_v27, %v914_v32  ;;  %v954_v18 = vld [vmem:[#allocation2 + $0x15f0] sm:$0xff] }
 0x48f   :  { %v14413_v57 = vcombine.high %v911_v34, %v915_v35  ;;  %v14451_v27 = vcombine.high %v950_v10, %v954_v18 }
 0x490   :  { %10683 = vmatpush1.bf16.msra.mxu0 %v14362_v62  ;;  %11175 = vmatpush1.bf16.msra.mxu1 %v14364_v42  ;;  %v918_v62 = vld [vmem:[#allocation2 + $0x14d0] sm:$0xff] }
 0x491   :  { %10684 = vmatprep.subr.bf16.mxu0 %v14371_v45  ;;  %11176 = vmatprep.subr.bf16.mxu1 %v14373_v4  ;;  %v922_v42 = vld [vmem:[#allocation2 + $0x14f0] sm:$0xff]  ;;  %v919_v45 = vld [vmem:[#allocation2 + $0x14d8] sm:$0xff] }
 0x492   :  { %v923_v4 = vld [vmem:[#allocation2 + $0x14f8] sm:$0xff]  ;;  %v14419_v46 = vcombine.high %v918_v62, %v922_v42 }
 0x493   :  { %v14421_v25 = vcombine.high %v919_v45, %v923_v4  ;;  %v14420_v49 = vcombine.low %v919_v45, %v923_v4  ;;  %v966_v45 = vld [vmem:[#allocation2 + $0x1650] sm:$0xff] }
 0x494   :  { %10685 = vmatpush1.bf16.msra.mxu0 %v14370_v43  ;;  %11177 = vmatpush1.bf16.msra.mxu1 %v14372_v29  ;;  %v930_v43 = vld [vmem:[#allocation2 + $0x1530] sm:$0xff]  ;;  %v927_v29 = vld [vmem:[#allocation2 + $0x1518] sm:$0xff] }
 0x495   :  { %10686 = vmatprep.subr.bf16.mxu0 %v14379_v53  ;;  %11178 = vmatprep.subr.bf16.mxu1 %v14381_v9  ;;  %v931_v53 = vld [vmem:[#allocation2 + $0x1538] sm:$0xff]  ;;  %v14418_v9 = vcombine.low %v918_v62, %v922_v42  ;;  %v14427_v50 = vcombine.high %v926_v47, %v930_v43  ;;  %v970_v4 = vld [vmem:[#allocation2 + $0x1670] sm:$0xff] }
 0x498   :  { %10687 = vmatpush1.bf16.msra.mxu0 %v14378_v55  ;;  %11179 = vmatpush1.bf16.msra.mxu1 %v14380_v52  ;;  %v935_v55 = vld [vmem:[#allocation2 + $0x1558] sm:$0xff] }
 0x499   :  { %10688 = vmatprep.subr.bf16.mxu0 %v14387_v56  ;;  %11180 = vmatprep.subr.bf16.mxu1 %v14389_v39  ;;  %v939_v52 = vld [vmem:[#allocation2 + $0x1578] sm:$0xff]  ;;  %v14426_v56 = vcombine.low %v926_v47, %v930_v43  ;;  %v14428_v39 = vcombine.low %v927_v29, %v931_v53  ;;  %v14467_v47 = vcombine.high %v966_v45, %v970_v4 }
 0x49a   :  { %v14437_v54 = vcombine.high %v935_v55, %v939_v52 }
 0x49c   :  { %10689 = vmatpush1.bf16.msra.mxu0 %v14386_v61  ;;  %11181 = vmatpush1.bf16.msra.mxu1 %v14388_v11  ;;  %v943_v61 = vld [vmem:[#allocation2 + $0x1598] sm:$0xff] }
 0x49d   :  { %10699 = vmatprep.subr.bf16.mxu0 %v14395_v3  ;;  %11191 = vmatprep.subr.bf16.mxu1 %v14397_v6  ;;  %v947_v11 = vld [vmem:[#allocation2 + $0x15b8] sm:$0xff]  ;;  %v14434_v3 = vcombine.low %v934_v14, %v938_v16  ;;  %v14436_v6 = vcombine.low %v935_v55, %v939_v52  ;;  %v982_v55 = vld [vmem:[#allocation2 + $0x16d0] sm:$0xff] }
 0x49e   :  { %v14445_v8 = vcombine.high %v943_v61, %v947_v11  ;;  %v986_v52 = vld [vmem:[#allocation2 + $0x16f0] sm:$0xff] }
 0x49f   :  { %10691 = vmatmul.mubr.bf16.vlgmr.msra.gmra.mrb[4].mxu0 %v16621_v0  ;;  %11183 = vmatmul.mubr.bf16.vlgmr.msra.gmra.mrb[4].mxu1 %v16621_v0  ;;  %v14412_v0 = vcombine.low %v911_v34, %v915_v35  ;;  %v958_v34 = vld [vmem:[#allocation2 + $0x1610] sm:$0xff] }
 0x4a0   :  { %10700 = vmatpush1.bf16.msra.mxu0 %v14394_v15  ;;  %11192 = vmatpush1.bf16.msra.mxu1 %v14396_v59  ;;  %v951_v15 = vld [vmem:[#allocation2 + $0x15d8] sm:$0xff]  ;;  %v962_v35 = vld [vmem:[#allocation2 + $0x1630] sm:$0xff] }
 0x4a1   :  { %10701 = vmatprep.subr.bf16.mxu0 %v14403_v21  ;;  %11193 = vmatprep.subr.bf16.mxu1 %v14405_v22  ;;  %v955_v59 = vld [vmem:[#allocation2 + $0x15f8] sm:$0xff]  ;;  %v14442_v21 = vcombine.low %v942_v58, %v946_v60  ;;  %v14444_v22 = vcombine.low %v943_v61, %v947_v11  ;;  %v14459_v62 = vcombine.high %v958_v34, %v962_v35  ;;  %v990_v61 = vld [vmem:[#allocation2 + $0x1710] sm:$0xff] }
 0x4a2   :  { %10731 = vmatprep.mubr.bf16.mxu0 %v16623_v12  ;;  %11223 = vmatprep.mubr.bf16.mxu1 %v16623_v12  ;;  %v14429_v12 = vcombine.high %v927_v29, %v931_v53  ;;  %v14453_v32 = vcombine.high %v951_v15, %v955_v59  ;;  %v974_v29 = vld [vmem:[#allocation2 + $0x1690] sm:$0xff]  ;;  %v14483_v58 = vcombine.high %v982_v55, %v986_v52 }
 0x4a3   :  { %v978_v53 = vld [vmem:[#allocation2 + $0x16b0] sm:$0xff] }
 0x4a4   :  { %10702 = vmatpush1.bf16.msra.mxu0 %v14402_v63  ;;  %11194 = vmatpush1.bf16.msra.mxu1 %v14404_v37  ;;  %v959_v63 = vld [vmem:[#allocation2 + $0x1618] sm:$0xff]  ;;  %v14475_v14 = vcombine.high %v974_v29, %v978_v53  ;;  %v994_v11 = vld [vmem:[#allocation2 + $0x1730] sm:$0xff] }
 0x4a5   :  { %10703 = vmatprep.subr.bf16.mxu0 %v14411_v40  ;;  %11195 = vmatprep.subr.bf16.mxu1 %v14413_v57  ;;  %v963_v37 = vld [vmem:[#allocation2 + $0x1638] sm:$0xff]  ;;  %v14450_v40 = vcombine.low %v950_v10, %v954_v18  ;;  %v14452_v57 = vcombine.low %v951_v15, %v955_v59  ;;  %v14491_v10 = vcombine.high %v990_v61, %v994_v11  ;;  %v998_v15 = vld [vmem:[#allocation2 + $0x1750] sm:$0xff] }
 0x4a6   :  { %v14461_v42 = vcombine.high %v959_v63, %v963_v37  ;;  %v1002_v59 = vld [vmem:[#allocation2 + $0x1770] sm:$0xff] }
 0x4a8   :  { %10704 = vmatpush1.bf16.msra.mxu0 %v14410_v5  ;;  %11196 = vmatpush1.bf16.msra.mxu1 %v14412_v0  ;;  %v967_v5 = vld [vmem:[#allocation2 + $0x1658] sm:$0xff] }
 0x4a9   :  { %10705 = vmatprep.subr.bf16.mxu0 %v14419_v46  ;;  %11197 = vmatprep.subr.bf16.mxu1 %v14421_v25  ;;  %v971_v0 = vld [vmem:[#allocation2 + $0x1678] sm:$0xff]  ;;  %v14458_v46 = vcombine.low %v958_v34, %v962_v35  ;;  %v14460_v25 = vcombine.low %v959_v63, %v963_v37  ;;  %v14499_v34 = vcombine.high %v998_v15, %v1002_v59  ;;  %v1006_v63 = vld [vmem:[#allocation2 + $0x1790] sm:$0xff] }
 0x4aa   :  { %v14469_v43 = vcombine.high %v967_v5, %v971_v0  ;;  %v1010_v37 = vld [vmem:[#allocation2 + $0x17b0] sm:$0xff] }
 0x4ac   :  { %10706 = vmatpush1.bf16.msra.mxu0 %v14418_v9  ;;  %11198 = vmatpush1.bf16.msra.mxu1 %v14420_v49  ;;  %v975_v9 = vld [vmem:[#allocation2 + $0x1698] sm:$0xff] }
 0x4ad   :  { %10707 = vmatprep.subr.bf16.mxu0 %v14427_v50  ;;  %11199 = vmatprep.subr.bf16.mxu1 %v14429_v12  ;;  %v979_v49 = vld [vmem:[#allocation2 + $0x16b8] sm:$0xff]  ;;  %v14466_v50 = vcombine.low %v966_v45, %v970_v4  ;;  %v14468_v12 = vcombine.low %v967_v5, %v971_v0  ;;  %v14507_v45 = vcombine.high %v1006_v63, %v1010_v37  ;;  %v1014_v5 = vld [vmem:[#allocation2 + $0x17d0] sm:$0xff] }
 0x4ae   :  { %v14477_v16 = vcombine.high %v975_v9, %v979_v49  ;;  %v1018_v0 = vld [vmem:[#allocation2 + $0x17f0] sm:$0xff] }
 0x4b0   :  { %10708 = vmatpush1.bf16.msra.mxu0 %v14426_v56  ;;  %11200 = vmatpush1.bf16.msra.mxu1 %v14428_v39  ;;  %v983_v56 = vld [vmem:[#allocation2 + $0x16d8] sm:$0xff] }
 0x4b1   :  { %10709 = vmatprep.subr.bf16.mxu0 %v14435_v36  ;;  %11201 = vmatprep.subr.bf16.mxu1 %v14437_v54  ;;  %v987_v39 = vld [vmem:[#allocation2 + $0x16f8] sm:$0xff]  ;;  %v14474_v36 = vcombine.low %v974_v29, %v978_v53  ;;  %v14476_v54 = vcombine.low %v975_v9, %v979_v49  ;;  %v14515_v29 = vcombine.high %v1014_v5, %v1018_v0  ;;  %v1022_v9 = vld [vmem:[#allocation2 + $0x1810] sm:$0xff] }
 0x4b2   :  { %v14485_v60 = vcombine.high %v983_v56, %v987_v39  ;;  %v1026_v49 = vld [vmem:[#allocation2 + $0x1830] sm:$0xff] }
 0x4b4   :  { %10710 = vmatpush1.bf16.msra.mxu0 %v14434_v3  ;;  %11202 = vmatpush1.bf16.msra.mxu1 %v14436_v6  ;;  %v991_v3 = vld [vmem:[#allocation2 + $0x1718] sm:$0xff] }
 0x4b5   :  { %10711 = vmatprep.subr.bf16.mxu0 %v14443_v7  ;;  %11203 = vmatprep.subr.bf16.mxu1 %v14445_v8  ;;  %v995_v6 = vld [vmem:[#allocation2 + $0x1738] sm:$0xff]  ;;  %v14482_v7 = vcombine.low %v982_v55, %v986_v52  ;;  %v14484_v8 = vcombine.low %v983_v56, %v987_v39  ;;  %v14523_v55 = vcombine.high %v1022_v9, %v1026_v49  ;;  %v1030_v56 = vld [vmem:[#allocation2 + $0x1850] sm:$0xff] }
 0x4b6   :  { %v14493_v18 = vcombine.high %v991_v3, %v995_v6  ;;  %v1034_v39 = vld [vmem:[#allocation2 + $0x1870] sm:$0xff] }
 0x4b8   :  { %10712 = vmatpush1.bf16.msra.mxu0 %v14442_v21  ;;  %11204 = vmatpush1.bf16.msra.mxu1 %v14444_v22  ;;  %v999_v21 = vld [vmem:[#allocation2 + $0x1758] sm:$0xff] }
 0x4b9   :  { %10713 = vmatprep.subr.bf16.mxu0 %v14451_v27  ;;  %11205 = vmatprep.subr.bf16.mxu1 %v14453_v32  ;;  %v1003_v22 = vld [vmem:[#allocation2 + $0x1778] sm:$0xff]  ;;  %v14490_v27 = vcombine.low %v990_v61, %v994_v11  ;;  %v14492_v32 = vcombine.low %v991_v3, %v995_v6  ;;  %v14531_v61 = vcombine.high %v1030_v56, %v1034_v39  ;;  %v1038_v3 = vld [vmem:[#allocation2 + $0x1890] sm:$0xff] }
 0x4ba   :  { %v14501_v35 = vcombine.high %v999_v21, %v1003_v22  ;;  %v1042_v6 = vld [vmem:[#allocation2 + $0x18b0] sm:$0xff] }
 0x4bc   :  { %10714 = vmatpush1.bf16.msra.mxu0 %v14450_v40  ;;  %11206 = vmatpush1.bf16.msra.mxu1 %v14452_v57  ;;  %v1007_v40 = vld [vmem:[#allocation2 + $0x1798] sm:$0xff] }
 0x4bd   :  { %10715 = vmatprep.subr.bf16.mxu0 %v14459_v62  ;;  %11207 = vmatprep.subr.bf16.mxu1 %v14461_v42  ;;  %v1011_v57 = vld [vmem:[#allocation2 + $0x17b8] sm:$0xff]  ;;  %v14498_v62 = vcombine.low %v998_v15, %v1002_v59  ;;  %v14500_v42 = vcombine.low %v999_v21, %v1003_v22  ;;  %v14539_v15 = vcombine.high %v1038_v3, %v1042_v6  ;;  %v1046_v21 = vld [vmem:[#allocation2 + $0x18d0] sm:$0xff] }
 0x4be   :  { %v14509_v4 = vcombine.high %v1007_v40, %v1011_v57  ;;  %v1050_v22 = vld [vmem:[#allocation2 + $0x18f0] sm:$0xff] }
 0x4c0   :  { %10716 = vmatpush1.bf16.msra.mxu0 %v14458_v46  ;;  %11208 = vmatpush1.bf16.msra.mxu1 %v14460_v25  ;;  %v1015_v46 = vld [vmem:[#allocation2 + $0x17d8] sm:$0xff] }
 0x4c1   :  { %10717 = vmatprep.subr.bf16.mxu0 %v14467_v47  ;;  %11209 = vmatprep.subr.bf16.mxu1 %v14469_v43  ;;  %v1019_v25 = vld [vmem:[#allocation2 + $0x17f8] sm:$0xff]  ;;  %v14506_v47 = vcombine.low %v1006_v63, %v1010_v37  ;;  %v14508_v43 = vcombine.low %v1007_v40, %v1011_v57  ;;  %v1054_v37 = vld [vmem:[#allocation2 + $0x1910] sm:$0xff] }
 0x4c2   :  { %v14517_v53 = vcombine.high %v1015_v46, %v1019_v25  ;;  %v1058_v40 = vld [vmem:[#allocation2 + $0x1930] sm:$0xff]  ;;  %v1055_v57 = vld [vmem:[#allocation2 + $0x1918] sm:$0xff] }
 0x4c4   :  { %10718 = vmatpush1.bf16.msra.mxu0 %v14466_v50  ;;  %11210 = vmatpush1.bf16.msra.mxu1 %v14468_v12  ;;  %v1023_v50 = vld [vmem:[#allocation2 + $0x1818] sm:$0xff] }
 0x4c5   :  { %10719 = vmatprep.subr.bf16.mxu0 %v14475_v14  ;;  %11211 = vmatprep.subr.bf16.mxu1 %v14477_v16  ;;  %v1027_v12 = vld [vmem:[#allocation2 + $0x1838] sm:$0xff]  ;;  %v14514_v14 = vcombine.low %v1014_v5, %v1018_v0  ;;  %v14516_v16 = vcombine.low %v1015_v46, %v1019_v25  ;;  %v1062_v5 = vld [vmem:[#allocation2 + $0x1950] sm:$0xff] }
 0x4c6   :  { %v14525_v52 = vcombine.high %v1023_v50, %v1027_v12  ;;  %v1066_v0 = vld [vmem:[#allocation2 + $0x1970] sm:$0xff]  ;;  %v1063_v46 = vld [vmem:[#allocation2 + $0x1958] sm:$0xff] }
 0x4c7   :  { %v1067_v25 = vld [vmem:[#allocation2 + $0x1978] sm:$0xff] }
 0x4c8   :  { %10720 = vmatpush1.bf16.msra.mxu0 %v14474_v36  ;;  %11212 = vmatpush1.bf16.msra.mxu1 %v14476_v54  ;;  %v1031_v36 = vld [vmem:[#allocation2 + $0x1858] sm:$0xff] }
 0x4c9   :  { %10721 = vmatprep.subr.bf16.mxu0 %v14483_v58  ;;  %11213 = vmatprep.subr.bf16.mxu1 %v14485_v60  ;;  %v1035_v54 = vld [vmem:[#allocation2 + $0x1878] sm:$0xff]  ;;  %v14522_v58 = vcombine.low %v1022_v9, %v1026_v49  ;;  %v14524_v60 = vcombine.low %v1023_v50, %v1027_v12  ;;  %v1070_v9 = vld [vmem:[#allocation2 + $0x1990] sm:$0xff] }
 0x4ca   :  { %v14533_v11 = vcombine.high %v1031_v36, %v1035_v54  ;;  %v1074_v49 = vld [vmem:[#allocation2 + $0x19b0] sm:$0xff]  ;;  %v1071_v50 = vld [vmem:[#allocation2 + $0x1998] sm:$0xff] }
 0x4cb   :  { %v1075_v12 = vld [vmem:[#allocation2 + $0x19b8] sm:$0xff] }
 0x4cc   :  { %10722 = vmatpush1.bf16.msra.mxu0 %v14482_v7  ;;  %11214 = vmatpush1.bf16.msra.mxu1 %v14484_v8  ;;  %v1039_v7 = vld [vmem:[#allocation2 + $0x1898] sm:$0xff] }
 0x4cd   :  { %10723 = vmatprep.subr.bf16.mxu0 %v14491_v10  ;;  %11215 = vmatprep.subr.bf16.mxu1 %v14493_v18  ;;  %v1043_v8 = vld [vmem:[#allocation2 + $0x18b8] sm:$0xff]  ;;  %v14530_v10 = vcombine.low %v1030_v56, %v1034_v39  ;;  %v14532_v18 = vcombine.low %v1031_v36, %v1035_v54  ;;  %v1078_v56 = vld [vmem:[#allocation2 + $0x19d0] sm:$0xff] }
 0x4ce   :  { %v14541_v59 = vcombine.high %v1039_v7, %v1043_v8  ;;  %v1082_v39 = vld [vmem:[#allocation2 + $0x19f0] sm:$0xff]  ;;  %v1079_v36 = vld [vmem:[#allocation2 + $0x19d8] sm:$0xff] }
 0x4cf   :  { %v1083_v54 = vld [vmem:[#allocation2 + $0x19f8] sm:$0xff] }
 0x4d0   :  { %10724 = vmatpush1.bf16.msra.mxu0 %v14490_v27  ;;  %11216 = vmatpush1.bf16.msra.mxu1 %v14492_v32  ;;  %v1047_v27 = vld [vmem:[#allocation2 + $0x18d8] sm:$0xff] }
 0x4d1   :  { %10725 = vmatprep.subr.bf16.mxu0 %v14499_v34  ;;  %11217 = vmatprep.subr.bf16.mxu1 %v14501_v35  ;;  %v1051_v32 = vld [vmem:[#allocation2 + $0x18f8] sm:$0xff]  ;;  %v14538_v34 = vcombine.low %v1038_v3, %v1042_v6  ;;  %v14547_v35 = vcombine.high %v1046_v21, %v1050_v22  ;;  %v1086_v3 = vld [vmem:[#allocation2 + $0x1a10] sm:$0xff] }
 0x4d2   :  { %v14549_v63 = vcombine.high %v1047_v27, %v1051_v32  ;;  %v1090_v6 = vld [vmem:[#allocation2 + $0x1a30] sm:$0xff] }
 0x4d4   :  { %10726 = vmatpush1.bf16.msra.mxu0 %v14498_v62  ;;  %11218 = vmatpush1.bf16.msra.mxu1 %v14500_v42  ;;  %v1059_v62 = vld [vmem:[#allocation2 + $0x1938] sm:$0xff]  ;;  %v14546_v42 = vcombine.low %v1046_v21, %v1050_v22  ;;  %v1094_v21 = vld [vmem:[#allocation2 + $0x1a50] sm:$0xff] }
 0x4d5   :  { %10727 = vmatprep.subr.bf16.mxu0 %v14507_v45  ;;  %11219 = vmatprep.subr.bf16.mxu1 %v14509_v4  ;;  %v14548_v45 = vcombine.low %v1047_v27, %v1051_v32  ;;  %v14555_v4 = vcombine.high %v1054_v37, %v1058_v40  ;;  %v1098_v22 = vld [vmem:[#allocation2 + $0x1a70] sm:$0xff]  ;;  %v1095_v27 = vld [vmem:[#allocation2 + $0x1a58] sm:$0xff] }
 0x4d6   :  { %v1099_v32 = vld [vmem:[#allocation2 + $0x1a78] sm:$0xff] }
 0x4d8   :  { %10728 = vmatpush1.bf16.msra.mxu0 %v14506_v47  ;;  %11220 = vmatpush1.bf16.msra.mxu1 %v14508_v43  ;;  %v14554_v47 = vcombine.low %v1054_v37, %v1058_v40  ;;  %v14556_v43 = vcombine.low %v1055_v57, %v1059_v62  ;;  %v1102_v37 = vld [vmem:[#allocation2 + $0x1a90] sm:$0xff] }
 0x4d9   :  { %10729 = vmatprep.subr.bf16.mxu0 %v14515_v29  ;;  %11221 = vmatprep.subr.bf16.mxu1 %v14517_v53  ;;  %v14563_v29 = vcombine.high %v1062_v5, %v1066_v0  ;;  %v14565_v53 = vcombine.high %v1063_v46, %v1067_v25  ;;  %v1106_v40 = vld [vmem:[#allocation2 + $0x1ab0] sm:$0xff] }
 0x4dc   :  { %10730 = vmatpush1.bf16.msra.mxu0 %v14514_v14  ;;  %11222 = vmatpush1.bf16.msra.mxu1 %v14516_v16  ;;  %v14562_v14 = vcombine.low %v1062_v5, %v1066_v0  ;;  %v14564_v16 = vcombine.low %v1063_v46, %v1067_v25  ;;  %v1110_v5 = vld [vmem:[#allocation2 + $0x1ad0] sm:$0xff]  ;;  %v1111_v46 = vld [vmem:[#allocation2 + $0x1ad8] sm:$0xff] }
 0x4dd   :  { %10740 = vmatprep.subr.bf16.mxu0 %v14523_v55  ;;  %11232 = vmatprep.subr.bf16.mxu1 %v14525_v52  ;;  %v14571_v55 = vcombine.high %v1070_v9, %v1074_v49  ;;  %v14573_v52 = vcombine.high %v1071_v50, %v1075_v12  ;;  %v1114_v0 = vld [vmem:[#allocation2 + $0x1af0] sm:$0xff]  ;;  %v1115_v25 = vld [vmem:[#allocation2 + $0x1af8] sm:$0xff] }
 0x4df   :  { %10732 = vmatmul.mubr.bf16.vlgmr.msra.gmra.mrb[4].mxu0 %v16642_v41  ;;  %11224 = vmatmul.mubr.bf16.vlgmr.msra.gmra.mrb[4].mxu1 %v16642_v41  ;;  %v14540_v41 = vcombine.low %v1039_v7, %v1043_v8  ;;  %v1087_v7 = vld [vmem:[#allocation2 + $0x1a18] sm:$0xff] }
 0x4e0   :  { %10741 = vmatpush1.bf16.msra.mxu0 %v14522_v58  ;;  %11233 = vmatpush1.bf16.msra.mxu1 %v14524_v60  ;;  %v14570_v58 = vcombine.low %v1070_v9, %v1074_v49  ;;  %v14572_v60 = vcombine.low %v1071_v50, %v1075_v12  ;;  %v1091_v8 = vld [vmem:[#allocation2 + $0x1a38] sm:$0xff]  ;;  %v1118_v9 = vld [vmem:[#allocation2 + $0x1b10] sm:$0xff] }
 0x4e1   :  { %10742 = vmatprep.subr.bf16.mxu0 %v14531_v61  ;;  %11234 = vmatprep.subr.bf16.mxu1 %v14533_v11  ;;  %v14579_v61 = vcombine.high %v1078_v56, %v1082_v39  ;;  %v14581_v11 = vcombine.high %v1079_v36, %v1083_v54  ;;  %v1122_v49 = vld [vmem:[#allocation2 + $0x1b30] sm:$0xff]  ;;  %v1119_v50 = vld [vmem:[#allocation2 + $0x1b18] sm:$0xff] }
 0x4e2   :  { %10772 = vmatprep.mubr.bf16.mxu0 %v16644_v51  ;;  %11264 = vmatprep.mubr.bf16.mxu1 %v16644_v51  ;;  %v14557_v51 = vcombine.high %v1055_v57, %v1059_v62  ;;  %v1103_v57 = vld [vmem:[#allocation2 + $0x1a98] sm:$0xff] }
 0x4e3   :  { %v1107_v62 = vld [vmem:[#allocation2 + $0x1ab8] sm:$0xff] }
 0x4e4   :  { %10743 = vmatpush1.bf16.msra.mxu0 %v14530_v10  ;;  %11235 = vmatpush1.bf16.msra.mxu1 %v14532_v18  ;;  %v14578_v10 = vcombine.low %v1078_v56, %v1082_v39  ;;  %v14580_v18 = vcombine.low %v1079_v36, %v1083_v54  ;;  %v1123_v12 = vld [vmem:[#allocation2 + $0x1b38] sm:$0xff]  ;;  %v1126_v56 = vld [vmem:[#allocation2 + $0x1b50] sm:$0xff] }
 0x4e5   :  { %10744 = vmatprep.subr.bf16.mxu0 %v14539_v15  ;;  %11236 = vmatprep.subr.bf16.mxu1 %v14541_v59  ;;  %v14587_v15 = vcombine.high %v1086_v3, %v1090_v6  ;;  %v14589_v59 = vcombine.high %v1087_v7, %v1091_v8  ;;  %v1130_v39 = vld [vmem:[#allocation2 + $0x1b70] sm:$0xff]  ;;  %v1127_v36 = vld [vmem:[#allocation2 + $0x1b58] sm:$0xff] }
 0x4e6   :  { %v1131_v54 = vld [vmem:[#allocation2 + $0x1b78] sm:$0xff] }
 0x4e8   :  { %10745 = vmatpush1.bf16.msra.mxu0 %v14538_v34  ;;  %11237 = vmatpush1.bf16.msra.mxu1 %v14540_v41  ;;  %v14586_v34 = vcombine.low %v1086_v3, %v1090_v6  ;;  %v14588_v41 = vcombine.low %v1087_v7, %v1091_v8  ;;  %v1134_v3 = vld [vmem:[#allocation2 + $0x1b90] sm:$0xff]  ;;  %v1135_v7 = vld [vmem:[#allocation2 + $0x1b98] sm:$0xff] }
 0x4e9   :  { %10746 = vmatprep.subr.bf16.mxu0 %v14547_v35  ;;  %11238 = vmatprep.subr.bf16.mxu1 %v14549_v63  ;;  %v14595_v35 = vcombine.high %v1094_v21, %v1098_v22  ;;  %v14597_v63 = vcombine.high %v1095_v27, %v1099_v32  ;;  %v1138_v6 = vld [vmem:[#allocation2 + $0x1bb0] sm:$0xff]  ;;  %v1139_v8 = vld [vmem:[#allocation2 + $0x1bb8] sm:$0xff] }
 0x4ec   :  { %10747 = vmatpush1.bf16.msra.mxu0 %v14546_v42  ;;  %11239 = vmatpush1.bf16.msra.mxu1 %v14548_v45  ;;  %v14594_v42 = vcombine.low %v1094_v21, %v1098_v22  ;;  %v14596_v45 = vcombine.low %v1095_v27, %v1099_v32  ;;  %v1142_v21 = vld [vmem:[#allocation2 + $0x1bd0] sm:$0xff]  ;;  %v1143_v27 = vld [vmem:[#allocation2 + $0x1bd8] sm:$0xff] }
 0x4ed   :  { %10748 = vmatprep.subr.bf16.mxu0 %v14555_v4  ;;  %11240 = vmatprep.subr.bf16.mxu1 %v14557_v51  ;;  %v14603_v4 = vcombine.high %v1102_v37, %v1106_v40  ;;  %v14605_v51 = vcombine.high %v1103_v57, %v1107_v62  ;;  %v1146_v22 = vld [vmem:[#allocation2 + $0x1bf0] sm:$0xff]  ;;  %v1147_v32 = vld [vmem:[#allocation2 + $0x1bf8] sm:$0xff] }
 0x4f0   :  { %10749 = vmatpush1.bf16.msra.mxu0 %v14554_v47  ;;  %11241 = vmatpush1.bf16.msra.mxu1 %v14556_v43  ;;  %v14602_v47 = vcombine.low %v1102_v37, %v1106_v40  ;;  %v14604_v43 = vcombine.low %v1103_v57, %v1107_v62  ;;  %v1150_v37 = vld [vmem:[#allocation2 + $0x1c10] sm:$0xff]  ;;  %v1151_v57 = vld [vmem:[#allocation2 + $0x1c18] sm:$0xff] }
 0x4f1   :  { %10750 = vmatprep.subr.bf16.mxu0 %v14563_v29  ;;  %11242 = vmatprep.subr.bf16.mxu1 %v14565_v53  ;;  %v14611_v29 = vcombine.high %v1110_v5, %v1114_v0  ;;  %v14613_v53 = vcombine.high %v1111_v46, %v1115_v25  ;;  %v1154_v40 = vld [vmem:[#allocation2 + $0x1c30] sm:$0xff]  ;;  %v1155_v62 = vld [vmem:[#allocation2 + $0x1c38] sm:$0xff] }
 0x4f4   :  { %10751 = vmatpush1.bf16.msra.mxu0 %v14562_v14  ;;  %11243 = vmatpush1.bf16.msra.mxu1 %v14564_v16  ;;  %v14610_v14 = vcombine.low %v1110_v5, %v1114_v0  ;;  %v14612_v16 = vcombine.low %v1111_v46, %v1115_v25  ;;  %v1158_v5 = vld [vmem:[#allocation2 + $0x1c50] sm:$0xff]  ;;  %v1159_v46 = vld [vmem:[#allocation2 + $0x1c58] sm:$0xff] }
 0x4f5   :  { %10752 = vmatprep.subr.bf16.mxu0 %v14571_v55  ;;  %11244 = vmatprep.subr.bf16.mxu1 %v14573_v52  ;;  %v14619_v55 = vcombine.high %v1118_v9, %v1122_v49  ;;  %v14621_v52 = vcombine.high %v1119_v50, %v1123_v12  ;;  %v1162_v0 = vld [vmem:[#allocation2 + $0x1c70] sm:$0xff]  ;;  %v1163_v25 = vld [vmem:[#allocation2 + $0x1c78] sm:$0xff] }
 0x4f8   :  { %10753 = vmatpush1.bf16.msra.mxu0 %v14570_v58  ;;  %11245 = vmatpush1.bf16.msra.mxu1 %v14572_v60  ;;  %v14618_v58 = vcombine.low %v1118_v9, %v1122_v49  ;;  %v14620_v60 = vcombine.low %v1119_v50, %v1123_v12  ;;  %v1166_v9 = vld [vmem:[#allocation2 + $0x1c90] sm:$0xff]  ;;  %v1167_v50 = vld [vmem:[#allocation2 + $0x1c98] sm:$0xff] }
 0x4f9   :  { %10754 = vmatprep.subr.bf16.mxu0 %v14579_v61  ;;  %11246 = vmatprep.subr.bf16.mxu1 %v14581_v11  ;;  %v14627_v61 = vcombine.high %v1126_v56, %v1130_v39  ;;  %v14629_v11 = vcombine.high %v1127_v36, %v1131_v54  ;;  %v1170_v49 = vld [vmem:[#allocation2 + $0x1cb0] sm:$0xff]  ;;  %v1171_v12 = vld [vmem:[#allocation2 + $0x1cb8] sm:$0xff] }
 0x4fc   :  { %10755 = vmatpush1.bf16.msra.mxu0 %v14578_v10  ;;  %11247 = vmatpush1.bf16.msra.mxu1 %v14580_v18  ;;  %v14626_v10 = vcombine.low %v1126_v56, %v1130_v39  ;;  %v14628_v18 = vcombine.low %v1127_v36, %v1131_v54  ;;  %v1174_v56 = vld [vmem:[#allocation2 + $0x1cd0] sm:$0xff]  ;;  %v1175_v36 = vld [vmem:[#allocation2 + $0x1cd8] sm:$0xff] }
 0x4fd   :  { %10756 = vmatprep.subr.bf16.mxu0 %v14587_v15  ;;  %11248 = vmatprep.subr.bf16.mxu1 %v14589_v59  ;;  %v14635_v15 = vcombine.high %v1134_v3, %v1138_v6  ;;  %v14637_v59 = vcombine.high %v1135_v7, %v1139_v8  ;;  %v1178_v39 = vld [vmem:[#allocation2 + $0x1cf0] sm:$0xff]  ;;  %v1179_v54 = vld [vmem:[#allocation2 + $0x1cf8] sm:$0xff] }
 0x500   :  { %10757 = vmatpush1.bf16.msra.mxu0 %v14586_v34  ;;  %11249 = vmatpush1.bf16.msra.mxu1 %v14588_v41  ;;  %v14634_v34 = vcombine.low %v1134_v3, %v1138_v6  ;;  %v14636_v41 = vcombine.low %v1135_v7, %v1139_v8  ;;  %v1186_v3 = vld [vmem:[#allocation2 + $0x1d30] sm:$0xff]  ;;  %v1183_v6 = vld [vmem:[#allocation2 + $0x1d18] sm:$0xff]  ;;  %v14674_v8 = vcombine.low %v1174_v56, %v1178_v39 }
 0x501   :  { %10758 = vmatprep.subr.bf16.mxu0 %v14595_v35  ;;  %11250 = vmatprep.subr.bf16.mxu1 %v14597_v63  ;;  %v14643_v35 = vcombine.high %v1142_v21, %v1146_v22  ;;  %v14645_v63 = vcombine.high %v1143_v27, %v1147_v32  ;;  %v1187_v7 = vld [vmem:[#allocation2 + $0x1d38] sm:$0xff] }
 0x504   :  { %10759 = vmatpush1.bf16.msra.mxu0 %v14594_v42  ;;  %11251 = vmatpush1.bf16.msra.mxu1 %v14596_v45  ;;  %v14642_v42 = vcombine.low %v1142_v21, %v1146_v22  ;;  %v14644_v45 = vcombine.low %v1143_v27, %v1147_v32  ;;  %v1191_v21 = vld [vmem:[#allocation2 + $0x1d58] sm:$0xff]  ;;  %v14684_v32 = vcombine.low %v1183_v6, %v1187_v7 }
 0x505   :  { %10760 = vmatprep.subr.bf16.mxu0 %v14603_v4  ;;  %11252 = vmatprep.subr.bf16.mxu1 %v14605_v51  ;;  %v14651_v4 = vcombine.high %v1150_v37, %v1154_v40  ;;  %v14653_v51 = vcombine.high %v1151_v57, %v1155_v62  ;;  %v1195_v22 = vld [vmem:[#allocation2 + $0x1d78] sm:$0xff] }
 0x508   :  { %10761 = vmatpush1.bf16.msra.mxu0 %v14602_v47  ;;  %11253 = vmatpush1.bf16.msra.mxu1 %v14604_v43  ;;  %v14650_v47 = vcombine.low %v1150_v37, %v1154_v40  ;;  %v14652_v43 = vcombine.low %v1151_v57, %v1155_v62  ;;  %v1199_v37 = vld [vmem:[#allocation2 + $0x1d98] sm:$0xff]  ;;  %v14692_v62 = vcombine.low %v1191_v21, %v1195_v22 }
 0x509   :  { %10762 = vmatprep.subr.bf16.mxu0 %v14611_v29  ;;  %11254 = vmatprep.subr.bf16.mxu1 %v14613_v53  ;;  %v14659_v29 = vcombine.high %v1158_v5, %v1162_v0  ;;  %v14661_v53 = vcombine.high %v1159_v46, %v1163_v25  ;;  %v1203_v40 = vld [vmem:[#allocation2 + $0x1db8] sm:$0xff] }
 0x50c   :  { %10763 = vmatpush1.bf16.msra.mxu0 %v14610_v14  ;;  %11255 = vmatpush1.bf16.msra.mxu1 %v14612_v16  ;;  %v14658_v14 = vcombine.low %v1158_v5, %v1162_v0  ;;  %v14660_v16 = vcombine.low %v1159_v46, %v1163_v25  ;;  %v1207_v5 = vld [vmem:[#allocation2 + $0x1dd8] sm:$0xff]  ;;  %v14700_v25 = vcombine.low %v1199_v37, %v1203_v40 }
 0x50d   :  { %10764 = vmatprep.subr.bf16.mxu0 %v14619_v55  ;;  %11256 = vmatprep.subr.bf16.mxu1 %v14621_v52  ;;  %v14667_v55 = vcombine.high %v1166_v9, %v1170_v49  ;;  %v14669_v52 = vcombine.high %v1167_v50, %v1171_v12  ;;  %v1211_v0 = vld [vmem:[#allocation2 + $0x1df8] sm:$0xff] }
 0x510   :  { %10765 = vmatpush1.bf16.msra.mxu0 %v14618_v58  ;;  %11257 = vmatpush1.bf16.msra.mxu1 %v14620_v60  ;;  %v14666_v58 = vcombine.low %v1166_v9, %v1170_v49  ;;  %v14675_v60 = vcombine.high %v1174_v56, %v1178_v39  ;;  %v1215_v9 = vld [vmem:[#allocation2 + $0x1e18] sm:$0xff] }
 0x511   :  { %10766 = vmatprep.subr.bf16.mxu0 %v14627_v61  ;;  %11258 = vmatprep.subr.bf16.mxu1 %v14629_v11  ;;  %v14677_v61 = vcombine.high %v1175_v36, %v1179_v54  ;;  %v1182_v11 = vld [vmem:[#allocation2 + $0x1d10] sm:$0xff]  ;;  %v1219_v49 = vld [vmem:[#allocation2 + $0x1e38] sm:$0xff] }
 0x512   :  { %v14682_v27 = vcombine.low %v1182_v11, %v1186_v3  ;;  %v1223_v56 = vld [vmem:[#allocation2 + $0x1e58] sm:$0xff] }
 0x513   :  { %v1227_v39 = vld [vmem:[#allocation2 + $0x1e78] sm:$0xff] }
 0x514   :  { %10767 = vmatpush1.bf16.msra.mxu0 %v14626_v10  ;;  %11259 = vmatpush1.bf16.msra.mxu1 %v14628_v18  ;;  %v14676_v10 = vcombine.low %v1175_v36, %v1179_v54  ;;  %v14683_v18 = vcombine.high %v1182_v11, %v1186_v3  ;;  %v14716_v54 = vcombine.low %v1215_v9, %v1219_v49  ;;  %v1231_v11 = vld [vmem:[#allocation2 + $0x1e98] sm:$0xff] }
 0x515   :  { %10768 = vmatprep.subr.bf16.mxu0 %v14635_v15  ;;  %11260 = vmatprep.subr.bf16.mxu1 %v14637_v59  ;;  %v1190_v15 = vld [vmem:[#allocation2 + $0x1d50] sm:$0xff]  ;;  %v1235_v3 = vld [vmem:[#allocation2 + $0x1eb8] sm:$0xff] }
 0x516   :  { %v1194_v59 = vld [vmem:[#allocation2 + $0x1d70] sm:$0xff] }
 0x517   :  { %v14690_v57 = vcombine.low %v1190_v15, %v1194_v59 }
 0x518   :  { %10769 = vmatpush1.bf16.msra.mxu0 %v14634_v34  ;;  %11261 = vmatpush1.bf16.msra.mxu1 %v14636_v41  ;;  %v14691_v34 = vcombine.high %v1190_v15, %v1194_v59  ;;  %v14693_v41 = vcombine.high %v1191_v21, %v1195_v22  ;;  %v1239_v15 = vld [vmem:[#allocation2 + $0x1ed8] sm:$0xff]  ;;  %v14732_v22 = vcombine.low %v1231_v11, %v1235_v3 }
 0x519   :  { %10770 = vmatprep.subr.bf16.mxu0 %v14643_v35  ;;  %11262 = vmatprep.subr.bf16.mxu1 %v14645_v63  ;;  %v1198_v35 = vld [vmem:[#allocation2 + $0x1d90] sm:$0xff]  ;;  %v1243_v59 = vld [vmem:[#allocation2 + $0x1ef8] sm:$0xff] }
 0x51a   :  { %v1202_v63 = vld [vmem:[#allocation2 + $0x1db0] sm:$0xff] }
 0x51b   :  { %v14698_v46 = vcombine.low %v1198_v35, %v1202_v63 }
 0x51c   :  { %10771 = vmatpush1.bf16.msra.mxu0 %v14642_v42  ;;  %11263 = vmatpush1.bf16.msra.mxu1 %v14644_v45  ;;  %v14699_v42 = vcombine.high %v1198_v35, %v1202_v63  ;;  %v14701_v45 = vcombine.high %v1199_v37, %v1203_v40  ;;  %v1247_v35 = vld [vmem:[#allocation2 + $0x1f18] sm:$0xff]  ;;  %v14740_v40 = vcombine.low %v1239_v15, %v1243_v59 }
 0x51d   :  { %10781 = vmatprep.subr.bf16.mxu0 %v14651_v4  ;;  %11273 = vmatprep.subr.bf16.mxu1 %v14653_v51  ;;  %v1206_v4 = vld [vmem:[#allocation2 + $0x1dd0] sm:$0xff]  ;;  %v1251_v63 = vld [vmem:[#allocation2 + $0x1f38] sm:$0xff] }
 0x51e   :  { %v1210_v51 = vld [vmem:[#allocation2 + $0x1df0] sm:$0xff] }
 0x51f   :  { %10773 = vmatmul.mubr.bf16.vlgmr.msra.gmra.mrb[4].mxu0 %v16659_v26  ;;  %11265 = vmatmul.mubr.bf16.vlgmr.msra.gmra.mrb[4].mxu1 %v16659_v26  ;;  %v14668_v26 = vcombine.low %v1167_v50, %v1171_v12  ;;  %v14706_v50 = vcombine.low %v1206_v4, %v1210_v51  ;;  %v14708_v12 = vcombine.low %v1207_v5, %v1211_v0 }
 0x520   :  { %10782 = vmatpush1.bf16.msra.mxu0 %v14650_v47  ;;  %11274 = vmatpush1.bf16.msra.mxu1 %v14652_v43  ;;  %v14707_v47 = vcombine.high %v1206_v4, %v1210_v51  ;;  %v14709_v43 = vcombine.high %v1207_v5, %v1211_v0  ;;  %v1255_v4 = vld [vmem:[#allocation2 + $0x1f58] sm:$0xff]  ;;  %v14748_v0 = vcombine.low %v1247_v35, %v1251_v63 }
 0x521   :  { %10783 = vmatprep.subr.bf16.mxu0 %v14659_v29  ;;  %11275 = vmatprep.subr.bf16.mxu1 %v14661_v53  ;;  %v1214_v29 = vld [vmem:[#allocation2 + $0x1e10] sm:$0xff]  ;;  %v1259_v51 = vld [vmem:[#allocation2 + $0x1f78] sm:$0xff] }
 0x522   :  { %10813 = vmatprep.mubr.bf16.mxu0 %v16661_v38  ;;  %11305 = vmatprep.mubr.bf16.mxu1 %v16661_v38  ;;  %v14685_v38 = vcombine.high %v1183_v6, %v1187_v7  ;;  %v1218_v53 = vld [vmem:[#allocation2 + $0x1e30] sm:$0xff]  ;;  %v14724_v7 = vcombine.low %v1223_v56, %v1227_v39 }
 0x523   :  { %v14714_v36 = vcombine.low %v1214_v29, %v1218_v53 }
 0x524   :  { %10784 = vmatpush1.bf16.msra.mxu0 %v14658_v14  ;;  %11276 = vmatpush1.bf16.msra.mxu1 %v14660_v16  ;;  %v14715_v14 = vcombine.high %v1214_v29, %v1218_v53  ;;  %v14717_v16 = vcombine.high %v1215_v9, %v1219_v49  ;;  %v1263_v29 = vld [vmem:[#allocation2 + $0x1f98] sm:$0xff]  ;;  %v14756_v49 = vcombine.low %v1255_v4, %v1259_v51 }
 0x525   :  { %10785 = vmatprep.subr.bf16.mxu0 %v14667_v55  ;;  %11277 = vmatprep.subr.bf16.mxu1 %v14669_v52  ;;  %v1222_v55 = vld [vmem:[#allocation2 + $0x1e50] sm:$0xff]  ;;  %v1267_v53 = vld [vmem:[#allocation2 + $0x1fb8] sm:$0xff] }
 0x526   :  { %v1226_v52 = vld [vmem:[#allocation2 + $0x1e70] sm:$0xff] }
 0x527   :  { %v14722_v6 = vcombine.low %v1222_v55, %v1226_v52 }
 0x528   :  { %10786 = vmatpush1.bf16.msra.mxu0 %v14666_v58  ;;  %11278 = vmatpush1.bf16.msra.mxu1 %v14668_v26  ;;  %v14723_v58 = vcombine.high %v1222_v55, %v1226_v52  ;;  %v14725_v26 = vcombine.high %v1223_v56, %v1227_v39  ;;  %v1271_v55 = vld [vmem:[#allocation2 + $0x1fd8] sm:$0xff]  ;;  %v14764_v39 = vcombine.low %v1263_v29, %v1267_v53 }
 0x529   :  { %10787 = vmatprep.subr.bf16.mxu0 %v14675_v60  ;;  %11279 = vmatprep.subr.bf16.mxu1 %v14677_v61  ;;  %v1230_v60 = vld [vmem:[#allocation2 + $0x1e90] sm:$0xff]  ;;  %v1275_v52 = vld [vmem:[#allocation2 + $0x1ff8] sm:$0xff] }
 0x52a   :  { %v1234_v61 = vld [vmem:[#allocation2 + $0x1eb0] sm:$0xff] }
 0x52b   :  { %v14730_v21 = vcombine.low %v1230_v60, %v1234_v61 }
 0x52c   :  { %10788 = vmatpush1.bf16.msra.mxu0 %v14674_v8  ;;  %11280 = vmatpush1.bf16.msra.mxu1 %v14676_v10  ;;  %v14731_v8 = vcombine.high %v1230_v60, %v1234_v61  ;;  %v14733_v10 = vcombine.high %v1231_v11, %v1235_v3  ;;  %v1279_v60 = vld [vmem:[#allocation2 + $0x2018] sm:$0xff]  ;;  %v14772_v3 = vcombine.low %v1271_v55, %v1275_v52 }
 0x52d   :  { %10789 = vmatprep.subr.bf16.mxu0 %v14683_v18  ;;  %11281 = vmatprep.subr.bf16.mxu1 %v14685_v38  ;;  %v1238_v18 = vld [vmem:[#allocation2 + $0x1ed0] sm:$0xff]  ;;  %v1283_v61 = vld [vmem:[#allocation2 + $0x2038] sm:$0xff] }
 0x52e   :  { %v1242_v38 = vld [vmem:[#allocation2 + $0x1ef0] sm:$0xff] }
 0x52f   :  { %v14738_v37 = vcombine.low %v1238_v18, %v1242_v38 }
 0x530   :  { %10790 = vmatpush1.bf16.msra.mxu0 %v14682_v27  ;;  %11282 = vmatpush1.bf16.msra.mxu1 %v14684_v32  ;;  %v14739_v27 = vcombine.high %v1238_v18, %v1242_v38  ;;  %v14741_v32 = vcombine.high %v1239_v15, %v1243_v59  ;;  %v1287_v18 = vld [vmem:[#allocation2 + $0x2058] sm:$0xff]  ;;  %v14780_v59 = vcombine.low %v1279_v60, %v1283_v61 }
 0x531   :  { %10791 = vmatprep.subr.bf16.mxu0 %v14691_v34  ;;  %11283 = vmatprep.subr.bf16.mxu1 %v14693_v41  ;;  %v1246_v34 = vld [vmem:[#allocation2 + $0x1f10] sm:$0xff]  ;;  %v1291_v38 = vld [vmem:[#allocation2 + $0x2078] sm:$0xff] }
 0x532   :  { %v1250_v41 = vld [vmem:[#allocation2 + $0x1f30] sm:$0xff] }
 0x533   :  { %v14746_v5 = vcombine.low %v1246_v34, %v1250_v41 }
 0x534   :  { %10792 = vmatpush1.bf16.msra.mxu0 %v14690_v57  ;;  %11284 = vmatpush1.bf16.msra.mxu1 %v14692_v62  ;;  %v14747_v57 = vcombine.high %v1246_v34, %v1250_v41  ;;  %v14749_v62 = vcombine.high %v1247_v35, %v1251_v63  ;;  %v1295_v34 = vld [vmem:[#allocation2 + $0x2098] sm:$0xff]  ;;  %v14788_v63 = vcombine.low %v1287_v18, %v1291_v38 }
 0x535   :  { %10793 = vmatprep.subr.bf16.mxu0 %v14699_v42  ;;  %11285 = vmatprep.subr.bf16.mxu1 %v14701_v45  ;;  %v1254_v42 = vld [vmem:[#allocation2 + $0x1f50] sm:$0xff]  ;;  %v1299_v41 = vld [vmem:[#allocation2 + $0x20b8] sm:$0xff] }
 0x536   :  { %v1258_v45 = vld [vmem:[#allocation2 + $0x1f70] sm:$0xff] }
 0x537   :  { %v14754_v9 = vcombine.low %v1254_v42, %v1258_v45 }
 0x538   :  { %10794 = vmatpush1.bf16.msra.mxu0 %v14698_v46  ;;  %11286 = vmatpush1.bf16.msra.mxu1 %v14700_v25  ;;  %v14755_v46 = vcombine.high %v1254_v42, %v1258_v45  ;;  %v14757_v25 = vcombine.high %v1255_v4, %v1259_v51  ;;  %v1303_v42 = vld [vmem:[#allocation2 + $0x20d8] sm:$0xff] }
 0x539   :  { %10795 = vmatprep.subr.bf16.mxu0 %v14707_v47  ;;  %11287 = vmatprep.subr.bf16.mxu1 %v14709_v43  ;;  %v1262_v47 = vld [vmem:[#allocation2 + $0x1f90] sm:$0xff]  ;;  %v1307_v45 = vld [vmem:[#allocation2 + $0x20f8] sm:$0xff] }
 0x53a   :  { %v1266_v43 = vld [vmem:[#allocation2 + $0x1fb0] sm:$0xff] }
 0x53b   :  { %v14762_v56 = vcombine.low %v1262_v47, %v1266_v43 }
 0x53c   :  { %10796 = vmatpush1.bf16.msra.mxu0 %v14706_v50  ;;  %11288 = vmatpush1.bf16.msra.mxu1 %v14708_v12  ;;  %v14763_v50 = vcombine.high %v1262_v47, %v1266_v43  ;;  %v14765_v12 = vcombine.high %v1263_v29, %v1267_v53  ;;  %v1315_v47 = vld [vmem:[#allocation2 + $0x2138] sm:$0xff]  ;;  %v14804_v29 = vcombine.low %v1303_v42, %v1307_v45 }
 0x53d   :  { %10797 = vmatprep.subr.bf16.mxu0 %v14715_v14  ;;  %11289 = vmatprep.subr.bf16.mxu1 %v14717_v16  ;;  %v1270_v14 = vld [vmem:[#allocation2 + $0x1fd0] sm:$0xff] }
 0x53e   :  { %v1274_v16 = vld [vmem:[#allocation2 + $0x1ff0] sm:$0xff] }
 0x53f   :  { %v14770_v11 = vcombine.low %v1270_v14, %v1274_v16 }
 0x540   :  { %10798 = vmatpush1.bf16.msra.mxu0 %v14714_v36  ;;  %11290 = vmatpush1.bf16.msra.mxu1 %v14716_v54  ;;  %v14771_v36 = vcombine.high %v1270_v14, %v1274_v16  ;;  %v14773_v54 = vcombine.high %v1271_v55, %v1275_v52 }
 0x541   :  { %10799 = vmatprep.subr.bf16.mxu0 %v14723_v58  ;;  %11291 = vmatprep.subr.bf16.mxu1 %v14725_v26  ;;  %v1278_v58 = vld [vmem:[#allocation2 + $0x2010] sm:$0xff] }
 0x542   :  { %v1282_v26 = vld [vmem:[#allocation2 + $0x2030] sm:$0xff] }
 0x543   :  { %v14778_v15 = vcombine.low %v1278_v58, %v1282_v26 }
 0x544   :  { %10800 = vmatpush1.bf16.msra.mxu0 %v14722_v6  ;;  %11292 = vmatpush1.bf16.msra.mxu1 %v14724_v7  ;;  %v14779_v6 = vcombine.high %v1278_v58, %v1282_v26  ;;  %v14781_v7 = vcombine.high %v1279_v60, %v1283_v61 }
 0x545   :  { %10801 = vmatprep.subr.bf16.mxu0 %v14731_v8  ;;  %11293 = vmatprep.subr.bf16.mxu1 %v14733_v10  ;;  %v1286_v8 = vld [vmem:[#allocation2 + $0x2050] sm:$0xff] }
 0x546   :  { %v1290_v10 = vld [vmem:[#allocation2 + $0x2070] sm:$0xff] }
 0x547   :  { %v14786_v35 = vcombine.low %v1286_v8, %v1290_v10 }
 0x548   :  { %10802 = vmatpush1.bf16.msra.mxu0 %v14730_v21  ;;  %11294 = vmatpush1.bf16.msra.mxu1 %v14732_v22  ;;  %v14787_v21 = vcombine.high %v1286_v8, %v1290_v10  ;;  %v14789_v22 = vcombine.high %v1287_v18, %v1291_v38 }
 0x549   :  { %10803 = vmatprep.subr.bf16.mxu0 %v14739_v27  ;;  %11295 = vmatprep.subr.bf16.mxu1 %v14741_v32  ;;  %v1294_v27 = vld [vmem:[#allocation2 + $0x2090] sm:$0xff] }
 0x54a   :  { %v1298_v32 = vld [vmem:[#allocation2 + $0x20b0] sm:$0xff] }
 0x54b   :  { %v14794_v4 = vcombine.low %v1294_v27, %v1298_v32 }
 0x54c   :  { %10804 = vmatpush1.bf16.msra.mxu0 %v14738_v37  ;;  %11296 = vmatpush1.bf16.msra.mxu1 %v14740_v40  ;;  %v14795_v37 = vcombine.high %v1294_v27, %v1298_v32  ;;  %v14797_v40 = vcombine.high %v1295_v34, %v1299_v41 }
 0x54d   :  { %10805 = vmatprep.subr.bf16.mxu0 %v14747_v57  ;;  %11297 = vmatprep.subr.bf16.mxu1 %v14749_v62  ;;  %v1302_v57 = vld [vmem:[#allocation2 + $0x20d0] sm:$0xff] }
 0x54e   :  { %v1306_v62 = vld [vmem:[#allocation2 + $0x20f0] sm:$0xff] }
 0x54f   :  { %v14803_v51 = vcombine.high %v1302_v57, %v1306_v62  ;;  %v14802_v43 = vcombine.low %v1302_v57, %v1306_v62 }
 0x550   :  { %10806 = vmatpush1.bf16.msra.mxu0 %v14746_v5  ;;  %11298 = vmatpush1.bf16.msra.mxu1 %v14748_v0  ;;  %v14805_v5 = vcombine.high %v1303_v42, %v1307_v45  ;;  %v1310_v0 = vld [vmem:[#allocation2 + $0x2110] sm:$0xff] }
 0x551   :  { %10807 = vmatprep.subr.bf16.mxu0 %v14755_v46  ;;  %11299 = vmatprep.subr.bf16.mxu1 %v14757_v25  ;;  %v1314_v46 = vld [vmem:[#allocation2 + $0x2130] sm:$0xff]  ;;  %v1311_v25 = vld [vmem:[#allocation2 + $0x2118] sm:$0xff] }
 0x552   :  { %v14811_v53 = vcombine.high %v1310_v0, %v1314_v46  ;;  %v14810_v14 = vcombine.low %v1310_v0, %v1314_v46  ;;  %v14812_v16 = vcombine.low %v1311_v25, %v1315_v47 }
 0x554   :  { %10808 = vmatpush1.bf16.msra.mxu0 %v14754_v9  ;;  %11300 = vmatpush1.bf16.msra.mxu1 %v14756_v49  ;;  %v1318_v9 = vld [vmem:[#allocation2 + $0x2150] sm:$0xff] }
 0x555   :  { %10809 = vmatprep.subr.bf16.mxu0 %v14763_v50  ;;  %11301 = vmatprep.subr.bf16.mxu1 %v14765_v12  ;;  %v1322_v49 = vld [vmem:[#allocation2 + $0x2170] sm:$0xff]  ;;  %v1319_v50 = vld [vmem:[#allocation2 + $0x2158] sm:$0xff] }
 0x556   :  { %v1323_v12 = vld [vmem:[#allocation2 + $0x2178] sm:$0xff]  ;;  %v14819_v55 = vcombine.high %v1318_v9, %v1322_v49  ;;  %v14818_v58 = vcombine.low %v1318_v9, %v1322_v49 }
 0x557   :  { %v14821_v52 = vcombine.high %v1319_v50, %v1323_v12  ;;  %v14820_v26 = vcombine.low %v1319_v50, %v1323_v12 }
 0x558   :  { %10810 = vmatpush1.bf16.msra.mxu0 %v14762_v56  ;;  %11302 = vmatpush1.bf16.msra.mxu1 %v14764_v39  ;;  %v1326_v56 = vld [vmem:[#allocation2 + $0x2190] sm:$0xff] }
 0x559   :  { %10811 = vmatprep.subr.bf16.mxu0 %v14771_v36  ;;  %11303 = vmatprep.subr.bf16.mxu1 %v14773_v54  ;;  %v1330_v39 = vld [vmem:[#allocation2 + $0x21b0] sm:$0xff]  ;;  %v1327_v36 = vld [vmem:[#allocation2 + $0x2198] sm:$0xff] }
 0x55a   :  { %v1331_v54 = vld [vmem:[#allocation2 + $0x21b8] sm:$0xff]  ;;  %v14827_v60 = vcombine.high %v1326_v56, %v1330_v39  ;;  %v14826_v8 = vcombine.low %v1326_v56, %v1330_v39 }
 0x55b   :  { %v14829_v61 = vcombine.high %v1327_v36, %v1331_v54  ;;  %v14828_v10 = vcombine.low %v1327_v36, %v1331_v54 }
 0x55c   :  { %10812 = vmatpush1.bf16.msra.mxu0 %v14770_v11  ;;  %11304 = vmatpush1.bf16.msra.mxu1 %v14772_v3  ;;  %v1334_v11 = vld [vmem:[#allocation2 + $0x21d0] sm:$0xff] }
 0x55d   :  { %10822 = vmatprep.subr.bf16.mxu0 %v14779_v6  ;;  %11314 = vmatprep.subr.bf16.mxu1 %v14781_v7  ;;  %v1338_v3 = vld [vmem:[#allocation2 + $0x21f0] sm:$0xff]  ;;  %v1335_v6 = vld [vmem:[#allocation2 + $0x21d8] sm:$0xff] }
 0x55e   :  { %v1339_v7 = vld [vmem:[#allocation2 + $0x21f8] sm:$0xff]  ;;  %v14835_v18 = vcombine.high %v1334_v11, %v1338_v3  ;;  %v14834_v27 = vcombine.low %v1334_v11, %v1338_v3 }
 0x55f   :  { %10814 = vmatmul.mubr.bf16.vlgmr.msra.gmra.mrb[4].mxu0 %v16680_v17  ;;  %11306 = vmatmul.mubr.bf16.vlgmr.msra.gmra.mrb[4].mxu1 %v16680_v17  ;;  %v14796_v17 = vcombine.low %v1295_v34, %v1299_v41  ;;  %v14837_v38 = vcombine.high %v1335_v6, %v1339_v7  ;;  %v14836_v32 = vcombine.low %v1335_v6, %v1339_v7 }
 0x560   :  { %10823 = vmatpush1.bf16.msra.mxu0 %v14778_v15  ;;  %11315 = vmatpush1.bf16.msra.mxu1 %v14780_v59  ;;  %v1342_v15 = vld [vmem:[#allocation2 + $0x2210] sm:$0xff] }
 0x561   :  { %10824 = vmatprep.subr.bf16.mxu0 %v14787_v21  ;;  %11316 = vmatprep.subr.bf16.mxu1 %v14789_v22  ;;  %v1346_v59 = vld [vmem:[#allocation2 + $0x2230] sm:$0xff]  ;;  %v1343_v21 = vld [vmem:[#allocation2 + $0x2218] sm:$0xff] }
 0x562   :  { %10854 = vmatprep.mubr.bf16.mxu0 %v16682_v31  ;;  %11346 = vmatprep.mubr.bf16.mxu1 %v16682_v31  ;;  %v14813_v31 = vcombine.high %v1311_v25, %v1315_v47  ;;  %v1347_v22 = vld [vmem:[#allocation2 + $0x2238] sm:$0xff]  ;;  %v14843_v34 = vcombine.high %v1342_v15, %v1346_v59  ;;  %v14842_v57 = vcombine.low %v1342_v15, %v1346_v59 }
 0x563   :  { %v14845_v41 = vcombine.high %v1343_v21, %v1347_v22  ;;  %v14844_v62 = vcombine.low %v1343_v21, %v1347_v22 }
 0x564   :  { %10825 = vmatpush1.bf16.msra.mxu0 %v14786_v35  ;;  %11317 = vmatpush1.bf16.msra.mxu1 %v14788_v63  ;;  %v1350_v35 = vld [vmem:[#allocation2 + $0x2250] sm:$0xff] }
 0x565   :  { %10826 = vmatprep.subr.bf16.mxu0 %v14795_v37  ;;  %11318 = vmatprep.subr.bf16.mxu1 %v14797_v40  ;;  %v1354_v63 = vld [vmem:[#allocation2 + $0x2270] sm:$0xff]  ;;  %v1351_v37 = vld [vmem:[#allocation2 + $0x2258] sm:$0xff] }
 0x566   :  { %v1355_v40 = vld [vmem:[#allocation2 + $0x2278] sm:$0xff]  ;;  %v14851_v42 = vcombine.high %v1350_v35, %v1354_v63  ;;  %v14850_v0 = vcombine.low %v1350_v35, %v1354_v63 }
 0x567   :  { %v14853_v45 = vcombine.high %v1351_v37, %v1355_v40  ;;  %v14852_v46 = vcombine.low %v1351_v37, %v1355_v40 }
 0x568   :  { %10827 = vmatpush1.bf16.msra.mxu0 %v14794_v4  ;;  %11319 = vmatpush1.bf16.msra.mxu1 %v14796_v17  ;;  %v1358_v4 = vld [vmem:[#allocation2 + $0x2290] sm:$0xff] }
 0x569   :  { %10828 = vmatprep.subr.bf16.mxu0 %v14803_v51  ;;  %11320 = vmatprep.subr.bf16.mxu1 %v14805_v5  ;;  %v1362_v17 = vld [vmem:[#allocation2 + $0x22b0] sm:$0xff]  ;;  %v1359_v51 = vld [vmem:[#allocation2 + $0x2298] sm:$0xff] }
 0x56a   :  { %v1363_v5 = vld [vmem:[#allocation2 + $0x22b8] sm:$0xff]  ;;  %v14859_v25 = vcombine.high %v1358_v4, %v1362_v17  ;;  %v14858_v9 = vcombine.low %v1358_v4, %v1362_v17 }
 0x56b   :  { %v14861_v47 = vcombine.high %v1359_v51, %v1363_v5  ;;  %v14860_v49 = vcombine.low %v1359_v51, %v1363_v5 }
 0x56c   :  { %10829 = vmatpush1.bf16.msra.mxu0 %v14802_v43  ;;  %11321 = vmatpush1.bf16.msra.mxu1 %v14804_v29  ;;  %v1366_v43 = vld [vmem:[#allocation2 + $0x22d0] sm:$0xff] }
 0x56d   :  { %10830 = vmatprep.subr.bf16.mxu0 %v14811_v53  ;;  %11322 = vmatprep.subr.bf16.mxu1 %v14813_v31  ;;  %v1370_v29 = vld [vmem:[#allocation2 + $0x22f0] sm:$0xff]  ;;  %v1367_v53 = vld [vmem:[#allocation2 + $0x22d8] sm:$0xff] }
 0x56e   :  { %v1371_v31 = vld [vmem:[#allocation2 + $0x22f8] sm:$0xff]  ;;  %v14867_v50 = vcombine.high %v1366_v43, %v1370_v29  ;;  %v14866_v56 = vcombine.low %v1366_v43, %v1370_v29 }
 0x56f   :  { %v14869_v12 = vcombine.high %v1367_v53, %v1371_v31  ;;  %v14868_v39 = vcombine.low %v1367_v53, %v1371_v31 }
 0x570   :  { %10831 = vmatpush1.bf16.msra.mxu0 %v14810_v14  ;;  %11323 = vmatpush1.bf16.msra.mxu1 %v14812_v16  ;;  %v1374_v14 = vld [vmem:[#allocation2 + $0x2310] sm:$0xff] }
 0x571   :  { %10832 = vmatprep.subr.bf16.mxu0 %v14819_v55  ;;  %11324 = vmatprep.subr.bf16.mxu1 %v14821_v52  ;;  %v1378_v16 = vld [vmem:[#allocation2 + $0x2330] sm:$0xff]  ;;  %v1375_v55 = vld [vmem:[#allocation2 + $0x2318] sm:$0xff] }
 0x572   :  { %v1379_v52 = vld [vmem:[#allocation2 + $0x2338] sm:$0xff]  ;;  %v14875_v36 = vcombine.high %v1374_v14, %v1378_v16  ;;  %v14874_v11 = vcombine.low %v1374_v14, %v1378_v16 }
 0x573   :  { %v14877_v54 = vcombine.high %v1375_v55, %v1379_v52  ;;  %v14876_v3 = vcombine.low %v1375_v55, %v1379_v52 }
 0x574   :  { %10833 = vmatpush1.bf16.msra.mxu0 %v14818_v58  ;;  %11325 = vmatpush1.bf16.msra.mxu1 %v14820_v26  ;;  %v1382_v58 = vld [vmem:[#allocation2 + $0x2350] sm:$0xff] }
 0x575   :  { %10834 = vmatprep.subr.bf16.mxu0 %v14827_v60  ;;  %11326 = vmatprep.subr.bf16.mxu1 %v14829_v61  ;;  %v1386_v26 = vld [vmem:[#allocation2 + $0x2370] sm:$0xff]  ;;  %v1383_v60 = vld [vmem:[#allocation2 + $0x2358] sm:$0xff] }
 0x576   :  { %v1387_v61 = vld [vmem:[#allocation2 + $0x2378] sm:$0xff]  ;;  %v14883_v6 = vcombine.high %v1382_v58, %v1386_v26  ;;  %v14882_v15 = vcombine.low %v1382_v58, %v1386_v26 }
 0x577   :  { %v14885_v7 = vcombine.high %v1383_v60, %v1387_v61  ;;  %v14884_v59 = vcombine.low %v1383_v60, %v1387_v61  ;;  %v1438_v61 = vld [vmem:[#allocation2 + $0x2510] sm:$0xff] }
 0x578   :  { %10835 = vmatpush1.bf16.msra.mxu0 %v14826_v8  ;;  %11327 = vmatpush1.bf16.msra.mxu1 %v14828_v10  ;;  %v1390_v8 = vld [vmem:[#allocation2 + $0x2390] sm:$0xff] }
 0x579   :  { %10836 = vmatprep.subr.bf16.mxu0 %v14835_v18  ;;  %11328 = vmatprep.subr.bf16.mxu1 %v14837_v38  ;;  %v1394_v10 = vld [vmem:[#allocation2 + $0x23b0] sm:$0xff]  ;;  %v1391_v18 = vld [vmem:[#allocation2 + $0x2398] sm:$0xff] }
 0x57a   :  { %v1395_v38 = vld [vmem:[#allocation2 + $0x23b8] sm:$0xff]  ;;  %v14891_v21 = vcombine.high %v1390_v8, %v1394_v10  ;;  %v14890_v35 = vcombine.low %v1390_v8, %v1394_v10 }
 0x57b   :  { %v14893_v22 = vcombine.high %v1391_v18, %v1395_v38  ;;  %v14892_v63 = vcombine.low %v1391_v18, %v1395_v38  ;;  %v1446_v18 = vld [vmem:[#allocation2 + $0x2550] sm:$0xff] }
 0x57c   :  { %10837 = vmatpush1.bf16.msra.mxu0 %v14834_v27  ;;  %11329 = vmatpush1.bf16.msra.mxu1 %v14836_v32  ;;  %v1398_v27 = vld [vmem:[#allocation2 + $0x23d0] sm:$0xff] }
 0x57d   :  { %10838 = vmatprep.subr.bf16.mxu0 %v14843_v34  ;;  %11330 = vmatprep.subr.bf16.mxu1 %v14845_v41  ;;  %v1402_v32 = vld [vmem:[#allocation2 + $0x23f0] sm:$0xff]  ;;  %v1399_v34 = vld [vmem:[#allocation2 + $0x23d8] sm:$0xff] }
 0x57e   :  { %v1403_v41 = vld [vmem:[#allocation2 + $0x23f8] sm:$0xff]  ;;  %v14899_v37 = vcombine.high %v1398_v27, %v1402_v32  ;;  %v14898_v4 = vcombine.low %v1398_v27, %v1402_v32  ;;  %v1450_v38 = vld [vmem:[#allocation2 + $0x2570] sm:$0xff] }
 0x57f   :  { %v14901_v40 = vcombine.high %v1399_v34, %v1403_v41  ;;  %v14900_v17 = vcombine.low %v1399_v34, %v1403_v41  ;;  %v14947_v27 = vcombine.high %v1446_v18, %v1450_v38  ;;  %v1454_v34 = vld [vmem:[#allocation2 + $0x2590] sm:$0xff] }
 0x580   :  { %10839 = vmatpush1.bf16.msra.mxu0 %v14842_v57  ;;  %11331 = vmatpush1.bf16.msra.mxu1 %v14844_v62  ;;  %v1406_v57 = vld [vmem:[#allocation2 + $0x2410] sm:$0xff] }
 0x581   :  { %10840 = vmatprep.subr.bf16.mxu0 %v14851_v42  ;;  %11332 = vmatprep.subr.bf16.mxu1 %v14853_v45  ;;  %v1410_v62 = vld [vmem:[#allocation2 + $0x2430] sm:$0xff]  ;;  %v1407_v42 = vld [vmem:[#allocation2 + $0x2418] sm:$0xff] }
 0x582   :  { %v1411_v45 = vld [vmem:[#allocation2 + $0x2438] sm:$0xff]  ;;  %v14907_v51 = vcombine.high %v1406_v57, %v1410_v62  ;;  %v14906_v43 = vcombine.low %v1406_v57, %v1410_v62  ;;  %v1458_v41 = vld [vmem:[#allocation2 + $0x25b0] sm:$0xff] }
 0x583   :  { %v14909_v5 = vcombine.high %v1407_v42, %v1411_v45  ;;  %v14908_v29 = vcombine.low %v1407_v42, %v1411_v45  ;;  %v14955_v57 = vcombine.high %v1454_v34, %v1458_v41  ;;  %v1462_v42 = vld [vmem:[#allocation2 + $0x25d0] sm:$0xff] }
 0x584   :  { %10841 = vmatpush1.bf16.msra.mxu0 %v14850_v0  ;;  %11333 = vmatpush1.bf16.msra.mxu1 %v14852_v46  ;;  %v1414_v0 = vld [vmem:[#allocation2 + $0x2450] sm:$0xff] }
 0x585   :  { %10842 = vmatprep.subr.bf16.mxu0 %v14859_v25  ;;  %11334 = vmatprep.subr.bf16.mxu1 %v14861_v47  ;;  %v1418_v46 = vld [vmem:[#allocation2 + $0x2470] sm:$0xff]  ;;  %v1415_v25 = vld [vmem:[#allocation2 + $0x2458] sm:$0xff] }
 0x586   :  { %v1419_v47 = vld [vmem:[#allocation2 + $0x2478] sm:$0xff]  ;;  %v14915_v53 = vcombine.high %v1414_v0, %v1418_v46  ;;  %v14914_v14 = vcombine.low %v1414_v0, %v1418_v46  ;;  %v1466_v45 = vld [vmem:[#allocation2 + $0x25f0] sm:$0xff] }
 0x587   :  { %v14917_v31 = vcombine.high %v1415_v25, %v1419_v47  ;;  %v14916_v16 = vcombine.low %v1415_v25, %v1419_v47  ;;  %v14963_v0 = vcombine.high %v1462_v42, %v1466_v45  ;;  %v1470_v25 = vld [vmem:[#allocation2 + $0x2610] sm:$0xff] }
 0x588   :  { %10843 = vmatpush1.bf16.msra.mxu0 %v14858_v9  ;;  %11335 = vmatpush1.bf16.msra.mxu1 %v14860_v49  ;;  %v1422_v9 = vld [vmem:[#allocation2 + $0x2490] sm:$0xff] }
 0x589   :  { %10844 = vmatprep.subr.bf16.mxu0 %v14867_v50  ;;  %11336 = vmatprep.subr.bf16.mxu1 %v14869_v12  ;;  %v1426_v49 = vld [vmem:[#allocation2 + $0x24b0] sm:$0xff]  ;;  %v1423_v50 = vld [vmem:[#allocation2 + $0x2498] sm:$0xff] }
 0x58a   :  { %v1427_v12 = vld [vmem:[#allocation2 + $0x24b8] sm:$0xff]  ;;  %v14923_v55 = vcombine.high %v1422_v9, %v1426_v49  ;;  %v14922_v58 = vcombine.low %v1422_v9, %v1426_v49  ;;  %v1474_v47 = vld [vmem:[#allocation2 + $0x2630] sm:$0xff] }
 0x58b   :  { %v14925_v52 = vcombine.high %v1423_v50, %v1427_v12  ;;  %v14971_v9 = vcombine.high %v1470_v25, %v1474_v47 }
 0x58c   :  { %10845 = vmatpush1.bf16.msra.mxu0 %v14866_v56  ;;  %11337 = vmatpush1.bf16.msra.mxu1 %v14868_v39  ;;  %v1430_v56 = vld [vmem:[#allocation2 + $0x24d0] sm:$0xff] }
 0x58d   :  { %10846 = vmatprep.subr.bf16.mxu0 %v14875_v36  ;;  %11338 = vmatprep.subr.bf16.mxu1 %v14877_v54  ;;  %v1434_v39 = vld [vmem:[#allocation2 + $0x24f0] sm:$0xff]  ;;  %v1431_v36 = vld [vmem:[#allocation2 + $0x24d8] sm:$0xff] }
 0x58e   :  { %v1435_v54 = vld [vmem:[#allocation2 + $0x24f8] sm:$0xff]  ;;  %v14931_v26 = vcombine.high %v1430_v56, %v1434_v39 }
 0x58f   :  { %v14933_v60 = vcombine.high %v1431_v36, %v1435_v54  ;;  %v14932_v8 = vcombine.low %v1431_v36, %v1435_v54  ;;  %v1486_v36 = vld [vmem:[#allocation2 + $0x2690] sm:$0xff] }
 0x590   :  { %10847 = vmatpush1.bf16.msra.mxu0 %v14874_v11  ;;  %11339 = vmatpush1.bf16.msra.mxu1 %v14876_v3  ;;  %v1442_v11 = vld [vmem:[#allocation2 + $0x2530] sm:$0xff]  ;;  %v1439_v3 = vld [vmem:[#allocation2 + $0x2518] sm:$0xff] }
 0x591   :  { %10848 = vmatprep.subr.bf16.mxu0 %v14883_v6  ;;  %11340 = vmatprep.subr.bf16.mxu1 %v14885_v7  ;;  %v1443_v6 = vld [vmem:[#allocation2 + $0x2538] sm:$0xff]  ;;  %v14930_v7 = vcombine.low %v1430_v56, %v1434_v39  ;;  %v14939_v10 = vcombine.high %v1438_v61, %v1442_v11  ;;  %v1490_v54 = vld [vmem:[#allocation2 + $0x26b0] sm:$0xff] }
 0x594   :  { %10849 = vmatpush1.bf16.msra.mxu0 %v14882_v15  ;;  %11341 = vmatpush1.bf16.msra.mxu1 %v14884_v59  ;;  %v1447_v15 = vld [vmem:[#allocation2 + $0x2558] sm:$0xff] }
 0x595   :  { %10850 = vmatprep.subr.bf16.mxu0 %v14891_v21  ;;  %11342 = vmatprep.subr.bf16.mxu1 %v14893_v22  ;;  %v1451_v59 = vld [vmem:[#allocation2 + $0x2578] sm:$0xff]  ;;  %v14938_v21 = vcombine.low %v1438_v61, %v1442_v11  ;;  %v14940_v22 = vcombine.low %v1439_v3, %v1443_v6  ;;  %v14987_v61 = vcombine.high %v1486_v36, %v1490_v54 }
 0x596   :  { %v14949_v32 = vcombine.high %v1447_v15, %v1451_v59 }
 0x598   :  { %10851 = vmatpush1.bf16.msra.mxu0 %v14890_v35  ;;  %11343 = vmatpush1.bf16.msra.mxu1 %v14892_v63  ;;  %v1455_v35 = vld [vmem:[#allocation2 + $0x2598] sm:$0xff] }
 0x599   :  { %10852 = vmatprep.subr.bf16.mxu0 %v14899_v37  ;;  %11344 = vmatprep.subr.bf16.mxu1 %v14901_v40  ;;  %v1459_v63 = vld [vmem:[#allocation2 + $0x25b8] sm:$0xff]  ;;  %v14946_v37 = vcombine.low %v1446_v18, %v1450_v38  ;;  %v14948_v40 = vcombine.low %v1447_v15, %v1451_v59  ;;  %v1502_v15 = vld [vmem:[#allocation2 + $0x2710] sm:$0xff] }
 0x59a   :  { %v14957_v62 = vcombine.high %v1455_v35, %v1459_v63  ;;  %v1506_v59 = vld [vmem:[#allocation2 + $0x2730] sm:$0xff] }
 0x59c   :  { %10853 = vmatpush1.bf16.msra.mxu0 %v14898_v4  ;;  %11345 = vmatpush1.bf16.msra.mxu1 %v14900_v17  ;;  %v1463_v4 = vld [vmem:[#allocation2 + $0x25d8] sm:$0xff] }
 0x59d   :  { %10863 = vmatprep.subr.bf16.mxu0 %v14907_v51  ;;  %11355 = vmatprep.subr.bf16.mxu1 %v14909_v5  ;;  %v1467_v17 = vld [vmem:[#allocation2 + $0x25f8] sm:$0xff]  ;;  %v14954_v51 = vcombine.low %v1454_v34, %v1458_v41  ;;  %v14956_v5 = vcombine.low %v1455_v35, %v1459_v63  ;;  %v15003_v34 = vcombine.high %v1502_v15, %v1506_v59  ;;  %v1510_v35 = vld [vmem:[#allocation2 + $0x2750] sm:$0xff] }
 0x59e   :  { %v14965_v46 = vcombine.high %v1463_v4, %v1467_v17  ;;  %v1514_v63 = vld [vmem:[#allocation2 + $0x2770] sm:$0xff] }
 0x59f   :  { %10855 = vmatmul.mubr.bf16.vlgmr.msra.gmra.mrb[4].mxu0 %v16697_v19  ;;  %11347 = vmatmul.mubr.bf16.vlgmr.msra.gmra.mrb[4].mxu1 %v16697_v19  ;;  %v14924_v19 = vcombine.low %v1423_v50, %v1427_v12  ;;  %v1478_v50 = vld [vmem:[#allocation2 + $0x2650] sm:$0xff] }
 0x5a0   :  { %10864 = vmatpush1.bf16.msra.mxu0 %v14906_v43  ;;  %11356 = vmatpush1.bf16.msra.mxu1 %v14908_v29  ;;  %v1471_v43 = vld [vmem:[#allocation2 + $0x2618] sm:$0xff]  ;;  %v1482_v12 = vld [vmem:[#allocation2 + $0x2670] sm:$0xff] }
 0x5a1   :  { %10865 = vmatprep.subr.bf16.mxu0 %v14915_v53  ;;  %11357 = vmatprep.subr.bf16.mxu1 %v14917_v31  ;;  %v1475_v29 = vld [vmem:[#allocation2 + $0x2638] sm:$0xff]  ;;  %v14962_v53 = vcombine.low %v1462_v42, %v1466_v45  ;;  %v14964_v31 = vcombine.low %v1463_v4, %v1467_v17  ;;  %v14979_v56 = vcombine.high %v1478_v50, %v1482_v12  ;;  %v1518_v4 = vld [vmem:[#allocation2 + $0x2790] sm:$0xff] }
 0x5a2   :  { %10895 = vmatprep.mubr.bf16.mxu0 %v16699_v33  ;;  %11387 = vmatprep.mubr.bf16.mxu1 %v16699_v33  ;;  %v14941_v33 = vcombine.high %v1439_v3, %v1443_v6  ;;  %v14973_v49 = vcombine.high %v1471_v43, %v1475_v29  ;;  %v1494_v3 = vld [vmem:[#allocation2 + $0x26d0] sm:$0xff]  ;;  %v15011_v42 = vcombine.high %v1510_v35, %v1514_v63 }
 0x5a3   :  { %v1498_v6 = vld [vmem:[#allocation2 + $0x26f0] sm:$0xff] }
 0x5a4   :  { %10866 = vmatpush1.bf16.msra.mxu0 %v14914_v14  ;;  %11358 = vmatpush1.bf16.msra.mxu1 %v14916_v16  ;;  %v1479_v14 = vld [vmem:[#allocation2 + $0x2658] sm:$0xff]  ;;  %v14995_v18 = vcombine.high %v1494_v3, %v1498_v6  ;;  %v1522_v17 = vld [vmem:[#allocation2 + $0x27b0] sm:$0xff] }
 0x5a5   :  { %10867 = vmatprep.subr.bf16.mxu0 %v14923_v55  ;;  %11359 = vmatprep.subr.bf16.mxu1 %v14925_v52  ;;  %v1483_v16 = vld [vmem:[#allocation2 + $0x2678] sm:$0xff]  ;;  %v14970_v55 = vcombine.low %v1470_v25, %v1474_v47  ;;  %v14972_v52 = vcombine.low %v1471_v43, %v1475_v29  ;;  %v15019_v25 = vcombine.high %v1518_v4, %v1522_v17  ;;  %v1526_v43 = vld [vmem:[#allocation2 + $0x27d0] sm:$0xff] }
 0x5a6   :  { %v14981_v39 = vcombine.high %v1479_v14, %v1483_v16  ;;  %v1530_v29 = vld [vmem:[#allocation2 + $0x27f0] sm:$0xff] }
 0x5a8   :  { %10868 = vmatpush1.bf16.msra.mxu0 %v14922_v58  ;;  %11360 = vmatpush1.bf16.msra.mxu1 %v14924_v19  ;;  %v1487_v58 = vld [vmem:[#allocation2 + $0x2698] sm:$0xff] }
 0x5a9   :  { %10869 = vmatprep.subr.bf16.mxu0 %v14931_v26  ;;  %11361 = vmatprep.subr.bf16.mxu1 %v14933_v60  ;;  %v1491_v19 = vld [vmem:[#allocation2 + $0x26b8] sm:$0xff]  ;;  %v14978_v26 = vcombine.low %v1478_v50, %v1482_v12  ;;  %v14980_v60 = vcombine.low %v1479_v14, %v1483_v16  ;;  %v15027_v50 = vcombine.high %v1526_v43, %v1530_v29  ;;  %v1534_v14 = vld [vmem:[#allocation2 + $0x2810] sm:$0xff] }
 0x5aa   :  { %v14989_v11 = vcombine.high %v1487_v58, %v1491_v19  ;;  %v1538_v16 = vld [vmem:[#allocation2 + $0x2830] sm:$0xff] }
 0x5ac   :  { %10870 = vmatpush1.bf16.msra.mxu0 %v14930_v7  ;;  %11362 = vmatpush1.bf16.msra.mxu1 %v14932_v8  ;;  %v1495_v7 = vld [vmem:[#allocation2 + $0x26d8] sm:$0xff] }
 0x5ad   :  { %10871 = vmatprep.subr.bf16.mxu0 %v14939_v10  ;;  %11363 = vmatprep.subr.bf16.mxu1 %v14941_v33  ;;  %v1499_v8 = vld [vmem:[#allocation2 + $0x26f8] sm:$0xff]  ;;  %v14986_v10 = vcombine.low %v1486_v36, %v1490_v54  ;;  %v14988_v33 = vcombine.low %v1487_v58, %v1491_v19  ;;  %v15035_v36 = vcombine.high %v1534_v14, %v1538_v16  ;;  %v1542_v58 = vld [vmem:[#allocation2 + $0x2850] sm:$0xff] }
 0x5ae   :  { %v14997_v38 = vcombine.high %v1495_v7, %v1499_v8  ;;  %v1546_v19 = vld [vmem:[#allocation2 + $0x2870] sm:$0xff] }
 0x5b0   :  { %10872 = vmatpush1.bf16.msra.mxu0 %v14938_v21  ;;  %11364 = vmatpush1.bf16.msra.mxu1 %v14940_v22  ;;  %v1503_v21 = vld [vmem:[#allocation2 + $0x2718] sm:$0xff] }
 0x5b1   :  { %10873 = vmatprep.subr.bf16.mxu0 %v14947_v27  ;;  %11365 = vmatprep.subr.bf16.mxu1 %v14949_v32  ;;  %v1507_v22 = vld [vmem:[#allocation2 + $0x2738] sm:$0xff]  ;;  %v14994_v27 = vcombine.low %v1494_v3, %v1498_v6  ;;  %v14996_v32 = vcombine.low %v1495_v7, %v1499_v8  ;;  %v15043_v3 = vcombine.high %v1542_v58, %v1546_v19  ;;  %v1550_v7 = vld [vmem:[#allocation2 + $0x2890] sm:$0xff] }
 0x5b2   :  { %v15005_v41 = vcombine.high %v1503_v21, %v1507_v22  ;;  %v1554_v8 = vld [vmem:[#allocation2 + $0x28b0] sm:$0xff] }
 0x5b4   :  { %10874 = vmatpush1.bf16.msra.mxu0 %v14946_v37  ;;  %11366 = vmatpush1.bf16.msra.mxu1 %v14948_v40  ;;  %v1511_v37 = vld [vmem:[#allocation2 + $0x2758] sm:$0xff] }
 0x5b5   :  { %10875 = vmatprep.subr.bf16.mxu0 %v14955_v57  ;;  %11367 = vmatprep.subr.bf16.mxu1 %v14957_v62  ;;  %v1515_v40 = vld [vmem:[#allocation2 + $0x2778] sm:$0xff]  ;;  %v15002_v57 = vcombine.low %v1502_v15, %v1506_v59  ;;  %v15004_v62 = vcombine.low %v1503_v21, %v1507_v22  ;;  %v15051_v15 = vcombine.high %v1550_v7, %v1554_v8  ;;  %v1558_v21 = vld [vmem:[#allocation2 + $0x28d0] sm:$0xff] }
 0x5b6   :  { %v15013_v45 = vcombine.high %v1511_v37, %v1515_v40  ;;  %v1562_v22 = vld [vmem:[#allocation2 + $0x28f0] sm:$0xff] }
 0x5b8   :  { %10876 = vmatpush1.bf16.msra.mxu0 %v14954_v51  ;;  %11368 = vmatpush1.bf16.msra.mxu1 %v14956_v5  ;;  %v1519_v51 = vld [vmem:[#allocation2 + $0x2798] sm:$0xff] }
 0x5b9   :  { %10877 = vmatprep.subr.bf16.mxu0 %v14963_v0  ;;  %11369 = vmatprep.subr.bf16.mxu1 %v14965_v46  ;;  %v1523_v5 = vld [vmem:[#allocation2 + $0x27b8] sm:$0xff]  ;;  %v15010_v0 = vcombine.low %v1510_v35, %v1514_v63  ;;  %v15012_v46 = vcombine.low %v1511_v37, %v1515_v40  ;;  %v1566_v63 = vld [vmem:[#allocation2 + $0x2910] sm:$0xff] }
 0x5ba   :  { %v15021_v47 = vcombine.high %v1519_v51, %v1523_v5  ;;  %v1570_v37 = vld [vmem:[#allocation2 + $0x2930] sm:$0xff]  ;;  %v1567_v40 = vld [vmem:[#allocation2 + $0x2918] sm:$0xff] }
 0x5bc   :  { %10878 = vmatpush1.bf16.msra.mxu0 %v14962_v53  ;;  %11370 = vmatpush1.bf16.msra.mxu1 %v14964_v31  ;;  %v1527_v53 = vld [vmem:[#allocation2 + $0x27d8] sm:$0xff] }
 0x5bd   :  { %10879 = vmatprep.subr.bf16.mxu0 %v14971_v9  ;;  %11371 = vmatprep.subr.bf16.mxu1 %v14973_v49  ;;  %v1531_v31 = vld [vmem:[#allocation2 + $0x27f8] sm:$0xff]  ;;  %v15018_v9 = vcombine.low %v1518_v4, %v1522_v17  ;;  %v15020_v49 = vcombine.low %v1519_v51, %v1523_v5  ;;  %v1574_v4 = vld [vmem:[#allocation2 + $0x2950] sm:$0xff] }
 0x5be   :  { %v15029_v12 = vcombine.high %v1527_v53, %v1531_v31  ;;  %v1578_v17 = vld [vmem:[#allocation2 + $0x2970] sm:$0xff]  ;;  %v1575_v51 = vld [vmem:[#allocation2 + $0x2958] sm:$0xff] }
 0x5bf   :  { %v1579_v5 = vld [vmem:[#allocation2 + $0x2978] sm:$0xff] }
 0x5c0   :  { %10880 = vmatpush1.bf16.msra.mxu0 %v14970_v55  ;;  %11372 = vmatpush1.bf16.msra.mxu1 %v14972_v52  ;;  %v1535_v55 = vld [vmem:[#allocation2 + $0x2818] sm:$0xff] }
 0x5c1   :  { %10881 = vmatprep.subr.bf16.mxu0 %v14979_v56  ;;  %11373 = vmatprep.subr.bf16.mxu1 %v14981_v39  ;;  %v1539_v52 = vld [vmem:[#allocation2 + $0x2838] sm:$0xff]  ;;  %v15026_v56 = vcombine.low %v1526_v43, %v1530_v29  ;;  %v15028_v39 = vcombine.low %v1527_v53, %v1531_v31  ;;  %v1582_v43 = vld [vmem:[#allocation2 + $0x2990] sm:$0xff] }
 0x5c2   :  { %v15037_v54 = vcombine.high %v1535_v55, %v1539_v52  ;;  %v1586_v29 = vld [vmem:[#allocation2 + $0x29b0] sm:$0xff]  ;;  %v1583_v53 = vld [vmem:[#allocation2 + $0x2998] sm:$0xff] }
 0x5c3   :  { %v1587_v31 = vld [vmem:[#allocation2 + $0x29b8] sm:$0xff] }
 0x5c4   :  { %10882 = vmatpush1.bf16.msra.mxu0 %v14978_v26  ;;  %11374 = vmatpush1.bf16.msra.mxu1 %v14980_v60  ;;  %v1543_v26 = vld [vmem:[#allocation2 + $0x2858] sm:$0xff] }
 0x5c5   :  { %10883 = vmatprep.subr.bf16.mxu0 %v14987_v61  ;;  %11375 = vmatprep.subr.bf16.mxu1 %v14989_v11  ;;  %v1547_v60 = vld [vmem:[#allocation2 + $0x2878] sm:$0xff]  ;;  %v15034_v61 = vcombine.low %v1534_v14, %v1538_v16  ;;  %v15036_v11 = vcombine.low %v1535_v55, %v1539_v52  ;;  %v1590_v14 = vld [vmem:[#allocation2 + $0x29d0] sm:$0xff] }
 0x5c6   :  { %v15045_v6 = vcombine.high %v1543_v26, %v1547_v60  ;;  %v1594_v16 = vld [vmem:[#allocation2 + $0x29f0] sm:$0xff]  ;;  %v1591_v55 = vld [vmem:[#allocation2 + $0x29d8] sm:$0xff] }
 0x5c7   :  { %v1595_v52 = vld [vmem:[#allocation2 + $0x29f8] sm:$0xff] }
 0x5c8   :  { %10884 = vmatpush1.bf16.msra.mxu0 %v14986_v10  ;;  %11376 = vmatpush1.bf16.msra.mxu1 %v14988_v33  ;;  %v1551_v10 = vld [vmem:[#allocation2 + $0x2898] sm:$0xff] }
 0x5c9   :  { %10885 = vmatprep.subr.bf16.mxu0 %v14995_v18  ;;  %11377 = vmatprep.subr.bf16.mxu1 %v14997_v38  ;;  %v1555_v33 = vld [vmem:[#allocation2 + $0x28b8] sm:$0xff]  ;;  %v15042_v18 = vcombine.low %v1542_v58, %v1546_v19  ;;  %v15044_v38 = vcombine.low %v1543_v26, %v1547_v60  ;;  %v1598_v58 = vld [vmem:[#allocation2 + $0x2a10] sm:$0xff] }
 0x5ca   :  { %v15053_v59 = vcombine.high %v1551_v10, %v1555_v33  ;;  %v1602_v19 = vld [vmem:[#allocation2 + $0x2a30] sm:$0xff]  ;;  %v1599_v26 = vld [vmem:[#allocation2 + $0x2a18] sm:$0xff] }
 0x5cb   :  { %v1603_v60 = vld [vmem:[#allocation2 + $0x2a38] sm:$0xff] }
 0x5cc   :  { %10886 = vmatpush1.bf16.msra.mxu0 %v14994_v27  ;;  %11378 = vmatpush1.bf16.msra.mxu1 %v14996_v32  ;;  %v1559_v27 = vld [vmem:[#allocation2 + $0x28d8] sm:$0xff] }
 0x5cd   :  { %10887 = vmatprep.subr.bf16.mxu0 %v15003_v34  ;;  %11379 = vmatprep.subr.bf16.mxu1 %v15005_v41  ;;  %v1563_v32 = vld [vmem:[#allocation2 + $0x28f8] sm:$0xff]  ;;  %v15050_v34 = vcombine.low %v1550_v7, %v1554_v8  ;;  %v15059_v41 = vcombine.high %v1558_v21, %v1562_v22  ;;  %v1606_v7 = vld [vmem:[#allocation2 + $0x2a50] sm:$0xff] }
 0x5ce   :  { %v15061_v35 = vcombine.high %v1559_v27, %v1563_v32  ;;  %v1610_v8 = vld [vmem:[#allocation2 + $0x2a70] sm:$0xff] }
 0x5d0   :  { %10888 = vmatpush1.bf16.msra.mxu0 %v15002_v57  ;;  %11380 = vmatpush1.bf16.msra.mxu1 %v15004_v62  ;;  %v1571_v57 = vld [vmem:[#allocation2 + $0x2938] sm:$0xff]  ;;  %v15058_v62 = vcombine.low %v1558_v21, %v1562_v22  ;;  %v1614_v21 = vld [vmem:[#allocation2 + $0x2a90] sm:$0xff] }
 0x5d1   :  { %10889 = vmatprep.subr.bf16.mxu0 %v15011_v42  ;;  %11381 = vmatprep.subr.bf16.mxu1 %v15013_v45  ;;  %v15060_v42 = vcombine.low %v1559_v27, %v1563_v32  ;;  %v15067_v45 = vcombine.high %v1566_v63, %v1570_v37  ;;  %v1618_v22 = vld [vmem:[#allocation2 + $0x2ab0] sm:$0xff]  ;;  %v1615_v27 = vld [vmem:[#allocation2 + $0x2a98] sm:$0xff] }
 0x5d2   :  { %v1619_v32 = vld [vmem:[#allocation2 + $0x2ab8] sm:$0xff] }
 0x5d4   :  { %10890 = vmatpush1.bf16.msra.mxu0 %v15010_v0  ;;  %11382 = vmatpush1.bf16.msra.mxu1 %v15012_v46  ;;  %v15066_v0 = vcombine.low %v1566_v63, %v1570_v37  ;;  %v15068_v46 = vcombine.low %v1567_v40, %v1571_v57  ;;  %v1622_v63 = vld [vmem:[#allocation2 + $0x2ad0] sm:$0xff] }
 0x5d5   :  { %10891 = vmatprep.subr.bf16.mxu0 %v15019_v25  ;;  %11383 = vmatprep.subr.bf16.mxu1 %v15021_v47  ;;  %v15075_v25 = vcombine.high %v1574_v4, %v1578_v17  ;;  %v15077_v47 = vcombine.high %v1575_v51, %v1579_v5  ;;  %v1626_v37 = vld [vmem:[#allocation2 + $0x2af0] sm:$0xff] }
 0x5d8   :  { %10892 = vmatpush1.bf16.msra.mxu0 %v15018_v9  ;;  %11384 = vmatpush1.bf16.msra.mxu1 %v15020_v49  ;;  %v15074_v9 = vcombine.low %v1574_v4, %v1578_v17  ;;  %v15076_v49 = vcombine.low %v1575_v51, %v1579_v5  ;;  %v1630_v4 = vld [vmem:[#allocation2 + $0x2b10] sm:$0xff]  ;;  %v1631_v51 = vld [vmem:[#allocation2 + $0x2b18] sm:$0xff] }
 0x5d9   :  { %10893 = vmatprep.subr.bf16.mxu0 %v15027_v50  ;;  %11385 = vmatprep.subr.bf16.mxu1 %v15029_v12  ;;  %v15083_v50 = vcombine.high %v1582_v43, %v1586_v29  ;;  %v15085_v12 = vcombine.high %v1583_v53, %v1587_v31  ;;  %v1634_v17 = vld [vmem:[#allocation2 + $0x2b30] sm:$0xff]  ;;  %v1635_v5 = vld [vmem:[#allocation2 + $0x2b38] sm:$0xff] }
 0x5dc   :  { %10894 = vmatpush1.bf16.msra.mxu0 %v15026_v56  ;;  %11386 = vmatpush1.bf16.msra.mxu1 %v15028_v39  ;;  %v15082_v56 = vcombine.low %v1582_v43, %v1586_v29  ;;  %v15084_v39 = vcombine.low %v1583_v53, %v1587_v31  ;;  %v1638_v43 = vld [vmem:[#allocation2 + $0x2b50] sm:$0xff]  ;;  %v1639_v53 = vld [vmem:[#allocation2 + $0x2b58] sm:$0xff] }
 0x5dd   :  { %10904 = vmatprep.subr.bf16.mxu0 %v15035_v36  ;;  %11396 = vmatprep.subr.bf16.mxu1 %v15037_v54  ;;  %v15091_v36 = vcombine.high %v1590_v14, %v1594_v16  ;;  %v15093_v54 = vcombine.high %v1591_v55, %v1595_v52  ;;  %v1642_v29 = vld [vmem:[#allocation2 + $0x2b70] sm:$0xff]  ;;  %v1643_v31 = vld [vmem:[#allocation2 + $0x2b78] sm:$0xff] }
 0x5df   :  { %10896 = vmatmul.mubr.bf16.vlgmr.msra.gmra.mrb[4].mxu0 %v16718_v30  ;;  %11388 = vmatmul.mubr.bf16.vlgmr.msra.gmra.mrb[4].mxu1 %v16718_v30  ;;  %v15052_v30 = vcombine.low %v1551_v10, %v1555_v33  ;;  %v1607_v10 = vld [vmem:[#allocation2 + $0x2a58] sm:$0xff] }
 0x5e0   :  { %10905 = vmatpush1.bf16.msra.mxu0 %v15034_v61  ;;  %11397 = vmatpush1.bf16.msra.mxu1 %v15036_v11  ;;  %v15090_v61 = vcombine.low %v1590_v14, %v1594_v16  ;;  %v15092_v11 = vcombine.low %v1591_v55, %v1595_v52  ;;  %v1611_v33 = vld [vmem:[#allocation2 + $0x2a78] sm:$0xff]  ;;  %v1646_v14 = vld [vmem:[#allocation2 + $0x2b90] sm:$0xff] }
 0x5e1   :  { %10906 = vmatprep.subr.bf16.mxu0 %v15043_v3  ;;  %11398 = vmatprep.subr.bf16.mxu1 %v15045_v6  ;;  %v15099_v3 = vcombine.high %v1598_v58, %v1602_v19  ;;  %v15101_v6 = vcombine.high %v1599_v26, %v1603_v60  ;;  %v1650_v16 = vld [vmem:[#allocation2 + $0x2bb0] sm:$0xff]  ;;  %v1647_v55 = vld [vmem:[#allocation2 + $0x2b98] sm:$0xff] }
 0x5e2   :  { %10936 = vmatprep.mubr.bf16.mxu0 %v16720_v28  ;;  %11428 = vmatprep.mubr.bf16.mxu1 %v16720_v28  ;;  %v15069_v28 = vcombine.high %v1567_v40, %v1571_v57  ;;  %v1623_v40 = vld [vmem:[#allocation2 + $0x2ad8] sm:$0xff] }
 0x5e3   :  { %v1627_v57 = vld [vmem:[#allocation2 + $0x2af8] sm:$0xff] }
 0x5e4   :  { %10907 = vmatpush1.bf16.msra.mxu0 %v15042_v18  ;;  %11399 = vmatpush1.bf16.msra.mxu1 %v15044_v38  ;;  %v15098_v18 = vcombine.low %v1598_v58, %v1602_v19  ;;  %v15100_v38 = vcombine.low %v1599_v26, %v1603_v60  ;;  %v1651_v52 = vld [vmem:[#allocation2 + $0x2bb8] sm:$0xff]  ;;  %v1654_v58 = vld [vmem:[#allocation2 + $0x2bd0] sm:$0xff] }
 0x5e5   :  { %10908 = vmatprep.subr.bf16.mxu0 %v15051_v15  ;;  %11400 = vmatprep.subr.bf16.mxu1 %v15053_v59  ;;  %v15107_v15 = vcombine.high %v1606_v7, %v1610_v8  ;;  %v15109_v59 = vcombine.high %v1607_v10, %v1611_v33  ;;  %v1658_v19 = vld [vmem:[#allocation2 + $0x2bf0] sm:$0xff]  ;;  %v1655_v26 = vld [vmem:[#allocation2 + $0x2bd8] sm:$0xff] }
 0x5e6   :  { %v1659_v60 = vld [vmem:[#allocation2 + $0x2bf8] sm:$0xff] }
 0x5e8   :  { %10909 = vmatpush1.bf16.msra.mxu0 %v15050_v34  ;;  %11401 = vmatpush1.bf16.msra.mxu1 %v15052_v30  ;;  %v15106_v34 = vcombine.low %v1606_v7, %v1610_v8  ;;  %v15108_v30 = vcombine.low %v1607_v10, %v1611_v33  ;;  %v1662_v7 = vld [vmem:[#allocation2 + $0x2c10] sm:$0xff]  ;;  %v1663_v10 = vld [vmem:[#allocation2 + $0x2c18] sm:$0xff] }
 0x5e9   :  { %10910 = vmatprep.subr.bf16.mxu0 %v15059_v41  ;;  %11402 = vmatprep.subr.bf16.mxu1 %v15061_v35  ;;  %v15115_v41 = vcombine.high %v1614_v21, %v1618_v22  ;;  %v15117_v35 = vcombine.high %v1615_v27, %v1619_v32  ;;  %v1666_v8 = vld [vmem:[#allocation2 + $0x2c30] sm:$0xff]  ;;  %v1667_v33 = vld [vmem:[#allocation2 + $0x2c38] sm:$0xff] }
 0x5ec   :  { %10911 = vmatpush1.bf16.msra.mxu0 %v15058_v62  ;;  %11403 = vmatpush1.bf16.msra.mxu1 %v15060_v42  ;;  %v15114_v62 = vcombine.low %v1614_v21, %v1618_v22  ;;  %v15116_v42 = vcombine.low %v1615_v27, %v1619_v32  ;;  %v1670_v21 = vld [vmem:[#allocation2 + $0x2c50] sm:$0xff]  ;;  %v1671_v27 = vld [vmem:[#allocation2 + $0x2c58] sm:$0xff] }
 0x5ed   :  { %10912 = vmatprep.subr.bf16.mxu0 %v15067_v45  ;;  %11404 = vmatprep.subr.bf16.mxu1 %v15069_v28  ;;  %v15123_v45 = vcombine.high %v1622_v63, %v1626_v37  ;;  %v15125_v28 = vcombine.high %v1623_v40, %v1627_v57  ;;  %v1674_v22 = vld [vmem:[#allocation2 + $0x2c70] sm:$0xff]  ;;  %v1675_v32 = vld [vmem:[#allocation2 + $0x2c78] sm:$0xff] }
 0x5f0   :  { %10913 = vmatpush1.bf16.msra.mxu0 %v15066_v0  ;;  %11405 = vmatpush1.bf16.msra.mxu1 %v15068_v46  ;;  %v15122_v0 = vcombine.low %v1622_v63, %v1626_v37  ;;  %v15124_v46 = vcombine.low %v1623_v40, %v1627_v57  ;;  %v1678_v63 = vld [vmem:[#allocation2 + $0x2c90] sm:$0xff]  ;;  %v1679_v40 = vld [vmem:[#allocation2 + $0x2c98] sm:$0xff] }
 0x5f1   :  { %10914 = vmatprep.subr.bf16.mxu0 %v15075_v25  ;;  %11406 = vmatprep.subr.bf16.mxu1 %v15077_v47  ;;  %v15131_v25 = vcombine.high %v1630_v4, %v1634_v17  ;;  %v15133_v47 = vcombine.high %v1631_v51, %v1635_v5  ;;  %v1682_v37 = vld [vmem:[#allocation2 + $0x2cb0] sm:$0xff]  ;;  %v1683_v57 = vld [vmem:[#allocation2 + $0x2cb8] sm:$0xff] }
 0x5f4   :  { %10915 = vmatpush1.bf16.msra.mxu0 %v15074_v9  ;;  %11407 = vmatpush1.bf16.msra.mxu1 %v15076_v49  ;;  %v15130_v9 = vcombine.low %v1630_v4, %v1634_v17  ;;  %v15132_v49 = vcombine.low %v1631_v51, %v1635_v5  ;;  %v1686_v4 = vld [vmem:[#allocation2 + $0x2cd0] sm:$0xff]  ;;  %v1687_v51 = vld [vmem:[#allocation2 + $0x2cd8] sm:$0xff] }
 0x5f5   :  { %10916 = vmatprep.subr.bf16.mxu0 %v15083_v50  ;;  %11408 = vmatprep.subr.bf16.mxu1 %v15085_v12  ;;  %v15139_v50 = vcombine.high %v1638_v43, %v1642_v29  ;;  %v15141_v12 = vcombine.high %v1639_v53, %v1643_v31  ;;  %v1690_v17 = vld [vmem:[#allocation2 + $0x2cf0] sm:$0xff]  ;;  %v1691_v5 = vld [vmem:[#allocation2 + $0x2cf8] sm:$0xff] }
 0x5f8   :  { %10917 = vmatpush1.bf16.msra.mxu0 %v15082_v56  ;;  %11409 = vmatpush1.bf16.msra.mxu1 %v15084_v39  ;;  %v15138_v56 = vcombine.low %v1638_v43, %v1642_v29  ;;  %v15140_v39 = vcombine.low %v1639_v53, %v1643_v31  ;;  %v1698_v43 = vld [vmem:[#allocation2 + $0x2d30] sm:$0xff]  ;;  %v1695_v29 = vld [vmem:[#allocation2 + $0x2d18] sm:$0xff]  ;;  %v15186_v31 = vcombine.low %v1686_v4, %v1690_v17 }
 0x5f9   :  { %10918 = vmatprep.subr.bf16.mxu0 %v15091_v36  ;;  %11410 = vmatprep.subr.bf16.mxu1 %v15093_v54  ;;  %v15147_v36 = vcombine.high %v1646_v14, %v1650_v16  ;;  %v15149_v54 = vcombine.high %v1647_v55, %v1651_v52  ;;  %v1699_v53 = vld [vmem:[#allocation2 + $0x2d38] sm:$0xff] }
 0x5fc   :  { %10919 = vmatpush1.bf16.msra.mxu0 %v15090_v61  ;;  %11411 = vmatpush1.bf16.msra.mxu1 %v15092_v11  ;;  %v15146_v61 = vcombine.low %v1646_v14, %v1650_v16  ;;  %v15148_v11 = vcombine.low %v1647_v55, %v1651_v52  ;;  %v1703_v14 = vld [vmem:[#allocation2 + $0x2d58] sm:$0xff]  ;;  %v15196_v52 = vcombine.low %v1695_v29, %v1699_v53 }
 0x5fd   :  { %10920 = vmatprep.subr.bf16.mxu0 %v15099_v3  ;;  %11412 = vmatprep.subr.bf16.mxu1 %v15101_v6  ;;  %v15155_v3 = vcombine.high %v1654_v58, %v1658_v19  ;;  %v15157_v6 = vcombine.high %v1655_v26, %v1659_v60  ;;  %v1707_v16 = vld [vmem:[#allocation2 + $0x2d78] sm:$0xff] }
 0x600   :  { %10921 = vmatpush1.bf16.msra.mxu0 %v15098_v18  ;;  %11413 = vmatpush1.bf16.msra.mxu1 %v15100_v38  ;;  %v15154_v18 = vcombine.low %v1654_v58, %v1658_v19  ;;  %v15156_v38 = vcombine.low %v1655_v26, %v1659_v60  ;;  %v1711_v58 = vld [vmem:[#allocation2 + $0x2d98] sm:$0xff]  ;;  %v15204_v60 = vcombine.low %v1703_v14, %v1707_v16 }
 0x601   :  { %10922 = vmatprep.subr.bf16.mxu0 %v15107_v15  ;;  %11414 = vmatprep.subr.bf16.mxu1 %v15109_v59  ;;  %v15163_v15 = vcombine.high %v1662_v7, %v1666_v8  ;;  %v15165_v59 = vcombine.high %v1663_v10, %v1667_v33  ;;  %v1715_v19 = vld [vmem:[#allocation2 + $0x2db8] sm:$0xff] }
 0x604   :  { %10923 = vmatpush1.bf16.msra.mxu0 %v15106_v34  ;;  %11415 = vmatpush1.bf16.msra.mxu1 %v15108_v30  ;;  %v15162_v34 = vcombine.low %v1662_v7, %v1666_v8  ;;  %v15164_v30 = vcombine.low %v1663_v10, %v1667_v33  ;;  %v1719_v7 = vld [vmem:[#allocation2 + $0x2dd8] sm:$0xff]  ;;  %v15212_v33 = vcombine.low %v1711_v58, %v1715_v19 }
 0x605   :  { %10924 = vmatprep.subr.bf16.mxu0 %v15115_v41  ;;  %11416 = vmatprep.subr.bf16.mxu1 %v15117_v35  ;;  %v15171_v41 = vcombine.high %v1670_v21, %v1674_v22  ;;  %v15173_v35 = vcombine.high %v1671_v27, %v1675_v32  ;;  %v1723_v8 = vld [vmem:[#allocation2 + $0x2df8] sm:$0xff] }
 0x608   :  { %10925 = vmatpush1.bf16.msra.mxu0 %v15114_v62  ;;  %11417 = vmatpush1.bf16.msra.mxu1 %v15116_v42  ;;  %v15170_v62 = vcombine.low %v1670_v21, %v1674_v22  ;;  %v15172_v42 = vcombine.low %v1671_v27, %v1675_v32  ;;  %v1727_v21 = vld [vmem:[#allocation2 + $0x2e18] sm:$0xff]  ;;  %v15220_v32 = vcombine.low %v1719_v7, %v1723_v8 }
 0x609   :  { %10926 = vmatprep.subr.bf16.mxu0 %v15123_v45  ;;  %11418 = vmatprep.subr.bf16.mxu1 %v15125_v28  ;;  %v15179_v45 = vcombine.high %v1678_v63, %v1682_v37  ;;  %v15181_v28 = vcombine.high %v1679_v40, %v1683_v57  ;;  %v1731_v22 = vld [vmem:[#allocation2 + $0x2e38] sm:$0xff] }
 0x60c   :  { %10927 = vmatpush1.bf16.msra.mxu0 %v15122_v0  ;;  %11419 = vmatpush1.bf16.msra.mxu1 %v15124_v46  ;;  %v15178_v0 = vcombine.low %v1678_v63, %v1682_v37  ;;  %v15187_v46 = vcombine.high %v1686_v4, %v1690_v17  ;;  %v1735_v63 = vld [vmem:[#allocation2 + $0x2e58] sm:$0xff] }
 0x60d   :  { %10928 = vmatprep.subr.bf16.mxu0 %v15131_v25  ;;  %11420 = vmatprep.subr.bf16.mxu1 %v15133_v47  ;;  %v15189_v25 = vcombine.high %v1687_v51, %v1691_v5  ;;  %v1694_v47 = vld [vmem:[#allocation2 + $0x2d10] sm:$0xff]  ;;  %v1739_v37 = vld [vmem:[#allocation2 + $0x2e78] sm:$0xff] }
 0x60e   :  { %v15194_v55 = vcombine.low %v1694_v47, %v1698_v43  ;;  %v1743_v4 = vld [vmem:[#allocation2 + $0x2e98] sm:$0xff] }
 0x60f   :  { %v1747_v17 = vld [vmem:[#allocation2 + $0x2eb8] sm:$0xff] }
 0x610   :  { %10929 = vmatpush1.bf16.msra.mxu0 %v15130_v9  ;;  %11421 = vmatpush1.bf16.msra.mxu1 %v15132_v49  ;;  %v15188_v9 = vcombine.low %v1687_v51, %v1691_v5  ;;  %v15195_v49 = vcombine.high %v1694_v47, %v1698_v43  ;;  %v15236_v5 = vcombine.low %v1735_v63, %v1739_v37  ;;  %v1751_v47 = vld [vmem:[#allocation2 + $0x2ed8] sm:$0xff] }
 0x611   :  { %10930 = vmatprep.subr.bf16.mxu0 %v15139_v50  ;;  %11422 = vmatprep.subr.bf16.mxu1 %v15141_v12  ;;  %v1702_v50 = vld [vmem:[#allocation2 + $0x2d50] sm:$0xff]  ;;  %v1755_v43 = vld [vmem:[#allocation2 + $0x2ef8] sm:$0xff] }
 0x612   :  { %v1706_v12 = vld [vmem:[#allocation2 + $0x2d70] sm:$0xff] }
 0x613   :  { %v15202_v26 = vcombine.low %v1702_v50, %v1706_v12 }
 0x614   :  { %10931 = vmatpush1.bf16.msra.mxu0 %v15138_v56  ;;  %11423 = vmatpush1.bf16.msra.mxu1 %v15140_v39  ;;  %v15203_v56 = vcombine.high %v1702_v50, %v1706_v12  ;;  %v15205_v39 = vcombine.high %v1703_v14, %v1707_v16  ;;  %v1759_v50 = vld [vmem:[#allocation2 + $0x2f18] sm:$0xff]  ;;  %v15252_v16 = vcombine.low %v1751_v47, %v1755_v43 }
 0x615   :  { %10932 = vmatprep.subr.bf16.mxu0 %v15147_v36  ;;  %11424 = vmatprep.subr.bf16.mxu1 %v15149_v54  ;;  %v1710_v36 = vld [vmem:[#allocation2 + $0x2d90] sm:$0xff]  ;;  %v1763_v12 = vld [vmem:[#allocation2 + $0x2f38] sm:$0xff] }
 0x616   :  { %v1714_v54 = vld [vmem:[#allocation2 + $0x2db0] sm:$0xff] }
 0x617   :  { %v15210_v10 = vcombine.low %v1710_v36, %v1714_v54 }
 0x618   :  { %10933 = vmatpush1.bf16.msra.mxu0 %v15146_v61  ;;  %11425 = vmatpush1.bf16.msra.mxu1 %v15148_v11  ;;  %v15211_v61 = vcombine.high %v1710_v36, %v1714_v54  ;;  %v15213_v11 = vcombine.high %v1711_v58, %v1715_v19  ;;  %v1767_v36 = vld [vmem:[#allocation2 + $0x2f58] sm:$0xff]  ;;  %v15260_v19 = vcombine.low %v1759_v50, %v1763_v12 }
 0x619   :  { %10934 = vmatprep.subr.bf16.mxu0 %v15155_v3  ;;  %11426 = vmatprep.subr.bf16.mxu1 %v15157_v6  ;;  %v1718_v3 = vld [vmem:[#allocation2 + $0x2dd0] sm:$0xff]  ;;  %v1771_v54 = vld [vmem:[#allocation2 + $0x2f78] sm:$0xff] }
 0x61a   :  { %v1722_v6 = vld [vmem:[#allocation2 + $0x2df0] sm:$0xff] }
 0x61b   :  { %v15218_v27 = vcombine.low %v1718_v3, %v1722_v6 }
 0x61c   :  { %10935 = vmatpush1.bf16.msra.mxu0 %v15154_v18  ;;  %11427 = vmatpush1.bf16.msra.mxu1 %v15156_v38  ;;  %v15219_v18 = vcombine.high %v1718_v3, %v1722_v6  ;;  %v15221_v38 = vcombine.high %v1719_v7, %v1723_v8  ;;  %v1796_v3 = vsub.s32 1, %v16516_v44  ;;  %v1775_v6 = vld [vmem:[#allocation2 + $0x2f98] sm:$0xff]  ;;  %v16804_v8 = vld [vmem:[#allocation5] sm:$0xff] }
 0x61d   :  { %10945 = vmatprep.subr.bf16.mxu0 %v15163_v15  ;;  %11437 = vmatprep.subr.bf16.mxu1 %v15165_v59  ;;  %v1726_v15 = vld [vmem:[#allocation2 + $0x2e10] sm:$0xff]  ;;  %v1779_v7 = vld [vmem:[#allocation2 + $0x2fb8] sm:$0xff] }
 0x61e   :  { %v1730_v59 = vld [vmem:[#allocation2 + $0x2e30] sm:$0xff] }
 0x61f   :  { %10937 = vmatmul.mubr.bf16.vlgmr.msra.gmra.mrb[4].mxu0 %v16735_v48  ;;  %11429 = vmatmul.mubr.bf16.vlgmr.msra.gmra.mrb[4].mxu1 %v16735_v48  ;;  %v15180_v48 = vcombine.low %v1679_v40, %v1683_v57  ;;  %v15226_v40 = vcombine.low %v1726_v15, %v1730_v59  ;;  %v15228_v57 = vcombine.low %v1727_v21, %v1731_v22 }
 0x620   :  { %10946 = vmatpush1.bf16.msra.mxu0 %v15162_v34  ;;  %11438 = vmatpush1.bf16.msra.mxu1 %v15164_v30  ;;  %v15227_v34 = vcombine.high %v1726_v15, %v1730_v59  ;;  %v15229_v30 = vcombine.high %v1727_v21, %v1731_v22  ;;  %v1782_v15 = vld [vmem:[#allocation2 + $0x2fd0] sm:$0xff]  ;;  %v1797_v21 = vrot.slane %v16804_v8, %v1796_v3  ;;  %v1783_v22 = vld [vmem:[#allocation2 + $0x2fd8] sm:$0xff] }
 0x621   :  { %10947 = vmatprep.subr.bf16.mxu0 %v15171_v41  ;;  %11439 = vmatprep.subr.bf16.mxu1 %v15173_v35  ;;  %v1734_v41 = vld [vmem:[#allocation2 + $0x2e50] sm:$0xff] }
 0x622   :  { %10977 = vmatprep.mubr.bf16.mxu0 %v16737_v23  ;;  %11469 = vmatprep.mubr.bf16.mxu1 %v16737_v23  ;;  %v15197_v23 = vcombine.high %v1695_v29, %v1699_v53  ;;  %v1738_v35 = vld [vmem:[#allocation2 + $0x2e70] sm:$0xff]  ;;  %v15244_v53 = vcombine.low %v1743_v4, %v1747_v17 }
 0x623   :  { %v15234_v51 = vcombine.low %v1734_v41, %v1738_v35  ;;  %v1786_v59 = vld [vmem:[#allocation2 + $0x2ff0] sm:$0xff] }
 0x624   :  { %10948 = vmatpush1.bf16.msra.mxu0 %v15170_v62  ;;  %11440 = vmatpush1.bf16.msra.mxu1 %v15172_v42  ;;  %v15235_v62 = vcombine.high %v1734_v41, %v1738_v35  ;;  %v15237_v42 = vcombine.high %v1735_v63, %v1739_v37  ;;  %v15620_v35 = vadd.f32 %v16767_v2, %v1797_v21  ;;  %v15859_v2 = vld [vmem:[#allocation7 + $0x2c] ss:$16 sps:$4 sm:$0xff]   ;;  %v15914_v21 = vld [vmem:[#allocation7 + $0x160] ss:$16 sps:$4 sm:$0xff]  }
 0x625   :  { %10949 = vmatprep.subr.bf16.mxu0 %v15179_v45  ;;  %11441 = vmatprep.subr.bf16.mxu1 %v15181_v28  ;;  %v1742_v45 = vld [vmem:[#allocation2 + $0x2e90] sm:$0xff]  ;;  %v15282_v63 = vcombine.low %v1782_v15, %v1786_v59 }
 0x626   :  { %v1746_v28 = vld [vmem:[#allocation2 + $0x2eb0] sm:$0xff] }
 0x627   :  { %v15242_v29 = vcombine.low %v1742_v45, %v1746_v28 }
 0x628   :  { %10950 = vmatpush1.bf16.msra.mxu0 %v15178_v0  ;;  %11442 = vmatpush1.bf16.msra.mxu1 %v15180_v48  ;;  %v15243_v0 = vcombine.high %v1742_v45, %v1746_v28  ;;  %v15245_v48 = vcombine.high %v1743_v4, %v1747_v17  ;;  %v15851_v45 = vld [vmem:[#allocation7 + $0x8] ss:$16 sps:$4 sm:$0xff]   ;;  %v15856_v28 = vld [vmem:[#allocation7 + $0x24] ss:$16 sps:$4 sm:$0xff]   ;;  %v15854_v17 = vld [vmem:[#allocation7 + $0x20] ss:$16 sps:$4 sm:$0xff]  }
 0x629   :  { %10951 = vmatprep.subr.bf16.mxu0 %v15187_v46  ;;  %11443 = vmatprep.subr.bf16.mxu1 %v15189_v25  ;;  %v1750_v46 = vld [vmem:[#allocation2 + $0x2ed0] sm:$0xff] }
 0x62a   :  { %v1754_v25 = vld [vmem:[#allocation2 + $0x2ef0] sm:$0xff] }
 0x62b   :  { %v15250_v14 = vcombine.low %v1750_v46, %v1754_v25 }
 0x62c   :  { %10952 = vmatpush1.bf16.msra.mxu0 %v15186_v31  ;;  %11444 = vmatpush1.bf16.msra.mxu1 %v15188_v9  ;;  %v15251_v31 = vcombine.high %v1750_v46, %v1754_v25  ;;  %v15253_v9 = vcombine.high %v1751_v47, %v1755_v43  ;;  %v15863_v46 = vld [vmem:[#allocation7 + $0x48] ss:$16 sps:$4 sm:$0xff]   ;;  %v15868_v25 = vld [vmem:[#allocation7 + $0x64] ss:$16 sps:$4 sm:$0xff]   ;;  %v15871_v47 = vld [vmem:[#allocation7 + $0x6c] ss:$16 sps:$4 sm:$0xff]  }
 0x62d   :  { %10953 = vmatprep.subr.bf16.mxu0 %v15195_v49  ;;  %11445 = vmatprep.subr.bf16.mxu1 %v15197_v23  ;;  %v1758_v49 = vld [vmem:[#allocation2 + $0x2f10] sm:$0xff] }
 0x62e   :  { %v1762_v23 = vld [vmem:[#allocation2 + $0x2f30] sm:$0xff] }
 0x62f   :  { %v15258_v58 = vcombine.low %v1758_v49, %v1762_v23  ;;  %v15869_v43 = vld [vmem:[#allocation7 + $0x68] ss:$16 sps:$4 sm:$0xff]  }
 0x630   :  { %10954 = vmatpush1.bf16.msra.mxu0 %v15194_v55  ;;  %11446 = vmatpush1.bf16.msra.mxu1 %v15196_v52  ;;  %v15259_v55 = vcombine.high %v1758_v49, %v1762_v23  ;;  %v15261_v52 = vcombine.high %v1759_v50, %v1763_v12  ;;  %v15880_v49 = vld [vmem:[#allocation7 + $0xa4] ss:$16 sps:$4 sm:$0xff]   ;;  %v15883_v23 = vld [vmem:[#allocation7 + $0xac] ss:$16 sps:$4 sm:$0xff]   ;;  %v15878_v50 = vld [vmem:[#allocation7 + $0xa0] ss:$16 sps:$4 sm:$0xff]  }
 0x631   :  { %10955 = vmatprep.subr.bf16.mxu0 %v15203_v56  ;;  %11447 = vmatprep.subr.bf16.mxu1 %v15205_v39  ;;  %v1766_v56 = vld [vmem:[#allocation2 + $0x2f50] sm:$0xff] }
 0x632   :  { %v1770_v39 = vld [vmem:[#allocation2 + $0x2f70] sm:$0xff] }
 0x633   :  { %v15881_v12 = vld [vmem:[#allocation7 + $0xa8] ss:$16 sps:$4 sm:$0xff]  }
 0x634   :  { %10956 = vmatpush1.bf16.msra.mxu0 %v15202_v26  ;;  %11448 = vmatpush1.bf16.msra.mxu1 %v15204_v60  ;;  %v15267_v26 = vcombine.high %v1766_v56, %v1770_v39  ;;  %v15269_v60 = vcombine.high %v1767_v36, %v1771_v54 }
 0x635   :  { %10957 = vmatprep.subr.bf16.mxu0 %v15211_v61  ;;  %11449 = vmatprep.subr.bf16.mxu1 %v15213_v11  ;;  %v1774_v61 = vld [vmem:[#allocation2 + $0x2f90] sm:$0xff] }
 0x636   :  { %v1778_v11 = vld [vmem:[#allocation2 + $0x2fb0] sm:$0xff] }
 0x638   :  { %10958 = vmatpush1.bf16.msra.mxu0 %v15210_v10  ;;  %11450 = vmatpush1.bf16.msra.mxu1 %v15212_v33  ;;  %v15266_v10 = vcombine.low %v1766_v56, %v1770_v39  ;;  %v15268_v33 = vcombine.low %v1767_v36, %v1771_v54  ;;  %v15892_v56 = vld [vmem:[#allocation7 + $0xe4] ss:$16 sps:$4 sm:$0xff]   ;;  %v15895_v39 = vld [vmem:[#allocation7 + $0xec] ss:$16 sps:$4 sm:$0xff]   ;;  %v15890_v36 = vld [vmem:[#allocation7 + $0xe0] ss:$16 sps:$4 sm:$0xff]  }
 0x639   :  { %10959 = vmatprep.subr.bf16.mxu0 %v15219_v18  ;;  %11451 = vmatprep.subr.bf16.mxu1 %v15221_v38  ;;  %v15275_v18 = vcombine.high %v1774_v61, %v1778_v11  ;;  %v15277_v38 = vcombine.high %v1775_v6, %v1779_v7  ;;  %v15893_v54 = vld [vmem:[#allocation7 + $0xe8] ss:$16 sps:$4 sm:$0xff]  }
 0x63c   :  { %10960 = vmatpush1.bf16.msra.mxu0 %v15218_v27  ;;  %11452 = vmatpush1.bf16.msra.mxu1 %v15220_v32  ;;  %v1787_v27 = vld [vmem:[#allocation2 + $0x2ff8] sm:$0xff]  ;;  %v15274_v32 = vcombine.low %v1774_v61, %v1778_v11  ;;  %v15907_v11 = vld [vmem:[#allocation7 + $0x12c] ss:$16 sps:$4 sm:$0xff]  }
 0x63d   :  { %10961 = vmatprep.subr.bf16.mxu0 %v15227_v34  ;;  %11453 = vmatprep.subr.bf16.mxu1 %v15229_v30  ;;  %v15276_v34 = vcombine.low %v1775_v6, %v1779_v7  ;;  %v15283_v30 = vcombine.high %v1782_v15, %v1786_v59  ;;  %v15285_v41 = vcombine.high %v1783_v22, %v1787_v27  ;;  %v15904_v61 = vld [vmem:[#allocation7 + $0x124] ss:$16 sps:$4 sm:$0xff]   ;;  %v15902_v6 = vld [vmem:[#allocation7 + $0x120] ss:$16 sps:$4 sm:$0xff]   ;;  %v15905_v7 = vld [vmem:[#allocation7 + $0x128] ss:$16 sps:$4 sm:$0xff]  }
 0x63e   :  { %v15284_v37 = vcombine.low %v1783_v22, %v1787_v27  ;;  %v15916_v15 = vld [vmem:[#allocation7 + $0x164] ss:$16 sps:$4 sm:$0xff]   ;;  %v15919_v59 = vld [vmem:[#allocation7 + $0x16c] ss:$16 sps:$4 sm:$0xff]   ;;  %v15917_v22 = vld [vmem:[#allocation7 + $0x168] ss:$16 sps:$4 sm:$0xff]  }
 0x63f   :  { %v15922_v27 = vld [vmem:[#allocation7 + $0x184] ss:$16 sps:$4 sm:$0xff]  }
 0x640   :  { %10962 = vmatpush1.bf16.msra.mxu0 %v15226_v40  ;;  %11454 = vmatpush1.bf16.msra.mxu1 %v15228_v57  ;;  %v15850_v40 = vld [vmem:[#allocation7 + $0x4] ss:$16 sps:$4 sm:$0xff]   ;;  %v15853_v57 = vld [vmem:[#allocation7 + $0xc] ss:$16 sps:$4 sm:$0xff]  }
 0x641   :  { %10963 = vmatprep.subr.bf16.mxu0 %v15235_v62  ;;  %11455 = vmatprep.subr.bf16.mxu1 %v15237_v42  ;;  %v11479_v62 = vmax.f32 %v15620_v35, 0.0  ;;  %v15848_v42 = vld [vmem:[#allocation7] ss:$16 sps:$4 sm:$0xff]   ;;  %v15928_v35 = vld [vmem:[#allocation7 + $0x1a4] ss:$16 sps:$4 sm:$0xff]  }
 0x643   :  { %v11487_v4 = vpack.c.bf16 %v11479_v62, %v11479_v62  ;;  %v15929_v62 = vld [vmem:[#allocation7 + $0x1a8] ss:$16 sps:$4 sm:$0xff]  }
 0x644   :  { %10964 = vmatpush1.bf16.msra.mxu0 %v15234_v51  ;;  %11456 = vmatpush1.bf16.msra.mxu1 %v15236_v5  ;;  %v15857_v51 = vld [vmem:[#allocation7 + $0x28] ss:$16 sps:$4 sm:$0xff]   ;;  %v15862_v5 = vld [vmem:[#allocation7 + $0x44] ss:$16 sps:$4 sm:$0xff]  }
 0x645   :  { %10965 = vmatprep.subr.bf16.mxu0 %v15243_v0  ;;  %11457 = vmatprep.subr.bf16.mxu1 %v15245_v48  ;;  %v15865_v0 = vld [vmem:[#allocation7 + $0x4c] ss:$16 sps:$4 sm:$0xff]   ;;  %v15860_v48 = vld [vmem:[#allocation7 + $0x40] ss:$16 sps:$4 sm:$0xff]  }
 0x648   :  { %10966 = vmatpush1.bf16.msra.mxu0 %v15242_v29  ;;  %11458 = vmatpush1.bf16.msra.mxu1 %v15244_v53  ;;  %v15874_v29 = vld [vmem:[#allocation7 + $0x84] ss:$16 sps:$4 sm:$0xff]   ;;  %v15877_v53 = vld [vmem:[#allocation7 + $0x8c] ss:$16 sps:$4 sm:$0xff]  }
 0x649   :  { %10967 = vmatprep.subr.bf16.mxu0 %v15251_v31  ;;  %11459 = vmatprep.subr.bf16.mxu1 %v15253_v9  ;;  %v15872_v31 = vld [vmem:[#allocation7 + $0x80] ss:$16 sps:$4 sm:$0xff]   ;;  %v15875_v9 = vld [vmem:[#allocation7 + $0x88] ss:$16 sps:$4 sm:$0xff]  }
 0x64c   :  { %10968 = vmatpush1.bf16.msra.mxu0 %v15250_v14  ;;  %11460 = vmatpush1.bf16.msra.mxu1 %v15252_v16  ;;  %v15886_v14 = vld [vmem:[#allocation7 + $0xc4] ss:$16 sps:$4 sm:$0xff]   ;;  %v15889_v16 = vld [vmem:[#allocation7 + $0xcc] ss:$16 sps:$4 sm:$0xff]  }
 0x64d   :  { %10969 = vmatprep.subr.bf16.mxu0 %v15259_v55  ;;  %11461 = vmatprep.subr.bf16.mxu1 %v15261_v52  ;;  %v15884_v55 = vld [vmem:[#allocation7 + $0xc0] ss:$16 sps:$4 sm:$0xff]   ;;  %v15887_v52 = vld [vmem:[#allocation7 + $0xc8] ss:$16 sps:$4 sm:$0xff]  }
 0x650   :  { %10970 = vmatpush1.bf16.msra.mxu0 %v15258_v58  ;;  %11462 = vmatpush1.bf16.msra.mxu1 %v15260_v19  ;;  %v15898_v58 = vld [vmem:[#allocation7 + $0x104] ss:$16 sps:$4 sm:$0xff]   ;;  %v15901_v19 = vld [vmem:[#allocation7 + $0x10c] ss:$16 sps:$4 sm:$0xff]  }
 0x651   :  { %10971 = vmatprep.subr.bf16.mxu0 %v15267_v26  ;;  %11463 = vmatprep.subr.bf16.mxu1 %v15269_v60  ;;  %v15896_v26 = vld [vmem:[#allocation7 + $0x100] ss:$16 sps:$4 sm:$0xff]   ;;  %v15899_v60 = vld [vmem:[#allocation7 + $0x108] ss:$16 sps:$4 sm:$0xff]  }
 0x654   :  { %10972 = vmatpush1.bf16.msra.mxu0 %v15266_v10  ;;  %11464 = vmatpush1.bf16.msra.mxu1 %v15268_v33  ;;  %v15910_v10 = vld [vmem:[#allocation7 + $0x144] ss:$16 sps:$4 sm:$0xff]   ;;  %v15913_v33 = vld [vmem:[#allocation7 + $0x14c] ss:$16 sps:$4 sm:$0xff]  }
 0x655   :  { %10973 = vmatprep.subr.bf16.mxu0 %v15275_v18  ;;  %11465 = vmatprep.subr.bf16.mxu1 %v15277_v38  ;;  %v15908_v18 = vld [vmem:[#allocation7 + $0x140] ss:$16 sps:$4 sm:$0xff]   ;;  %v15911_v38 = vld [vmem:[#allocation7 + $0x148] ss:$16 sps:$4 sm:$0xff]  }
 0x658   :  { %10974 = vmatpush1.bf16.msra.mxu0 %v15274_v32  ;;  %11466 = vmatpush1.bf16.msra.mxu1 %v15276_v34  ;;  %v15925_v32 = vld [vmem:[#allocation7 + $0x18c] ss:$16 sps:$4 sm:$0xff]   ;;  %v15920_v34 = vld [vmem:[#allocation7 + $0x180] ss:$16 sps:$4 sm:$0xff]  }
 0x659   :  { %10975 = vmatprep.subr.bf16.mxu0 %v15283_v30  ;;  %11467 = vmatprep.subr.bf16.mxu1 %v15285_v41  ;;  %v1792_v30 = vsub.s32 0, %v16516_v44  ;;  %v15923_v41 = vld [vmem:[#allocation7 + $0x188] ss:$16 sps:$4 sm:$0xff]  }
 0x65c   :  { %10976 = vmatpush1.bf16.msra.mxu0 %v15282_v63  ;;  %11468 = vmatpush1.bf16.msra.mxu1 %v15284_v37  ;;  %v15931_v63 = vld [vmem:[#allocation7 + $0x1ac] ss:$16 sps:$4 sm:$0xff]   ;;  %v1804_v37 = vsub.s32 3, %v16516_v44 }
 0x65d   :  { %13052 = vmatprep.subr.bf16.mxu0 %v15850_v40  ;;  %13216 = vmatprep.subr.bf16.mxu1 %v15853_v57  ;;  %v15926_v40 = vld [vmem:[#allocation7 + $0x1a0] ss:$16 sps:$4 sm:$0xff]   ;;  %v1793_v57 = vrot.slane %v16804_v8, %v1792_v30 }
 0x65f   :  { %10978 = vmatmul.mubr.bf16.vlgmr.msra.gmra.mrb[4].mxu0 %v16745_v1  ;;  %11470 = vmatmul.mubr.bf16.vlgmr.msra.gmra.mrb[4].mxu1 %v16745_v1  ;;  %v15866_v1 = vld [vmem:[#allocation7 + $0x60] ss:$16 sps:$4 sm:$0xff]  }
 0x660   :  { %13053 = vmatpush1.bf16.msra.mxu0 %v15848_v42  ;;  %13084 = vmatprep.mubr.bf16.mxu0 %v11487_v4  ;;  %v15934_v42 = vld [vmem:[#allocation7 + $0x1c4] ss:$16 sps:$4 sm:$0xff]  }
 0x661   :  { %13217 = vmatpush1.bf16.msra.mxu1 %v15851_v45  ;;  %13248 = vmatprep.mubr.bf16.mxu1 %v11487_v4  ;;  %v15937_v45 = vld [vmem:[#allocation7 + $0x1cc] ss:$16 sps:$4 sm:$0xff]   ;;  %v15932_v4 = vld [vmem:[#allocation7 + $0x1c0] ss:$16 sps:$4 sm:$0xff]  }
 0x662   :  { %13054 = vmatprep.subr.bf16.mxu0 %v15856_v28  ;;  %13218 = vmatprep.subr.bf16.mxu1 %v15859_v2  ;;  %v1805_v28 = vrot.slane %v16804_v8, %v1804_v37  ;;  %v15619_v2 = vadd.f32 %v16763_v13, %v1793_v57  ;;  %v15944_v13 = vld [vmem:[#allocation7 + $0x200] ss:$16 sps:$4 sm:$0xff]   ;;  %v16009_v57 = vld [vmem:[#allocation7 + $0x34c] ss:$16 sps:$4 sm:$0xff]  }
 0x664   :  { %13055 = vmatpush1.bf16.msra.mxu0 %v15854_v17  ;;  %v15935_v17 = vld [vmem:[#allocation7 + $0x1c8] ss:$16 sps:$4 sm:$0xff]  }
 0x665   :  { %13219 = vmatpush1.bf16.msra.mxu1 %v15857_v51  ;;  %13056 = vmatprep.subr.bf16.mxu0 %v15862_v5  ;;  %v15940_v51 = vld [vmem:[#allocation7 + $0x1e4] ss:$16 sps:$4 sm:$0xff]   ;;  %v15943_v5 = vld [vmem:[#allocation7 + $0x1ec] ss:$16 sps:$4 sm:$0xff]  }
 0x666   :  { %13220 = vmatprep.subr.bf16.mxu1 %v15865_v0  ;;  %v15622_v0 = vadd.f32 %v16769_v24, %v1805_v28  ;;  %v15955_v24 = vld [vmem:[#allocation7 + $0x22c] ss:$16 sps:$4 sm:$0xff]  }
 0x667   :  { %v16015_v28 = vld [vmem:[#allocation7 + $0x36c] ss:$16 sps:$4 sm:$0xff]  }
 0x668   :  { %13057 = vmatpush1.bf16.msra.mxu0 %v15860_v48  ;;  %v15938_v48 = vld [vmem:[#allocation7 + $0x1e0] ss:$16 sps:$4 sm:$0xff]  }
 0x669   :  { %13221 = vmatpush1.bf16.msra.mxu1 %v15863_v46  ;;  %13058 = vmatprep.subr.bf16.mxu0 %v15868_v25  ;;  %v11478_v46 = vmax.f32 %v15619_v2, 0.0  ;;  %v15941_v25 = vld [vmem:[#allocation7 + $0x1e8] ss:$16 sps:$4 sm:$0xff]  }
 0x66a   :  { %13222 = vmatprep.subr.bf16.mxu1 %v15871_v47  ;;  %v15946_v47 = vld [vmem:[#allocation7 + $0x204] ss:$16 sps:$4 sm:$0xff]   ;;  %v16013_v2 = vld [vmem:[#allocation7 + $0x368] ss:$16 sps:$4 sm:$0xff]  }
 0x66c   :  { %13059 = vmatpush1.bf16.msra.mxu0 %v15866_v1  ;;  %v15949_v1 = vld [vmem:[#allocation7 + $0x20c] ss:$16 sps:$4 sm:$0xff]  }
 0x66d   :  { %13223 = vmatpush1.bf16.msra.mxu1 %v15869_v43  ;;  %13060 = vmatprep.subr.bf16.mxu0 %v15874_v29  ;;  %v11481_v43 = vmax.f32 %v15622_v0, 0.0  ;;  %v11486_v29 = vpack.c.bf16 %v11478_v46, %v11478_v46  ;;  %v1800_v0 = vsub.s32 2, %v16516_v44  ;;  %v16024_v46 = vld [vmem:[#allocation7 + $0x3a4] ss:$16 sps:$4 sm:$0xff]  }
 0x66e   :  { %13224 = vmatprep.subr.bf16.mxu1 %v15877_v53  ;;  %v15947_v53 = vld [vmem:[#allocation7 + $0x208] ss:$16 sps:$4 sm:$0xff]  }
 0x670   :  { %13061 = vmatpush1.bf16.msra.mxu0 %v15872_v31  ;;  %v15952_v31 = vld [vmem:[#allocation7 + $0x224] ss:$16 sps:$4 sm:$0xff]  }
 0x671   :  { %13225 = vmatpush1.bf16.msra.mxu1 %v15875_v9  ;;  %13062 = vmatprep.subr.bf16.mxu0 %v15880_v49  ;;  %v11489_v9 = vpack.c.bf16 %v11481_v43, %v11481_v43  ;;  %v15950_v49 = vld [vmem:[#allocation7 + $0x220] ss:$16 sps:$4 sm:$0xff]   ;;  %v16025_v43 = vld [vmem:[#allocation7 + $0x3a8] ss:$16 sps:$4 sm:$0xff]  }
 0x672   :  { %13226 = vmatprep.subr.bf16.mxu1 %v15883_v23  ;;  %v15953_v23 = vld [vmem:[#allocation7 + $0x228] ss:$16 sps:$4 sm:$0xff]  }
 0x674   :  { %13063 = vmatpush1.bf16.msra.mxu0 %v15878_v50  ;;  %v15958_v50 = vld [vmem:[#allocation7 + $0x244] ss:$16 sps:$4 sm:$0xff]  }
 0x675   :  { %13227 = vmatpush1.bf16.msra.mxu1 %v15881_v12  ;;  %13064 = vmatprep.subr.bf16.mxu0 %v15886_v14  ;;  %v15961_v12 = vld [vmem:[#allocation7 + $0x24c] ss:$16 sps:$4 sm:$0xff]   ;;  %v15956_v14 = vld [vmem:[#allocation7 + $0x240] ss:$16 sps:$4 sm:$0xff]  }
 0x676   :  { %13228 = vmatprep.subr.bf16.mxu1 %v15889_v16  ;;  %v15959_v16 = vld [vmem:[#allocation7 + $0x248] ss:$16 sps:$4 sm:$0xff]  }
 0x678   :  { %13065 = vmatpush1.bf16.msra.mxu0 %v15884_v55  ;;  %v15964_v55 = vld [vmem:[#allocation7 + $0x264] ss:$16 sps:$4 sm:$0xff]  }
 0x679   :  { %13229 = vmatpush1.bf16.msra.mxu1 %v15887_v52  ;;  %13066 = vmatprep.subr.bf16.mxu0 %v15892_v56  ;;  %v15967_v52 = vld [vmem:[#allocation7 + $0x26c] ss:$16 sps:$4 sm:$0xff]   ;;  %v15962_v56 = vld [vmem:[#allocation7 + $0x260] ss:$16 sps:$4 sm:$0xff]  }
 0x67a   :  { %13230 = vmatprep.subr.bf16.mxu1 %v15895_v39  ;;  %v15965_v39 = vld [vmem:[#allocation7 + $0x268] ss:$16 sps:$4 sm:$0xff]  }
 0x67c   :  { %13067 = vmatpush1.bf16.msra.mxu0 %v15890_v36  ;;  %v15970_v36 = vld [vmem:[#allocation7 + $0x284] ss:$16 sps:$4 sm:$0xff]  }
 0x67d   :  { %13231 = vmatpush1.bf16.msra.mxu1 %v15893_v54  ;;  %13068 = vmatprep.subr.bf16.mxu0 %v15898_v58  ;;  %v15973_v54 = vld [vmem:[#allocation7 + $0x28c] ss:$16 sps:$4 sm:$0xff]   ;;  %v15968_v58 = vld [vmem:[#allocation7 + $0x280] ss:$16 sps:$4 sm:$0xff]  }
 0x67e   :  { %13232 = vmatprep.subr.bf16.mxu1 %v15901_v19  ;;  %v15971_v19 = vld [vmem:[#allocation7 + $0x288] ss:$16 sps:$4 sm:$0xff]  }
 0x680   :  { %13069 = vmatpush1.bf16.msra.mxu0 %v15896_v26  ;;  %v15976_v26 = vld [vmem:[#allocation7 + $0x2a4] ss:$16 sps:$4 sm:$0xff]  }
 0x681   :  { %13233 = vmatpush1.bf16.msra.mxu1 %v15899_v60  ;;  %13070 = vmatprep.subr.bf16.mxu0 %v15904_v61  ;;  %v15979_v60 = vld [vmem:[#allocation7 + $0x2ac] ss:$16 sps:$4 sm:$0xff]   ;;  %v15974_v61 = vld [vmem:[#allocation7 + $0x2a0] ss:$16 sps:$4 sm:$0xff]  }
 0x682   :  { %13234 = vmatprep.subr.bf16.mxu1 %v15907_v11  ;;  %v15977_v11 = vld [vmem:[#allocation7 + $0x2a8] ss:$16 sps:$4 sm:$0xff]  }
 0x684   :  { %13071 = vmatpush1.bf16.msra.mxu0 %v15902_v6  ;;  %v15982_v6 = vld [vmem:[#allocation7 + $0x2c4] ss:$16 sps:$4 sm:$0xff]  }
 0x685   :  { %13235 = vmatpush1.bf16.msra.mxu1 %v15905_v7  ;;  %13072 = vmatprep.subr.bf16.mxu0 %v15910_v10  ;;  %v15985_v7 = vld [vmem:[#allocation7 + $0x2cc] ss:$16 sps:$4 sm:$0xff]   ;;  %v15980_v10 = vld [vmem:[#allocation7 + $0x2c0] ss:$16 sps:$4 sm:$0xff]  }
 0x686   :  { %13236 = vmatprep.subr.bf16.mxu1 %v15913_v33  ;;  %v15983_v33 = vld [vmem:[#allocation7 + $0x2c8] ss:$16 sps:$4 sm:$0xff]  }
 0x688   :  { %13073 = vmatpush1.bf16.msra.mxu0 %v15908_v18  ;;  %v15988_v18 = vld [vmem:[#allocation7 + $0x2e4] ss:$16 sps:$4 sm:$0xff]  }
 0x689   :  { %13237 = vmatpush1.bf16.msra.mxu1 %v15911_v38  ;;  %13074 = vmatprep.subr.bf16.mxu0 %v15916_v15  ;;  %v15991_v38 = vld [vmem:[#allocation7 + $0x2ec] ss:$16 sps:$4 sm:$0xff]   ;;  %v15986_v15 = vld [vmem:[#allocation7 + $0x2e0] ss:$16 sps:$4 sm:$0xff]  }
 0x68a   :  { %13238 = vmatprep.subr.bf16.mxu1 %v15919_v59  ;;  %v15989_v59 = vld [vmem:[#allocation7 + $0x2e8] ss:$16 sps:$4 sm:$0xff]  }
 0x68c   :  { %13075 = vmatpush1.bf16.msra.mxu0 %v15914_v21  ;;  %v15994_v21 = vld [vmem:[#allocation7 + $0x304] ss:$16 sps:$4 sm:$0xff]  }
 0x68d   :  { %13239 = vmatpush1.bf16.msra.mxu1 %v15917_v22  ;;  %13076 = vmatprep.subr.bf16.mxu0 %v15922_v27  ;;  %v15997_v22 = vld [vmem:[#allocation7 + $0x30c] ss:$16 sps:$4 sm:$0xff]   ;;  %v15992_v27 = vld [vmem:[#allocation7 + $0x300] ss:$16 sps:$4 sm:$0xff]  }
 0x68e   :  { %13240 = vmatprep.subr.bf16.mxu1 %v15925_v32  ;;  %v15995_v32 = vld [vmem:[#allocation7 + $0x308] ss:$16 sps:$4 sm:$0xff]  }
 0x690   :  { %13077 = vmatpush1.bf16.msra.mxu0 %v15920_v34  ;;  %v16000_v34 = vld [vmem:[#allocation7 + $0x324] ss:$16 sps:$4 sm:$0xff]  }
 0x691   :  { %13241 = vmatpush1.bf16.msra.mxu1 %v15923_v41  ;;  %13078 = vmatprep.subr.bf16.mxu0 %v15928_v35  ;;  %v16003_v41 = vld [vmem:[#allocation7 + $0x32c] ss:$16 sps:$4 sm:$0xff]   ;;  %v15998_v35 = vld [vmem:[#allocation7 + $0x320] ss:$16 sps:$4 sm:$0xff]  }
 0x692   :  { %13242 = vmatprep.subr.bf16.mxu1 %v15931_v63  ;;  %v16001_v63 = vld [vmem:[#allocation7 + $0x328] ss:$16 sps:$4 sm:$0xff]  }
 0x694   :  { %13079 = vmatpush1.bf16.msra.mxu0 %v15926_v40  ;;  %v16006_v40 = vld [vmem:[#allocation7 + $0x344] ss:$16 sps:$4 sm:$0xff]  }
 0x695   :  { %13243 = vmatpush1.bf16.msra.mxu1 %v15929_v62  ;;  %13080 = vmatprep.subr.bf16.mxu0 %v15934_v42  ;;  %v16004_v62 = vld [vmem:[#allocation7 + $0x340] ss:$16 sps:$4 sm:$0xff]   ;;  %v16007_v42 = vld [vmem:[#allocation7 + $0x348] ss:$16 sps:$4 sm:$0xff]  }
 0x696   :  { %13244 = vmatprep.subr.bf16.mxu1 %v15937_v45  ;;  %v16012_v45 = vld [vmem:[#allocation7 + $0x364] ss:$16 sps:$4 sm:$0xff]  }
 0x698   :  { %13081 = vmatpush1.bf16.msra.mxu0 %v15932_v4  ;;  %v16010_v4 = vld [vmem:[#allocation7 + $0x360] ss:$16 sps:$4 sm:$0xff]  }
 0x699   :  { %13245 = vmatpush1.bf16.msra.mxu1 %v15935_v17  ;;  %13082 = vmatprep.subr.bf16.mxu0 %v15940_v51  ;;  %v16018_v17 = vld [vmem:[#allocation7 + $0x384] ss:$16 sps:$4 sm:$0xff]   ;;  %v16021_v51 = vld [vmem:[#allocation7 + $0x38c] ss:$16 sps:$4 sm:$0xff]  }
 0x69a   :  { %13246 = vmatprep.subr.bf16.mxu1 %v15943_v5  ;;  %v16016_v5 = vld [vmem:[#allocation7 + $0x380] ss:$16 sps:$4 sm:$0xff]  }
 0x69c   :  { %13083 = vmatpush1.bf16.msra.mxu0 %v15938_v48  ;;  %v16019_v48 = vld [vmem:[#allocation7 + $0x388] ss:$16 sps:$4 sm:$0xff]  }
 0x69d   :  { %13247 = vmatpush1.bf16.msra.mxu1 %v15941_v25  ;;  %13093 = vmatprep.subr.bf16.mxu0 %v15946_v47  ;;  %v16027_v25 = vld [vmem:[#allocation7 + $0x3ac] ss:$16 sps:$4 sm:$0xff]   ;;  %v16022_v47 = vld [vmem:[#allocation7 + $0x3a0] ss:$16 sps:$4 sm:$0xff]  }
 0x69e   :  { %13257 = vmatprep.subr.bf16.mxu1 %v15949_v1  ;;  %v1801_v1 = vrot.slane %v16804_v8, %v1800_v0 }
 0x69f   :  { %13085 = vmatmul.mubr.bf16.vlgmr.msra.gmra.mrb[8].mxu0 %v11486_v29 }
 0x6a0   :  { %13249 = vmatmul.mubr.bf16.vlgmr.msra.gmra.mrb[8].mxu1 %v11486_v29  ;;  %13094 = vmatpush1.bf16.msra.mxu0 %v15944_v13  ;;  %v16030_v13 = vld [vmem:[#allocation7 + $0x3c4] ss:$16 sps:$4 sm:$0xff]   ;;  %v16033_v29 = vld [vmem:[#allocation7 + $0x3cc] ss:$16 sps:$4 sm:$0xff]  }
 0x6a1   :  { %13125 = vmatprep.mubr.bf16.mxu0 %v11489_v9  ;;  %13258 = vmatpush1.bf16.msra.mxu1 %v15947_v53  ;;  %v16028_v53 = vld [vmem:[#allocation7 + $0x3c0] ss:$16 sps:$4 sm:$0xff]  }
 0x6a2   :  { %13289 = vmatprep.mubr.bf16.mxu1 %v11489_v9  ;;  %13095 = vmatprep.subr.bf16.mxu0 %v15952_v31  ;;  %v15621_v31 = vadd.f32 %v16765_v20, %v1801_v1  ;;  %v16031_v9 = vld [vmem:[#allocation7 + $0x3c8] ss:$16 sps:$4 sm:$0xff]   ;;  %v16111_v1 = vld [vmem:[#allocation7 + $0x56c] ss:$16 sps:$4 sm:$0xff]  }
 0x6a3   :  { %13259 = vmatprep.subr.bf16.mxu1 %v15955_v24  ;;  %v16036_v24 = vld [vmem:[#allocation7 + $0x3e4] ss:$16 sps:$4 sm:$0xff]   ;;  %v16043_v20 = vld [vmem:[#allocation7 + $0x408] ss:$16 sps:$4 sm:$0xff]  }
 0x6a4   :  { %13096 = vmatpush1.bf16.msra.mxu0 %v15950_v49  ;;  %v16039_v49 = vld [vmem:[#allocation7 + $0x3ec] ss:$16 sps:$4 sm:$0xff]  }
 0x6a5   :  { %13260 = vmatpush1.bf16.msra.mxu1 %v15953_v23  ;;  %13097 = vmatprep.subr.bf16.mxu0 %v15958_v50  ;;  %v16034_v23 = vld [vmem:[#allocation7 + $0x3e0] ss:$16 sps:$4 sm:$0xff]   ;;  %v11480_v50 = vmax.f32 %v15621_v31, 0.0 }
 0x6a6   :  { %13261 = vmatprep.subr.bf16.mxu1 %v15961_v12  ;;  %v16037_v12 = vld [vmem:[#allocation7 + $0x3e8] ss:$16 sps:$4 sm:$0xff]   ;;  %v16112_v31 = vld [vmem:[#allocation7 + $0x580] ss:$16 sps:$4 sm:$0xff]  }
 0x6a8   :  { %13098 = vmatpush1.bf16.msra.mxu0 %v15956_v14  ;;  %v16042_v14 = vld [vmem:[#allocation7 + $0x404] ss:$16 sps:$4 sm:$0xff]  }
 0x6a9   :  { %13262 = vmatpush1.bf16.msra.mxu1 %v15959_v16  ;;  %13099 = vmatprep.subr.bf16.mxu0 %v15964_v55  ;;  %v16045_v16 = vld [vmem:[#allocation7 + $0x40c] ss:$16 sps:$4 sm:$0xff]   ;;  %v16040_v55 = vld [vmem:[#allocation7 + $0x400] ss:$16 sps:$4 sm:$0xff]  }
 0x6aa   :  { %13263 = vmatprep.subr.bf16.mxu1 %v15967_v52  ;;  %v11488_v52 = vpack.c.bf16 %v11480_v50, %v11480_v50  ;;  %v16121_v50 = vld [vmem:[#allocation7 + $0x5a8] ss:$16 sps:$4 sm:$0xff]  }
 0x6ac   :  { %13100 = vmatpush1.bf16.msra.mxu0 %v15962_v56  ;;  %v16048_v56 = vld [vmem:[#allocation7 + $0x424] ss:$16 sps:$4 sm:$0xff]  }
 0x6ad   :  { %13264 = vmatpush1.bf16.msra.mxu1 %v15965_v39  ;;  %13101 = vmatprep.subr.bf16.mxu0 %v15970_v36  ;;  %v16051_v39 = vld [vmem:[#allocation7 + $0x42c] ss:$16 sps:$4 sm:$0xff]   ;;  %v16046_v36 = vld [vmem:[#allocation7 + $0x420] ss:$16 sps:$4 sm:$0xff]  }
 0x6ae   :  { %13265 = vmatprep.subr.bf16.mxu1 %v15973_v54  ;;  %v16049_v54 = vld [vmem:[#allocation7 + $0x428] ss:$16 sps:$4 sm:$0xff]  }
 0x6b0   :  { %13102 = vmatpush1.bf16.msra.mxu0 %v15968_v58  ;;  %v16054_v58 = vld [vmem:[#allocation7 + $0x444] ss:$16 sps:$4 sm:$0xff]  }
 0x6b1   :  { %13266 = vmatpush1.bf16.msra.mxu1 %v15971_v19  ;;  %13103 = vmatprep.subr.bf16.mxu0 %v15976_v26  ;;  %v16057_v19 = vld [vmem:[#allocation7 + $0x44c] ss:$16 sps:$4 sm:$0xff]   ;;  %v16052_v26 = vld [vmem:[#allocation7 + $0x440] ss:$16 sps:$4 sm:$0xff]  }
 0x6b2   :  { %13267 = vmatprep.subr.bf16.mxu1 %v15979_v60  ;;  %v16055_v60 = vld [vmem:[#allocation7 + $0x448] ss:$16 sps:$4 sm:$0xff]  }
 0x6b4   :  { %13104 = vmatpush1.bf16.msra.mxu0 %v15974_v61  ;;  %v16060_v61 = vld [vmem:[#allocation7 + $0x464] ss:$16 sps:$4 sm:$0xff]  }
 0x6b5   :  { %13268 = vmatpush1.bf16.msra.mxu1 %v15977_v11  ;;  %13105 = vmatprep.subr.bf16.mxu0 %v15982_v6  ;;  %v16063_v11 = vld [vmem:[#allocation7 + $0x46c] ss:$16 sps:$4 sm:$0xff]   ;;  %v16058_v6 = vld [vmem:[#allocation7 + $0x460] ss:$16 sps:$4 sm:$0xff]  }
 0x6b6   :  { %13269 = vmatprep.subr.bf16.mxu1 %v15985_v7  ;;  %v16061_v7 = vld [vmem:[#allocation7 + $0x468] ss:$16 sps:$4 sm:$0xff]  }
 0x6b8   :  { %13106 = vmatpush1.bf16.msra.mxu0 %v15980_v10  ;;  %v16066_v10 = vld [vmem:[#allocation7 + $0x484] ss:$16 sps:$4 sm:$0xff]  }
 0x6b9   :  { %13270 = vmatpush1.bf16.msra.mxu1 %v15983_v33  ;;  %13107 = vmatprep.subr.bf16.mxu0 %v15988_v18  ;;  %v16069_v33 = vld [vmem:[#allocation7 + $0x48c] ss:$16 sps:$4 sm:$0xff]   ;;  %v16064_v18 = vld [vmem:[#allocation7 + $0x480] ss:$16 sps:$4 sm:$0xff]  }
 0x6ba   :  { %13271 = vmatprep.subr.bf16.mxu1 %v15991_v38  ;;  %v16067_v38 = vld [vmem:[#allocation7 + $0x488] ss:$16 sps:$4 sm:$0xff]  }
 0x6bc   :  { %13108 = vmatpush1.bf16.msra.mxu0 %v15986_v15  ;;  %v16072_v15 = vld [vmem:[#allocation7 + $0x4a4] ss:$16 sps:$4 sm:$0xff]  }
 0x6bd   :  { %13272 = vmatpush1.bf16.msra.mxu1 %v15989_v59  ;;  %13109 = vmatprep.subr.bf16.mxu0 %v15994_v21  ;;  %v16075_v59 = vld [vmem:[#allocation7 + $0x4ac] ss:$16 sps:$4 sm:$0xff]   ;;  %v16070_v21 = vld [vmem:[#allocation7 + $0x4a0] ss:$16 sps:$4 sm:$0xff]  }
 0x6be   :  { %13273 = vmatprep.subr.bf16.mxu1 %v15997_v22  ;;  %v16073_v22 = vld [vmem:[#allocation7 + $0x4a8] ss:$16 sps:$4 sm:$0xff]  }
 0x6c0   :  { %13110 = vmatpush1.bf16.msra.mxu0 %v15992_v27  ;;  %v16078_v27 = vld [vmem:[#allocation7 + $0x4c4] ss:$16 sps:$4 sm:$0xff]  }
 0x6c1   :  { %13274 = vmatpush1.bf16.msra.mxu1 %v15995_v32  ;;  %13111 = vmatprep.subr.bf16.mxu0 %v16000_v34  ;;  %v16081_v32 = vld [vmem:[#allocation7 + $0x4cc] ss:$16 sps:$4 sm:$0xff]   ;;  %v16076_v34 = vld [vmem:[#allocation7 + $0x4c0] ss:$16 sps:$4 sm:$0xff]  }
 0x6c2   :  { %13275 = vmatprep.subr.bf16.mxu1 %v16003_v41  ;;  %v16079_v41 = vld [vmem:[#allocation7 + $0x4c8] ss:$16 sps:$4 sm:$0xff]  }
 0x6c4   :  { %13112 = vmatpush1.bf16.msra.mxu0 %v15998_v35  ;;  %v16084_v35 = vld [vmem:[#allocation7 + $0x4e4] ss:$16 sps:$4 sm:$0xff]  }
 0x6c5   :  { %13276 = vmatpush1.bf16.msra.mxu1 %v16001_v63  ;;  %13113 = vmatprep.subr.bf16.mxu0 %v16006_v40  ;;  %v16087_v63 = vld [vmem:[#allocation7 + $0x4ec] ss:$16 sps:$4 sm:$0xff]   ;;  %v16082_v40 = vld [vmem:[#allocation7 + $0x4e0] ss:$16 sps:$4 sm:$0xff]  }
 0x6c6   :  { %13277 = vmatprep.subr.bf16.mxu1 %v16009_v57  ;;  %v16085_v57 = vld [vmem:[#allocation7 + $0x4e8] ss:$16 sps:$4 sm:$0xff]  }
 0x6c8   :  { %13114 = vmatpush1.bf16.msra.mxu0 %v16004_v62  ;;  %v16090_v62 = vld [vmem:[#allocation7 + $0x504] ss:$16 sps:$4 sm:$0xff]  }
 0x6c9   :  { %13278 = vmatpush1.bf16.msra.mxu1 %v16007_v42  ;;  %13115 = vmatprep.subr.bf16.mxu0 %v16012_v45  ;;  %v16093_v42 = vld [vmem:[#allocation7 + $0x50c] ss:$16 sps:$4 sm:$0xff]   ;;  %v16088_v45 = vld [vmem:[#allocation7 + $0x500] ss:$16 sps:$4 sm:$0xff]  }
 0x6ca   :  { %13279 = vmatprep.subr.bf16.mxu1 %v16015_v28  ;;  %v16091_v28 = vld [vmem:[#allocation7 + $0x508] ss:$16 sps:$4 sm:$0xff]  }
 0x6cc   :  { %13116 = vmatpush1.bf16.msra.mxu0 %v16010_v4  ;;  %v16096_v4 = vld [vmem:[#allocation7 + $0x524] ss:$16 sps:$4 sm:$0xff]  }
 0x6cd   :  { %13280 = vmatpush1.bf16.msra.mxu1 %v16013_v2  ;;  %13117 = vmatprep.subr.bf16.mxu0 %v16018_v17  ;;  %v16099_v2 = vld [vmem:[#allocation7 + $0x52c] ss:$16 sps:$4 sm:$0xff]   ;;  %v16094_v17 = vld [vmem:[#allocation7 + $0x520] ss:$16 sps:$4 sm:$0xff]  }
 0x6ce   :  { %13281 = vmatprep.subr.bf16.mxu1 %v16021_v51  ;;  %v16097_v51 = vld [vmem:[#allocation7 + $0x528] ss:$16 sps:$4 sm:$0xff]  }
 0x6d0   :  { %13118 = vmatpush1.bf16.msra.mxu0 %v16016_v5  ;;  %v16102_v5 = vld [vmem:[#allocation7 + $0x544] ss:$16 sps:$4 sm:$0xff]  }
 0x6d1   :  { %13282 = vmatpush1.bf16.msra.mxu1 %v16019_v48  ;;  %13119 = vmatprep.subr.bf16.mxu0 %v16024_v46  ;;  %v16105_v48 = vld [vmem:[#allocation7 + $0x54c] ss:$16 sps:$4 sm:$0xff]   ;;  %v16100_v46 = vld [vmem:[#allocation7 + $0x540] ss:$16 sps:$4 sm:$0xff]  }
 0x6d2   :  { %13283 = vmatprep.subr.bf16.mxu1 %v16027_v25  ;;  %v16103_v25 = vld [vmem:[#allocation7 + $0x548] ss:$16 sps:$4 sm:$0xff]  }
 0x6d4   :  { %13120 = vmatpush1.bf16.msra.mxu0 %v16022_v47  ;;  %v16108_v47 = vld [vmem:[#allocation7 + $0x564] ss:$16 sps:$4 sm:$0xff]  }
 0x6d5   :  { %13284 = vmatpush1.bf16.msra.mxu1 %v16025_v43  ;;  %13121 = vmatprep.subr.bf16.mxu0 %v16030_v13  ;;  %v16106_v43 = vld [vmem:[#allocation7 + $0x560] ss:$16 sps:$4 sm:$0xff]   ;;  %v16109_v13 = vld [vmem:[#allocation7 + $0x568] ss:$16 sps:$4 sm:$0xff]  }
 0x6d6   :  { %13285 = vmatprep.subr.bf16.mxu1 %v16033_v29  ;;  %v16114_v29 = vld [vmem:[#allocation7 + $0x584] ss:$16 sps:$4 sm:$0xff]  }
 0x6d8   :  { %13122 = vmatpush1.bf16.msra.mxu0 %v16028_v53  ;;  %v16117_v53 = vld [vmem:[#allocation7 + $0x58c] ss:$16 sps:$4 sm:$0xff]  }
 0x6d9   :  { %13286 = vmatpush1.bf16.msra.mxu1 %v16031_v9  ;;  %13123 = vmatprep.subr.bf16.mxu0 %v16036_v24  ;;  %v16115_v9 = vld [vmem:[#allocation7 + $0x588] ss:$16 sps:$4 sm:$0xff]   ;;  %v16120_v24 = vld [vmem:[#allocation7 + $0x5a4] ss:$16 sps:$4 sm:$0xff]  }
 0x6da   :  { %13287 = vmatprep.subr.bf16.mxu1 %v16039_v49  ;;  %v16123_v49 = vld [vmem:[#allocation7 + $0x5ac] ss:$16 sps:$4 sm:$0xff]  }
 0x6dc   :  { %13124 = vmatpush1.bf16.msra.mxu0 %v16034_v23  ;;  %v16118_v23 = vld [vmem:[#allocation7 + $0x5a0] ss:$16 sps:$4 sm:$0xff]  }
 0x6dd   :  { %13288 = vmatpush1.bf16.msra.mxu1 %v16037_v12  ;;  %13134 = vmatprep.subr.bf16.mxu0 %v16042_v14  ;;  %v16126_v12 = vld [vmem:[#allocation7 + $0x5c4] ss:$16 sps:$4 sm:$0xff]   ;;  %v16129_v14 = vld [vmem:[#allocation7 + $0x5cc] ss:$16 sps:$4 sm:$0xff]  }
 0x6de   :  { %13298 = vmatprep.subr.bf16.mxu1 %v16045_v16  ;;  %v16124_v16 = vld [vmem:[#allocation7 + $0x5c0] ss:$16 sps:$4 sm:$0xff]  }
 0x6df   :  { %13126 = vmatmul.mubr.bf16.vlgmr.msra.gmra.mrb[8].mxu0 %v11488_v52 }
 0x6e0   :  { %13290 = vmatmul.mubr.bf16.vlgmr.msra.gmra.mrb[8].mxu1 %v11488_v52  ;;  %13135 = vmatpush1.bf16.msra.mxu0 %v16040_v55  ;;  %v16127_v55 = vld [vmem:[#allocation7 + $0x5c8] ss:$16 sps:$4 sm:$0xff]   ;;  %v16132_v52 = vld [vmem:[#allocation7 + $0x5e4] ss:$16 sps:$4 sm:$0xff]  }
 0x6e1   :  { %13299 = vmatpush1.bf16.msra.mxu1 %v16043_v20  ;;  %13136 = vmatprep.subr.bf16.mxu0 %v16048_v56  ;;  %v16135_v20 = vld [vmem:[#allocation7 + $0x5ec] ss:$16 sps:$4 sm:$0xff]   ;;  %v16130_v56 = vld [vmem:[#allocation7 + $0x5e0] ss:$16 sps:$4 sm:$0xff]  }
 0x6e2   :  { %13300 = vmatprep.subr.bf16.mxu1 %v16051_v39  ;;  %v16133_v39 = vld [vmem:[#allocation7 + $0x5e8] ss:$16 sps:$4 sm:$0xff]  }
 0x6e4   :  { %13137 = vmatpush1.bf16.msra.mxu0 %v16046_v36  ;;  %v16138_v36 = vld [vmem:[#allocation7 + $0x604] ss:$16 sps:$4 sm:$0xff]  }
 0x6e5   :  { %13301 = vmatpush1.bf16.msra.mxu1 %v16049_v54  ;;  %13138 = vmatprep.subr.bf16.mxu0 %v16054_v58  ;;  %v16141_v54 = vld [vmem:[#allocation7 + $0x60c] ss:$16 sps:$4 sm:$0xff]   ;;  %v1808_v58 = vsub.s32 4, %v16516_v44 }
 0x6e6   :  { %13302 = vmatprep.subr.bf16.mxu1 %v16057_v19  ;;  %v1812_v19 = vsub.s32 5, %v16516_v44 }
 0x6e8   :  { %13139 = vmatpush1.bf16.msra.mxu0 %v16052_v26  ;;  %v1820_v26 = vsub.s32 7, %v16516_v44 }
 0x6e9   :  { %13303 = vmatpush1.bf16.msra.mxu1 %v16055_v60  ;;  %13140 = vmatprep.subr.bf16.mxu0 %v16060_v61  ;;  %v1809_v60 = vrot.slane %v16804_v8, %v1808_v58  ;;  %v1813_v61 = vrot.slane %v16804_v8, %v1812_v19  ;;  %v16190_v58 = vld [vmem:[#allocation7 + $0x720] ss:$16 sps:$4 sm:$0xff]   ;;  %v16193_v19 = vld [vmem:[#allocation7 + $0x728] ss:$16 sps:$4 sm:$0xff]  }
 0x6ea   :  { %13304 = vmatprep.subr.bf16.mxu1 %v16063_v11  ;;  %v1821_v11 = vrot.slane %v16804_v8, %v1820_v26  ;;  %v16144_v8 = vld [vmem:[#allocation7 + $0x624] ss:$16 sps:$4 sm:$0xff]  }
 0x6eb   :  { %v16198_v26 = vld [vmem:[#allocation7 + $0x744] ss:$16 sps:$4 sm:$0xff]  }
 0x6ec   :  { %13141 = vmatpush1.bf16.msra.mxu0 %v16058_v6 }
 0x6ed   :  { %13305 = vmatpush1.bf16.msra.mxu1 %v16061_v7  ;;  %13142 = vmatprep.subr.bf16.mxu0 %v16066_v10 }
 0x6ee   :  { %13306 = vmatprep.subr.bf16.mxu1 %v16069_v33 }
 0x6f0   :  { %13143 = vmatpush1.bf16.msra.mxu0 %v16064_v18 }
 0x6f1   :  { %13307 = vmatpush1.bf16.msra.mxu1 %v16067_v38  ;;  %13144 = vmatprep.subr.bf16.mxu0 %v16072_v15 }
 0x6f2   :  { %13308 = vmatprep.subr.bf16.mxu1 %v16075_v59 }
 0x6f4   :  { %13145 = vmatpush1.bf16.msra.mxu0 %v16070_v21 }
 0x6f5   :  { %13309 = vmatpush1.bf16.msra.mxu1 %v16073_v22  ;;  %13146 = vmatprep.subr.bf16.mxu0 %v16078_v27 }
 0x6f6   :  { %13310 = vmatprep.subr.bf16.mxu1 %v16081_v32 }
 0x6f8   :  { %13147 = vmatpush1.bf16.msra.mxu0 %v16076_v34 }
 0x6f9   :  { %13311 = vmatpush1.bf16.msra.mxu1 %v16079_v41  ;;  %13148 = vmatprep.subr.bf16.mxu0 %v16084_v35 }
 0x6fa   :  { %13312 = vmatprep.subr.bf16.mxu1 %v16087_v63  ;;  %v16136_v63 = vld [vmem:[#allocation7 + $0x600] ss:$16 sps:$4 sm:$0xff]  }
 0x6fc   :  { %13149 = vmatpush1.bf16.msra.mxu0 %v16082_v40  ;;  %v16139_v40 = vld [vmem:[#allocation7 + $0x608] ss:$16 sps:$4 sm:$0xff]  }
 0x6fd   :  { %13313 = vmatpush1.bf16.msra.mxu1 %v16085_v57  ;;  %13150 = vmatprep.subr.bf16.mxu0 %v16090_v62  ;;  %v16147_v62 = vld [vmem:[#allocation7 + $0x62c] ss:$16 sps:$4 sm:$0xff]  }
 0x6fe   :  { %13314 = vmatprep.subr.bf16.mxu1 %v16093_v42 }
 0x700   :  { %13151 = vmatpush1.bf16.msra.mxu0 %v16088_v45  ;;  %v16142_v45 = vld [vmem:[#allocation7 + $0x620] ss:$16 sps:$4 sm:$0xff]  }
 0x701   :  { %13315 = vmatpush1.bf16.msra.mxu1 %v16091_v28  ;;  %13152 = vmatprep.subr.bf16.mxu0 %v16096_v4  ;;  %v16145_v28 = vld [vmem:[#allocation7 + $0x628] ss:$16 sps:$4 sm:$0xff]   ;;  %v16150_v4 = vld [vmem:[#allocation7 + $0x644] ss:$16 sps:$4 sm:$0xff]  }
 0x702   :  { %13316 = vmatprep.subr.bf16.mxu1 %v16099_v2  ;;  %v16153_v2 = vld [vmem:[#allocation7 + $0x64c] ss:$16 sps:$4 sm:$0xff]  }
 0x704   :  { %13153 = vmatpush1.bf16.msra.mxu0 %v16094_v17  ;;  %v16148_v17 = vld [vmem:[#allocation7 + $0x640] ss:$16 sps:$4 sm:$0xff]  }
 0x705   :  { %13317 = vmatpush1.bf16.msra.mxu1 %v16097_v51  ;;  %13154 = vmatprep.subr.bf16.mxu0 %v16102_v5  ;;  %v16151_v51 = vld [vmem:[#allocation7 + $0x648] ss:$16 sps:$4 sm:$0xff]   ;;  %v16156_v5 = vld [vmem:[#allocation7 + $0x664] ss:$16 sps:$4 sm:$0xff]  }
 0x706   :  { %13318 = vmatprep.subr.bf16.mxu1 %v16105_v48  ;;  %v16159_v48 = vld [vmem:[#allocation7 + $0x66c] ss:$16 sps:$4 sm:$0xff]  }
 0x708   :  { %13155 = vmatpush1.bf16.msra.mxu0 %v16100_v46  ;;  %v16154_v46 = vld [vmem:[#allocation7 + $0x660] ss:$16 sps:$4 sm:$0xff]  }
 0x709   :  { %13319 = vmatpush1.bf16.msra.mxu1 %v16103_v25  ;;  %13156 = vmatprep.subr.bf16.mxu0 %v16108_v47  ;;  %v16157_v25 = vld [vmem:[#allocation7 + $0x668] ss:$16 sps:$4 sm:$0xff]   ;;  %v16162_v47 = vld [vmem:[#allocation7 + $0x684] ss:$16 sps:$4 sm:$0xff]  }
 0x70a   :  { %13320 = vmatprep.subr.bf16.mxu1 %v16111_v1  ;;  %v16165_v1 = vld [vmem:[#allocation7 + $0x68c] ss:$16 sps:$4 sm:$0xff]  }
 0x70c   :  { %13157 = vmatpush1.bf16.msra.mxu0 %v16106_v43  ;;  %v16160_v43 = vld [vmem:[#allocation7 + $0x680] ss:$16 sps:$4 sm:$0xff]  }
 0x70d   :  { %13321 = vmatpush1.bf16.msra.mxu1 %v16109_v13  ;;  %13158 = vmatprep.subr.bf16.mxu0 %v16114_v29  ;;  %v16163_v13 = vld [vmem:[#allocation7 + $0x688] ss:$16 sps:$4 sm:$0xff]   ;;  %v16168_v29 = vld [vmem:[#allocation7 + $0x6a4] ss:$16 sps:$4 sm:$0xff]  }
 0x70e   :  { %13322 = vmatprep.subr.bf16.mxu1 %v16117_v53  ;;  %v16171_v53 = vld [vmem:[#allocation7 + $0x6ac] ss:$16 sps:$4 sm:$0xff]  }
 0x710   :  { %13159 = vmatpush1.bf16.msra.mxu0 %v16112_v31  ;;  %v16166_v31 = vld [vmem:[#allocation7 + $0x6a0] ss:$16 sps:$4 sm:$0xff]  }
 0x711   :  { %13323 = vmatpush1.bf16.msra.mxu1 %v16115_v9  ;;  %13160 = vmatprep.subr.bf16.mxu0 %v16120_v24  ;;  %v16169_v9 = vld [vmem:[#allocation7 + $0x6a8] ss:$16 sps:$4 sm:$0xff]   ;;  %v16174_v24 = vld [vmem:[#allocation7 + $0x6c4] ss:$16 sps:$4 sm:$0xff]  }
 0x712   :  { %13324 = vmatprep.subr.bf16.mxu1 %v16123_v49  ;;  %v16177_v49 = vld [vmem:[#allocation7 + $0x6cc] ss:$16 sps:$4 sm:$0xff]  }
 0x714   :  { %13161 = vmatpush1.bf16.msra.mxu0 %v16118_v23  ;;  %v16172_v23 = vld [vmem:[#allocation7 + $0x6c0] ss:$16 sps:$4 sm:$0xff]  }
 0x715   :  { %13325 = vmatpush1.bf16.msra.mxu1 %v16121_v50  ;;  %13162 = vmatprep.subr.bf16.mxu0 %v16126_v12  ;;  %v16175_v50 = vld [vmem:[#allocation7 + $0x6c8] ss:$16 sps:$4 sm:$0xff]   ;;  %v16180_v12 = vld [vmem:[#allocation7 + $0x6e4] ss:$16 sps:$4 sm:$0xff]  }
 0x716   :  { %13326 = vmatprep.subr.bf16.mxu1 %v16129_v14  ;;  %v16183_v14 = vld [vmem:[#allocation7 + $0x6ec] ss:$16 sps:$4 sm:$0xff]  }
 0x718   :  { %13163 = vmatpush1.bf16.msra.mxu0 %v16124_v16  ;;  %v16178_v16 = vld [vmem:[#allocation7 + $0x6e0] ss:$16 sps:$4 sm:$0xff]  }
 0x719   :  { %13327 = vmatpush1.bf16.msra.mxu1 %v16127_v55  ;;  %13164 = vmatprep.subr.bf16.mxu0 %v16132_v52  ;;  %v16181_v55 = vld [vmem:[#allocation7 + $0x6e8] ss:$16 sps:$4 sm:$0xff]   ;;  %v16186_v52 = vld [vmem:[#allocation7 + $0x704] ss:$16 sps:$4 sm:$0xff]  }
 0x71a   :  { %13328 = vmatprep.subr.bf16.mxu1 %v16135_v20  ;;  %v16189_v20 = vld [vmem:[#allocation7 + $0x70c] ss:$16 sps:$4 sm:$0xff]  }
 0x71c   :  { %13165 = vmatpush1.bf16.msra.mxu0 %v16130_v56  ;;  %v16184_v56 = vld [vmem:[#allocation7 + $0x700] ss:$16 sps:$4 sm:$0xff]  }
 0x71d   :  { %13329 = vmatpush1.bf16.msra.mxu1 %v16133_v39  ;;  %13175 = vmatprep.subr.bf16.mxu0 %v16138_v36  ;;  %v16187_v39 = vld [vmem:[#allocation7 + $0x708] ss:$16 sps:$4 sm:$0xff]   ;;  %v16192_v36 = vld [vmem:[#allocation7 + $0x724] ss:$16 sps:$4 sm:$0xff]  }
 0x71e   :  { %13339 = vmatprep.subr.bf16.mxu1 %v16141_v54  ;;  %v16195_v54 = vld [vmem:[#allocation7 + $0x72c] ss:$16 sps:$4 sm:$0xff]  }
 0x732   :  { %v10979_v6 = vpop.f32.mrb[4].mxu0  ;;  %v16833_v10 = vpop.f32.mrb[4].mxu1 }
 0x733   :  { %v15623_v7 = vadd.f32 %v10979_v6, %v1809_v60  ;;  %v10981_v33 = vpop.f32.mrb[5].mxu0  ;;  %v11473_v38 = vpop.f32.mrb[5].mxu1  ;;  %v16201_v60 = vld [vmem:[#allocation7 + $0x74c] ss:$16 sps:$4 sm:$0xff]   ;;  %v16204_v6 = vld [vmem:[#allocation7 + $0x764] ss:$16 sps:$4 sm:$0xff]  }
 0x734   :  { %v15624_v18 = vadd.f32 %v10981_v33, %v1813_v61  ;;  %v10983_v15 = vpop.f32.mrb[6].mxu0  ;;  %v15626_v21 = vadd.f32 %v11473_v38, %v1821_v11  ;;  %v11475_v22 = vpop.f32.mrb[6].mxu1  ;;  %v16196_v61 = vld [vmem:[#allocation7 + $0x740] ss:$16 sps:$4 sm:$0xff]   ;;  %v16199_v11 = vld [vmem:[#allocation7 + $0x748] ss:$16 sps:$4 sm:$0xff]  }
 0x735   :  { %v11482_v59 = vmax.f32 %v15623_v7, 0.0  ;;  %v10984_v27 = vpop.f32.mrb[7].mxu0  ;;  %v11476_v34 = vpop.f32.mrb[7].mxu1  ;;  %v16207_v7 = vld [vmem:[#allocation7 + $0x76c] ss:$16 sps:$4 sm:$0xff]   ;;  %v1816_v22 = vsub.s32 6, %v16516_v44 }
 0x736   :  { %v11483_v32 = vmax.f32 %v15624_v18, 0.0  ;;  %v11485_v41 = vmax.f32 %v15626_v21, 0.0  ;;  %v16202_v33 = vld [vmem:[#allocation7 + $0x760] ss:$16 sps:$4 sm:$0xff]   ;;  %v16205_v18 = vld [vmem:[#allocation7 + $0x768] ss:$16 sps:$4 sm:$0xff]  }
 0x737   :  { %v11490_v57 = vpack.c.bf16 %v11482_v59, %v11482_v59  ;;  %v16210_v38 = vld [vmem:[#allocation7 + $0x784] ss:$16 sps:$4 sm:$0xff]   ;;  %v16213_v15 = vld [vmem:[#allocation7 + $0x78c] ss:$16 sps:$4 sm:$0xff]   ;;  %v16208_v59 = vld [vmem:[#allocation7 + $0x780] ss:$16 sps:$4 sm:$0xff]  }
 0x738   :  { %v11491_v35 = vpack.c.bf16 %v11483_v32, %v11483_v32  ;;  %v11493_v42 = vpack.c.bf16 %v11485_v41, %v11485_v41  ;;  %v16211_v21 = vld [vmem:[#allocation7 + $0x788] ss:$16 sps:$4 sm:$0xff]   ;;  %v16216_v27 = vld [vmem:[#allocation7 + $0x7a4] ss:$16 sps:$4 sm:$0xff]   ;;  %v16219_v32 = vld [vmem:[#allocation7 + $0x7ac] ss:$16 sps:$4 sm:$0xff]  }
 0x739   :  { %v16214_v34 = vld [vmem:[#allocation7 + $0x7a0] ss:$16 sps:$4 sm:$0xff]   ;;  %v16217_v41 = vld [vmem:[#allocation7 + $0x7a8] ss:$16 sps:$4 sm:$0xff]  }
 0x73a   :  { %13166 = vmatprep.mubr.bf16.mxu0 %v11491_v35  ;;  %13330 = vmatprep.mubr.bf16.mxu1 %v11491_v35  ;;  %v16264_v35 = vld [vmem:[#allocation5] sm:$0xff] }
 0x73b   :  { %13167 = vmatmul.mubr.bf16.vlgmr.msra.gmra.mrb[8].mxu0 %v11490_v57  ;;  %13331 = vmatmul.mubr.bf16.vlgmr.msra.gmra.mrb[8].mxu1 %v11490_v57  ;;  %v16225_v57 = vld [vmem:[#allocation7 + $0x7cc] ss:$16 sps:$4 sm:$0xff]  }
 0x73c   :  { %13176 = vmatpush1.bf16.msra.mxu0 %v16136_v63  ;;  %13340 = vmatpush1.bf16.msra.mxu1 %v16139_v40  ;;  %v1817_v63 = vrot.slane %v16264_v35, %v1816_v22  ;;  %v16222_v40 = vld [vmem:[#allocation7 + $0x7c4] ss:$16 sps:$4 sm:$0xff]  }
 0x73d   :  { %13207 = vmatprep.mubr.bf16.mxu0 %v11493_v42  ;;  %13371 = vmatprep.mubr.bf16.mxu1 %v11493_v42 }
 0x73e   :  { %13177 = vmatprep.subr.bf16.mxu0 %v16144_v8  ;;  %13341 = vmatprep.subr.bf16.mxu1 %v16147_v62  ;;  %v16220_v8 = vld [vmem:[#allocation7 + $0x7c0] ss:$16 sps:$4 sm:$0xff]   ;;  %v16223_v62 = vld [vmem:[#allocation7 + $0x7c8] ss:$16 sps:$4 sm:$0xff]   ;;  %v15625_v42 = vadd.f32 %v16833_v10, %v1817_v63 }
 0x73f   :  { %v16234_v10 = vld [vmem:[%s16958_s5] sm:$0xff]  }
 0x740   :  { %13178 = vmatpush1.bf16.msra.mxu0 %v16142_v45  ;;  %13342 = vmatpush1.bf16.msra.mxu1 %v16145_v28  ;;  %v16228_v45 = vld [vmem:[#allocation7 + $0x7e4] ss:$16 sps:$4 sm:$0xff]   ;;  %v16231_v28 = vld [vmem:[#allocation7 + $0x7ec] ss:$16 sps:$4 sm:$0xff]  }
 0x741   :  { %13179 = vmatprep.subr.bf16.mxu0 %v16150_v4  ;;  %13343 = vmatprep.subr.bf16.mxu1 %v16153_v2  ;;  %v16226_v4 = vld [vmem:[#allocation7 + $0x7e0] ss:$16 sps:$4 sm:$0xff]   ;;  %v16229_v2 = vld [vmem:[#allocation7 + $0x7e8] ss:$16 sps:$4 sm:$0xff]  }
 0x744   :  { %13180 = vmatpush1.bf16.msra.mxu0 %v16148_v17  ;;  %13344 = vmatpush1.bf16.msra.mxu1 %v16151_v51  ;;  %v11484_v17 = vmax.f32 %v15625_v42, 0.0  ;;  %v16232_v51 = vld [vmem:[%s16958_s5 + $0x40] sm:$0xff]  }
 0x745   :  { %13181 = vmatprep.subr.bf16.mxu0 %v16156_v5  ;;  %13345 = vmatprep.subr.bf16.mxu1 %v16159_v48  ;;  %v16233_v5 = vld [vmem:[%s16958_s5 + $0xc0] sm:$0xff]  }
 0x746   :  { %v16235_v48 = vld [vmem:[%s16958_s5 + $0x80] sm:$0xff]  }
 0x748   :  { %13182 = vmatpush1.bf16.msra.mxu0 %v16154_v46  ;;  %13346 = vmatpush1.bf16.msra.mxu1 %v16157_v25  ;;  %v11492_v46 = vpack.c.bf16 %v11484_v17, %v11484_v17  ;;  %v16236_v25 = vld [vmem:[%s16958_s5 + $0x48] sm:$0xff]  }
 0x749   :  { %13183 = vmatprep.subr.bf16.mxu0 %v16162_v47  ;;  %13347 = vmatprep.subr.bf16.mxu1 %v16165_v1  ;;  %v16237_v47 = vld [vmem:[%s16958_s5 + $0xc8] sm:$0xff]  }
 0x74a   :  { %v16238_v1 = vld [vmem:[%s16958_s5 + $0x8] sm:$0xff]  }
 0x74c   :  { %13184 = vmatpush1.bf16.msra.mxu0 %v16160_v43  ;;  %13348 = vmatpush1.bf16.msra.mxu1 %v16163_v13  ;;  %v16239_v43 = vld [vmem:[%s16958_s5 + $0x88] sm:$0xff]   ;;  %v16240_v13 = vld [vmem:[%s16958_s5 + $0x50] sm:$0xff]  }
 0x74d   :  { %13185 = vmatprep.subr.bf16.mxu0 %v16168_v29  ;;  %13349 = vmatprep.subr.bf16.mxu1 %v16171_v53  ;;  %v16241_v29 = vld [vmem:[%s16958_s5 + $0xd0] sm:$0xff]  }
 0x74e   :  { %v16242_v53 = vld [vmem:[%s16958_s5 + $0x10] sm:$0xff]  }
 0x750   :  { %13186 = vmatpush1.bf16.msra.mxu0 %v16166_v31  ;;  %13350 = vmatpush1.bf16.msra.mxu1 %v16169_v9  ;;  %v16243_v31 = vld [vmem:[%s16958_s5 + $0x90] sm:$0xff]   ;;  %v16244_v9 = vld [vmem:[%s16958_s5 + $0x58] sm:$0xff]  }
 0x751   :  { %13187 = vmatprep.subr.bf16.mxu0 %v16174_v24  ;;  %13351 = vmatprep.subr.bf16.mxu1 %v16177_v49  ;;  %v16245_v24 = vld [vmem:[%s16958_s5 + $0xd8] sm:$0xff]  }
 0x752   :  { %v16246_v49 = vld [vmem:[%s16958_s5 + $0x18] sm:$0xff]  }
 0x754   :  { %13188 = vmatpush1.bf16.msra.mxu0 %v16172_v23  ;;  %13352 = vmatpush1.bf16.msra.mxu1 %v16175_v50  ;;  %v16247_v23 = vld [vmem:[%s16958_s5 + $0x98] sm:$0xff]   ;;  %v16248_v50 = vld [vmem:[%s16958_s5 + $0x60] sm:$0xff]  }
 0x755   :  { %13189 = vmatprep.subr.bf16.mxu0 %v16180_v12  ;;  %13353 = vmatprep.subr.bf16.mxu1 %v16183_v14  ;;  %v16249_v12 = vld [vmem:[%s16958_s5 + $0xe0] sm:$0xff]  }
 0x756   :  { %v16250_v14 = vld [vmem:[%s16958_s5 + $0x20] sm:$0xff]  }
 0x758   :  { %13190 = vmatpush1.bf16.msra.mxu0 %v16178_v16  ;;  %13354 = vmatpush1.bf16.msra.mxu1 %v16181_v55  ;;  %v16251_v16 = vld [vmem:[%s16958_s5 + $0xa0] sm:$0xff]   ;;  %v16252_v55 = vld [vmem:[%s16958_s5 + $0x68] sm:$0xff]  }
 0x759   :  { %13191 = vmatprep.subr.bf16.mxu0 %v16186_v52  ;;  %13355 = vmatprep.subr.bf16.mxu1 %v16189_v20  ;;  %v16253_v52 = vld [vmem:[%s16958_s5 + $0xe8] sm:$0xff]  }
 0x75a   :  { %v16254_v20 = vld [vmem:[%s16958_s5 + $0x28] sm:$0xff]  }
 0x75c   :  { %13192 = vmatpush1.bf16.msra.mxu0 %v16184_v56  ;;  %13356 = vmatpush1.bf16.msra.mxu1 %v16187_v39  ;;  %v16255_v56 = vld [vmem:[%s16958_s5 + $0xa8] sm:$0xff]   ;;  %v16256_v39 = vld [vmem:[%s16958_s5 + $0x70] sm:$0xff]  }
 0x75d   :  { %13193 = vmatprep.subr.bf16.mxu0 %v16192_v36  ;;  %13357 = vmatprep.subr.bf16.mxu1 %v16195_v54  ;;  %v16257_v36 = vld [vmem:[%s16958_s5 + $0xf0] sm:$0xff]  }
 0x75e   :  { %v16258_v54 = vld [vmem:[%s16958_s5 + $0x30] sm:$0xff]  }
 0x760   :  { %13194 = vmatpush1.bf16.msra.mxu0 %v16190_v58  ;;  %13358 = vmatpush1.bf16.msra.mxu1 %v16193_v19  ;;  %v16259_v58 = vld [vmem:[%s16958_s5 + $0xb0] sm:$0xff]   ;;  %v16260_v19 = vld [vmem:[%s16958_s5 + $0x78] sm:$0xff]  }
 0x761   :  { %13195 = vmatprep.subr.bf16.mxu0 %v16198_v26  ;;  %13359 = vmatprep.subr.bf16.mxu1 %v16201_v60  ;;  %v16261_v26 = vld [vmem:[%s16958_s5 + $0xf8] sm:$0xff]  }
 0x762   :  { %v16262_v60 = vld [vmem:[%s16958_s5 + $0x38] sm:$0xff]  }
 0x764   :  { %13196 = vmatpush1.bf16.msra.mxu0 %v16196_v61  ;;  %13360 = vmatpush1.bf16.msra.mxu1 %v16199_v11  ;;  %v16263_v61 = vld [vmem:[%s16958_s5 + $0xb8] sm:$0xff]   ;;  %s16415_s5 = smov [#allocation11]  }
 0x765   :  { %13197 = vmatprep.subr.bf16.mxu0 %v16204_v6  ;;  %13361 = vmatprep.subr.bf16.mxu1 %v16207_v7  ;;  %v11750_v11 = vld [vmem:[#allocation8] sm:$0xf]  ;;  %s13739_s29 = sshll.u32 %s16415_s5, 4  ;;  %s13740_s29 = int_to_ptr.vmem [resolvable:$true] %s13739_s29 }
 0x766   :  { %v11755_v6 = vrot.slane %v11750_v11, %v1792_v30  ;;  %v11763_v7 = vrot.slane %v11750_v11, %v1800_v0  ;;  %s16375_s30 = scalar_lea.vmem %s13740_s29, 32  ;;  %p16380_p13 = scmp.lt.s32.totalorder %s13740_s29, %s13740_s29 }
 0x767   :  { %p16376_p12 = scmp.ne.s32.totalorder %s13740_s29, %s16375_s30  ;;  %p16381_p0 = scmp.lt.s32.totalorder %s16375_s30, %s16375_s30 }
 0x768   :  { %13198 = vmatpush1.bf16.msra.mxu0 %v16202_v33  ;;  %13362 = vmatpush1.bf16.msra.mxu1 %v16205_v18  ;;  %v11759_v33 = vrot.slane %v11750_v11, %v1796_v3  ;;  %v11767_v18 = vrot.slane %v11750_v11, %v1804_v37 }
 0x769   :  { %13199 = vmatprep.subr.bf16.mxu0 %v16210_v38  ;;  %13363 = vmatprep.subr.bf16.mxu1 %v16213_v15  ;;  %p16382_p1 = por %p16381_p0, %p16380_p13 }
 0x76b   :  { %p16383_p2 = pnand %p16382_p1, %p16376_p12 }
 0x76c   :  { %13200 = vmatpush1.bf16.msra.mxu0 %v16208_v59  ;;  %13364 = vmatpush1.bf16.msra.mxu1 %v16211_v21 }
 0x76d   :  { %13201 = vmatprep.subr.bf16.mxu0 %v16216_v27  ;;  %13365 = vmatprep.subr.bf16.mxu1 %v16219_v32 }
 0x770   :  { %13202 = vmatpush1.bf16.msra.mxu0 %v16214_v34  ;;  %13366 = vmatpush1.bf16.msra.mxu1 %v16217_v41 }
 0x771   :  { %13203 = vmatprep.subr.bf16.mxu0 %v16222_v40  ;;  %13367 = vmatprep.subr.bf16.mxu1 %v16225_v57 }
 0x774   :  { %13204 = vmatpush1.bf16.msra.mxu0 %v16220_v8  ;;  %13368 = vmatpush1.bf16.msra.mxu1 %v16223_v62 }
 0x775   :  { %13205 = vmatprep.subr.bf16.mxu0 %v16228_v45  ;;  %13369 = vmatprep.subr.bf16.mxu1 %v16231_v28  ;;  %v15542_v28 = vld [vmem:[#allocation10] ss:$0 sm:$0xff] }
 0x778   :  { %13206 = vmatpush1.bf16.msra.mxu0 %v16226_v4  ;;  %13370 = vmatpush1.bf16.msra.mxu1 %v16229_v2 }
 0x779   :  { %15575 = vmatprep.subr.bf16.mxu0 %v16232_v51  ;;  %15597 = vmatprep.subr.bf16.mxu1 %v16233_v5 }
 0x77b   :  { %13208 = vmatmul.mubr.bf16.vlgmr.msra.gmra.mrb[8].mxu0 %v11492_v46  ;;  %13372 = vmatmul.mubr.bf16.vlgmr.msra.gmra.mrb[8].mxu1 %v11492_v46 }
 0x77c   :  { %15576 = vmatpush3.bf16.msra.mxu0 %v16234_v10  ;;  %15598 = vmatpush3.bf16.msra.mxu1 %v16235_v48 }
 0x77d   :  { %15577 = vmatprep.subr.bf16.mxu0 %v16236_v25  ;;  %15599 = vmatprep.subr.bf16.mxu1 %v16237_v47 }
 0x780   :  { %15578 = vmatpush3.bf16.msra.mxu0 %v16238_v1  ;;  %15600 = vmatpush3.bf16.msra.mxu1 %v16239_v43 }
 0x781   :  { %15579 = vmatprep.subr.bf16.mxu0 %v16240_v13  ;;  %15601 = vmatprep.subr.bf16.mxu1 %v16241_v29 }
 0x784   :  { %15580 = vmatpush3.bf16.msra.mxu0 %v16242_v53  ;;  %15602 = vmatpush3.bf16.msra.mxu1 %v16243_v31 }
 0x785   :  { %15581 = vmatprep.subr.bf16.mxu0 %v16244_v9  ;;  %15603 = vmatprep.subr.bf16.mxu1 %v16245_v24 }
 0x788   :  { %15582 = vmatpush3.bf16.msra.mxu0 %v16246_v49  ;;  %15604 = vmatpush3.bf16.msra.mxu1 %v16247_v23 }
 0x789   :  { %15583 = vmatprep.subr.bf16.mxu0 %v16248_v50  ;;  %15605 = vmatprep.subr.bf16.mxu1 %v16249_v12 }
 0x78c   :  { %15584 = vmatpush3.bf16.msra.mxu0 %v16250_v14  ;;  %15606 = vmatpush3.bf16.msra.mxu1 %v16251_v16 }
 0x78d   :  { %15585 = vmatprep.subr.bf16.mxu0 %v16252_v55  ;;  %15607 = vmatprep.subr.bf16.mxu1 %v16253_v52 }
 0x790   :  { %15586 = vmatpush3.bf16.msra.mxu0 %v16254_v20  ;;  %15608 = vmatpush3.bf16.msra.mxu1 %v16255_v56 }
 0x791   :  { %15587 = vmatprep.subr.bf16.mxu0 %v16256_v39  ;;  %15609 = vmatprep.subr.bf16.mxu1 %v16257_v36 }
 0x794   :  { %15588 = vmatpush3.bf16.msra.mxu0 %v16258_v54  ;;  %15610 = vmatpush3.bf16.msra.mxu1 %v16259_v58 }
 0x795   :  { %15589 = vmatprep.subr.bf16.mxu0 %v16260_v19  ;;  %15611 = vmatprep.subr.bf16.mxu1 %v16261_v26 }
 0x798   :  { %15590 = vmatpush3.bf16.msra.mxu0 %v16262_v60  ;;  %15612 = vmatpush3.bf16.msra.mxu1 %v16263_v61 }
 0x84e   :  { %v13209_v38 = vpop.f32.mrb[8].mxu0  ;;  %v13373_v15 = vpop.f32.mrb[8].mxu1 }
 0x84f   :  { %v15627_v59 = vadd.f32 %v13209_v38, %v11755_v6  ;;  %v15629_v21 = vadd.f32 %v13373_v15, %v11763_v7  ;;  %v13211_v22 = vpop.f32.mrb[9].mxu0  ;;  %v13375_v27 = vpop.f32.mrb[9].mxu1 }
 0x850   :  { %v15628_v32 = vadd.f32 %v13211_v22, %v11759_v33  ;;  %v15630_v34 = vadd.f32 %v13375_v27, %v11767_v18  ;;  %v13213_v41 = vpop.f32.mrb[10].mxu0  ;;  %v13377_v35 = vpop.f32.mrb[10].mxu1 }
 0x851   :  { %v13380_v30 = vmax.f32 %v15627_v59, 0.0  ;;  %v13382_v63 = vmax.f32 %v15629_v21, 0.0  ;;  %v13214_v40 = vpop.f32.mrb[11].mxu0  ;;  %v13378_v0 = vpop.f32.mrb[11].mxu1 }
 0x852   :  { %v13381_v57 = vmax.f32 %v15628_v32, 0.0  ;;  %v13383_v8 = vmax.f32 %v15630_v34, 0.0 }
 0x853   :  { %v13384_v44 = vpack.c.bf16 %v13380_v30, %v13380_v30  ;;  %v13386_v37 = vpack.c.bf16 %v13382_v63, %v13382_v63 }
 0x854   :  { %v13385_v3 = vpack.c.bf16 %v13381_v57, %v13381_v57  ;;  %v13387_v62 = vpack.c.bf16 %v13383_v8, %v13383_v8 }
 0x856   :  { %13683 = vmatprep.mubr.bf16.mxu0 %v13385_v3  ;;  %13723 = vmatprep.mubr.bf16.mxu1 %v13387_v62 }
 0x857   :  { %13684 = vmatmul.mubr.bf16.vlgmr.msra.gmra.mrb[12].mxu0 %v13384_v44  ;;  %13724 = vmatmul.mubr.bf16.vlgmr.msra.gmra.mrb[12].mxu1 %v13386_v37 }
 0x92a   :  { %v15591_v42 = vpop.f32.mrb[12].mxu0  ;;  %v15613_v45 = vpop.f32.mrb[12].mxu1 }
 0x92b   :  { %v15592_v4 = vpop.f32.mrb[13].mxu0  ;;  %v15614_v2 = vpop.f32.mrb[13].mxu1 }
 0x92c   :  { %v15593_v17 = vadd.f32 %v15592_v4, %v15591_v42  ;;  %v15615_v51 = vadd.f32 %v15614_v2, %v15613_v45  ;;  %v15594_v5 = vpop.f32.mrb[14].mxu0  ;;  %v15616_v10 = vpop.f32.mrb[14].mxu1 }
 0x92d   :  { %v15595_v48 = vpop.f32.mrb[15].mxu0  ;;  %v15617_v46 = vpop.f32.mrb[15].mxu1 }
 0x92e   :  { %v13686_v25 = vadd.f32 %v15593_v17, %v15542_v28 }
 0x930   :  { %v13726_v47 = vadd.f32 %v15615_v51, %v13686_v25 }
 0x932   :  { %13732 = vst.msk [vmem:[#allocation11] sm:$0x3] %vm13731_vm0, %v13726_v47 }
 0x933   :  { %16386 = shalt.err (!%p16383_p2)
}
 0x934   :  { %s16387_s10 = scalar_lea.hbm %s16960_s7, 32 }
 0x935   :  { %p16388_p3 = scmp.ne.s32.totalorder %s16960_s7, %s16387_s10  ;;  %p16391_p4 = scmp.lt.u32.totalorder %s16387_s10, %s16960_s7 }
 0x937   :  { %p16393_p5 = pnand %p16391_p4, %p16388_p3 }
 0x939   :  { %16396 = shalt.err (!%p16393_p5)
}
 0x93a   :  { %13742 = dma.vmem_to_hbm [thread:$0]  %s13740_s29, 32, %s16960_s7, [#allocation4]  }
 0x93b   :  { %16403 = dma.done.wait [#allocation4], 32  }
 0x93c   :  { %16404 = vsyncadd [#allocation4], 4294967264 }
 0x93d   :  { %13746 = vsyncpa [#allocation3], 1 }
 0x93e   :  { %13747 = vsyncpa [#allocation6], 1 }
 0x93f   :  { %13748 = vsyncpa [#allocation9], 1 }
 0x940   :  { %13749 = vsyncpa [#allocation4], 1 }

</bundles_post_ra>
